<compile_context>
chip_gen: v7x
topology: tpu7x:2x2x1
jax: 0.10.0
libtpu: 0.0.40
codegen_flags: <defaults>
</compile_context>

<pallas_src>
import functools

import jax
import jax.numpy as jnp
from jax import lax
from jax.experimental import pallas as pl
from jax.experimental.pallas import tpu as pltpu


LANE = 128      # pad E / H / V to multiples of this (lane width)
SUBLANE = 8     # pad batch to multiples of this (sublane width)
NEG = -1e30     # "minus infinity" planted in padded vocab columns of b_out


def _round_up(x, m):
    return (x + m - 1) // m * m


# ----------------------------- LSTM gate math ------------------------------

def _gates_to_hc(gates, c, H):
    """PyTorch gate order i | f | g | o; H is lane-padded so every gate slice
    starts on a 128-lane boundary (free slicing)."""
    i = jax.nn.sigmoid(gates[:, 0 * H:1 * H])
    f = jax.nn.sigmoid(gates[:, 1 * H:2 * H])
    g = jnp.tanh(gates[:, 2 * H:3 * H])
    o = jax.nn.sigmoid(gates[:, 3 * H:4 * H])
    c_new = f * c + i * g
    h_new = o * jnp.tanh(c_new)
    return h_new, c_new


# ----------------------------- Encoder kernel ------------------------------

def _make_encoder_call(T, Bp, Ep, Hp):
    """Single invocation: whole (T*Bp, Ep) embedded source resident in VMEM,
    input projection hoisted, serial h-recurrence fully unrolled in-kernel."""
    G = 4 * Hp

    def encoder_kernel(x_ref, wih_ref, whh_ref, b_ref, h_ref, c_ref, xw_ref):
        # Hoisted input-side projection: one big matmul -> VMEM scratch.
        xw_ref[...] = (jnp.dot(x_ref[...], wih_ref[...],
                               preferred_element_type=jnp.float32)
                       + b_ref[...])

        def step(t, carry):
            h, c = carry
            row = pl.multiple_of(t * Bp, SUBLANE)
            gates = (xw_ref[pl.ds(row, Bp), :]
                     + jnp.dot(h, whh_ref[...],
                               preferred_element_type=jnp.float32))
            return _gates_to_hc(gates, c, Hp)

        h0 = jnp.zeros((Bp, Hp), jnp.float32)
        c0 = jnp.zeros((Bp, Hp), jnp.float32)
        h, c = lax.fori_loop(0, T, step, (h0, c0), unroll=True)
        h_ref[...] = h
        c_ref[...] = c

    return pl.pallas_call(
        encoder_kernel,
        out_shape=(jax.ShapeDtypeStruct((Bp, Hp), jnp.float32),
                   jax.ShapeDtypeStruct((Bp, Hp), jnp.float32)),
        scratch_shapes=[pltpu.VMEM((T * Bp, G), jnp.float32)],
    )


# ------------------- Fused decoder (one invocation, no grid) ----------------

def _make_decoder_call(tgt_len, Bp, Vp, Hp, Ep):
    """The entire decode loop (LSTM step, projection, greedy argmax, teacher
    forcing) runs inside one kernel invocation."""

    def decoder_kernel(force_ref,                         # SMEM: force bits
                       h0_ref, c0_ref, xtf_ref, emb_ref,  # VMEM inputs
                       w_ref, b_ref, wout_ref, bout_ref,
                       out_ref):                          # (tgt_len, Bp, Vp)
        lane = lax.broadcasted_iota(jnp.int32, (Bp, Vp), 1)
        out_ref[0] = jnp.zeros((Bp, Vp), jnp.float32)     # outputs[:, 0] = 0

        def step(t, carry):
            h, c, x = carry
            # Fused gate matmul: [x, h] (Bp, Ep+Hp) @ [W_ih; W_hh] — K = 256.
            xh = jnp.concatenate([x, h], axis=1)
            gates = (jnp.dot(xh, w_ref[...],
                             preferred_element_type=jnp.float32)
                     + b_ref[...])
            h_new, c_new = _gates_to_hc(gates, c, Hp)

            logits = (jnp.dot(h_new, wout_ref[...],
                              preferred_element_type=jnp.float32)
                      + bout_ref[...])          # padded cols carry -1e30 bias
            out_ref[t] = logits

            # Greedy argmax, torch-style first-max (no lane<V mask needed:
            # padded vocab columns sit at -1e30 via b_out padding).
            max_val = jnp.max(logits, axis=1, keepdims=True)
            first_idx = jnp.min(jnp.where(logits == max_val, lane, Vp),
                                axis=1, keepdims=True)
            top_oh = (lane == first_idx).astype(jnp.float32)
            # Embedding "gather" of the greedy token on the MXU.
            x_greedy = jnp.dot(top_oh, emb_ref[...],
                               preferred_element_type=jnp.float32)

            # Teacher-forcing blend in embedding space (scalar force bit).
            fbit = force_ref[t].astype(jnp.float32)
            x_next = fbit * xtf_ref[t] + (1.0 - fbit) * x_greedy
            return h_new, c_new, x_next

        lax.fori_loop(1, tgt_len, step,
                      (h0_ref[...], c0_ref[...], xtf_ref[0]),  # input = tgt[:,0]
                      unroll=True)

    vm = pltpu.MemorySpace.VMEM
    sm = pltpu.MemorySpace.SMEM
    return pl.pallas_call(
        decoder_kernel,
        out_shape=jax.ShapeDtypeStruct((tgt_len, Bp, Vp), jnp.float32),
        in_specs=[pl.BlockSpec(memory_space=sm)]        # force bits
                 + [pl.BlockSpec(memory_space=vm)] * 8, # everything else
        out_specs=pl.BlockSpec(memory_space=vm),
    )


# ------------------------------ Params & padding ----------------------------

def init_params(key, src_vocab, tgt_vocab, emb_dim, hidden):
    ks = jax.random.split(key, 10)
    s = 1.0 / jnp.sqrt(hidden)
    u = lambda k, shp, sc: jax.random.uniform(k, shp, jnp.float32, -sc, sc)
    return dict(
        enc_emb=u(ks[0], (src_vocab, emb_dim), 1.0),
        enc_wih=u(ks[1], (emb_dim, 4 * hidden), s),
        enc_whh=u(ks[2], (hidden, 4 * hidden), s),
        enc_b=u(ks[3], (1, 4 * hidden), s),
        dec_emb=u(ks[4], (tgt_vocab, emb_dim), 1.0),
        dec_wih=u(ks[5], (emb_dim, 4 * hidden), s),
        dec_whh=u(ks[6], (hidden, 4 * hidden), s),
        dec_b=u(ks[7], (1, 4 * hidden), s),
        dec_wout=u(ks[8], (hidden, tgt_vocab), s),
        dec_bout=u(ks[9], (1, tgt_vocab), s),
    )


def _pad_axis(x, axis, new_size):
    pad = [(0, 0)] * x.ndim
    pad[axis] = (0, new_size - x.shape[axis])
    return jnp.pad(x, pad)


def _pad_gates(w, H, Hp):
    """Pad the last dim (4*H, gate order i|f|g|o) to 4*Hp per-gate so each
    gate block starts at a 128-lane boundary."""
    lead = w.shape[:-1]
    w4 = w.reshape(lead + (4, H))
    w4 = jnp.pad(w4, [(0, 0)] * len(lead) + [(0, 0), (0, Hp - H)])
    return w4.reshape(lead + (4 * Hp,))


def pad_params(p, emb_dim, hidden, tgt_vocab):
    Ep = _round_up(emb_dim, LANE)
    Hp = _round_up(hidden, LANE)
    Vp = _round_up(tgt_vocab, LANE)
    dec_wih = _pad_axis(_pad_gates(p["dec_wih"], hidden, Hp), 0, Ep)  # (Ep, 4Hp)
    dec_whh = _pad_axis(_pad_gates(p["dec_whh"], hidden, Hp), 0, Hp)  # (Hp, 4Hp)
    return dict(
        enc_emb=_pad_axis(p["enc_emb"], 1, Ep),
        enc_wih=_pad_axis(_pad_gates(p["enc_wih"], hidden, Hp), 0, Ep),
        enc_whh=_pad_axis(_pad_gates(p["enc_whh"], hidden, Hp), 0, Hp),
        enc_b=_pad_gates(p["enc_b"], hidden, Hp),
        dec_emb=_pad_axis(_pad_axis(p["dec_emb"], 1, Ep), 0, Vp),
        # Stacked [W_ih; W_hh] so the decoder does one K=256 gate matmul.
        dec_w=jnp.concatenate([dec_wih, dec_whh], axis=0),            # (Ep+Hp, 4Hp)
        dec_b=_pad_gates(p["dec_b"], hidden, Hp),
        dec_wout=_pad_axis(_pad_axis(p["dec_wout"], 1, Vp), 0, Hp),
        # Padded vocab columns get -1e30 so the in-kernel argmax never needs
        # a lane<V mask; these columns are sliced off in the wrapper.
        dec_bout=jnp.pad(p["dec_bout"], ((0, 0), (0, Vp - tgt_vocab)),
                         constant_values=NEG),
    )


# ------------------------------- Seq2Seq forward ----------------------------

@functools.partial(jax.jit, static_argnames=("teacher_forcing_ratio",))
def seq2seq_forward(params, src, tgt, tf_key, teacher_forcing_ratio=0.5):
    """Mirrors Seq2Seq.forward (LSTM branch). Returns (B, tgt_len, V)."""
    B, src_len = src.shape
    _, tgt_len = tgt.shape
    E = params["enc_emb"].shape[1]
    H = params["enc_whh"].shape[0]
    V = params["dec_wout"].shape[1]

    Bp = _round_up(B, SUBLANE)
    Ep = _round_up(E, LANE)
    Hp = _round_up(H, LANE)
    Vp = _round_up(V, LANE)

    p = pad_params(params, E, H, V)

    # ---- Encoder: embedding gather in XLA, LSTM scan in one Pallas call ----
    src_emb = jnp.take(p["enc_emb"], src, axis=0)           # (B, T, Ep)
    x_tm = jnp.transpose(src_emb, (1, 0, 2))                # (T, B, Ep)
    x_tm = _pad_axis(x_tm, 1, Bp)                           # (T, Bp, Ep)
    x_flat = x_tm.reshape(src_len * Bp, Ep)                 # (T*Bp, Ep)
    encode = _make_encoder_call(src_len, Bp, Ep, Hp)
    h0, c0 = encode(x_flat, p["enc_wih"], p["enc_whh"], p["enc_b"])

    # ---- Teacher-forcing decisions ----
    # TODO(synk): torch draws python random.random() per step; here the force
    # bits come deterministically from a jax PRNGKey (won't bit-match torch).
    force = (jax.random.uniform(tf_key, (tgt_len,))
             < teacher_forcing_ratio).astype(jnp.int32)

    # ---- Pre-gathered teacher embeddings (replaces in-kernel one-hot) ----
    tf_emb = jnp.take(p["dec_emb"], tgt.T.astype(jnp.int32), axis=0)  # (T, B, Ep)
    tf_emb = _pad_axis(tf_emb, 1, Bp)                                 # (T, Bp, Ep)

    # ---- Fused decoder: entire teacher-forced greedy loop in one kernel ----
    decode = _make_decoder_call(tgt_len, Bp, Vp, Hp, Ep)
    out_tm = decode(force, h0, c0, tf_emb, p["dec_emb"], p["dec_w"],
                    p["dec_b"], p["dec_wout"], p["dec_bout"])
    # (tgt_len, Bp, Vp) -> (B, tgt_len, V); row t=0 was zeroed in-kernel.
    return jnp.transpose(out_tm, (1, 0, 2))[:B, :, :V]


# ----------------------------------- main -----------------------------------

if __name__ == "__main__":
    B, SRC_T, TGT_T = 4, 8, 8
    EMB, HID = 16, 32
    SRC_V, TGT_V = 24, 24

    root = jax.random.PRNGKey(0)
    k_par, k_src, k_tgt, k_tf = jax.random.split(root, 4)

    params = init_params(k_par, SRC_V, TGT_V, EMB, HID)
    src = jax.random.randint(k_src, (B, SRC_T), 0, SRC_V, dtype=jnp.int32)
    tgt = jax.random.randint(k_tgt, (B, TGT_T), 0, TGT_V, dtype=jnp.int32)

    out = seq2seq_forward(params, src, tgt, k_tf, teacher_forcing_ratio=0.5)
    jax.block_until_ready(out)
    assert out.shape == (B, TGT_T, TGT_V)
    print("KERNEL_OK")
</pallas_src>

<mosaic_0001>
module attributes {stable_mosaic.version = 11 : i64} {
  func.func @encoder_kernel(%arg0: memref<64x128xf32, #tpu.memory_space<vmem>>, %arg1: memref<128x512xf32, #tpu.memory_space<vmem>>, %arg2: memref<128x512xf32, #tpu.memory_space<vmem>>, %arg3: memref<1x512xf32, #tpu.memory_space<vmem>>, %arg4: memref<8x128xf32, #tpu.memory_space<vmem>>, %arg5: memref<8x128xf32, #tpu.memory_space<vmem>>, %arg6: memref<64x512xf32, #tpu.memory_space<vmem>>) attributes {dimension_semantics = [], scalar_prefetch = 0 : i64, scratch_operands = 1 : i64, tpu.core_type = #tpu.core_type<tc>} {
    %c0 = arith.constant 0 : index
    %c0_0 = arith.constant 0 : index
    %0 = vector.load %arg0[%c0, %c0_0] : memref<64x128xf32, #tpu.memory_space<vmem>>, vector<64x128xf32>
    %c0_1 = arith.constant 0 : index
    %c0_2 = arith.constant 0 : index
    %1 = vector.load %arg1[%c0_1, %c0_2] : memref<128x512xf32, #tpu.memory_space<vmem>>, vector<128x512xf32>
    %cst = arith.constant dense<0.000000e+00> : vector<64x512xf32>
    %2 = tpu.matmul %0, %1, %cst {dimension_numbers = #tpu.dot_dimension_numbers<[1], [0], [0], [1], [0, 0, 1, 1], [], []>} : vector<64x128xf32>, vector<128x512xf32>, vector<64x512xf32> -> vector<64x512xf32>
    %c0_3 = arith.constant 0 : index
    %c0_4 = arith.constant 0 : index
    %3 = vector.load %arg3[%c0_3, %c0_4] : memref<1x512xf32, #tpu.memory_space<vmem>>, vector<1x512xf32>
    %4 = vector.broadcast %3 : vector<1x512xf32> to vector<64x512xf32>
    %5 = arith.addf %2, %4 : vector<64x512xf32>
    %c0_5 = arith.constant 0 : index
    %c0_6 = arith.constant 0 : index
    %6 = vector.load %arg6[%c0_5, %c0_6] : memref<64x512xf32, #tpu.memory_space<vmem>>, vector<64x512xf32>
    tpu.vector_store %arg6[%c0_5, %c0_6], %5 {strides = array<i32>} : memref<64x512xf32, #tpu.memory_space<vmem>>, vector<64x512xf32>,
    %cst_7 = arith.constant 0.000000e+00 : f32
    %7 = vector.broadcast %cst_7 : f32 to vector<8x128xf32>
    %cst_8 = arith.constant 0.000000e+00 : f32
    %8 = vector.broadcast %cst_8 : f32 to vector<8x128xf32>
    %c0_i32 = arith.constant 0 : i32
    %c8_i32 = arith.constant 8 : i32
    %9 = arith.muli %c0_i32, %c8_i32 : i32
    %10 = tpu.assume_multiple %9, 8 : i32
    %11 = arith.index_cast %10 : i32 to index
    %c0_9 = arith.constant 0 : index
    %12 = vector.load %arg6[%11, %c0_9] : memref<64x512xf32, #tpu.memory_space<vmem>>, vector<8x512xf32>
    %c0_10 = arith.constant 0 : index
    %c0_11 = arith.constant 0 : index
    %13 = vector.load %arg2[%c0_10, %c0_11] : memref<128x512xf32, #tpu.memory_space<vmem>>, vector<128x512xf32>
    %cst_12 = arith.constant dense<0.000000e+00> : vector<8x512xf32>
    %14 = tpu.matmul %7, %13, %cst_12 {dimension_numbers = #tpu.dot_dimension_numbers<[1], [0], [0], [1], [0, 0, 1, 1], [], []>} : vector<8x128xf32>, vector<128x512xf32>, vector<8x512xf32> -> vector<8x512xf32>
    %15 = arith.addf %12, %14 : vector<8x512xf32>
    %16 = vector.extract_strided_slice %15 {offsets = [0, 0], sizes = [8, 128], strides = [1, 1]} : vector<8x512xf32> to vector<8x128xf32>
    %17 = arith.negf %16 : vector<8x128xf32>
    %18 = math.exp %17 : vector<8x128xf32>
    %cst_13 = arith.constant 1.000000e+00 : f32
    %19 = vector.broadcast %cst_13 : f32 to vector<8x128xf32>
    %20 = arith.addf %19, %18 : vector<8x128xf32>
    %21 = arith.divf %19, %20 : vector<8x128xf32>
    %22 = vector.extract_strided_slice %15 {offsets = [0, 128], sizes = [8, 128], strides = [1, 1]} : vector<8x512xf32> to vector<8x128xf32>
    %23 = arith.negf %22 : vector<8x128xf32>
    %24 = math.exp %23 : vector<8x128xf32>
    %cst_14 = arith.constant 1.000000e+00 : f32
    %25 = vector.broadcast %cst_14 : f32 to vector<8x128xf32>
    %26 = arith.addf %25, %24 : vector<8x128xf32>
    %27 = arith.divf %25, %26 : vector<8x128xf32>
    %28 = vector.extract_strided_slice %15 {offsets = [0, 256], sizes = [8, 128], strides = [1, 1]} : vector<8x512xf32> to vector<8x128xf32>
    %29 = math.tanh %28 : vector<8x128xf32>
    %30 = vector.extract_strided_slice %15 {offsets = [0, 384], sizes = [8, 128], strides = [1, 1]} : vector<8x512xf32> to vector<8x128xf32>
    %31 = arith.negf %30 : vector<8x128xf32>
    %32 = math.exp %31 : vector<8x128xf32>
    %cst_15 = arith.constant 1.000000e+00 : f32
    %33 = vector.broadcast %cst_15 : f32 to vector<8x128xf32>
    %34 = arith.addf %33, %32 : vector<8x128xf32>
    %35 = arith.divf %33, %34 : vector<8x128xf32>
    %36 = arith.mulf %27, %8 : vector<8x128xf32>
    %37 = arith.mulf %21, %29 : vector<8x128xf32>
    %38 = arith.addf %36, %37 : vector<8x128xf32>
    %39 = math.tanh %38 : vector<8x128xf32>
    %40 = arith.mulf %35, %39 : vector<8x128xf32>
    %c1_i32 = arith.constant 1 : i32
    %c8_i32_16 = arith.constant 8 : i32
    %41 = arith.muli %c1_i32, %c8_i32_16 : i32
    %42 = tpu.assume_multiple %41, 8 : i32
    %43 = arith.index_cast %42 : i32 to index
    %c0_17 = arith.constant 0 : index
    %44 = vector.load %arg6[%43, %c0_17] : memref<64x512xf32, #tpu.memory_space<vmem>>, vector<8x512xf32>
    %c0_18 = arith.constant 0 : index
    %c0_19 = arith.constant 0 : index
    %45 = vector.load %arg2[%c0_18, %c0_19] : memref<128x512xf32, #tpu.memory_space<vmem>>, vector<128x512xf32>
    %cst_20 = arith.constant dense<0.000000e+00> : vector<8x512xf32>
    %46 = tpu.matmul %40, %45, %cst_20 {dimension_numbers = #tpu.dot_dimension_numbers<[1], [0], [0], [1], [0, 0, 1, 1], [], []>} : vector<8x128xf32>, vector<128x512xf32>, vector<8x512xf32> -> vector<8x512xf32>
    %47 = arith.addf %44, %46 : vector<8x512xf32>
    %48 = vector.extract_strided_slice %47 {offsets = [0, 0], sizes = [8, 128], strides = [1, 1]} : vector<8x512xf32> to vector<8x128xf32>
    %49 = arith.negf %48 : vector<8x128xf32>
    %50 = math.exp %49 : vector<8x128xf32>
    %cst_21 = arith.constant 1.000000e+00 : f32
    %51 = vector.broadcast %cst_21 : f32 to vector<8x128xf32>
    %52 = arith.addf %51, %50 : vector<8x128xf32>
    %53 = arith.divf %51, %52 : vector<8x128xf32>
    %54 = vector.extract_strided_slice %47 {offsets = [0, 128], sizes = [8, 128], strides = [1, 1]} : vector<8x512xf32> to vector<8x128xf32>
    %55 = arith.negf %54 : vector<8x128xf32>
    %56 = math.exp %55 : vector<8x128xf32>
    %cst_22 = arith.constant 1.000000e+00 : f32
    %57 = vector.broadcast %cst_22 : f32 to vector<8x128xf32>
    %58 = arith.addf %57, %56 : vector<8x128xf32>
    %59 = arith.divf %57, %58 : vector<8x128xf32>
    %60 = vector.extract_strided_slice %47 {offsets = [0, 256], sizes = [8, 128], strides = [1, 1]} : vector<8x512xf32> to vector<8x128xf32>
    %61 = math.tanh %60 : vector<8x128xf32>
    %62 = vector.extract_strided_slice %47 {offsets = [0, 384], sizes = [8, 128], strides = [1, 1]} : vector<8x512xf32> to vector<8x128xf32>
    %63 = arith.negf %62 : vector<8x128xf32>
    %64 = math.exp %63 : vector<8x128xf32>
    %cst_23 = arith.constant 1.000000e+00 : f32
    %65 = vector.broadcast %cst_23 : f32 to vector<8x128xf32>
    %66 = arith.addf %65, %64 : vector<8x128xf32>
    %67 = arith.divf %65, %66 : vector<8x128xf32>
    %68 = arith.mulf %59, %38 : vector<8x128xf32>
    %69 = arith.mulf %53, %61 : vector<8x128xf32>
    %70 = arith.addf %68, %69 : vector<8x128xf32>
    %71 = math.tanh %70 : vector<8x128xf32>
    %72 = arith.mulf %67, %71 : vector<8x128xf32>
    %c2_i32 = arith.constant 2 : i32
    %c8_i32_24 = arith.constant 8 : i32
    %73 = arith.muli %c2_i32, %c8_i32_24 : i32
    %74 = tpu.assume_multiple %73, 8 : i32
    %75 = arith.index_cast %74 : i32 to index
    %c0_25 = arith.constant 0 : index
    %76 = vector.load %arg6[%75, %c0_25] : memref<64x512xf32, #tpu.memory_space<vmem>>, vector<8x512xf32>
    %c0_26 = arith.constant 0 : index
    %c0_27 = arith.constant 0 : index
    %77 = vector.load %arg2[%c0_26, %c0_27] : memref<128x512xf32, #tpu.memory_space<vmem>>, vector<128x512xf32>
    %cst_28 = arith.constant dense<0.000000e+00> : vector<8x512xf32>
    %78 = tpu.matmul %72, %77, %cst_28 {dimension_numbers = #tpu.dot_dimension_numbers<[1], [0], [0], [1], [0, 0, 1, 1], [], []>} : vector<8x128xf32>, vector<128x512xf32>, vector<8x512xf32> -> vector<8x512xf32>
    %79 = arith.addf %76, %78 : vector<8x512xf32>
    %80 = vector.extract_strided_slice %79 {offsets = [0, 0], sizes = [8, 128], strides = [1, 1]} : vector<8x512xf32> to vector<8x128xf32>
    %81 = arith.negf %80 : vector<8x128xf32>
    %82 = math.exp %81 : vector<8x128xf32>
    %cst_29 = arith.constant 1.000000e+00 : f32
    %83 = vector.broadcast %cst_29 : f32 to vector<8x128xf32>
    %84 = arith.addf %83, %82 : vector<8x128xf32>
    %85 = arith.divf %83, %84 : vector<8x128xf32>
    %86 = vector.extract_strided_slice %79 {offsets = [0, 128], sizes = [8, 128], strides = [1, 1]} : vector<8x512xf32> to vector<8x128xf32>
    %87 = arith.negf %86 : vector<8x128xf32>
    %88 = math.exp %87 : vector<8x128xf32>
    %cst_30 = arith.constant 1.000000e+00 : f32
    %89 = vector.broadcast %cst_30 : f32 to vector<8x128xf32>
    %90 = arith.addf %89, %88 : vector<8x128xf32>
    %91 = arith.divf %89, %90 : vector<8x128xf32>
    %92 = vector.extract_strided_slice %79 {offsets = [0, 256], sizes = [8, 128], strides = [1, 1]} : vector<8x512xf32> to vector<8x128xf32>
    %93 = math.tanh %92 : vector<8x128xf32>
    %94 = vector.extract_strided_slice %79 {offsets = [0, 384], sizes = [8, 128], strides = [1, 1]} : vector<8x512xf32> to vector<8x128xf32>
    %95 = arith.negf %94 : vector<8x128xf32>
    %96 = math.exp %95 : vector<8x128xf32>
    %cst_31 = arith.constant 1.000000e+00 : f32
    %97 = vector.broadcast %cst_31 : f32 to vector<8x128xf32>
    %98 = arith.addf %97, %96 : vector<8x128xf32>
    %99 = arith.divf %97, %98 : vector<8x128xf32>
    %100 = arith.mulf %91, %70 : vector<8x128xf32>
    %101 = arith.mulf %85, %93 : vector<8x128xf32>
    %102 = arith.addf %100, %101 : vector<8x128xf32>
    %103 = math.tanh %102 : vector<8x128xf32>
    %104 = arith.mulf %99, %103 : vector<8x128xf32>
    %c3_i32 = arith.constant 3 : i32
    %c8_i32_32 = arith.constant 8 : i32
    %105 = arith.muli %c3_i32, %c8_i32_32 : i32
    %106 = tpu.assume_multiple %105, 8 : i32
    %107 = arith.index_cast %106 : i32 to index
    %c0_33 = arith.constant 0 : index
    %108 = vector.load %arg6[%107, %c0_33] : memref<64x512xf32, #tpu.memory_space<vmem>>, vector<8x512xf32>
    %c0_34 = arith.constant 0 : index
    %c0_35 = arith.constant 0 : index
    %109 = vector.load %arg2[%c0_34, %c0_35] : memref<128x512xf32, #tpu.memory_space<vmem>>, vector<128x512xf32>
    %cst_36 = arith.constant dense<0.000000e+00> : vector<8x512xf32>
    %110 = tpu.matmul %104, %109, %cst_36 {dimension_numbers = #tpu.dot_dimension_numbers<[1], [0], [0], [1], [0, 0, 1, 1], [], []>} : vector<8x128xf32>, vector<128x512xf32>, vector<8x512xf32> -> vector<8x512xf32>
    %111 = arith.addf %108, %110 : vector<8x512xf32>
    %112 = vector.extract_strided_slice %111 {offsets = [0, 0], sizes = [8, 128], strides = [1, 1]} : vector<8x512xf32> to vector<8x128xf32>
    %113 = arith.negf %112 : vector<8x128xf32>
    %114 = math.exp %113 : vector<8x128xf32>
    %cst_37 = arith.constant 1.000000e+00 : f32
    %115 = vector.broadcast %cst_37 : f32 to vector<8x128xf32>
    %116 = arith.addf %115, %114 : vector<8x128xf32>
    %117 = arith.divf %115, %116 : vector<8x128xf32>
    %118 = vector.extract_strided_slice %111 {offsets = [0, 128], sizes = [8, 128], strides = [1, 1]} : vector<8x512xf32> to vector<8x128xf32>
    %119 = arith.negf %118 : vector<8x128xf32>
    %120 = math.exp %119 : vector<8x128xf32>
    %cst_38 = arith.constant 1.000000e+00 : f32
    %121 = vector.broadcast %cst_38 : f32 to vector<8x128xf32>
    %122 = arith.addf %121, %120 : vector<8x128xf32>
    %123 = arith.divf %121, %122 : vector<8x128xf32>
    %124 = vector.extract_strided_slice %111 {offsets = [0, 256], sizes = [8, 128], strides = [1, 1]} : vector<8x512xf32> to vector<8x128xf32>
    %125 = math.tanh %124 : vector<8x128xf32>
    %126 = vector.extract_strided_slice %111 {offsets = [0, 384], sizes = [8, 128], strides = [1, 1]} : vector<8x512xf32> to vector<8x128xf32>
    %127 = arith.negf %126 : vector<8x128xf32>
    %128 = math.exp %127 : vector<8x128xf32>
    %cst_39 = arith.constant 1.000000e+00 : f32
    %129 = vector.broadcast %cst_39 : f32 to vector<8x128xf32>
    %130 = arith.addf %129, %128 : vector<8x128xf32>
    %131 = arith.divf %129, %130 : vector<8x128xf32>
    %132 = arith.mulf %123, %102 : vector<8x128xf32>
    %133 = arith.mulf %117, %125 : vector<8x128xf32>
    %134 = arith.addf %132, %133 : vector<8x128xf32>
    %135 = math.tanh %134 : vector<8x128xf32>
    %136 = arith.mulf %131, %135 : vector<8x128xf32>
    %c4_i32 = arith.constant 4 : i32
    %c8_i32_40 = arith.constant 8 : i32
    %137 = arith.muli %c4_i32, %c8_i32_40 : i32
    %138 = tpu.assume_multiple %137, 8 : i32
    %139 = arith.index_cast %138 : i32 to index
    %c0_41 = arith.constant 0 : index
    %140 = vector.load %arg6[%139, %c0_41] : memref<64x512xf32, #tpu.memory_space<vmem>>, vector<8x512xf32>
    %c0_42 = arith.constant 0 : index
    %c0_43 = arith.constant 0 : index
    %141 = vector.load %arg2[%c0_42, %c0_43] : memref<128x512xf32, #tpu.memory_space<vmem>>, vector<128x512xf32>
    %cst_44 = arith.constant dense<0.000000e+00> : vector<8x512xf32>
    %142 = tpu.matmul %136, %141, %cst_44 {dimension_numbers = #tpu.dot_dimension_numbers<[1], [0], [0], [1], [0, 0, 1, 1], [], []>} : vector<8x128xf32>, vector<128x512xf32>, vector<8x512xf32> -> vector<8x512xf32>
    %143 = arith.addf %140, %142 : vector<8x512xf32>
    %144 = vector.extract_strided_slice %143 {offsets = [0, 0], sizes = [8, 128], strides = [1, 1]} : vector<8x512xf32> to vector<8x128xf32>
    %145 = arith.negf %144 : vector<8x128xf32>
    %146 = math.exp %145 : vector<8x128xf32>
    %cst_45 = arith.constant 1.000000e+00 : f32
    %147 = vector.broadcast %cst_45 : f32 to vector<8x128xf32>
    %148 = arith.addf %147, %146 : vector<8x128xf32>
    %149 = arith.divf %147, %148 : vector<8x128xf32>
    %150 = vector.extract_strided_slice %143 {offsets = [0, 128], sizes = [8, 128], strides = [1, 1]} : vector<8x512xf32> to vector<8x128xf32>
    %151 = arith.negf %150 : vector<8x128xf32>
    %152 = math.exp %151 : vector<8x128xf32>
    %cst_46 = arith.constant 1.000000e+00 : f32
    %153 = vector.broadcast %cst_46 : f32 to vector<8x128xf32>
    %154 = arith.addf %153, %152 : vector<8x128xf32>
    %155 = arith.divf %153, %154 : vector<8x128xf32>
    %156 = vector.extract_strided_slice %143 {offsets = [0, 256], sizes = [8, 128], strides = [1, 1]} : vector<8x512xf32> to vector<8x128xf32>
    %157 = math.tanh %156 : vector<8x128xf32>
    %158 = vector.extract_strided_slice %143 {offsets = [0, 384], sizes = [8, 128], strides = [1, 1]} : vector<8x512xf32> to vector<8x128xf32>
    %159 = arith.negf %158 : vector<8x128xf32>
    %160 = math.exp %159 : vector<8x128xf32>
    %cst_47 = arith.constant 1.000000e+00 : f32
    %161 = vector.broadcast %cst_47 : f32 to vector<8x128xf32>
    %162 = arith.addf %161, %160 : vector<8x128xf32>
    %163 = arith.divf %161, %162 : vector<8x128xf32>
    %164 = arith.mulf %155, %134 : vector<8x128xf32>
    %165 = arith.mulf %149, %157 : vector<8x128xf32>
    %166 = arith.addf %164, %165 : vector<8x128xf32>
    %167 = math.tanh %166 : vector<8x128xf32>
    %168 = arith.mulf %163, %167 : vector<8x128xf32>
    %c5_i32 = arith.constant 5 : i32
    %c8_i32_48 = arith.constant 8 : i32
    %169 = arith.muli %c5_i32, %c8_i32_48 : i32
    %170 = tpu.assume_multiple %169, 8 : i32
    %171 = arith.index_cast %170 : i32 to index
    %c0_49 = arith.constant 0 : index
    %172 = vector.load %arg6[%171, %c0_49] : memref<64x512xf32, #tpu.memory_space<vmem>>, vector<8x512xf32>
    %c0_50 = arith.constant 0 : index
    %c0_51 = arith.constant 0 : index
    %173 = vector.load %arg2[%c0_50, %c0_51] : memref<128x512xf32, #tpu.memory_space<vmem>>, vector<128x512xf32>
    %cst_52 = arith.constant dense<0.000000e+00> : vector<8x512xf32>
    %174 = tpu.matmul %168, %173, %cst_52 {dimension_numbers = #tpu.dot_dimension_numbers<[1], [0], [0], [1], [0, 0, 1, 1], [], []>} : vector<8x128xf32>, vector<128x512xf32>, vector<8x512xf32> -> vector<8x512xf32>
    %175 = arith.addf %172, %174 : vector<8x512xf32>
    %176 = vector.extract_strided_slice %175 {offsets = [0, 0], sizes = [8, 128], strides = [1, 1]} : vector<8x512xf32> to vector<8x128xf32>
    %177 = arith.negf %176 : vector<8x128xf32>
    %178 = math.exp %177 : vector<8x128xf32>
    %cst_53 = arith.constant 1.000000e+00 : f32
    %179 = vector.broadcast %cst_53 : f32 to vector<8x128xf32>
    %180 = arith.addf %179, %178 : vector<8x128xf32>
    %181 = arith.divf %179, %180 : vector<8x128xf32>
    %182 = vector.extract_strided_slice %175 {offsets = [0, 128], sizes = [8, 128], strides = [1, 1]} : vector<8x512xf32> to vector<8x128xf32>
    %183 = arith.negf %182 : vector<8x128xf32>
    %184 = math.exp %183 : vector<8x128xf32>
    %cst_54 = arith.constant 1.000000e+00 : f32
    %185 = vector.broadcast %cst_54 : f32 to vector<8x128xf32>
    %186 = arith.addf %185, %184 : vector<8x128xf32>
    %187 = arith.divf %185, %186 : vector<8x128xf32>
    %188 = vector.extract_strided_slice %175 {offsets = [0, 256], sizes = [8, 128], strides = [1, 1]} : vector<8x512xf32> to vector<8x128xf32>
    %189 = math.tanh %188 : vector<8x128xf32>
    %190 = vector.extract_strided_slice %175 {offsets = [0, 384], sizes = [8, 128], strides = [1, 1]} : vector<8x512xf32> to vector<8x128xf32>
    %191 = arith.negf %190 : vector<8x128xf32>
    %192 = math.exp %191 : vector<8x128xf32>
    %cst_55 = arith.constant 1.000000e+00 : f32
    %193 = vector.broadcast %cst_55 : f32 to vector<8x128xf32>
    %194 = arith.addf %193, %192 : vector<8x128xf32>
    %195 = arith.divf %193, %194 : vector<8x128xf32>
    %196 = arith.mulf %187, %166 : vector<8x128xf32>
    %197 = arith.mulf %181, %189 : vector<8x128xf32>
    %198 = arith.addf %196, %197 : vector<8x128xf32>
    %199 = math.tanh %198 : vector<8x128xf32>
    %200 = arith.mulf %195, %199 : vector<8x128xf32>
    %c6_i32 = arith.constant 6 : i32
    %c8_i32_56 = arith.constant 8 : i32
    %201 = arith.muli %c6_i32, %c8_i32_56 : i32
    %202 = tpu.assume_multiple %201, 8 : i32
    %203 = arith.index_cast %202 : i32 to index
    %c0_57 = arith.constant 0 : index
    %204 = vector.load %arg6[%203, %c0_57] : memref<64x512xf32, #tpu.memory_space<vmem>>, vector<8x512xf32>
    %c0_58 = arith.constant 0 : index
    %c0_59 = arith.constant 0 : index
    %205 = vector.load %arg2[%c0_58, %c0_59] : memref<128x512xf32, #tpu.memory_space<vmem>>, vector<128x512xf32>
    %cst_60 = arith.constant dense<0.000000e+00> : vector<8x512xf32>
    %206 = tpu.matmul %200, %205, %cst_60 {dimension_numbers = #tpu.dot_dimension_numbers<[1], [0], [0], [1], [0, 0, 1, 1], [], []>} : vector<8x128xf32>, vector<128x512xf32>, vector<8x512xf32> -> vector<8x512xf32>
    %207 = arith.addf %204, %206 : vector<8x512xf32>
    %208 = vector.extract_strided_slice %207 {offsets = [0, 0], sizes = [8, 128], strides = [1, 1]} : vector<8x512xf32> to vector<8x128xf32>
    %209 = arith.negf %208 : vector<8x128xf32>
    %210 = math.exp %209 : vector<8x128xf32>
    %cst_61 = arith.constant 1.000000e+00 : f32
    %211 = vector.broadcast %cst_61 : f32 to vector<8x128xf32>
    %212 = arith.addf %211, %210 : vector<8x128xf32>
    %213 = arith.divf %211, %212 : vector<8x128xf32>
    %214 = vector.extract_strided_slice %207 {offsets = [0, 128], sizes = [8, 128], strides = [1, 1]} : vector<8x512xf32> to vector<8x128xf32>
    %215 = arith.negf %214 : vector<8x128xf32>
    %216 = math.exp %215 : vector<8x128xf32>
    %cst_62 = arith.constant 1.000000e+00 : f32
    %217 = vector.broadcast %cst_62 : f32 to vector<8x128xf32>
    %218 = arith.addf %217, %216 : vector<8x128xf32>
    %219 = arith.divf %217, %218 : vector<8x128xf32>
    %220 = vector.extract_strided_slice %207 {offsets = [0, 256], sizes = [8, 128], strides = [1, 1]} : vector<8x512xf32> to vector<8x128xf32>
    %221 = math.tanh %220 : vector<8x128xf32>
    %222 = vector.extract_strided_slice %207 {offsets = [0, 384], sizes = [8, 128], strides = [1, 1]} : vector<8x512xf32> to vector<8x128xf32>
    %223 = arith.negf %222 : vector<8x128xf32>
    %224 = math.exp %223 : vector<8x128xf32>
    %cst_63 = arith.constant 1.000000e+00 : f32
    %225 = vector.broadcast %cst_63 : f32 to vector<8x128xf32>
    %226 = arith.addf %225, %224 : vector<8x128xf32>
    %227 = arith.divf %225, %226 : vector<8x128xf32>
    %228 = arith.mulf %219, %198 : vector<8x128xf32>
    %229 = arith.mulf %213, %221 : vector<8x128xf32>
    %230 = arith.addf %228, %229 : vector<8x128xf32>
    %231 = math.tanh %230 : vector<8x128xf32>
    %232 = arith.mulf %227, %231 : vector<8x128xf32>
    %c7_i32 = arith.constant 7 : i32
    %c8_i32_64 = arith.constant 8 : i32
    %233 = arith.muli %c7_i32, %c8_i32_64 : i32
    %234 = tpu.assume_multiple %233, 8 : i32
    %235 = arith.index_cast %234 : i32 to index
    %c0_65 = arith.constant 0 : index
    %236 = vector.load %arg6[%235, %c0_65] : memref<64x512xf32, #tpu.memory_space<vmem>>, vector<8x512xf32>
    %c0_66 = arith.constant 0 : index
    %c0_67 = arith.constant 0 : index
    %237 = vector.load %arg2[%c0_66, %c0_67] : memref<128x512xf32, #tpu.memory_space<vmem>>, vector<128x512xf32>
    %cst_68 = arith.constant dense<0.000000e+00> : vector<8x512xf32>
    %238 = tpu.matmul %232, %237, %cst_68 {dimension_numbers = #tpu.dot_dimension_numbers<[1], [0], [0], [1], [0, 0, 1, 1], [], []>} : vector<8x128xf32>, vector<128x512xf32>, vector<8x512xf32> -> vector<8x512xf32>
    %239 = arith.addf %236, %238 : vector<8x512xf32>
    %240 = vector.extract_strided_slice %239 {offsets = [0, 0], sizes = [8, 128], strides = [1, 1]} : vector<8x512xf32> to vector<8x128xf32>
    %241 = arith.negf %240 : vector<8x128xf32>
    %242 = math.exp %241 : vector<8x128xf32>
    %cst_69 = arith.constant 1.000000e+00 : f32
    %243 = vector.broadcast %cst_69 : f32 to vector<8x128xf32>
    %244 = arith.addf %243, %242 : vector<8x128xf32>
    %245 = arith.divf %243, %244 : vector<8x128xf32>
    %246 = vector.extract_strided_slice %239 {offsets = [0, 128], sizes = [8, 128], strides = [1, 1]} : vector<8x512xf32> to vector<8x128xf32>
    %247 = arith.negf %246 : vector<8x128xf32>
    %248 = math.exp %247 : vector<8x128xf32>
    %cst_70 = arith.constant 1.000000e+00 : f32
    %249 = vector.broadcast %cst_70 : f32 to vector<8x128xf32>
    %250 = arith.addf %249, %248 : vector<8x128xf32>
    %251 = arith.divf %249, %250 : vector<8x128xf32>
    %252 = vector.extract_strided_slice %239 {offsets = [0, 256], sizes = [8, 128], strides = [1, 1]} : vector<8x512xf32> to vector<8x128xf32>
    %253 = math.tanh %252 : vector<8x128xf32>
    %254 = vector.extract_strided_slice %239 {offsets = [0, 384], sizes = [8, 128], strides = [1, 1]} : vector<8x512xf32> to vector<8x128xf32>
    %255 = arith.negf %254 : vector<8x128xf32>
    %256 = math.exp %255 : vector<8x128xf32>
    %cst_71 = arith.constant 1.000000e+00 : f32
    %257 = vector.broadcast %cst_71 : f32 to vector<8x128xf32>
    %258 = arith.addf %257, %256 : vector<8x128xf32>
    %259 = arith.divf %257, %258 : vector<8x128xf32>
    %260 = arith.mulf %251, %230 : vector<8x128xf32>
    %261 = arith.mulf %245, %253 : vector<8x128xf32>
    %262 = arith.addf %260, %261 : vector<8x128xf32>
    %263 = math.tanh %262 : vector<8x128xf32>
    %264 = arith.mulf %259, %263 : vector<8x128xf32>
    %c8_i32_72 = arith.constant 8 : i32
    %c0_73 = arith.constant 0 : index
    %c0_74 = arith.constant 0 : index
    %265 = vector.load %arg4[%c0_73, %c0_74] : memref<8x128xf32, #tpu.memory_space<vmem>>, vector<8x128xf32>
    tpu.vector_store %arg4[%c0_73, %c0_74], %264 {strides = array<i32>} : memref<8x128xf32, #tpu.memory_space<vmem>>, vector<8x128xf32>,
    %c0_75 = arith.constant 0 : index
    %c0_76 = arith.constant 0 : index
    %266 = vector.load %arg5[%c0_75, %c0_76] : memref<8x128xf32, #tpu.memory_space<vmem>>, vector<8x128xf32>
    tpu.vector_store %arg5[%c0_75, %c0_76], %262 {strides = array<i32>} : memref<8x128xf32, #tpu.memory_space<vmem>>, vector<8x128xf32>,
    return
  }
}

module attributes {stable_mosaic.version = 11 : i64} {
  func.func @decoder_kernel(%arg0: memref<8xi32, #tpu.memory_space<smem>>, %arg1: memref<8x128xf32, #tpu.memory_space<vmem>>, %arg2: memref<8x128xf32, #tpu.memory_space<vmem>>, %arg3: memref<8x8x128xf32, #tpu.memory_space<vmem>>, %arg4: memref<128x128xf32, #tpu.memory_space<vmem>>, %arg5: memref<256x512xf32, #tpu.memory_space<vmem>>, %arg6: memref<1x512xf32, #tpu.memory_space<vmem>>, %arg7: memref<128x128xf32, #tpu.memory_space<vmem>>, %arg8: memref<1x128xf32, #tpu.memory_space<vmem>>, %arg9: memref<8x8x128xf32, #tpu.memory_space<vmem>>) attributes {dimension_semantics = [], scalar_prefetch = 0 : i64, scratch_operands = 0 : i64, tpu.core_type = #tpu.core_type<tc>} {
    %0 = tpu.iota {dimensions = array<i32: 1>} : vector<8x128xi32>
    %cst = arith.constant 0.000000e+00 : f32
    %1 = vector.broadcast %cst : f32 to vector<8x128xf32>
    %c0 = arith.constant 0 : index
    %c0_0 = arith.constant 0 : index
    %c0_1 = arith.constant 0 : index
    %2 = vector.load %arg9[%c0, %c0_0, %c0_1] : memref<8x8x128xf32, #tpu.memory_space<vmem>>, vector<1x8x128xf32>
    %3 = vector.shape_cast %2 : vector<1x8x128xf32> to vector<8x128xf32>
    %4 = vector.shape_cast %1 : vector<8x128xf32> to vector<1x8x128xf32>
    tpu.vector_store %arg9[%c0, %c0_0, %c0_1], %4 {strides = array<i32>} : memref<8x8x128xf32, #tpu.memory_space<vmem>>, vector<1x8x128xf32>,
    %c0_2 = arith.constant 0 : index
    %c0_3 = arith.constant 0 : index
    %5 = vector.load %arg1[%c0_2, %c0_3] : memref<8x128xf32, #tpu.memory_space<vmem>>, vector<8x128xf32>
    %c0_4 = arith.constant 0 : index
    %c0_5 = arith.constant 0 : index
    %6 = vector.load %arg2[%c0_4, %c0_5] : memref<8x128xf32, #tpu.memory_space<vmem>>, vector<8x128xf32>
    %c0_6 = arith.constant 0 : index
    %c0_7 = arith.constant 0 : index
    %c0_8 = arith.constant 0 : index
    %7 = vector.load %arg3[%c0_6, %c0_7, %c0_8] : memref<8x8x128xf32, #tpu.memory_space<vmem>>, vector<1x8x128xf32>
    %8 = vector.shape_cast %7 : vector<1x8x128xf32> to vector<8x128xf32>
    %c1_i32 = arith.constant 1 : i32
    %9 = tpu.concatenate %8, %5 in 1 : vector<8x128xf32>, vector<8x128xf32> -> vector<8x256xf32>
    %c0_9 = arith.constant 0 : index
    %c0_10 = arith.constant 0 : index
    %10 = vector.load %arg5[%c0_9, %c0_10] : memref<256x512xf32, #tpu.memory_space<vmem>>, vector<256x512xf32>
    %cst_11 = arith.constant dense<0.000000e+00> : vector<8x512xf32>
    %11 = tpu.matmul %9, %10, %cst_11 {dimension_numbers = #tpu.dot_dimension_numbers<[1], [0], [0], [1], [0, 0, 1, 1], [], []>} : vector<8x256xf32>, vector<256x512xf32>, vector<8x512xf32> -> vector<8x512xf32>
    %c0_12 = arith.constant 0 : index
    %c0_13 = arith.constant 0 : index
    %12 = vector.load %arg6[%c0_12, %c0_13] : memref<1x512xf32, #tpu.memory_space<vmem>>, vector<1x512xf32>
    %13 = vector.broadcast %12 : vector<1x512xf32> to vector<8x512xf32>
    %14 = arith.addf %11, %13 : vector<8x512xf32>
    %15 = vector.extract_strided_slice %14 {offsets = [0, 0], sizes = [8, 128], strides = [1, 1]} : vector<8x512xf32> to vector<8x128xf32>
    %16 = arith.negf %15 : vector<8x128xf32>
    %17 = math.exp %16 : vector<8x128xf32>
    %cst_14 = arith.constant 1.000000e+00 : f32
    %18 = vector.broadcast %cst_14 : f32 to vector<8x128xf32>
    %19 = arith.addf %18, %17 : vector<8x128xf32>
    %20 = arith.divf %18, %19 : vector<8x128xf32>
    %21 = vector.extract_strided_slice %14 {offsets = [0, 128], sizes = [8, 128], strides = [1, 1]} : vector<8x512xf32> to vector<8x128xf32>
    %22 = arith.negf %21 : vector<8x128xf32>
    %23 = math.exp %22 : vector<8x128xf32>
    %cst_15 = arith.constant 1.000000e+00 : f32
    %24 = vector.broadcast %cst_15 : f32 to vector<8x128xf32>
    %25 = arith.addf %24, %23 : vector<8x128xf32>
    %26 = arith.divf %24, %25 : vector<8x128xf32>
    %27 = vector.extract_strided_slice %14 {offsets = [0, 256], sizes = [8, 128], strides = [1, 1]} : vector<8x512xf32> to vector<8x128xf32>
    %28 = math.tanh %27 : vector<8x128xf32>
    %29 = vector.extract_strided_slice %14 {offsets = [0, 384], sizes = [8, 128], strides = [1, 1]} : vector<8x512xf32> to vector<8x128xf32>
    %30 = arith.negf %29 : vector<8x128xf32>
    %31 = math.exp %30 : vector<8x128xf32>
    %cst_16 = arith.constant 1.000000e+00 : f32
    %32 = vector.broadcast %cst_16 : f32 to vector<8x128xf32>
    %33 = arith.addf %32, %31 : vector<8x128xf32>
    %34 = arith.divf %32, %33 : vector<8x128xf32>
    %35 = arith.mulf %26, %6 : vector<8x128xf32>
    %36 = arith.mulf %20, %28 : vector<8x128xf32>
    %37 = arith.addf %35, %36 : vector<8x128xf32>
    %38 = math.tanh %37 : vector<8x128xf32>
    %39 = arith.mulf %34, %38 : vector<8x128xf32>
    %c0_17 = arith.constant 0 : index
    %c0_18 = arith.constant 0 : index
    %40 = vector.load %arg7[%c0_17, %c0_18] : memref<128x128xf32, #tpu.memory_space<vmem>>, vector<128x128xf32>
    %cst_19 = arith.constant dense<0.000000e+00> : vector<8x128xf32>
    %41 = tpu.matmul %39, %40, %cst_19 {dimension_numbers = #tpu.dot_dimension_numbers<[1], [0], [0], [1], [0, 0, 1, 1], [], []>} : vector<8x128xf32>, vector<128x128xf32>, vector<8x128xf32> -> vector<8x128xf32>
    %c0_20 = arith.constant 0 : index
    %c0_21 = arith.constant 0 : index
    %42 = vector.load %arg8[%c0_20, %c0_21] : memref<1x128xf32, #tpu.memory_space<vmem>>, vector<1x128xf32>
    %43 = vector.broadcast %42 : vector<1x128xf32> to vector<8x128xf32>
    %44 = arith.addf %41, %43 : vector<8x128xf32>
    %45 = arith.index_cast %c1_i32 : i32 to index
    %c0_22 = arith.constant 0 : index
    %c0_23 = arith.constant 0 : index
    %46 = vector.load %arg9[%45, %c0_22, %c0_23] : memref<8x8x128xf32, #tpu.memory_space<vmem>>, vector<1x8x128xf32>
    %47 = vector.shape_cast %46 : vector<1x8x128xf32> to vector<8x128xf32>
    %48 = vector.shape_cast %44 : vector<8x128xf32> to vector<1x8x128xf32>
    tpu.vector_store %arg9[%45, %c0_22, %c0_23], %48 {strides = array<i32>} : memref<8x8x128xf32, #tpu.memory_space<vmem>>, vector<1x8x128xf32>,
    %cst_24 = arith.constant dense<0xFF800000> : vector<8xf32>
    %49 = vector.multi_reduction <maximumf>, %44, %cst_24 [1] : vector<8x128xf32> to vector<8xf32>
    %50 = vector.shape_cast %49 : vector<8xf32> to vector<8x1xf32>
    %51 = vector.broadcast %50 : vector<8x1xf32> to vector<8x128xf32>
    %52 = arith.cmpf oeq, %44, %51 : vector<8x128xf32>
    %c128_i32 = arith.constant 128 : i32
    %53 = vector.broadcast %c128_i32 : i32 to vector<8x128xi32>
    %54 = arith.select %52, %0, %53 : vector<8x128xi1>, vector<8x128xi32>
    %cst_25 = arith.constant dense<2147483647> : vector<8xi32>
    %55 = vector.multi_reduction <minsi>, %54, %cst_25 [1] : vector<8x128xi32> to vector<8xi32>
    %56 = vector.shape_cast %55 : vector<8xi32> to vector<8x1xi32>
    %57 = vector.broadcast %56 : vector<8x1xi32> to vector<8x128xi32>
    %58 = arith.cmpi eq, %0, %57 : vector<8x128xi32>
    %59 = arith.extui %58 : vector<8x128xi1> to vector<8x128xi32>
    %60 = arith.sitofp %59 : vector<8x128xi32> to vector<8x128xf32>
    %c0_26 = arith.constant 0 : index
    %c0_27 = arith.constant 0 : index
    %61 = vector.load %arg4[%c0_26, %c0_27] : memref<128x128xf32, #tpu.memory_space<vmem>>, vector<128x128xf32>
    %cst_28 = arith.constant dense<0.000000e+00> : vector<8x128xf32>
    %62 = tpu.matmul %60, %61, %cst_28 {dimension_numbers = #tpu.dot_dimension_numbers<[1], [0], [0], [1], [0, 0, 1, 1], [], []>} : vector<8x128xf32>, vector<128x128xf32>, vector<8x128xf32> -> vector<8x128xf32>
    %63 = arith.index_cast %c1_i32 : i32 to index
    %64 = memref.load %arg0[%63] : memref<8xi32, #tpu.memory_space<smem>>
    %65 = arith.sitofp %64 : i32 to f32
    %66 = arith.index_cast %c1_i32 : i32 to index
    %c0_29 = arith.constant 0 : index
    %c0_30 = arith.constant 0 : index
    %67 = vector.load %arg3[%66, %c0_29, %c0_30] : memref<8x8x128xf32, #tpu.memory_space<vmem>>, vector<1x8x128xf32>
    %68 = vector.shape_cast %67 : vector<1x8x128xf32> to vector<8x128xf32>
    %69 = vector.broadcast %65 : f32 to vector<8x128xf32>
    %70 = arith.mulf %69, %68 : vector<8x128xf32>
    %cst_31 = arith.constant 1.000000e+00 : f32
    %71 = arith.subf %cst_31, %65 : f32
    %72 = vector.broadcast %71 : f32 to vector<8x128xf32>
    %73 = arith.mulf %72, %62 : vector<8x128xf32>
    %74 = arith.addf %70, %73 : vector<8x128xf32>
    %c2_i32 = arith.constant 2 : i32
    %75 = tpu.concatenate %74, %39 in 1 : vector<8x128xf32>, vector<8x128xf32> -> vector<8x256xf32>
    %c0_32 = arith.constant 0 : index
    %c0_33 = arith.constant 0 : index
    %76 = vector.load %arg5[%c0_32, %c0_33] : memref<256x512xf32, #tpu.memory_space<vmem>>, vector<256x512xf32>
    %cst_34 = arith.constant dense<0.000000e+00> : vector<8x512xf32>
    %77 = tpu.matmul %75, %76, %cst_34 {dimension_numbers = #tpu.dot_dimension_numbers<[1], [0], [0], [1], [0, 0, 1, 1], [], []>} : vector<8x256xf32>, vector<256x512xf32>, vector<8x512xf32> -> vector<8x512xf32>
    %c0_35 = arith.constant 0 : index
    %c0_36 = arith.constant 0 : index
    %78 = vector.load %arg6[%c0_35, %c0_36] : memref<1x512xf32, #tpu.memory_space<vmem>>, vector<1x512xf32>
    %79 = vector.broadcast %78 : vector<1x512xf32> to vector<8x512xf32>
    %80 = arith.addf %77, %79 : vector<8x512xf32>
    %81 = vector.extract_strided_slice %80 {offsets = [0, 0], sizes = [8, 128], strides = [1, 1]} : vector<8x512xf32> to vector<8x128xf32>
    %82 = arith.negf %81 : vector<8x128xf32>
    %83 = math.exp %82 : vector<8x128xf32>
    %cst_37 = arith.constant 1.000000e+00 : f32
    %84 = vector.broadcast %cst_37 : f32 to vector<8x128xf32>
    %85 = arith.addf %84, %83 : vector<8x128xf32>
    %86 = arith.divf %84, %85 : vector<8x128xf32>
    %87 = vector.extract_strided_slice %80 {offsets = [0, 128], sizes = [8, 128], strides = [1, 1]} : vector<8x512xf32> to vector<8x128xf32>
    %88 = arith.negf %87 : vector<8x128xf32>
    %89 = math.exp %88 : vector<8x128xf32>
    %cst_38 = arith.constant 1.000000e+00 : f32
    %90 = vector.broadcast %cst_38 : f32 to vector<8x128xf32>
    %91 = arith.addf %90, %89 : vector<8x128xf32>
    %92 = arith.divf %90, %91 : vector<8x128xf32>
    %93 = vector.extract_strided_slice %80 {offsets = [0, 256], sizes = [8, 128], strides = [1, 1]} : vector<8x512xf32> to vector<8x128xf32>
    %94 = math.tanh %93 : vector<8x128xf32>
    %95 = vector.extract_strided_slice %80 {offsets = [0, 384], sizes = [8, 128], strides = [1, 1]} : vector<8x512xf32> to vector<8x128xf32>
    %96 = arith.negf %95 : vector<8x128xf32>
    %97 = math.exp %96 : vector<8x128xf32>
    %cst_39 = arith.constant 1.000000e+00 : f32
    %98 = vector.broadcast %cst_39 : f32 to vector<8x128xf32>
    %99 = arith.addf %98, %97 : vector<8x128xf32>
    %100 = arith.divf %98, %99 : vector<8x128xf32>
    %101 = arith.mulf %92, %37 : vector<8x128xf32>
    %102 = arith.mulf %86, %94 : vector<8x128xf32>
    %103 = arith.addf %101, %102 : vector<8x128xf32>
    %104 = math.tanh %103 : vector<8x128xf32>
    %105 = arith.mulf %100, %104 : vector<8x128xf32>
    %c0_40 = arith.constant 0 : index
    %c0_41 = arith.constant 0 : index
    %106 = vector.load %arg7[%c0_40, %c0_41] : memref<128x128xf32, #tpu.memory_space<vmem>>, vector<128x128xf32>
    %cst_42 = arith.constant dense<0.000000e+00> : vector<8x128xf32>
    %107 = tpu.matmul %105, %106, %cst_42 {dimension_numbers = #tpu.dot_dimension_numbers<[1], [0], [0], [1], [0, 0, 1, 1], [], []>} : vector<8x128xf32>, vector<128x128xf32>, vector<8x128xf32> -> vector<8x128xf32>
    %c0_43 = arith.constant 0 : index
    %c0_44 = arith.constant 0 : index
    %108 = vector.load %arg8[%c0_43, %c0_44] : memref<1x128xf32, #tpu.memory_space<vmem>>, vector<1x128xf32>
    %109 = vector.broadcast %108 : vector<1x128xf32> to vector<8x128xf32>
    %110 = arith.addf %107, %109 : vector<8x128xf32>
    %111 = arith.index_cast %c2_i32 : i32 to index
    %c0_45 = arith.constant 0 : index
    %c0_46 = arith.constant 0 : index
    %112 = vector.load %arg9[%111, %c0_45, %c0_46] : memref<8x8x128xf32, #tpu.memory_space<vmem>>, vector<1x8x128xf32>
    %113 = vector.shape_cast %112 : vector<1x8x128xf32> to vector<8x128xf32>
    %114 = vector.shape_cast %110 : vector<8x128xf32> to vector<1x8x128xf32>
    tpu.vector_store %arg9[%111, %c0_45, %c0_46], %114 {strides = array<i32>} : memref<8x8x128xf32, #tpu.memory_space<vmem>>, vector<1x8x128xf32>,
    %cst_47 = arith.constant dense<0xFF800000> : vector<8xf32>
    %115 = vector.multi_reduction <maximumf>, %110, %cst_47 [1] : vector<8x128xf32> to vector<8xf32>
    %116 = vector.shape_cast %115 : vector<8xf32> to vector<8x1xf32>
    %117 = vector.broadcast %116 : vector<8x1xf32> to vector<8x128xf32>
    %118 = arith.cmpf oeq, %110, %117 : vector<8x128xf32>
    %c128_i32_48 = arith.constant 128 : i32
    %119 = vector.broadcast %c128_i32_48 : i32 to vector<8x128xi32>
    %120 = arith.select %118, %0, %119 : vector<8x128xi1>, vector<8x128xi32>
    %cst_49 = arith.constant dense<2147483647> : vector<8xi32>
    %121 = vector.multi_reduction <minsi>, %120, %cst_49 [1] : vector<8x128xi32> to vector<8xi32>
    %122 = vector.shape_cast %121 : vector<8xi32> to vector<8x1xi32>
    %123 = vector.broadcast %122 : vector<8x1xi32> to vector<8x128xi32>
    %124 = arith.cmpi eq, %0, %123 : vector<8x128xi32>
    %125 = arith.extui %124 : vector<8x128xi1> to vector<8x128xi32>
    %126 = arith.sitofp %125 : vector<8x128xi32> to vector<8x128xf32>
    %c0_50 = arith.constant 0 : index
    %c0_51 = arith.constant 0 : index
    %127 = vector.load %arg4[%c0_50, %c0_51] : memref<128x128xf32, #tpu.memory_space<vmem>>, vector<128x128xf32>
    %cst_52 = arith.constant dense<0.000000e+00> : vector<8x128xf32>
    %128 = tpu.matmul %126, %127, %cst_52 {dimension_numbers = #tpu.dot_dimension_numbers<[1], [0], [0], [1], [0, 0, 1, 1], [], []>} : vector<8x128xf32>, vector<128x128xf32>, vector<8x128xf32> -> vector<8x128xf32>
    %129 = arith.index_cast %c2_i32 : i32 to index
    %130 = memref.load %arg0[%129] : memref<8xi32, #tpu.memory_space<smem>>
    %131 = arith.sitofp %130 : i32 to f32
    %132 = arith.index_cast %c2_i32 : i32 to index
    %c0_53 = arith.constant 0 : index
    %c0_54 = arith.constant 0 : index
    %133 = vector.load %arg3[%132, %c0_53, %c0_54] : memref<8x8x128xf32, #tpu.memory_space<vmem>>, vector<1x8x128xf32>
    %134 = vector.shape_cast %133 : vector<1x8x128xf32> to vector<8x128xf32>
    %135 = vector.broadcast %131 : f32 to vector<8x128xf32>
    %136 = arith.mulf %135, %134 : vector<8x128xf32>
    %cst_55 = arith.constant 1.000000e+00 : f32
    %137 = arith.subf %cst_55, %131 : f32
    %138 = vector.broadcast %137 : f32 to vector<8x128xf32>
    %139 = arith.mulf %138, %128 : vector<8x128xf32>
    %140 = arith.addf %136, %139 : vector<8x128xf32>
    %c3_i32 = arith.constant 3 : i32
    %141 = tpu.concatenate %140, %105 in 1 : vector<8x128xf32>, vector<8x128xf32> -> vector<8x256xf32>
    %c0_56 = arith.constant 0 : index
    %c0_57 = arith.constant 0 : index
    %142 = vector.load %arg5[%c0_56, %c0_57] : memref<256x512xf32, #tpu.memory_space<vmem>>, vector<256x512xf32>
    %cst_58 = arith.constant dense<0.000000e+00> : vector<8x512xf32>
    %143 = tpu.matmul %141, %142, %cst_58 {dimension_numbers = #tpu.dot_dimension_numbers<[1], [0], [0], [1], [0, 0, 1, 1], [], []>} : vector<8x256xf32>, vector<256x512xf32>, vector<8x512xf32> -> vector<8x512xf32>
    %c0_59 = arith.constant 0 : index
    %c0_60 = arith.constant 0 : index
    %144 = vector.load %arg6[%c0_59, %c0_60] : memref<1x512xf32, #tpu.memory_space<vmem>>, vector<1x512xf32>
    %145 = vector.broadcast %144 : vector<1x512xf32> to vector<8x512xf32>
    %146 = arith.addf %143, %145 : vector<8x512xf32>
    %147 = vector.extract_strided_slice %146 {offsets = [0, 0], sizes = [8, 128], strides = [1, 1]} : vector<8x512xf32> to vector<8x128xf32>
    %148 = arith.negf %147 : vector<8x128xf32>
    %149 = math.exp %148 : vector<8x128xf32>
    %cst_61 = arith.constant 1.000000e+00 : f32
    %150 = vector.broadcast %cst_61 : f32 to vector<8x128xf32>
    %151 = arith.addf %150, %149 : vector<8x128xf32>
    %152 = arith.divf %150, %151 : vector<8x128xf32>
    %153 = vector.extract_strided_slice %146 {offsets = [0, 128], sizes = [8, 128], strides = [1, 1]} : vector<8x512xf32> to vector<8x128xf32>
    %154 = arith.negf %153 : vector<8x128xf32>
    %155 = math.exp %154 : vector<8x128xf32>
    %cst_62 = arith.constant 1.000000e+00 : f32
    %156 = vector.broadcast %cst_62 : f32 to vector<8x128xf32>
    %157 = arith.addf %156, %155 : vector<8x128xf32>
    %158 = arith.divf %156, %157 : vector<8x128xf32>
    %159 = vector.extract_strided_slice %146 {offsets = [0, 256], sizes = [8, 128], strides = [1, 1]} : vector<8x512xf32> to vector<8x128xf32>
    %160 = math.tanh %159 : vector<8x128xf32>
    %161 = vector.extract_strided_slice %146 {offsets = [0, 384], sizes = [8, 128], strides = [1, 1]} : vector<8x512xf32> to vector<8x128xf32>
    %162 = arith.negf %161 : vector<8x128xf32>
    %163 = math.exp %162 : vector<8x128xf32>
    %cst_63 = arith.constant 1.000000e+00 : f32
    %164 = vector.broadcast %cst_63 : f32 to vector<8x128xf32>
    %165 = arith.addf %164, %163 : vector<8x128xf32>
    %166 = arith.divf %164, %165 : vector<8x128xf32>
    %167 = arith.mulf %158, %103 : vector<8x128xf32>
    %168 = arith.mulf %152, %160 : vector<8x128xf32>
    %169 = arith.addf %167, %168 : vector<8x128xf32>
    %170 = math.tanh %169 : vector<8x128xf32>
    %171 = arith.mulf %166, %170 : vector<8x128xf32>
    %c0_64 = arith.constant 0 : index
    %c0_65 = arith.constant 0 : index
    %172 = vector.load %arg7[%c0_64, %c0_65] : memref<128x128xf32, #tpu.memory_space<vmem>>, vector<128x128xf32>
    %cst_66 = arith.constant dense<0.000000e+00> : vector<8x128xf32>
    %173 = tpu.matmul %171, %172, %cst_66 {dimension_numbers = #tpu.dot_dimension_numbers<[1], [0], [0], [1], [0, 0, 1, 1], [], []>} : vector<8x128xf32>, vector<128x128xf32>, vector<8x128xf32> -> vector<8x128xf32>
    %c0_67 = arith.constant 0 : index
    %c0_68 = arith.constant 0 : index
    %174 = vector.load %arg8[%c0_67, %c0_68] : memref<1x128xf32, #tpu.memory_space<vmem>>, vector<1x128xf32>
    %175 = vector.broadcast %174 : vector<1x128xf32> to vector<8x128xf32>
    %176 = arith.addf %173, %175 : vector<8x128xf32>
    %177 = arith.index_cast %c3_i32 : i32 to index
    %c0_69 = arith.constant 0 : index
    %c0_70 = arith.constant 0 : index
    %178 = vector.load %arg9[%177, %c0_69, %c0_70] : memref<8x8x128xf32, #tpu.memory_space<vmem>>, vector<1x8x128xf32>
    %179 = vector.shape_cast %178 : vector<1x8x128xf32> to vector<8x128xf32>
    %180 = vector.shape_cast %176 : vector<8x128xf32> to vector<1x8x128xf32>
    tpu.vector_store %arg9[%177, %c0_69, %c0_70], %180 {strides = array<i32>} : memref<8x8x128xf32, #tpu.memory_space<vmem>>, vector<1x8x128xf32>,
    %cst_71 = arith.constant dense<0xFF800000> : vector<8xf32>
    %181 = vector.multi_reduction <maximumf>, %176, %cst_71 [1] : vector<8x128xf32> to vector<8xf32>
    %182 = vector.shape_cast %181 : vector<8xf32> to vector<8x1xf32>
    %183 = vector.broadcast %182 : vector<8x1xf32> to vector<8x128xf32>
    %184 = arith.cmpf oeq, %176, %183 : vector<8x128xf32>
    %c128_i32_72 = arith.constant 128 : i32
    %185 = vector.broadcast %c128_i32_72 : i32 to vector<8x128xi32>
    %186 = arith.select %184, %0, %185 : vector<8x128xi1>, vector<8x128xi32>
    %cst_73 = arith.constant dense<2147483647> : vector<8xi32>
    %187 = vector.multi_reduction <minsi>, %186, %cst_73 [1] : vector<8x128xi32> to vector<8xi32>
    %188 = vector.shape_cast %187 : vector<8xi32> to vector<8x1xi32>
    %189 = vector.broadcast %188 : vector<8x1xi32> to vector<8x128xi32>
    %190 = arith.cmpi eq, %0, %189 : vector<8x128xi32>
    %191 = arith.extui %190 : vector<8x128xi1> to vector<8x128xi32>
    %192 = arith.sitofp %191 : vector<8x128xi32> to vector<8x128xf32>
    %c0_74 = arith.constant 0 : index
    %c0_75 = arith.constant 0 : index
    %193 = vector.load %arg4[%c0_74, %c0_75] : memref<128x128xf32, #tpu.memory_space<vmem>>, vector<128x128xf32>
    %cst_76 = arith.constant dense<0.000000e+00> : vector<8x128xf32>
    %194 = tpu.matmul %192, %193, %cst_76 {dimension_numbers = #tpu.dot_dimension_numbers<[1], [0], [0], [1], [0, 0, 1, 1], [], []>} : vector<8x128xf32>, vector<128x128xf32>, vector<8x128xf32> -> vector<8x128xf32>
    %195 = arith.index_cast %c3_i32 : i32 to index
    %196 = memref.load %arg0[%195] : memref<8xi32, #tpu.memory_space<smem>>
    %197 = arith.sitofp %196 : i32 to f32
    %198 = arith.index_cast %c3_i32 : i32 to index
    %c0_77 = arith.constant 0 : index
    %c0_78 = arith.constant 0 : index
    %199 = vector.load %arg3[%198, %c0_77, %c0_78] : memref<8x8x128xf32, #tpu.memory_space<vmem>>, vector<1x8x128xf32>
    %200 = vector.shape_cast %199 : vector<1x8x128xf32> to vector<8x128xf32>
    %201 = vector.broadcast %197 : f32 to vector<8x128xf32>
    %202 = arith.mulf %201, %200 : vector<8x128xf32>
    %cst_79 = arith.constant 1.000000e+00 : f32
    %203 = arith.subf %cst_79, %197 : f32
    %204 = vector.broadcast %203 : f32 to vector<8x128xf32>
    %205 = arith.mulf %204, %194 : vector<8x128xf32>
    %206 = arith.addf %202, %205 : vector<8x128xf32>
    %c4_i32 = arith.constant 4 : i32
    %207 = tpu.concatenate %206, %171 in 1 : vector<8x128xf32>, vector<8x128xf32> -> vector<8x256xf32>
    %c0_80 = arith.constant 0 : index
    %c0_81 = arith.constant 0 : index
    %208 = vector.load %arg5[%c0_80, %c0_81] : memref<256x512xf32, #tpu.memory_space<vmem>>, vector<256x512xf32>
    %cst_82 = arith.constant dense<0.000000e+00> : vector<8x512xf32>
    %209 = tpu.matmul %207, %208, %cst_82 {dimension_numbers = #tpu.dot_dimension_numbers<[1], [0], [0], [1], [0, 0, 1, 1], [], []>} : vector<8x256xf32>, vector<256x512xf32>, vector<8x512xf32> -> vector<8x512xf32>
    %c0_83 = arith.constant 0 : index
    %c0_84 = arith.constant 0 : index
    %210 = vector.load %arg6[%c0_83, %c0_84] : memref<1x512xf32, #tpu.memory_space<vmem>>, vector<1x512xf32>
    %211 = vector.broadcast %210 : vector<1x512xf32> to vector<8x512xf32>
    %212 = arith.addf %209, %211 : vector<8x512xf32>
    %213 = vector.extract_strided_slice %212 {offsets = [0, 0], sizes = [8, 128], strides = [1, 1]} : vector<8x512xf32> to vector<8x128xf32>
    %214 = arith.negf %213 : vector<8x128xf32>
    %215 = math.exp %214 : vector<8x128xf32>
    %cst_85 = arith.constant 1.000000e+00 : f32
    %216 = vector.broadcast %cst_85 : f32 to vector<8x128xf32>
    %217 = arith.addf %216, %215 : vector<8x128xf32>
    %218 = arith.divf %216, %217 : vector<8x128xf32>
    %219 = vector.extract_strided_slice %212 {offsets = [0, 128], sizes = [8, 128], strides = [1, 1]} : vector<8x512xf32> to vector<8x128xf32>
    %220 = arith.negf %219 : vector<8x128xf32>
    %221 = math.exp %220 : vector<8x128xf32>
    %cst_86 = arith.constant 1.000000e+00 : f32
    %222 = vector.broadcast %cst_86 : f32 to vector<8x128xf32>
    %223 = arith.addf %222, %221 : vector<8x128xf32>
    %224 = arith.divf %222, %223 : vector<8x128xf32>
    %225 = vector.extract_strided_slice %212 {offsets = [0, 256], sizes = [8, 128], strides = [1, 1]} : vector<8x512xf32> to vector<8x128xf32>
    %226 = math.tanh %225 : vector<8x128xf32>
    %227 = vector.extract_strided_slice %212 {offsets = [0, 384], sizes = [8, 128], strides = [1, 1]} : vector<8x512xf32> to vector<8x128xf32>
    %228 = arith.negf %227 : vector<8x128xf32>
    %229 = math.exp %228 : vector<8x128xf32>
    %cst_87 = arith.constant 1.000000e+00 : f32
    %230 = vector.broadcast %cst_87 : f32 to vector<8x128xf32>
    %231 = arith.addf %230, %229 : vector<8x128xf32>
    %232 = arith.divf %230, %231 : vector<8x128xf32>
    %233 = arith.mulf %224, %169 : vector<8x128xf32>
    %234 = arith.mulf %218, %226 : vector<8x128xf32>
    %235 = arith.addf %233, %234 : vector<8x128xf32>
    %236 = math.tanh %235 : vector<8x128xf32>
    %237 = arith.mulf %232, %236 : vector<8x128xf32>
    %c0_88 = arith.constant 0 : index
    %c0_89 = arith.constant 0 : index
    %238 = vector.load %arg7[%c0_88, %c0_89] : memref<128x128xf32, #tpu.memory_space<vmem>>, vector<128x128xf32>
    %cst_90 = arith.constant dense<0.000000e+00> : vector<8x128xf32>
    %239 = tpu.matmul %237, %238, %cst_90 {dimension_numbers = #tpu.dot_dimension_numbers<[1], [0], [0], [1], [0, 0, 1, 1], [], []>} : vector<8x128xf32>, vector<128x128xf32>, vector<8x128xf32> -> vector<8x128xf32>
    %c0_91 = arith.constant 0 : index
    %c0_92 = arith.constant 0 : index
    %240 = vector.load %arg8[%c0_91, %c0_92] : memref<1x128xf32, #tpu.memory_space<vmem>>, vector<1x128xf32>
    %241 = vector.broadcast %240 : vector<1x128xf32> to vector<8x128xf32>
    %242 = arith.addf %239, %241 : vector<8x128xf32>
    %243 = arith.index_cast %c4_i32 : i32 to index
    %c0_93 = arith.constant 0 : index
    %c0_94 = arith.constant 0 : index
    %244 = vector.load %arg9[%243, %c0_93, %c0_94] : memref<8x8x128xf32, #tpu.memory_space<vmem>>, vector<1x8x128xf32>
    %245 = vector.shape_cast %244 : vector<1x8x128xf32> to vector<8x128xf32>
    %246 = vector.shape_cast %242 : vector<8x128xf32> to vector<1x8x128xf32>
    tpu.vector_store %arg9[%243, %c0_93, %c0_94], %246 {strides = array<i32>} : memref<8x8x128xf32, #tpu.memory_space<vmem>>, vector<1x8x128xf32>,
    %cst_95 = arith.constant dense<0xFF800000> : vector<8xf32>
    %247 = vector.multi_reduction <maximumf>, %242, %cst_95 [1] : vector<8x128xf32> to vector<8xf32>
    %248 = vector.shape_cast %247 : vector<8xf32> to vector<8x1xf32>
    %249 = vector.broadcast %248 : vector<8x1xf32> to vector<8x128xf32>
    %250 = arith.cmpf oeq, %242, %249 : vector<8x128xf32>
    %c128_i32_96 = arith.constant 128 : i32
    %251 = vector.broadcast %c128_i32_96 : i32 to vector<8x128xi32>
    %252 = arith.select %250, %0, %251 : vector<8x128xi1>, vector<8x128xi32>
    %cst_97 = arith.constant dense<2147483647> : vector<8xi32>
    %253 = vector.multi_reduction <minsi>, %252, %cst_97 [1] : vector<8x128xi32> to vector<8xi32>
    %254 = vector.shape_cast %253 : vector<8xi32> to vector<8x1xi32>
    %255 = vector.broadcast %254 : vector<8x1xi32> to vector<8x128xi32>
    %256 = arith.cmpi eq, %0, %255 : vector<8x128xi32>
    %257 = arith.extui %256 : vector<8x128xi1> to vector<8x128xi32>
    %258 = arith.sitofp %257 : vector<8x128xi32> to vector<8x128xf32>
    %c0_98 = arith.constant 0 : index
    %c0_99 = arith.constant 0 : index
    %259 = vector.load %arg4[%c0_98, %c0_99] : memref<128x128xf32, #tpu.memory_space<vmem>>, vector<128x128xf32>
    %cst_100 = arith.constant dense<0.000000e+00> : vector<8x128xf32>
    %260 = tpu.matmul %258, %259, %cst_100 {dimension_numbers = #tpu.dot_dimension_numbers<[1], [0], [0], [1], [0, 0, 1, 1], [], []>} : vector<8x128xf32>, vector<128x128xf32>, vector<8x128xf32> -> vector<8x128xf32>
    %261 = arith.index_cast %c4_i32 : i32 to index
    %262 = memref.load %arg0[%261] : memref<8xi32, #tpu.memory_space<smem>>
    %263 = arith.sitofp %262 : i32 to f32
    %264 = arith.index_cast %c4_i32 : i32 to index
    %c0_101 = arith.constant 0 : index
    %c0_102 = arith.constant 0 : index
    %265 = vector.load %arg3[%264, %c0_101, %c0_102] : memref<8x8x128xf32, #tpu.memory_space<vmem>>, vector<1x8x128xf32>
    %266 = vector.shape_cast %265 : vector<1x8x128xf32> to vector<8x128xf32>
    %267 = vector.broadcast %263 : f32 to vector<8x128xf32>
    %268 = arith.mulf %267, %266 : vector<8x128xf32>
    %cst_103 = arith.constant 1.000000e+00 : f32
    %269 = arith.subf %cst_103, %263 : f32
    %270 = vector.broadcast %269 : f32 to vector<8x128xf32>
    %271 = arith.mulf %270, %260 : vector<8x128xf32>
    %272 = arith.addf %268, %271 : vector<8x128xf32>
    %c5_i32 = arith.constant 5 : i32
    %273 = tpu.concatenate %272, %237 in 1 : vector<8x128xf32>, vector<8x128xf32> -> vector<8x256xf32>
    %c0_104 = arith.constant 0 : index
    %c0_105 = arith.constant 0 : index
    %274 = vector.load %arg5[%c0_104, %c0_105] : memref<256x512xf32, #tpu.memory_space<vmem>>, vector<256x512xf32>
    %cst_106 = arith.constant dense<0.000000e+00> : vector<8x512xf32>
    %275 = tpu.matmul %273, %274, %cst_106 {dimension_numbers = #tpu.dot_dimension_numbers<[1], [0], [0], [1], [0, 0, 1, 1], [], []>} : vector<8x256xf32>, vector<256x512xf32>, vector<8x512xf32> -> vector<8x512xf32>
    %c0_107 = arith.constant 0 : index
    %c0_108 = arith.constant 0 : index
    %276 = vector.load %arg6[%c0_107, %c0_108] : memref<1x512xf32, #tpu.memory_space<vmem>>, vector<1x512xf32>
    %277 = vector.broadcast %276 : vector<1x512xf32> to vector<8x512xf32>
    %278 = arith.addf %275, %277 : vector<8x512xf32>
    %279 = vector.extract_strided_slice %278 {offsets = [0, 0], sizes = [8, 128], strides = [1, 1]} : vector<8x512xf32> to vector<8x128xf32>
    %280 = arith.negf %279 : vector<8x128xf32>
    %281 = math.exp %280 : vector<8x128xf32>
    %cst_109 = arith.constant 1.000000e+00 : f32
    %282 = vector.broadcast %cst_109 : f32 to vector<8x128xf32>
    %283 = arith.addf %282, %281 : vector<8x128xf32>
    %284 = arith.divf %282, %283 : vector<8x128xf32>
    %285 = vector.extract_strided_slice %278 {offsets = [0, 128], sizes = [8, 128], strides = [1, 1]} : vector<8x512xf32> to vector<8x128xf32>
    %286 = arith.negf %285 : vector<8x128xf32>
    %287 = math.exp %286 : vector<8x128xf32>
    %cst_110 = arith.constant 1.000000e+00 : f32
    %288 = vector.broadcast %cst_110 : f32 to vector<8x128xf32>
    %289 = arith.addf %288, %287 : vector<8x128xf32>
    %290 = arith.divf %288, %289 : vector<8x128xf32>
    %291 = vector.extract_strided_slice %278 {offsets = [0, 256], sizes = [8, 128], strides = [1, 1]} : vector<8x512xf32> to vector<8x128xf32>
    %292 = math.tanh %291 : vector<8x128xf32>
    %293 = vector.extract_strided_slice %278 {offsets = [0, 384], sizes = [8, 128], strides = [1, 1]} : vector<8x512xf32> to vector<8x128xf32>
    %294 = arith.negf %293 : vector<8x128xf32>
    %295 = math.exp %294 : vector<8x128xf32>
    %cst_111 = arith.constant 1.000000e+00 : f32
    %296 = vector.broadcast %cst_111 : f32 to vector<8x128xf32>
    %297 = arith.addf %296, %295 : vector<8x128xf32>
    %298 = arith.divf %296, %297 : vector<8x128xf32>
    %299 = arith.mulf %290, %235 : vector<8x128xf32>
    %300 = arith.mulf %284, %292 : vector<8x128xf32>
    %301 = arith.addf %299, %300 : vector<8x128xf32>
    %302 = math.tanh %301 : vector<8x128xf32>
    %303 = arith.mulf %298, %302 : vector<8x128xf32>
    %c0_112 = arith.constant 0 : index
    %c0_113 = arith.constant 0 : index
    %304 = vector.load %arg7[%c0_112, %c0_113] : memref<128x128xf32, #tpu.memory_space<vmem>>, vector<128x128xf32>
    %cst_114 = arith.constant dense<0.000000e+00> : vector<8x128xf32>
    %305 = tpu.matmul %303, %304, %cst_114 {dimension_numbers = #tpu.dot_dimension_numbers<[1], [0], [0], [1], [0, 0, 1, 1], [], []>} : vector<8x128xf32>, vector<128x128xf32>, vector<8x128xf32> -> vector<8x128xf32>
    %c0_115 = arith.constant 0 : index
    %c0_116 = arith.constant 0 : index
    %306 = vector.load %arg8[%c0_115, %c0_116] : memref<1x128xf32, #tpu.memory_space<vmem>>, vector<1x128xf32>
    %307 = vector.broadcast %306 : vector<1x128xf32> to vector<8x128xf32>
    %308 = arith.addf %305, %307 : vector<8x128xf32>
    %309 = arith.index_cast %c5_i32 : i32 to index
    %c0_117 = arith.constant 0 : index
    %c0_118 = arith.constant 0 : index
    %310 = vector.load %arg9[%309, %c0_117, %c0_118] : memref<8x8x128xf32, #tpu.memory_space<vmem>>, vector<1x8x128xf32>
    %311 = vector.shape_cast %310 : vector<1x8x128xf32> to vector<8x128xf32>
    %312 = vector.shape_cast %308 : vector<8x128xf32> to vector<1x8x128xf32>
    tpu.vector_store %arg9[%309, %c0_117, %c0_118], %312 {strides = array<i32>} : memref<8x8x128xf32, #tpu.memory_space<vmem>>, vector<1x8x128xf32>,
    %cst_119 = arith.constant dense<0xFF800000> : vector<8xf32>
    %313 = vector.multi_reduction <maximumf>, %308, %cst_119 [1] : vector<8x128xf32> to vector<8xf32>
    %314 = vector.shape_cast %313 : vector<8xf32> to vector<8x1xf32>
    %315 = vector.broadcast %314 : vector<8x1xf32> to vector<8x128xf32>
    %316 = arith.cmpf oeq, %308, %315 : vector<8x128xf32>
    %c128_i32_120 = arith.constant 128 : i32
    %317 = vector.broadcast %c128_i32_120 : i32 to vector<8x128xi32>
    %318 = arith.select %316, %0, %317 : vector<8x128xi1>, vector<8x128xi32>
    %cst_121 = arith.constant dense<2147483647> : vector<8xi32>
    %319 = vector.multi_reduction <minsi>, %318, %cst_121 [1] : vector<8x128xi32> to vector<8xi32>
    %320 = vector.shape_cast %319 : vector<8xi32> to vector<8x1xi32>
    %321 = vector.broadcast %320 : vector<8x1xi32> to vector<8x128xi32>
    %322 = arith.cmpi eq, %0, %321 : vector<8x128xi32>
    %323 = arith.extui %322 : vector<8x128xi1> to vector<8x128xi32>
    %324 = arith.sitofp %323 : vector<8x128xi32> to vector<8x128xf32>
    %c0_122 = arith.constant 0 : index
    %c0_123 = arith.constant 0 : index
    %325 = vector.load %arg4[%c0_122, %c0_123] : memref<128x128xf32, #tpu.memory_space<vmem>>, vector<128x128xf32>
    %cst_124 = arith.constant dense<0.000000e+00> : vector<8x128xf32>
    %326 = tpu.matmul %324, %325, %cst_124 {dimension_numbers = #tpu.dot_dimension_numbers<[1], [0], [0], [1], [0, 0, 1, 1], [], []>} : vector<8x128xf32>, vector<128x128xf32>, vector<8x128xf32> -> vector<8x128xf32>
    %327 = arith.index_cast %c5_i32 : i32 to index
    %328 = memref.load %arg0[%327] : memref<8xi32, #tpu.memory_space<smem>>
    %329 = arith.sitofp %328 : i32 to f32
    %330 = arith.index_cast %c5_i32 : i32 to index
    %c0_125 = arith.constant 0 : index
    %c0_126 = arith.constant 0 : index
    %331 = vector.load %arg3[%330, %c0_125, %c0_126] : memref<8x8x128xf32, #tpu.memory_space<vmem>>, vector<1x8x128xf32>
    %332 = vector.shape_cast %331 : vector<1x8x128xf32> to vector<8x128xf32>
    %333 = vector.broadcast %329 : f32 to vector<8x128xf32>
    %334 = arith.mulf %333, %332 : vector<8x128xf32>
    %cst_127 = arith.constant 1.000000e+00 : f32
    %335 = arith.subf %cst_127, %329 : f32
    %336 = vector.broadcast %335 : f32 to vector<8x128xf32>
    %337 = arith.mulf %336, %326 : vector<8x128xf32>
    %338 = arith.addf %334, %337 : vector<8x128xf32>
    %c6_i32 = arith.constant 6 : i32
    %339 = tpu.concatenate %338, %303 in 1 : vector<8x128xf32>, vector<8x128xf32> -> vector<8x256xf32>
    %c0_128 = arith.constant 0 : index
    %c0_129 = arith.constant 0 : index
    %340 = vector.load %arg5[%c0_128, %c0_129] : memref<256x512xf32, #tpu.memory_space<vmem>>, vector<256x512xf32>
    %cst_130 = arith.constant dense<0.000000e+00> : vector<8x512xf32>
    %341 = tpu.matmul %339, %340, %cst_130 {dimension_numbers = #tpu.dot_dimension_numbers<[1], [0], [0], [1], [0, 0, 1, 1], [], []>} : vector<8x256xf32>, vector<256x512xf32>, vector<8x512xf32> -> vector<8x512xf32>
    %c0_131 = arith.constant 0 : index
    %c0_132 = arith.constant 0 : index
    %342 = vector.load %arg6[%c0_131, %c0_132] : memref<1x512xf32, #tpu.memory_space<vmem>>, vector<1x512xf32>
    %343 = vector.broadcast %342 : vector<1x512xf32> to vector<8x512xf32>
    %344 = arith.addf %341, %343 : vector<8x512xf32>
    %345 = vector.extract_strided_slice %344 {offsets = [0, 0], sizes = [8, 128], strides = [1, 1]} : vector<8x512xf32> to vector<8x128xf32>
    %346 = arith.negf %345 : vector<8x128xf32>
    %347 = math.exp %346 : vector<8x128xf32>
    %cst_133 = arith.constant 1.000000e+00 : f32
    %348 = vector.broadcast %cst_133 : f32 to vector<8x128xf32>
    %349 = arith.addf %348, %347 : vector<8x128xf32>
    %350 = arith.divf %348, %349 : vector<8x128xf32>
    %351 = vector.extract_strided_slice %344 {offsets = [0, 128], sizes = [8, 128], strides = [1, 1]} : vector<8x512xf32> to vector<8x128xf32>
    %352 = arith.negf %351 : vector<8x128xf32>
    %353 = math.exp %352 : vector<8x128xf32>
    %cst_134 = arith.constant 1.000000e+00 : f32
    %354 = vector.broadcast %cst_134 : f32 to vector<8x128xf32>
    %355 = arith.addf %354, %353 : vector<8x128xf32>
    %356 = arith.divf %354, %355 : vector<8x128xf32>
    %357 = vector.extract_strided_slice %344 {offsets = [0, 256], sizes = [8, 128], strides = [1, 1]} : vector<8x512xf32> to vector<8x128xf32>
    %358 = math.tanh %357 : vector<8x128xf32>
    %359 = vector.extract_strided_slice %344 {offsets = [0, 384], sizes = [8, 128], strides = [1, 1]} : vector<8x512xf32> to vector<8x128xf32>
    %360 = arith.negf %359 : vector<8x128xf32>
    %361 = math.exp %360 : vector<8x128xf32>
    %cst_135 = arith.constant 1.000000e+00 : f32
    %362 = vector.broadcast %cst_135 : f32 to vector<8x128xf32>
    %363 = arith.addf %362, %361 : vector<8x128xf32>
    %364 = arith.divf %362, %363 : vector<8x128xf32>
    %365 = arith.mulf %356, %301 : vector<8x128xf32>
    %366 = arith.mulf %350, %358 : vector<8x128xf32>
    %367 = arith.addf %365, %366 : vector<8x128xf32>
    %368 = math.tanh %367 : vector<8x128xf32>
    %369 = arith.mulf %364, %368 : vector<8x128xf32>
    %c0_136 = arith.constant 0 : index
    %c0_137 = arith.constant 0 : index
    %370 = vector.load %arg7[%c0_136, %c0_137] : memref<128x128xf32, #tpu.memory_space<vmem>>, vector<128x128xf32>
    %cst_138 = arith.constant dense<0.000000e+00> : vector<8x128xf32>
    %371 = tpu.matmul %369, %370, %cst_138 {dimension_numbers = #tpu.dot_dimension_numbers<[1], [0], [0], [1], [0, 0, 1, 1], [], []>} : vector<8x128xf32>, vector<128x128xf32>, vector<8x128xf32> -> vector<8x128xf32>
    %c0_139 = arith.constant 0 : index
    %c0_140 = arith.constant 0 : index
    %372 = vector.load %arg8[%c0_139, %c0_140] : memref<1x128xf32, #tpu.memory_space<vmem>>, vector<1x128xf32>
    %373 = vector.broadcast %372 : vector<1x128xf32> to vector<8x128xf32>
    %374 = arith.addf %371, %373 : vector<8x128xf32>
    %375 = arith.index_cast %c6_i32 : i32 to index
    %c0_141 = arith.constant 0 : index
    %c0_142 = arith.constant 0 : index
    %376 = vector.load %arg9[%375, %c0_141, %c0_142] : memref<8x8x128xf32, #tpu.memory_space<vmem>>, vector<1x8x128xf32>
    %377 = vector.shape_cast %376 : vector<1x8x128xf32> to vector<8x128xf32>
    %378 = vector.shape_cast %374 : vector<8x128xf32> to vector<1x8x128xf32>
    tpu.vector_store %arg9[%375, %c0_141, %c0_142], %378 {strides = array<i32>} : memref<8x8x128xf32, #tpu.memory_space<vmem>>, vector<1x8x128xf32>,
    %cst_143 = arith.constant dense<0xFF800000> : vector<8xf32>
    %379 = vector.multi_reduction <maximumf>, %374, %cst_143 [1] : vector<8x128xf32> to vector<8xf32>
    %380 = vector.shape_cast %379 : vector<8xf32> to vector<8x1xf32>
    %381 = vector.broadcast %380 : vector<8x1xf32> to vector<8x128xf32>
    %382 = arith.cmpf oeq, %374, %381 : vector<8x128xf32>
    %c128_i32_144 = arith.constant 128 : i32
    %383 = vector.broadcast %c128_i32_144 : i32 to vector<8x128xi32>
    %384 = arith.select %382, %0, %383 : vector<8x128xi1>, vector<8x128xi32>
    %cst_145 = arith.constant dense<2147483647> : vector<8xi32>
    %385 = vector.multi_reduction <minsi>, %384, %cst_145 [1] : vector<8x128xi32> to vector<8xi32>
    %386 = vector.shape_cast %385 : vector<8xi32> to vector<8x1xi32>
    %387 = vector.broadcast %386 : vector<8x1xi32> to vector<8x128xi32>
    %388 = arith.cmpi eq, %0, %387 : vector<8x128xi32>
    %389 = arith.extui %388 : vector<8x128xi1> to vector<8x128xi32>
    %390 = arith.sitofp %389 : vector<8x128xi32> to vector<8x128xf32>
    %c0_146 = arith.constant 0 : index
    %c0_147 = arith.constant 0 : index
    %391 = vector.load %arg4[%c0_146, %c0_147] : memref<128x128xf32, #tpu.memory_space<vmem>>, vector<128x128xf32>
    %cst_148 = arith.constant dense<0.000000e+00> : vector<8x128xf32>
    %392 = tpu.matmul %390, %391, %cst_148 {dimension_numbers = #tpu.dot_dimension_numbers<[1], [0], [0], [1], [0, 0, 1, 1], [], []>} : vector<8x128xf32>, vector<128x128xf32>, vector<8x128xf32> -> vector<8x128xf32>
    %393 = arith.index_cast %c6_i32 : i32 to index
    %394 = memref.load %arg0[%393] : memref<8xi32, #tpu.memory_space<smem>>
    %395 = arith.sitofp %394 : i32 to f32
    %396 = arith.index_cast %c6_i32 : i32 to index
    %c0_149 = arith.constant 0 : index
    %c0_150 = arith.constant 0 : index
    %397 = vector.load %arg3[%396, %c0_149, %c0_150] : memref<8x8x128xf32, #tpu.memory_space<vmem>>, vector<1x8x128xf32>
    %398 = vector.shape_cast %397 : vector<1x8x128xf32> to vector<8x128xf32>
    %399 = vector.broadcast %395 : f32 to vector<8x128xf32>
    %400 = arith.mulf %399, %398 : vector<8x128xf32>
    %cst_151 = arith.constant 1.000000e+00 : f32
    %401 = arith.subf %cst_151, %395 : f32
    %402 = vector.broadcast %401 : f32 to vector<8x128xf32>
    %403 = arith.mulf %402, %392 : vector<8x128xf32>
    %404 = arith.addf %400, %403 : vector<8x128xf32>
    %c7_i32 = arith.constant 7 : i32
    %405 = tpu.concatenate %404, %369 in 1 : vector<8x128xf32>, vector<8x128xf32> -> vector<8x256xf32>
    %c0_152 = arith.constant 0 : index
    %c0_153 = arith.constant 0 : index
    %406 = vector.load %arg5[%c0_152, %c0_153] : memref<256x512xf32, #tpu.memory_space<vmem>>, vector<256x512xf32>
    %cst_154 = arith.constant dense<0.000000e+00> : vector<8x512xf32>
    %407 = tpu.matmul %405, %406, %cst_154 {dimension_numbers = #tpu.dot_dimension_numbers<[1], [0], [0], [1], [0, 0, 1, 1], [], []>} : vector<8x256xf32>, vector<256x512xf32>, vector<8x512xf32> -> vector<8x512xf32>
    %c0_155 = arith.constant 0 : index
    %c0_156 = arith.constant 0 : index
    %408 = vector.load %arg6[%c0_155, %c0_156] : memref<1x512xf32, #tpu.memory_space<vmem>>, vector<1x512xf32>
    %409 = vector.broadcast %408 : vector<1x512xf32> to vector<8x512xf32>
    %410 = arith.addf %407, %409 : vector<8x512xf32>
    %411 = vector.extract_strided_slice %410 {offsets = [0, 0], sizes = [8, 128], strides = [1, 1]} : vector<8x512xf32> to vector<8x128xf32>
    %412 = arith.negf %411 : vector<8x128xf32>
    %413 = math.exp %412 : vector<8x128xf32>
    %cst_157 = arith.constant 1.000000e+00 : f32
    %414 = vector.broadcast %cst_157 : f32 to vector<8x128xf32>
    %415 = arith.addf %414, %413 : vector<8x128xf32>
    %416 = arith.divf %414, %415 : vector<8x128xf32>
    %417 = vector.extract_strided_slice %410 {offsets = [0, 128], sizes = [8, 128], strides = [1, 1]} : vector<8x512xf32> to vector<8x128xf32>
    %418 = arith.negf %417 : vector<8x128xf32>
    %419 = math.exp %418 : vector<8x128xf32>
    %cst_158 = arith.constant 1.000000e+00 : f32
    %420 = vector.broadcast %cst_158 : f32 to vector<8x128xf32>
    %421 = arith.addf %420, %419 : vector<8x128xf32>
    %422 = arith.divf %420, %421 : vector<8x128xf32>
    %423 = vector.extract_strided_slice %410 {offsets = [0, 256], sizes = [8, 128], strides = [1, 1]} : vector<8x512xf32> to vector<8x128xf32>
    %424 = math.tanh %423 : vector<8x128xf32>
    %425 = vector.extract_strided_slice %410 {offsets = [0, 384], sizes = [8, 128], strides = [1, 1]} : vector<8x512xf32> to vector<8x128xf32>
    %426 = arith.negf %425 : vector<8x128xf32>
    %427 = math.exp %426 : vector<8x128xf32>
    %cst_159 = arith.constant 1.000000e+00 : f32
    %428 = vector.broadcast %cst_159 : f32 to vector<8x128xf32>
    %429 = arith.addf %428, %427 : vector<8x128xf32>
    %430 = arith.divf %428, %429 : vector<8x128xf32>
    %431 = arith.mulf %422, %367 : vector<8x128xf32>
    %432 = arith.mulf %416, %424 : vector<8x128xf32>
    %433 = arith.addf %431, %432 : vector<8x128xf32>
    %434 = math.tanh %433 : vector<8x128xf32>
    %435 = arith.mulf %430, %434 : vector<8x128xf32>
    %c0_160 = arith.constant 0 : index
    %c0_161 = arith.constant 0 : index
    %436 = vector.load %arg7[%c0_160, %c0_161] : memref<128x128xf32, #tpu.memory_space<vmem>>, vector<128x128xf32>
    %cst_162 = arith.constant dense<0.000000e+00> : vector<8x128xf32>
    %437 = tpu.matmul %435, %436, %cst_162 {dimension_numbers = #tpu.dot_dimension_numbers<[1], [0], [0], [1], [0, 0, 1, 1], [], []>} : vector<8x128xf32>, vector<128x128xf32>, vector<8x128xf32> -> vector<8x128xf32>
    %c0_163 = arith.constant 0 : index
    %c0_164 = arith.constant 0 : index
    %438 = vector.load %arg8[%c0_163, %c0_164] : memref<1x128xf32, #tpu.memory_space<vmem>>, vector<1x128xf32>
    %439 = vector.broadcast %438 : vector<1x128xf32> to vector<8x128xf32>
    %440 = arith.addf %437, %439 : vector<8x128xf32>
    %441 = arith.index_cast %c7_i32 : i32 to index
    %c0_165 = arith.constant 0 : index
    %c0_166 = arith.constant 0 : index
    %442 = vector.load %arg9[%441, %c0_165, %c0_166] : memref<8x8x128xf32, #tpu.memory_space<vmem>>, vector<1x8x128xf32>
    %443 = vector.shape_cast %442 : vector<1x8x128xf32> to vector<8x128xf32>
    %444 = vector.shape_cast %440 : vector<8x128xf32> to vector<1x8x128xf32>
    tpu.vector_store %arg9[%441, %c0_165, %c0_166], %444 {strides = array<i32>} : memref<8x8x128xf32, #tpu.memory_space<vmem>>, vector<1x8x128xf32>,
    %cst_167 = arith.constant dense<0xFF800000> : vector<8xf32>
    %445 = vector.multi_reduction <maximumf>, %440, %cst_167 [1] : vector<8x128xf32> to vector<8xf32>
    %446 = vector.shape_cast %445 : vector<8xf32> to vector<8x1xf32>
    %447 = vector.broadcast %446 : vector<8x1xf32> to vector<8x128xf32>
    %448 = arith.cmpf oeq, %440, %447 : vector<8x128xf32>
    %c128_i32_168 = arith.constant 128 : i32
    %449 = vector.broadcast %c128_i32_168 : i32 to vector<8x128xi32>
    %450 = arith.select %448, %0, %449 : vector<8x128xi1>, vector<8x128xi32>
    %cst_169 = arith.constant dense<2147483647> : vector<8xi32>
    %451 = vector.multi_reduction <minsi>, %450, %cst_169 [1] : vector<8x128xi32> to vector<8xi32>
    %452 = vector.shape_cast %451 : vector<8xi32> to vector<8x1xi32>
    %453 = vector.broadcast %452 : vector<8x1xi32> to vector<8x128xi32>
    %454 = arith.cmpi eq, %0, %453 : vector<8x128xi32>
    %455 = arith.extui %454 : vector<8x128xi1> to vector<8x128xi32>
    %456 = arith.sitofp %455 : vector<8x128xi32> to vector<8x128xf32>
    %c0_170 = arith.constant 0 : index
    %c0_171 = arith.constant 0 : index
    %457 = vector.load %arg4[%c0_170, %c0_171] : memref<128x128xf32, #tpu.memory_space<vmem>>, vector<128x128xf32>
    %cst_172 = arith.constant dense<0.000000e+00> : vector<8x128xf32>
    %458 = tpu.matmul %456, %457, %cst_172 {dimension_numbers = #tpu.dot_dimension_numbers<[1], [0], [0], [1], [0, 0, 1, 1], [], []>} : vector<8x128xf32>, vector<128x128xf32>, vector<8x128xf32> -> vector<8x128xf32>
    %459 = arith.index_cast %c7_i32 : i32 to index
    %460 = memref.load %arg0[%459] : memref<8xi32, #tpu.memory_space<smem>>
    %461 = arith.sitofp %460 : i32 to f32
    %462 = arith.index_cast %c7_i32 : i32 to index
    %c0_173 = arith.constant 0 : index
    %c0_174 = arith.constant 0 : index
    %463 = vector.load %arg3[%462, %c0_173, %c0_174] : memref<8x8x128xf32, #tpu.memory_space<vmem>>, vector<1x8x128xf32>
    %464 = vector.shape_cast %463 : vector<1x8x128xf32> to vector<8x128xf32>
    %465 = vector.broadcast %461 : f32 to vector<8x128xf32>
    %466 = arith.mulf %465, %464 : vector<8x128xf32>
    %cst_175 = arith.constant 1.000000e+00 : f32
    %467 = arith.subf %cst_175, %461 : f32
    %468 = vector.broadcast %467 : f32 to vector<8x128xf32>
    %469 = arith.mulf %468, %458 : vector<8x128xf32>
    %470 = arith.addf %466, %469 : vector<8x128xf32>
    %c7_i32_176 = arith.constant 7 : i32
    return
  }
}

</mosaic_0001>

<bundles_post_ra>
// kernel: seq2seq_forward.2
= control target key start
LH: loop header
LB: loop body
LE: loop exit
PB: predicated region body
PF: predicated region fallthrough
CT: control target
= control target key end

     0   :  { %v2661_v3 = vmov 0.0   ;;  %s3527_s1 = inlined_call_operand.vmem [shape: f32[128,512], index: 1, kind: input, shape index: {}]   ;;  %s3528_s2 = inlined_call_operand.vmem [shape: f32[128,512], index: 2, kind: input, shape index: {}]   ;;  %s3529_s0 = inlined_call_operand.vmem [shape: f32[64,128], index: 0, kind: input, shape index: {}]   ;;  %s3530_s3 = inlined_call_operand.vmem [shape: f32[1,512], index: 3, kind: input, shape index: {}]   ;;  %s3531_s5 = inlined_call_operand.vmem [shape: f32[8,128], index: 5, kind: output, shape index: {1}]   ;;  %s3532_s4 = inlined_call_operand.vmem [shape: f32[8,128], index: 4, kind: output, shape index: {0}]  }
   0x1   :  { %v28_v0 = vld [vmem:[%s3527_s1 + $0x8] sm:$0xff]  ;;  %v30_v2 = vld [vmem:[%s3527_s1 + $0x18] sm:$0xff]  ;;  %177 = vmatprep.mubr.f32.mxu0 %v2661_v3  ;;  %290 = vmatprep.mubr.f32.mxu1 %v2661_v3  ;;  %v27_v6 = vld [vmem:[%s3527_s1] sm:$0xff] }
   0x2   :  { %v32_v1 = vld [vmem:[%s3527_s1 + $0x28] sm:$0xff]  ;;  %v34_v5 = vld [vmem:[%s3527_s1 + $0x38] sm:$0xff]  ;;  %v31_v7 = vld [vmem:[%s3527_s1 + $0x20] sm:$0xff] }
   0x3   :  { %v1892_v4 = vpack.c.bf16 %v32_v1, %v28_v0  ;;  %v1924_v8 = vpack.c.bf16 %v34_v5, %v30_v2  ;;  %v1894_v9 = vpack.c.bf16 %v31_v7, %v27_v6  ;;  %v29_v10 = vld [vmem:[%s3527_s1 + $0x10] sm:$0xff]  ;;  %v36_v12 = vld [vmem:[%s3527_s1 + $0x48] sm:$0xff]  ;;  %v38_v15 = vld [vmem:[%s3527_s1 + $0x58] sm:$0xff] }
   0x4   :  { %v33_v11 = vld [vmem:[%s3527_s1 + $0x30] sm:$0xff]  ;;  %v40_v14 = vld [vmem:[%s3527_s1 + $0x68] sm:$0xff]  ;;  %v42_v16 = vld [vmem:[%s3527_s1 + $0x78] sm:$0xff] }
   0x5   :  { %1893 = vmatprep.subr.bf16.mxu0 %v1892_v4  ;;  %v1926_v13 = vpack.c.bf16 %v33_v11, %v29_v10  ;;  %1925 = vmatprep.subr.bf16.mxu1 %v1924_v8  ;;  %v1896_v17 = vpack.c.bf16 %v40_v14, %v36_v12  ;;  %v1928_v18 = vpack.c.bf16 %v42_v16, %v38_v15  ;;  %v35_v19 = vld [vmem:[%s3527_s1 + $0x40] sm:$0xff]  ;;  %v37_v21 = vld [vmem:[%s3527_s1 + $0x50] sm:$0xff]  ;;  %v44_v24 = vld [vmem:[%s3527_s1 + $0x88] sm:$0xff] }
   0x6   :  { %1895 = vmatpush1.bf16.msra.mxu0 %v1894_v9  ;;  %v39_v20 = vld [vmem:[%s3527_s1 + $0x60] sm:$0xff]  ;;  %v41_v23 = vld [vmem:[%s3527_s1 + $0x70] sm:$0xff]  ;;  %v48_v25 = vld [vmem:[%s3527_s1 + $0xa8] sm:$0xff] }
   0x7   :  { %1927 = vmatpush1.bf16.msra.mxu1 %v1926_v13  ;;  %v1898_v22 = vpack.c.bf16 %v39_v20, %v35_v19  ;;  %1897 = vmatprep.subr.bf16.mxu0 %v1896_v17  ;;  %v1930_v26 = vpack.c.bf16 %v41_v23, %v37_v21  ;;  %v1900_v27 = vpack.c.bf16 %v48_v25, %v44_v24  ;;  %v46_v28 = vld [vmem:[%s3527_s1 + $0x98] sm:$0xff]  ;;  %v43_v30 = vld [vmem:[%s3527_s1 + $0x80] sm:$0xff]  ;;  %v45_v33 = vld [vmem:[%s3527_s1 + $0x90] sm:$0xff] }
   0x8   :  { %1929 = vmatprep.subr.bf16.mxu1 %v1928_v18  ;;  %v50_v29 = vld [vmem:[%s3527_s1 + $0xb8] sm:$0xff]  ;;  %v47_v32 = vld [vmem:[%s3527_s1 + $0xa0] sm:$0xff]  ;;  %v49_v34 = vld [vmem:[%s3527_s1 + $0xb0] sm:$0xff] }
   0x9   :  { %v1932_v31 = vpack.c.bf16 %v50_v29, %v46_v28  ;;  %v1902_v35 = vpack.c.bf16 %v47_v32, %v43_v30  ;;  %v52_v36 = vld [vmem:[%s3527_s1 + $0xc8] sm:$0xff]  ;;  %v54_v38 = vld [vmem:[%s3527_s1 + $0xd8] sm:$0xff]  ;;  %v1934_v39 = vpack.c.bf16 %v49_v34, %v45_v33  ;;  %v51_v42 = vld [vmem:[%s3527_s1 + $0xc0] sm:$0xff] }
   0xa   :  { %1899 = vmatpush1.bf16.msra.mxu0 %v1898_v22  ;;  %v56_v37 = vld [vmem:[%s3527_s1 + $0xe8] sm:$0xff]  ;;  %v58_v41 = vld [vmem:[%s3527_s1 + $0xf8] sm:$0xff]  ;;  %v55_v43 = vld [vmem:[%s3527_s1 + $0xe0] sm:$0xff] }
   0xb   :  { %1931 = vmatpush1.bf16.msra.mxu1 %v1930_v26  ;;  %1901 = vmatprep.subr.bf16.mxu0 %v1900_v27  ;;  %v1904_v40 = vpack.c.bf16 %v56_v37, %v52_v36  ;;  %v1936_v44 = vpack.c.bf16 %v58_v41, %v54_v38  ;;  %v53_v45 = vld [vmem:[%s3527_s1 + $0xd0] sm:$0xff]  ;;  %v60_v47 = vld [vmem:[%s3527_s1 + $0x108] sm:$0xff]  ;;  %v62_v49 = vld [vmem:[%s3527_s1 + $0x118] sm:$0xff]  ;;  %v1906_v51 = vpack.c.bf16 %v55_v43, %v51_v42 }
   0xc   :  { %1933 = vmatprep.subr.bf16.mxu1 %v1932_v31  ;;  %v57_v46 = vld [vmem:[%s3527_s1 + $0xf0] sm:$0xff]  ;;  %v64_v48 = vld [vmem:[%s3527_s1 + $0x128] sm:$0xff]  ;;  %v66_v50 = vld [vmem:[%s3527_s1 + $0x138] sm:$0xff] }
   0xd   :  { %v1938_v52 = vpack.c.bf16 %v57_v46, %v53_v45  ;;  %v1908_v53 = vpack.c.bf16 %v64_v48, %v60_v47  ;;  %v59_v54 = vld [vmem:[%s3527_s1 + $0x100] sm:$0xff]  ;;  %v61_v56 = vld [vmem:[%s3527_s1 + $0x110] sm:$0xff]  ;;  %v1940_v57 = vpack.c.bf16 %v66_v50, %v62_v49  ;;  %v68_v59 = vld [vmem:[%s3527_s1 + $0x148] sm:$0xff] }
   0xe   :  { %1903 = vmatpush1.bf16.msra.mxu0 %v1902_v35  ;;  %v63_v55 = vld [vmem:[%s3527_s1 + $0x120] sm:$0xff]  ;;  %v65_v58 = vld [vmem:[%s3527_s1 + $0x130] sm:$0xff]  ;;  %v72_v60 = vld [vmem:[%s3527_s1 + $0x168] sm:$0xff] }
   0xf   :  { %1935 = vmatpush1.bf16.msra.mxu1 %v1934_v39  ;;  %1905 = vmatprep.subr.bf16.mxu0 %v1904_v40  ;;  %v70_v61 = vld [vmem:[%s3527_s1 + $0x158] sm:$0xff]  ;;  %v1910_v63 = vpack.c.bf16 %v63_v55, %v59_v54  ;;  %v1942_v0 = vpack.c.bf16 %v65_v58, %v61_v56  ;;  %v1912_v1 = vpack.c.bf16 %v72_v60, %v68_v59  ;;  %v67_v2 = vld [vmem:[%s3527_s1 + $0x140] sm:$0xff]  ;;  %v69_v5 = vld [vmem:[%s3527_s1 + $0x150] sm:$0xff] }
  0x10   :  { %1937 = vmatprep.subr.bf16.mxu1 %v1936_v44  ;;  %v74_v62 = vld [vmem:[%s3527_s1 + $0x178] sm:$0xff]  ;;  %v71_v4 = vld [vmem:[%s3527_s1 + $0x160] sm:$0xff]  ;;  %v73_v7 = vld [vmem:[%s3527_s1 + $0x170] sm:$0xff] }
  0x11   :  { %v1944_v6 = vpack.c.bf16 %v74_v62, %v70_v61  ;;  %v76_v8 = vld [vmem:[%s3527_s1 + $0x188] sm:$0xff]  ;;  %v78_v10 = vld [vmem:[%s3527_s1 + $0x198] sm:$0xff]  ;;  %v1914_v12 = vpack.c.bf16 %v71_v4, %v67_v2  ;;  %v1946_v13 = vpack.c.bf16 %v73_v7, %v69_v5  ;;  %v75_v15 = vld [vmem:[%s3527_s1 + $0x180] sm:$0xff] }
  0x12   :  { %1907 = vmatpush1.bf16.msra.mxu0 %v1906_v51  ;;  %v80_v9 = vld [vmem:[%s3527_s1 + $0x1a8] sm:$0xff]  ;;  %v82_v11 = vld [vmem:[%s3527_s1 + $0x1b8] sm:$0xff]  ;;  %v79_v16 = vld [vmem:[%s3527_s1 + $0x1a0] sm:$0xff] }
  0x13   :  { %1939 = vmatpush1.bf16.msra.mxu1 %v1938_v52  ;;  %1909 = vmatprep.subr.bf16.mxu0 %v1908_v53  ;;  %v1916_v14 = vpack.c.bf16 %v80_v9, %v76_v8  ;;  %v77_v17 = vld [vmem:[%s3527_s1 + $0x190] sm:$0xff]  ;;  %v1948_v18 = vpack.c.bf16 %v82_v11, %v78_v10  ;;  %v84_v20 = vld [vmem:[%s3527_s1 + $0x1c8] sm:$0xff]  ;;  %v86_v22 = vld [vmem:[%s3527_s1 + $0x1d8] sm:$0xff]  ;;  %v1918_v24 = vpack.c.bf16 %v79_v16, %v75_v15 }
  0x14   :  { %1941 = vmatprep.subr.bf16.mxu1 %v1940_v57  ;;  %v81_v19 = vld [vmem:[%s3527_s1 + $0x1b0] sm:$0xff]  ;;  %v88_v21 = vld [vmem:[%s3527_s1 + $0x1e8] sm:$0xff]  ;;  %v90_v23 = vld [vmem:[%s3527_s1 + $0x1f8] sm:$0xff] }
  0x15   :  { %v1950_v25 = vpack.c.bf16 %v81_v19, %v77_v17  ;;  %v1920_v26 = vpack.c.bf16 %v88_v21, %v84_v20  ;;  %v83_v27 = vld [vmem:[%s3527_s1 + $0x1c0] sm:$0xff]  ;;  %v85_v29 = vld [vmem:[%s3527_s1 + $0x1d0] sm:$0xff]  ;;  %v1952_v30 = vpack.c.bf16 %v90_v23, %v86_v22  ;;  %v379_v32 = vld [vmem:[%s3528_s2 + $0x8] sm:$0xff] }
  0x16   :  { %1911 = vmatpush1.bf16.msra.mxu0 %v1910_v63  ;;  %v87_v28 = vld [vmem:[%s3527_s1 + $0x1e0] sm:$0xff]  ;;  %v89_v31 = vld [vmem:[%s3527_s1 + $0x1f0] sm:$0xff]  ;;  %v383_v33 = vld [vmem:[%s3528_s2 + $0x28] sm:$0xff] }
  0x17   :  { %1943 = vmatpush1.bf16.msra.mxu1 %v1942_v0  ;;  %1913 = vmatprep.subr.bf16.mxu0 %v1912_v1  ;;  %v381_v34 = vld [vmem:[%s3528_s2 + $0x18] sm:$0xff]  ;;  %v1922_v36 = vpack.c.bf16 %v87_v28, %v83_v27  ;;  %v1954_v37 = vpack.c.bf16 %v89_v31, %v85_v29  ;;  %v2898_v38 = vpack.c.bf16 %v383_v33, %v379_v32  ;;  %v378_v39 = vld [vmem:[%s3528_s2] sm:$0xff]  ;;  %v380_v42 = vld [vmem:[%s3528_s2 + $0x10] sm:$0xff] }
  0x18   :  { %1945 = vmatprep.subr.bf16.mxu1 %v1944_v6  ;;  %v385_v35 = vld [vmem:[%s3528_s2 + $0x38] sm:$0xff]  ;;  %v382_v40 = vld [vmem:[%s3528_s2 + $0x20] sm:$0xff]  ;;  %v384_v43 = vld [vmem:[%s3528_s2 + $0x30] sm:$0xff] }
  0x19   :  { %v2906_v41 = vpack.c.bf16 %v385_v35, %v381_v34  ;;  %v387_v44 = vld [vmem:[%s3528_s2 + $0x48] sm:$0xff]  ;;  %v19_v46 = vld [vmem:[%s3529_s0] sm:$0xff]  ;;  %v2923_v47 = vpack.c.bf16 %v382_v40, %v378_v39  ;;  %v389_v48 = vld [vmem:[%s3528_s2 + $0x58] sm:$0xff]  ;;  %v2932_v50 = vpack.c.bf16 %v384_v43, %v380_v42 }
  0x1a   :  { %1915 = vmatpush1.bf16.msra.mxu0 %v1914_v12  ;;  %v391_v45 = vld [vmem:[%s3528_s2 + $0x68] sm:$0xff]  ;;  %v393_v49 = vld [vmem:[%s3528_s2 + $0x78] sm:$0xff]  ;;  %v386_v51 = vld [vmem:[%s3528_s2 + $0x40] sm:$0xff] }
  0x1b   :  { %1947 = vmatpush1.bf16.msra.mxu1 %v1946_v13  ;;  %1917 = vmatprep.subr.bf16.mxu0 %v1916_v14  ;;  %v390_v52 = vld [vmem:[%s3528_s2 + $0x60] sm:$0xff]  ;;  %v2941_v53 = vpack.c.bf16 %v391_v45, %v387_v44  ;;  %v388_v54 = vld [vmem:[%s3528_s2 + $0x50] sm:$0xff]  ;;  %v2949_v56 = vpack.c.bf16 %v393_v49, %v389_v48  ;;  %v395_v57 = vld [vmem:[%s3528_s2 + $0x88] sm:$0xff] }
  0x1c   :  { %1949 = vmatprep.subr.bf16.mxu1 %v1948_v18  ;;  %v392_v55 = vld [vmem:[%s3528_s2 + $0x70] sm:$0xff]  ;;  %v399_v58 = vld [vmem:[%s3528_s2 + $0xa8] sm:$0xff]  ;;  %v2961_v60 = vpack.c.bf16 %v390_v52, %v386_v51  ;;  %v397_v61 = vld [vmem:[%s3528_s2 + $0x98] sm:$0xff] }
  0x1d   :  { %v20_v59 = vld [vmem:[%s3529_s0 + $0x8] sm:$0xff]  ;;  %v401_v62 = vld [vmem:[%s3528_s2 + $0xb8] sm:$0xff]  ;;  %v2971_v63 = vpack.c.bf16 %v392_v55, %v388_v54  ;;  %v394_v0 = vld [vmem:[%s3528_s2 + $0x80] sm:$0xff]  ;;  %v2981_v2 = vpack.c.bf16 %v399_v58, %v395_v57 }
  0x1e   :  { %1919 = vmatpush1.bf16.msra.mxu0 %v1918_v24  ;;  %v398_v1 = vld [vmem:[%s3528_s2 + $0xa0] sm:$0xff]  ;;  %v396_v4 = vld [vmem:[%s3528_s2 + $0x90] sm:$0xff]  ;;  %v2990_v6 = vpack.c.bf16 %v401_v62, %v397_v61  ;;  %v403_v7 = vld [vmem:[%s3528_s2 + $0xc8] sm:$0xff] }
  0x1f   :  { %1951 = vmatpush1.bf16.msra.mxu1 %v1950_v25  ;;  %1921 = vmatprep.subr.bf16.mxu0 %v1920_v26  ;;  %v400_v5 = vld [vmem:[%s3528_s2 + $0xb0] sm:$0xff]  ;;  %v407_v8 = vld [vmem:[%s3528_s2 + $0xe8] sm:$0xff]  ;;  %v3002_v10 = vpack.c.bf16 %v398_v1, %v394_v0  ;;  %v405_v11 = vld [vmem:[%s3528_s2 + $0xd8] sm:$0xff] }
  0x20   :  { %1953 = vmatprep.subr.bf16.mxu1 %v1952_v30  ;;  %v21_v9 = vld [vmem:[%s3529_s0 + $0x10] sm:$0xff]  ;;  %v409_v12 = vld [vmem:[%s3528_s2 + $0xf8] sm:$0xff]  ;;  %v3012_v13 = vpack.c.bf16 %v400_v5, %v396_v4  ;;  %v402_v14 = vld [vmem:[%s3528_s2 + $0xc0] sm:$0xff]  ;;  %v3022_v16 = vpack.c.bf16 %v407_v8, %v403_v7 }
  0x21   :  { %v406_v15 = vld [vmem:[%s3528_s2 + $0xe0] sm:$0xff]  ;;  %v404_v17 = vld [vmem:[%s3528_s2 + $0xd0] sm:$0xff]  ;;  %v3031_v19 = vpack.c.bf16 %v409_v12, %v405_v11  ;;  %v411_v20 = vld [vmem:[%s3528_s2 + $0x108] sm:$0xff] }
  0x22   :  { %1923 = vmatpush1.bf16.msra.mxu0 %v1922_v36  ;;  %v408_v18 = vld [vmem:[%s3528_s2 + $0xf0] sm:$0xff]  ;;  %v415_v21 = vld [vmem:[%s3528_s2 + $0x128] sm:$0xff]  ;;  %v22_v22 = vld [vmem:[%s3529_s0 + $0x18] sm:$0xff]  ;;  %v3043_v23 = vpack.c.bf16 %v406_v15, %v402_v14 }
  0x23   :  { %1955 = vmatpush1.bf16.msra.mxu1 %v1954_v37  ;;  %1957 = vmatprep.subr.bf16.mxu0 %v2898_v38  ;;  %v413_v24 = vld [vmem:[%s3528_s2 + $0x118] sm:$0xff]  ;;  %v3053_v26 = vpack.c.bf16 %v408_v18, %v404_v17  ;;  %v410_v27 = vld [vmem:[%s3528_s2 + $0x100] sm:$0xff]  ;;  %v3063_v29 = vpack.c.bf16 %v415_v21, %v411_v20  ;;  %v412_v30 = vld [vmem:[%s3528_s2 + $0x110] sm:$0xff] }
  0x24   :  { %1989 = vmatprep.subr.bf16.mxu1 %v2906_v41  ;;  %v417_v25 = vld [vmem:[%s3528_s2 + $0x138] sm:$0xff]  ;;  %v414_v28 = vld [vmem:[%s3528_s2 + $0x120] sm:$0xff]  ;;  %v416_v31 = vld [vmem:[%s3528_s2 + $0x130] sm:$0xff] }
  0x25   :  { %178 = vmatmul.mubr.f32.vlgmr.msra.gmra.mrb[0].mxu0 %v19_v46  ;;  %v3072_v32 = vpack.c.bf16 %v417_v25, %v413_v24  ;;  %v419_v33 = vld [vmem:[%s3528_s2 + $0x148] sm:$0xff]  ;;  %v23_v35 = vld [vmem:[%s3529_s0 + $0x20] sm:$0xff]  ;;  %v3084_v36 = vpack.c.bf16 %v414_v28, %v410_v27  ;;  %v421_v37 = vld [vmem:[%s3528_s2 + $0x158] sm:$0xff]  ;;  %v3094_v40 = vpack.c.bf16 %v416_v31, %v412_v30  ;;  %v93_v28 = vlaneseq }
  0x26   :  { %291 = vmatmul.mubr.f32.vlgmr.msra.gmra.mrb[0].mxu1 %v19_v46  ;;  %1959 = vmatpush1.bf16.msra.mxu0 %v2923_v47  ;;  %v423_v34 = vld [vmem:[%s3528_s2 + $0x168] sm:$0xff]  ;;  %v425_v39 = vld [vmem:[%s3528_s2 + $0x178] sm:$0xff]  ;;  %v418_v42 = vld [vmem:[%s3528_s2 + $0x140] sm:$0xff] }
  0x27   :  { %1991 = vmatpush1.bf16.msra.mxu1 %v2932_v50  ;;  %183 = vmatprep.mubr.f32.mxu0 %v2661_v3  ;;  %v422_v43 = vld [vmem:[%s3528_s2 + $0x160] sm:$0xff]  ;;  %v3104_v44 = vpack.c.bf16 %v423_v34, %v419_v33  ;;  %v420_v45 = vld [vmem:[%s3528_s2 + $0x150] sm:$0xff]  ;;  %v3113_v48 = vpack.c.bf16 %v425_v39, %v421_v37  ;;  %v427_v49 = vld [vmem:[%s3528_s2 + $0x188] sm:$0xff]  ;;  %v94_v30 = vshrl.u32 %v93_v28, 7 }
  0x28   :  { %296 = vmatprep.mubr.f32.mxu1 %v2661_v3  ;;  %1961 = vmatprep.subr.bf16.mxu0 %v2941_v53  ;;  %v424_v46 = vld [vmem:[%s3528_s2 + $0x170] sm:$0xff]  ;;  %v431_v51 = vld [vmem:[%s3528_s2 + $0x1a8] sm:$0xff]  ;;  %v3125_v54 = vpack.c.bf16 %v422_v43, %v418_v42  ;;  %v429_v55 = vld [vmem:[%s3528_s2 + $0x198] sm:$0xff] }
  0x29   :  { %184 = vmatmul.mubr.f32.gmra.mrb[2].mxu0 %v20_v59  ;;  %1993 = vmatprep.subr.bf16.mxu1 %v2949_v56  ;;  %v24_v52 = vld [vmem:[%s3529_s0 + $0x28] sm:$0xff]  ;;  %v433_v57 = vld [vmem:[%s3528_s2 + $0x1b8] sm:$0xff]  ;;  %v3135_v58 = vpack.c.bf16 %v424_v46, %v420_v45  ;;  %v430_v61 = vld [vmem:[%s3528_s2 + $0x1a0] sm:$0xff]  ;;  %v3145_v62 = vpack.c.bf16 %v431_v51, %v427_v49  ;;  %v95_v31 = vsub.s32 0, %v94_v30  ;;  %v99_v34 = vsub.s32 1, %v94_v30 }
  0x2a   :  { %297 = vmatmul.mubr.f32.gmra.mrb[2].mxu1 %v20_v59  ;;  %1963 = vmatpush1.bf16.msra.mxu0 %v2961_v60  ;;  %v426_v59 = vld [vmem:[%s3528_s2 + $0x180] sm:$0xff]  ;;  %v428_v0 = vld [vmem:[%s3528_s2 + $0x190] sm:$0xff]  ;;  %v3154_v4 = vpack.c.bf16 %v433_v57, %v429_v55  ;;  %v435_v5 = vld [vmem:[%s3528_s2 + $0x1c8] sm:$0xff]  ;;  %v107_v42 = vsub.s32 3, %v94_v30 }
  0x2b   :  { %1995 = vmatpush1.bf16.msra.mxu1 %v2971_v63  ;;  %189 = vmatprep.mubr.f32.mxu0 %v2661_v3  ;;  %v432_v1 = vld [vmem:[%s3528_s2 + $0x1b0] sm:$0xff]  ;;  %v439_v7 = vld [vmem:[%s3528_s2 + $0x1e8] sm:$0xff]  ;;  %v437_v11 = vld [vmem:[%s3528_s2 + $0x1d8] sm:$0xff] }
  0x2c   :  { %302 = vmatprep.mubr.f32.mxu1 %v2661_v3  ;;  %1965 = vmatprep.subr.bf16.mxu0 %v2981_v2  ;;  %v25_v8 = vld [vmem:[%s3529_s0 + $0x30] sm:$0xff]  ;;  %v441_v12 = vld [vmem:[%s3528_s2 + $0x1f8] sm:$0xff]  ;;  %v3176_v14 = vpack.c.bf16 %v432_v1, %v428_v0  ;;  %v434_v15 = vld [vmem:[%s3528_s2 + $0x1c0] sm:$0xff]  ;;  %v3186_v18 = vpack.c.bf16 %v439_v7, %v435_v5 }
  0x2d   :  { %190 = vmatmul.mubr.f32.gmra.mrb[4].mxu0 %v21_v9  ;;  %1997 = vmatprep.subr.bf16.mxu1 %v2990_v6  ;;  %v438_v17 = vld [vmem:[%s3528_s2 + $0x1e0] sm:$0xff]  ;;  %v436_v20 = vld [vmem:[%s3528_s2 + $0x1d0] sm:$0xff]  ;;  %v26_v24 = vld [vmem:[%s3529_s0 + $0x38] sm:$0xff] }
  0x2e   :  { %303 = vmatmul.mubr.f32.gmra.mrb[4].mxu1 %v21_v9  ;;  %1967 = vmatpush1.bf16.msra.mxu0 %v3002_v10  ;;  %v3166_v9 = vpack.c.bf16 %v430_v61, %v426_v59  ;;  %v440_v21 = vld [vmem:[%s3528_s2 + $0x1f0] sm:$0xff]  ;;  %v3201_v25 = vpack.c.bf16 %v438_v17, %v434_v15  ;;  %v91_v33 = vld [vmem:[%s3530_s3] sm:$0xf]  ;;  %v103_v59 = vsub.s32 2, %v94_v30 }
  0x2f   :  { %1999 = vmatpush1.bf16.msra.mxu1 %v3012_v13  ;;  %195 = vmatprep.mubr.f32.mxu0 %v2661_v3  ;;  %v3205_v27 = vpack.c.bf16 %v440_v21, %v436_v20  ;;  %v3257_v37 = vrot.slane %v91_v33, %v99_v34  ;;  %v3261_v57 = vrot.slane %v91_v33, %v107_v42 }
  0x30   :  { %308 = vmatprep.mubr.f32.mxu1 %v2661_v3  ;;  %1969 = vmatprep.subr.bf16.mxu0 %v3022_v16  ;;  %v3264_v0 = vrot.slane %v91_v33, %v103_v59 }
  0x31   :  { %196 = vmatmul.mubr.f32.gmra.mrb[6].mxu0 %v22_v22  ;;  %2001 = vmatprep.subr.bf16.mxu1 %v3031_v19 }
  0x32   :  { %309 = vmatmul.mubr.f32.gmra.mrb[6].mxu1 %v22_v22  ;;  %1971 = vmatpush1.bf16.msra.mxu0 %v3043_v23  ;;  %v3195_v22 = vpack.c.bf16 %v441_v12, %v437_v11 }
  0x33   :  { %2003 = vmatpush1.bf16.msra.mxu1 %v3053_v26  ;;  %201 = vmatprep.mubr.f32.mxu0 %v2661_v3 }
  0x34   :  { %314 = vmatprep.mubr.f32.mxu1 %v2661_v3  ;;  %1973 = vmatprep.subr.bf16.mxu0 %v3063_v29 }
  0x35   :  { %202 = vmatmul.mubr.f32.gmra.mrb[8].mxu0 %v23_v35  ;;  %2005 = vmatprep.subr.bf16.mxu1 %v3072_v32 }
  0x36   :  { %315 = vmatmul.mubr.f32.gmra.mrb[8].mxu1 %v23_v35  ;;  %1975 = vmatpush1.bf16.msra.mxu0 %v3084_v36  ;;  %v3255_v35 = vrot.slane %v91_v33, %v95_v31 }
  0x37   :  { %2007 = vmatpush1.bf16.msra.mxu1 %v3094_v40  ;;  %207 = vmatprep.mubr.f32.mxu0 %v2661_v3 }
  0x38   :  { %320 = vmatprep.mubr.f32.mxu1 %v2661_v3  ;;  %1977 = vmatprep.subr.bf16.mxu0 %v3104_v44 }
  0x39   :  { %208 = vmatmul.mubr.f32.gmra.mrb[10].mxu0 %v24_v52  ;;  %2009 = vmatprep.subr.bf16.mxu1 %v3113_v48 }
  0x3a   :  { %321 = vmatmul.mubr.f32.gmra.mrb[10].mxu1 %v24_v52  ;;  %1979 = vmatpush1.bf16.msra.mxu0 %v3125_v54 }
  0x3b   :  { %2011 = vmatpush1.bf16.msra.mxu1 %v3135_v58  ;;  %213 = vmatprep.mubr.f32.mxu0 %v2661_v3 }
  0x3c   :  { %326 = vmatprep.mubr.f32.mxu1 %v2661_v3  ;;  %1981 = vmatprep.subr.bf16.mxu0 %v3145_v62 }
  0x3d   :  { %214 = vmatmul.mubr.f32.gmra.mrb[12].mxu0 %v25_v8  ;;  %2013 = vmatprep.subr.bf16.mxu1 %v3154_v4 }
  0x3e   :  { %327 = vmatmul.mubr.f32.gmra.mrb[12].mxu1 %v25_v8  ;;  %1983 = vmatpush1.bf16.msra.mxu0 %v3166_v9 }
  0x3f   :  { %2015 = vmatpush1.bf16.msra.mxu1 %v3176_v14  ;;  %219 = vmatprep.mubr.f32.mxu0 %v2661_v3 }
  0x40   :  { %332 = vmatprep.mubr.f32.mxu1 %v2661_v3  ;;  %1985 = vmatprep.subr.bf16.mxu0 %v3186_v18 }
  0x41   :  { %220 = vmatmul.mubr.f32.gmra.mrb[14].mxu0 %v26_v24  ;;  %2017 = vmatprep.subr.bf16.mxu1 %v3195_v22 }
  0x42   :  { %333 = vmatmul.mubr.f32.gmra.mrb[14].mxu1 %v26_v24  ;;  %1987 = vmatpush1.bf16.msra.mxu0 %v3201_v25 }
  0x43   :  { %2019 = vmatpush1.bf16.msra.mxu1 %v3205_v27  ;;  %506 = vmatprep.mubr.f32.mxu0 %v2661_v3 }
  0x44   :  { %577 = vmatprep.mubr.f32.mxu1 %v2661_v3  ;;  %2021 = vmatprep.subr.bf16.mxu0 %v2898_v38 }
  0x45   :  { %507 = vmatmul.mubr.f32.vlgmr.msra.gmra.mrb[0].mxu0 %v2661_v3  ;;  %2053 = vmatprep.subr.bf16.mxu1 %v2906_v41 }
  0x46   :  { %578 = vmatmul.mubr.f32.vlgmr.msra.gmra.mrb[0].mxu1 %v2661_v3  ;;  %2023 = vmatpush1.bf16.msra.mxu0 %v2923_v47 }
  0x47   :  { %2055 = vmatpush1.bf16.msra.mxu1 %v2932_v50  ;;  %2025 = vmatprep.subr.bf16.mxu0 %v2941_v53 }
  0x48   :  { %2057 = vmatprep.subr.bf16.mxu1 %v2949_v56  ;;  %683 = vmatprep.mubr.f32.mxu0 %v2661_v3 }
  0x49   :  { %754 = vmatprep.mubr.f32.mxu1 %v2661_v3 }
  0x4a   :  { %2027 = vmatpush1.bf16.msra.mxu0 %v2961_v60 }
  0x4b   :  { %2059 = vmatpush1.bf16.msra.mxu1 %v2971_v63  ;;  %2029 = vmatprep.subr.bf16.mxu0 %v2981_v2 }
  0x4c   :  { %2061 = vmatprep.subr.bf16.mxu1 %v2990_v6 }
  0x4e   :  { %2031 = vmatpush1.bf16.msra.mxu0 %v3002_v10 }
  0x4f   :  { %2063 = vmatpush1.bf16.msra.mxu1 %v3012_v13  ;;  %2033 = vmatprep.subr.bf16.mxu0 %v3022_v16 }
  0x50   :  { %2065 = vmatprep.subr.bf16.mxu1 %v3031_v19 }
  0x52   :  { %2035 = vmatpush1.bf16.msra.mxu0 %v3043_v23 }
  0x53   :  { %2067 = vmatpush1.bf16.msra.mxu1 %v3053_v26  ;;  %2037 = vmatprep.subr.bf16.mxu0 %v3063_v29 }
  0x54   :  { %2069 = vmatprep.subr.bf16.mxu1 %v3072_v32 }
  0x56   :  { %2039 = vmatpush1.bf16.msra.mxu0 %v3084_v36 }
  0x57   :  { %2071 = vmatpush1.bf16.msra.mxu1 %v3094_v40  ;;  %2041 = vmatprep.subr.bf16.mxu0 %v3104_v44 }
  0x58   :  { %2073 = vmatprep.subr.bf16.mxu1 %v3113_v48 }
  0x5a   :  { %2043 = vmatpush1.bf16.msra.mxu0 %v3125_v54 }
  0x5b   :  { %2075 = vmatpush1.bf16.msra.mxu1 %v3135_v58  ;;  %2045 = vmatprep.subr.bf16.mxu0 %v3145_v62 }
  0x5c   :  { %2077 = vmatprep.subr.bf16.mxu1 %v3154_v4 }
  0x5e   :  { %2047 = vmatpush1.bf16.msra.mxu0 %v3166_v9 }
  0x5f   :  { %2079 = vmatpush1.bf16.msra.mxu1 %v3176_v14  ;;  %2049 = vmatprep.subr.bf16.mxu0 %v3186_v18 }
  0x60   :  { %2081 = vmatprep.subr.bf16.mxu1 %v3195_v22 }
  0x62   :  { %2051 = vmatpush1.bf16.msra.mxu0 %v3201_v25 }
  0x63   :  { %2083 = vmatpush1.bf16.msra.mxu1 %v3205_v27  ;;  %2085 = vmatprep.subr.bf16.mxu0 %v2898_v38 }
  0x64   :  { %2117 = vmatprep.subr.bf16.mxu1 %v2906_v41 }
 0x118   :  { %v508_v39 = vpop.f32.mrb[0].mxu0 }
 0x119   :  { %v2468_v43 = vadd.f32 %v508_v39, %v3255_v35  ;;  %v579_v45 = vpop.f32.mrb[0].mxu1  ;;  %v510_v46 = vpop.f32.mrb[1].mxu0 }
 0x11a   :  { %v2469_v49 = vadd.f32 %v510_v46, %v3257_v37  ;;  %v581_v51 = vpop.f32.mrb[1].mxu1  ;;  %v2484_v5 = vadd.f32 %v579_v45, %v3264_v0 }
 0x11b   :  { %v1868_v52 = vmul.f32 -1.442695, %v2468_v43  ;;  %v2485_v61 = vadd.f32 %v581_v51, %v3261_v57 }
 0x11c   :  { %v1869_v55 = vmul.f32 -1.442695, %v2469_v49 }
 0x11d   :  { %2533 = vpow2.f32 %v1868_v52  ;;  %v1870_v1 = vmul.f32 -1.442695, %v2485_v61 }
 0x11e   :  { %2535 = vpow2.f32 %v1869_v55 }
 0x11f   :  { %2537 = vpow2.f32 %v1870_v1 }
 0x120   :  { %2539 = vtanh.f32 %v2484_v5 }
 0x127   :  { %v2534_v7 = vpop.eup %2533 }
 0x128   :  { %v2536_v8 = vpop.eup %2535  ;;  %v591_v11 = vadd.f32 1.0, %v2534_v7 }
 0x129   :  { %v597_v12 = vadd.f32 1.0, %v2536_v8  ;;  %v2538_v15 = vpop.eup %2537 }
 0x12a   :  { %2541 = vrcp.f32 %v591_v11  ;;  %v2540_v17 = vpop.eup %2539  ;;  %v604_v28 = vadd.f32 1.0, %v2538_v15 }
 0x12b   :  { %2543 = vrcp.f32 %v597_v12 }
 0x12c   :  { %2545 = vrcp.f32 %v604_v28 }
 0x134   :  { %v2542_v20 = vpop.eup %2541 }
 0x135   :  { %v2544_v21 = vpop.eup %2543  ;;  %v608_v24 = vmul.f32 %v2542_v20, %v2540_v17 }
 0x136   :  { %v607_v30 = vmul.f32 0.0, %v2544_v21  ;;  %v2546_v33 = vpop.eup %2545 }
 0x138   :  { %v3267_v31 = vadd.f32 %v608_v24, %v607_v30 }
 0x13a   :  { %2547 = vtanh.f32 %v3267_v31 }
 0x144   :  { %v2548_v34 = vpop.eup %2547 }
 0x145   :  { %v611_v39 = vmul.f32 %v2548_v34, %v2546_v33 }
 0x147   :  { %684 = vmatmul.mubr.f32.vlgmr.msra.gmra.mrb[2].mxu0 %v611_v39  ;;  %755 = vmatmul.mubr.f32.vlgmr.msra.gmra.mrb[2].mxu1 %v611_v39 }
 0x148   :  { %2087 = vmatpush1.bf16.msra.mxu0 %v2923_v47  ;;  %2119 = vmatpush1.bf16.msra.mxu1 %v2932_v50 }
 0x149   :  { %2089 = vmatprep.subr.bf16.mxu0 %v2941_v53  ;;  %2121 = vmatprep.subr.bf16.mxu1 %v2949_v56 }
 0x14a   :  { %860 = vmatprep.mubr.f32.mxu0 %v2661_v3  ;;  %931 = vmatprep.mubr.f32.mxu1 %v2661_v3 }
 0x14c   :  { %2091 = vmatpush1.bf16.msra.mxu0 %v2961_v60  ;;  %2123 = vmatpush1.bf16.msra.mxu1 %v2971_v63 }
 0x14d   :  { %2093 = vmatprep.subr.bf16.mxu0 %v2981_v2  ;;  %2125 = vmatprep.subr.bf16.mxu1 %v2990_v6 }
 0x150   :  { %2095 = vmatpush1.bf16.msra.mxu0 %v3002_v10  ;;  %2127 = vmatpush1.bf16.msra.mxu1 %v3012_v13 }
 0x151   :  { %2097 = vmatprep.subr.bf16.mxu0 %v3022_v16  ;;  %2129 = vmatprep.subr.bf16.mxu1 %v3031_v19 }
 0x154   :  { %2099 = vmatpush1.bf16.msra.mxu0 %v3043_v23  ;;  %2131 = vmatpush1.bf16.msra.mxu1 %v3053_v26 }
 0x155   :  { %2101 = vmatprep.subr.bf16.mxu0 %v3063_v29  ;;  %2133 = vmatprep.subr.bf16.mxu1 %v3072_v32 }
 0x158   :  { %2103 = vmatpush1.bf16.msra.mxu0 %v3084_v36  ;;  %2135 = vmatpush1.bf16.msra.mxu1 %v3094_v40 }
 0x159   :  { %2105 = vmatprep.subr.bf16.mxu0 %v3104_v44  ;;  %2137 = vmatprep.subr.bf16.mxu1 %v3113_v48 }
 0x15c   :  { %2107 = vmatpush1.bf16.msra.mxu0 %v3125_v54  ;;  %2139 = vmatpush1.bf16.msra.mxu1 %v3135_v58 }
 0x15d   :  { %2109 = vmatprep.subr.bf16.mxu0 %v3145_v62  ;;  %2141 = vmatprep.subr.bf16.mxu1 %v3154_v4 }
 0x160   :  { %2111 = vmatpush1.bf16.msra.mxu0 %v3166_v9  ;;  %2143 = vmatpush1.bf16.msra.mxu1 %v3176_v14 }
 0x161   :  { %2113 = vmatprep.subr.bf16.mxu0 %v3186_v18  ;;  %2145 = vmatprep.subr.bf16.mxu1 %v3195_v22 }
 0x164   :  { %2115 = vmatpush1.bf16.msra.mxu0 %v3201_v25  ;;  %2147 = vmatpush1.bf16.msra.mxu1 %v3205_v27 }
 0x165   :  { %2149 = vmatprep.subr.bf16.mxu0 %v2898_v38  ;;  %2181 = vmatprep.subr.bf16.mxu1 %v2906_v41 }
 0x21a   :  { %v685_v42 = vpop.f32.mrb[2].mxu0  ;;  %v756_v43 = vpop.f32.mrb[2].mxu1 }
 0x21b   :  { %v2470_v45 = vadd.f32 %v685_v42, %v3255_v35  ;;  %v687_v46 = vpop.f32.mrb[3].mxu0  ;;  %v758_v49 = vpop.f32.mrb[3].mxu1  ;;  %v2486_v1 = vadd.f32 %v756_v43, %v3264_v0 }
 0x21c   :  { %v2471_v51 = vadd.f32 %v687_v46, %v3257_v37  ;;  %v2487_v59 = vadd.f32 %v758_v49, %v3261_v57 }
 0x21d   :  { %v1871_v52 = vmul.f32 -1.442695, %v2470_v45 }
 0x21e   :  { %v1872_v55 = vmul.f32 -1.442695, %v2471_v51  ;;  %v1873_v61 = vmul.f32 -1.442695, %v2487_v59 }
 0x21f   :  { %2549 = vpow2.f32 %v1871_v52 }
 0x220   :  { %2551 = vpow2.f32 %v1872_v55 }
 0x221   :  { %2553 = vpow2.f32 %v1873_v61 }
 0x222   :  { %2555 = vtanh.f32 %v2486_v1 }
 0x229   :  { %v2550_v5 = vpop.eup %2549 }
 0x22a   :  { %v2552_v7 = vpop.eup %2551  ;;  %v768_v8 = vadd.f32 1.0, %v2550_v5 }
 0x22b   :  { %v774_v11 = vadd.f32 1.0, %v2552_v7  ;;  %v2554_v12 = vpop.eup %2553 }
 0x22c   :  { %2557 = vrcp.f32 %v768_v8  ;;  %v2556_v15 = vpop.eup %2555  ;;  %v781_v24 = vadd.f32 1.0, %v2554_v12 }
 0x22d   :  { %2559 = vrcp.f32 %v774_v11 }
 0x22e   :  { %2561 = vrcp.f32 %v781_v24 }
 0x236   :  { %v2558_v17 = vpop.eup %2557 }
 0x237   :  { %v2560_v20 = vpop.eup %2559  ;;  %v785_v21 = vmul.f32 %v2558_v17, %v2556_v15 }
 0x238   :  { %v784_v28 = vmul.f32 %v2560_v20, %v3267_v31  ;;  %v2562_v33 = vpop.eup %2561 }
 0x23a   :  { %v3309_v30 = vadd.f32 %v785_v21, %v784_v28 }
 0x23c   :  { %2563 = vtanh.f32 %v3309_v30 }
 0x246   :  { %v2564_v34 = vpop.eup %2563 }
 0x247   :  { %v788_v39 = vmul.f32 %v2564_v34, %v2562_v33 }
 0x249   :  { %861 = vmatmul.mubr.f32.vlgmr.msra.gmra.mrb[4].mxu0 %v788_v39  ;;  %932 = vmatmul.mubr.f32.vlgmr.msra.gmra.mrb[4].mxu1 %v788_v39 }
 0x24a   :  { %2151 = vmatpush1.bf16.msra.mxu0 %v2923_v47  ;;  %2183 = vmatpush1.bf16.msra.mxu1 %v2932_v50 }
 0x24b   :  { %2153 = vmatprep.subr.bf16.mxu0 %v2941_v53  ;;  %2185 = vmatprep.subr.bf16.mxu1 %v2949_v56 }
 0x24c   :  { %1037 = vmatprep.mubr.f32.mxu0 %v2661_v3  ;;  %1108 = vmatprep.mubr.f32.mxu1 %v2661_v3 }
 0x24e   :  { %2155 = vmatpush1.bf16.msra.mxu0 %v2961_v60  ;;  %2187 = vmatpush1.bf16.msra.mxu1 %v2971_v63 }
 0x24f   :  { %2157 = vmatprep.subr.bf16.mxu0 %v2981_v2  ;;  %2189 = vmatprep.subr.bf16.mxu1 %v2990_v6 }
 0x252   :  { %2159 = vmatpush1.bf16.msra.mxu0 %v3002_v10  ;;  %2191 = vmatpush1.bf16.msra.mxu1 %v3012_v13 }
 0x253   :  { %2161 = vmatprep.subr.bf16.mxu0 %v3022_v16  ;;  %2193 = vmatprep.subr.bf16.mxu1 %v3031_v19 }
 0x256   :  { %2163 = vmatpush1.bf16.msra.mxu0 %v3043_v23  ;;  %2195 = vmatpush1.bf16.msra.mxu1 %v3053_v26 }
 0x257   :  { %2165 = vmatprep.subr.bf16.mxu0 %v3063_v29  ;;  %2197 = vmatprep.subr.bf16.mxu1 %v3072_v32 }
 0x25a   :  { %2167 = vmatpush1.bf16.msra.mxu0 %v3084_v36  ;;  %2199 = vmatpush1.bf16.msra.mxu1 %v3094_v40 }
 0x25b   :  { %2169 = vmatprep.subr.bf16.mxu0 %v3104_v44  ;;  %2201 = vmatprep.subr.bf16.mxu1 %v3113_v48 }
 0x25e   :  { %2171 = vmatpush1.bf16.msra.mxu0 %v3125_v54  ;;  %2203 = vmatpush1.bf16.msra.mxu1 %v3135_v58 }
 0x25f   :  { %2173 = vmatprep.subr.bf16.mxu0 %v3145_v62  ;;  %2205 = vmatprep.subr.bf16.mxu1 %v3154_v4 }
 0x262   :  { %2175 = vmatpush1.bf16.msra.mxu0 %v3166_v9  ;;  %2207 = vmatpush1.bf16.msra.mxu1 %v3176_v14 }
 0x263   :  { %2177 = vmatprep.subr.bf16.mxu0 %v3186_v18  ;;  %2209 = vmatprep.subr.bf16.mxu1 %v3195_v22 }
 0x266   :  { %2179 = vmatpush1.bf16.msra.mxu0 %v3201_v25  ;;  %2211 = vmatpush1.bf16.msra.mxu1 %v3205_v27 }
 0x267   :  { %2213 = vmatprep.subr.bf16.mxu0 %v2898_v38  ;;  %2245 = vmatprep.subr.bf16.mxu1 %v2906_v41 }
 0x31c   :  { %v862_v31 = vpop.f32.mrb[4].mxu0  ;;  %v933_v42 = vpop.f32.mrb[4].mxu1 }
 0x31d   :  { %v2472_v43 = vadd.f32 %v862_v31, %v3255_v35  ;;  %v864_v45 = vpop.f32.mrb[5].mxu0  ;;  %v935_v46 = vpop.f32.mrb[5].mxu1  ;;  %v2488_v61 = vadd.f32 %v933_v42, %v3264_v0 }
 0x31e   :  { %v2473_v49 = vadd.f32 %v864_v45, %v3257_v37  ;;  %v2489_v55 = vadd.f32 %v935_v46, %v3261_v57 }
 0x31f   :  { %v1874_v51 = vmul.f32 -1.442695, %v2472_v43 }
 0x320   :  { %v1875_v52 = vmul.f32 -1.442695, %v2473_v49  ;;  %v1876_v59 = vmul.f32 -1.442695, %v2489_v55 }
 0x321   :  { %2565 = vpow2.f32 %v1874_v51 }
 0x322   :  { %2567 = vpow2.f32 %v1875_v52 }
 0x323   :  { %2569 = vpow2.f32 %v1876_v59 }
 0x324   :  { %2571 = vtanh.f32 %v2488_v61 }
 0x32b   :  { %v2566_v1 = vpop.eup %2565 }
 0x32c   :  { %v2568_v5 = vpop.eup %2567  ;;  %v945_v7 = vadd.f32 1.0, %v2566_v1 }
 0x32d   :  { %v951_v8 = vadd.f32 1.0, %v2568_v5  ;;  %v2570_v11 = vpop.eup %2569 }
 0x32e   :  { %2573 = vrcp.f32 %v945_v7  ;;  %v2572_v12 = vpop.eup %2571  ;;  %v958_v21 = vadd.f32 1.0, %v2570_v11 }
 0x32f   :  { %2575 = vrcp.f32 %v951_v8 }
 0x330   :  { %2577 = vrcp.f32 %v958_v21 }
 0x338   :  { %v2574_v15 = vpop.eup %2573 }
 0x339   :  { %v2576_v17 = vpop.eup %2575  ;;  %v962_v20 = vmul.f32 %v2574_v15, %v2572_v12 }
 0x33a   :  { %v961_v24 = vmul.f32 %v2576_v17, %v3309_v30  ;;  %v2578_v33 = vpop.eup %2577 }
 0x33c   :  { %v3351_v28 = vadd.f32 %v962_v20, %v961_v24 }
 0x33e   :  { %2579 = vtanh.f32 %v3351_v28 }
 0x348   :  { %v2580_v34 = vpop.eup %2579 }
 0x349   :  { %v965_v39 = vmul.f32 %v2580_v34, %v2578_v33 }
 0x34b   :  { %1038 = vmatmul.mubr.f32.vlgmr.msra.gmra.mrb[6].mxu0 %v965_v39  ;;  %1109 = vmatmul.mubr.f32.vlgmr.msra.gmra.mrb[6].mxu1 %v965_v39 }
 0x34c   :  { %2215 = vmatpush1.bf16.msra.mxu0 %v2923_v47  ;;  %2247 = vmatpush1.bf16.msra.mxu1 %v2932_v50 }
 0x34d   :  { %2217 = vmatprep.subr.bf16.mxu0 %v2941_v53  ;;  %2249 = vmatprep.subr.bf16.mxu1 %v2949_v56 }
 0x34e   :  { %1214 = vmatprep.mubr.f32.mxu0 %v2661_v3  ;;  %1285 = vmatprep.mubr.f32.mxu1 %v2661_v3 }
 0x350   :  { %2219 = vmatpush1.bf16.msra.mxu0 %v2961_v60  ;;  %2251 = vmatpush1.bf16.msra.mxu1 %v2971_v63 }
 0x351   :  { %2221 = vmatprep.subr.bf16.mxu0 %v2981_v2  ;;  %2253 = vmatprep.subr.bf16.mxu1 %v2990_v6 }
 0x354   :  { %2223 = vmatpush1.bf16.msra.mxu0 %v3002_v10  ;;  %2255 = vmatpush1.bf16.msra.mxu1 %v3012_v13 }
 0x355   :  { %2225 = vmatprep.subr.bf16.mxu0 %v3022_v16  ;;  %2257 = vmatprep.subr.bf16.mxu1 %v3031_v19 }
 0x358   :  { %2227 = vmatpush1.bf16.msra.mxu0 %v3043_v23  ;;  %2259 = vmatpush1.bf16.msra.mxu1 %v3053_v26 }
 0x359   :  { %2229 = vmatprep.subr.bf16.mxu0 %v3063_v29  ;;  %2261 = vmatprep.subr.bf16.mxu1 %v3072_v32 }
 0x35c   :  { %2231 = vmatpush1.bf16.msra.mxu0 %v3084_v36  ;;  %2263 = vmatpush1.bf16.msra.mxu1 %v3094_v40 }
 0x35d   :  { %2233 = vmatprep.subr.bf16.mxu0 %v3104_v44  ;;  %2265 = vmatprep.subr.bf16.mxu1 %v3113_v48 }
 0x360   :  { %2235 = vmatpush1.bf16.msra.mxu0 %v3125_v54  ;;  %2267 = vmatpush1.bf16.msra.mxu1 %v3135_v58 }
 0x361   :  { %2237 = vmatprep.subr.bf16.mxu0 %v3145_v62  ;;  %2269 = vmatprep.subr.bf16.mxu1 %v3154_v4 }
 0x364   :  { %2239 = vmatpush1.bf16.msra.mxu0 %v3166_v9  ;;  %2271 = vmatpush1.bf16.msra.mxu1 %v3176_v14 }
 0x365   :  { %2241 = vmatprep.subr.bf16.mxu0 %v3186_v18  ;;  %2273 = vmatprep.subr.bf16.mxu1 %v3195_v22 }
 0x368   :  { %2243 = vmatpush1.bf16.msra.mxu0 %v3201_v25  ;;  %2275 = vmatpush1.bf16.msra.mxu1 %v3205_v27 }
 0x369   :  { %2277 = vmatprep.subr.bf16.mxu0 %v2898_v38  ;;  %2309 = vmatprep.subr.bf16.mxu1 %v2906_v41 }
 0x41e   :  { %v1039_v30 = vpop.f32.mrb[6].mxu0  ;;  %v1110_v31 = vpop.f32.mrb[6].mxu1 }
 0x41f   :  { %v2474_v42 = vadd.f32 %v1039_v30, %v3255_v35  ;;  %v1041_v43 = vpop.f32.mrb[7].mxu0  ;;  %v1112_v45 = vpop.f32.mrb[7].mxu1  ;;  %v2490_v59 = vadd.f32 %v1110_v31, %v3264_v0 }
 0x420   :  { %v2475_v46 = vadd.f32 %v1041_v43, %v3257_v37  ;;  %v2491_v52 = vadd.f32 %v1112_v45, %v3261_v57 }
 0x421   :  { %v1877_v49 = vmul.f32 -1.442695, %v2474_v42 }
 0x422   :  { %v1878_v51 = vmul.f32 -1.442695, %v2475_v46  ;;  %v1879_v55 = vmul.f32 -1.442695, %v2491_v52 }
 0x423   :  { %2581 = vpow2.f32 %v1877_v49 }
 0x424   :  { %2583 = vpow2.f32 %v1878_v51 }
 0x425   :  { %2585 = vpow2.f32 %v1879_v55 }
 0x426   :  { %2587 = vtanh.f32 %v2490_v59 }
 0x42d   :  { %v2582_v61 = vpop.eup %2581 }
 0x42e   :  { %v2584_v1 = vpop.eup %2583  ;;  %v1122_v5 = vadd.f32 1.0, %v2582_v61 }
 0x42f   :  { %v1128_v7 = vadd.f32 1.0, %v2584_v1  ;;  %v2586_v8 = vpop.eup %2585 }
 0x430   :  { %2589 = vrcp.f32 %v1122_v5  ;;  %v2588_v11 = vpop.eup %2587  ;;  %v1135_v20 = vadd.f32 1.0, %v2586_v8 }
 0x431   :  { %2591 = vrcp.f32 %v1128_v7 }
 0x432   :  { %2593 = vrcp.f32 %v1135_v20 }
 0x43a   :  { %v2590_v12 = vpop.eup %2589 }
 0x43b   :  { %v2592_v15 = vpop.eup %2591  ;;  %v1139_v17 = vmul.f32 %v2590_v12, %v2588_v11 }
 0x43c   :  { %v1138_v21 = vmul.f32 %v2592_v15, %v3351_v28  ;;  %v2594_v33 = vpop.eup %2593 }
 0x43e   :  { %v3393_v24 = vadd.f32 %v1139_v17, %v1138_v21 }
 0x440   :  { %2595 = vtanh.f32 %v3393_v24 }
 0x44a   :  { %v2596_v34 = vpop.eup %2595 }
 0x44b   :  { %v1142_v39 = vmul.f32 %v2596_v34, %v2594_v33 }
 0x44d   :  { %1215 = vmatmul.mubr.f32.vlgmr.msra.gmra.mrb[8].mxu0 %v1142_v39  ;;  %1286 = vmatmul.mubr.f32.vlgmr.msra.gmra.mrb[8].mxu1 %v1142_v39 }
 0x44e   :  { %2279 = vmatpush1.bf16.msra.mxu0 %v2923_v47  ;;  %2311 = vmatpush1.bf16.msra.mxu1 %v2932_v50 }
 0x44f   :  { %2281 = vmatprep.subr.bf16.mxu0 %v2941_v53  ;;  %2313 = vmatprep.subr.bf16.mxu1 %v2949_v56 }
 0x450   :  { %1391 = vmatprep.mubr.f32.mxu0 %v2661_v3  ;;  %1462 = vmatprep.mubr.f32.mxu1 %v2661_v3 }
 0x452   :  { %2283 = vmatpush1.bf16.msra.mxu0 %v2961_v60  ;;  %2315 = vmatpush1.bf16.msra.mxu1 %v2971_v63 }
 0x453   :  { %2285 = vmatprep.subr.bf16.mxu0 %v2981_v2  ;;  %2317 = vmatprep.subr.bf16.mxu1 %v2990_v6 }
 0x456   :  { %2287 = vmatpush1.bf16.msra.mxu0 %v3002_v10  ;;  %2319 = vmatpush1.bf16.msra.mxu1 %v3012_v13 }
 0x457   :  { %2289 = vmatprep.subr.bf16.mxu0 %v3022_v16  ;;  %2321 = vmatprep.subr.bf16.mxu1 %v3031_v19 }
 0x45a   :  { %2291 = vmatpush1.bf16.msra.mxu0 %v3043_v23  ;;  %2323 = vmatpush1.bf16.msra.mxu1 %v3053_v26 }
 0x45b   :  { %2293 = vmatprep.subr.bf16.mxu0 %v3063_v29  ;;  %2325 = vmatprep.subr.bf16.mxu1 %v3072_v32 }
 0x45e   :  { %2295 = vmatpush1.bf16.msra.mxu0 %v3084_v36  ;;  %2327 = vmatpush1.bf16.msra.mxu1 %v3094_v40 }
 0x45f   :  { %2297 = vmatprep.subr.bf16.mxu0 %v3104_v44  ;;  %2329 = vmatprep.subr.bf16.mxu1 %v3113_v48 }
 0x462   :  { %2299 = vmatpush1.bf16.msra.mxu0 %v3125_v54  ;;  %2331 = vmatpush1.bf16.msra.mxu1 %v3135_v58 }
 0x463   :  { %2301 = vmatprep.subr.bf16.mxu0 %v3145_v62  ;;  %2333 = vmatprep.subr.bf16.mxu1 %v3154_v4 }
 0x466   :  { %2303 = vmatpush1.bf16.msra.mxu0 %v3166_v9  ;;  %2335 = vmatpush1.bf16.msra.mxu1 %v3176_v14 }
 0x467   :  { %2305 = vmatprep.subr.bf16.mxu0 %v3186_v18  ;;  %2337 = vmatprep.subr.bf16.mxu1 %v3195_v22 }
 0x46a   :  { %2307 = vmatpush1.bf16.msra.mxu0 %v3201_v25  ;;  %2339 = vmatpush1.bf16.msra.mxu1 %v3205_v27 }
 0x46b   :  { %2341 = vmatprep.subr.bf16.mxu0 %v2898_v38  ;;  %2373 = vmatprep.subr.bf16.mxu1 %v2906_v41 }
 0x520   :  { %v1216_v28 = vpop.f32.mrb[8].mxu0  ;;  %v1287_v30 = vpop.f32.mrb[8].mxu1 }
 0x521   :  { %v2476_v31 = vadd.f32 %v1216_v28, %v3255_v35  ;;  %v1218_v42 = vpop.f32.mrb[9].mxu0  ;;  %v1289_v43 = vpop.f32.mrb[9].mxu1  ;;  %v2492_v55 = vadd.f32 %v1287_v30, %v3264_v0 }
 0x522   :  { %v2477_v45 = vadd.f32 %v1218_v42, %v3257_v37  ;;  %v2493_v51 = vadd.f32 %v1289_v43, %v3261_v57 }
 0x523   :  { %v1880_v46 = vmul.f32 -1.442695, %v2476_v31 }
 0x524   :  { %v1881_v49 = vmul.f32 -1.442695, %v2477_v45  ;;  %v1882_v52 = vmul.f32 -1.442695, %v2493_v51 }
 0x525   :  { %2597 = vpow2.f32 %v1880_v46 }
 0x526   :  { %2599 = vpow2.f32 %v1881_v49 }
 0x527   :  { %2601 = vpow2.f32 %v1882_v52 }
 0x528   :  { %2603 = vtanh.f32 %v2492_v55 }
 0x52f   :  { %v2598_v59 = vpop.eup %2597 }
 0x530   :  { %v2600_v61 = vpop.eup %2599  ;;  %v1299_v1 = vadd.f32 1.0, %v2598_v59 }
 0x531   :  { %v1305_v5 = vadd.f32 1.0, %v2600_v61  ;;  %v2602_v7 = vpop.eup %2601 }
 0x532   :  { %2605 = vrcp.f32 %v1299_v1  ;;  %v2604_v8 = vpop.eup %2603  ;;  %v1312_v17 = vadd.f32 1.0, %v2602_v7 }
 0x533   :  { %2607 = vrcp.f32 %v1305_v5 }
 0x534   :  { %2609 = vrcp.f32 %v1312_v17 }
 0x53c   :  { %v2606_v11 = vpop.eup %2605 }
 0x53d   :  { %v2608_v12 = vpop.eup %2607  ;;  %v1316_v15 = vmul.f32 %v2606_v11, %v2604_v8 }
 0x53e   :  { %v1315_v20 = vmul.f32 %v2608_v12, %v3393_v24  ;;  %v2610_v33 = vpop.eup %2609 }
 0x540   :  { %v3435_v21 = vadd.f32 %v1316_v15, %v1315_v20 }
 0x542   :  { %2611 = vtanh.f32 %v3435_v21 }
 0x54c   :  { %v2612_v34 = vpop.eup %2611 }
 0x54d   :  { %v1319_v39 = vmul.f32 %v2612_v34, %v2610_v33 }
 0x54f   :  { %1392 = vmatmul.mubr.f32.vlgmr.msra.gmra.mrb[10].mxu0 %v1319_v39  ;;  %1463 = vmatmul.mubr.f32.vlgmr.msra.gmra.mrb[10].mxu1 %v1319_v39 }
 0x550   :  { %2343 = vmatpush1.bf16.msra.mxu0 %v2923_v47  ;;  %2375 = vmatpush1.bf16.msra.mxu1 %v2932_v50 }
 0x551   :  { %2345 = vmatprep.subr.bf16.mxu0 %v2941_v53  ;;  %2377 = vmatprep.subr.bf16.mxu1 %v2949_v56 }
 0x552   :  { %1568 = vmatprep.mubr.f32.mxu0 %v2661_v3  ;;  %1639 = vmatprep.mubr.f32.mxu1 %v2661_v3 }
 0x554   :  { %2347 = vmatpush1.bf16.msra.mxu0 %v2961_v60  ;;  %2379 = vmatpush1.bf16.msra.mxu1 %v2971_v63 }
 0x555   :  { %2349 = vmatprep.subr.bf16.mxu0 %v2981_v2  ;;  %2381 = vmatprep.subr.bf16.mxu1 %v2990_v6 }
 0x558   :  { %2351 = vmatpush1.bf16.msra.mxu0 %v3002_v10  ;;  %2383 = vmatpush1.bf16.msra.mxu1 %v3012_v13 }
 0x559   :  { %2353 = vmatprep.subr.bf16.mxu0 %v3022_v16  ;;  %2385 = vmatprep.subr.bf16.mxu1 %v3031_v19 }
 0x55c   :  { %2355 = vmatpush1.bf16.msra.mxu0 %v3043_v23  ;;  %2387 = vmatpush1.bf16.msra.mxu1 %v3053_v26 }
 0x55d   :  { %2357 = vmatprep.subr.bf16.mxu0 %v3063_v29  ;;  %2389 = vmatprep.subr.bf16.mxu1 %v3072_v32 }
 0x560   :  { %2359 = vmatpush1.bf16.msra.mxu0 %v3084_v36  ;;  %2391 = vmatpush1.bf16.msra.mxu1 %v3094_v40 }
 0x561   :  { %2361 = vmatprep.subr.bf16.mxu0 %v3104_v44  ;;  %2393 = vmatprep.subr.bf16.mxu1 %v3113_v48 }
 0x564   :  { %2363 = vmatpush1.bf16.msra.mxu0 %v3125_v54  ;;  %2395 = vmatpush1.bf16.msra.mxu1 %v3135_v58 }
 0x565   :  { %2365 = vmatprep.subr.bf16.mxu0 %v3145_v62  ;;  %2397 = vmatprep.subr.bf16.mxu1 %v3154_v4 }
 0x568   :  { %2367 = vmatpush1.bf16.msra.mxu0 %v3166_v9  ;;  %2399 = vmatpush1.bf16.msra.mxu1 %v3176_v14 }
 0x569   :  { %2369 = vmatprep.subr.bf16.mxu0 %v3186_v18  ;;  %2401 = vmatprep.subr.bf16.mxu1 %v3195_v22 }
 0x56c   :  { %2371 = vmatpush1.bf16.msra.mxu0 %v3201_v25  ;;  %2403 = vmatpush1.bf16.msra.mxu1 %v3205_v27 }
 0x56d   :  { %2405 = vmatprep.subr.bf16.mxu0 %v2898_v38  ;;  %2437 = vmatprep.subr.bf16.mxu1 %v2906_v41 }
 0x622   :  { %v1393_v24 = vpop.f32.mrb[10].mxu0  ;;  %v1464_v28 = vpop.f32.mrb[10].mxu1 }
 0x623   :  { %v2478_v30 = vadd.f32 %v1393_v24, %v3255_v35  ;;  %v1395_v31 = vpop.f32.mrb[11].mxu0  ;;  %v1466_v42 = vpop.f32.mrb[11].mxu1  ;;  %v2494_v52 = vadd.f32 %v1464_v28, %v3264_v0 }
 0x624   :  { %v2479_v43 = vadd.f32 %v1395_v31, %v3257_v37  ;;  %v2495_v49 = vadd.f32 %v1466_v42, %v3261_v57 }
 0x625   :  { %v1883_v45 = vmul.f32 -1.442695, %v2478_v30 }
 0x626   :  { %v1884_v46 = vmul.f32 -1.442695, %v2479_v43  ;;  %v1885_v51 = vmul.f32 -1.442695, %v2495_v49 }
 0x627   :  { %2613 = vpow2.f32 %v1883_v45 }
 0x628   :  { %2615 = vpow2.f32 %v1884_v46 }
 0x629   :  { %2617 = vpow2.f32 %v1885_v51 }
 0x62a   :  { %2619 = vtanh.f32 %v2494_v52 }
 0x631   :  { %v2614_v38 = vpop.eup %2613 }
 0x632   :  { %v2616_v55 = vpop.eup %2615  ;;  %v1476_v41 = vadd.f32 1.0, %v2614_v38 }
 0x633   :  { %v1482_v59 = vadd.f32 1.0, %v2616_v55  ;;  %v2618_v61 = vpop.eup %2617 }
 0x634   :  { %2621 = vrcp.f32 %v1476_v41  ;;  %v2620_v1 = vpop.eup %2619  ;;  %v1489_v11 = vadd.f32 1.0, %v2618_v61 }
 0x635   :  { %2623 = vrcp.f32 %v1482_v59 }
 0x636   :  { %2625 = vrcp.f32 %v1489_v11 }
 0x63e   :  { %v2622_v5 = vpop.eup %2621 }
 0x63f   :  { %v2624_v7 = vpop.eup %2623  ;;  %v1493_v8 = vmul.f32 %v2622_v5, %v2620_v1 }
 0x640   :  { %v1492_v12 = vmul.f32 %v2624_v7, %v3435_v21  ;;  %v2626_v17 = vpop.eup %2625 }
 0x642   :  { %v3477_v15 = vadd.f32 %v1493_v8, %v1492_v12 }
 0x644   :  { %2627 = vtanh.f32 %v3477_v15 }
 0x64e   :  { %v2628_v20 = vpop.eup %2627 }
 0x64f   :  { %v1496_v33 = vmul.f32 %v2628_v20, %v2626_v17 }
 0x651   :  { %1569 = vmatmul.mubr.f32.vlgmr.msra.gmra.mrb[12].mxu0 %v1496_v33  ;;  %1640 = vmatmul.mubr.f32.vlgmr.msra.gmra.mrb[12].mxu1 %v1496_v33 }
 0x652   :  { %2407 = vmatpush1.bf16.msra.mxu0 %v2923_v47  ;;  %2439 = vmatpush1.bf16.msra.mxu1 %v2932_v50 }
 0x653   :  { %2409 = vmatprep.subr.bf16.mxu0 %v2941_v53  ;;  %2441 = vmatprep.subr.bf16.mxu1 %v2949_v56 }
 0x654   :  { %1745 = vmatprep.mubr.f32.mxu0 %v2661_v3  ;;  %1816 = vmatprep.mubr.f32.mxu1 %v2661_v3 }
 0x656   :  { %2411 = vmatpush1.bf16.msra.mxu0 %v2961_v60  ;;  %2443 = vmatpush1.bf16.msra.mxu1 %v2971_v63 }
 0x657   :  { %2413 = vmatprep.subr.bf16.mxu0 %v2981_v2  ;;  %2445 = vmatprep.subr.bf16.mxu1 %v2990_v6 }
 0x65a   :  { %2415 = vmatpush1.bf16.msra.mxu0 %v3002_v10  ;;  %2447 = vmatpush1.bf16.msra.mxu1 %v3012_v13 }
 0x65b   :  { %2417 = vmatprep.subr.bf16.mxu0 %v3022_v16  ;;  %2449 = vmatprep.subr.bf16.mxu1 %v3031_v19 }
 0x65e   :  { %2419 = vmatpush1.bf16.msra.mxu0 %v3043_v23  ;;  %2451 = vmatpush1.bf16.msra.mxu1 %v3053_v26 }
 0x65f   :  { %2421 = vmatprep.subr.bf16.mxu0 %v3063_v29  ;;  %2453 = vmatprep.subr.bf16.mxu1 %v3072_v32 }
 0x662   :  { %2423 = vmatpush1.bf16.msra.mxu0 %v3084_v36  ;;  %2455 = vmatpush1.bf16.msra.mxu1 %v3094_v40 }
 0x663   :  { %2425 = vmatprep.subr.bf16.mxu0 %v3104_v44  ;;  %2457 = vmatprep.subr.bf16.mxu1 %v3113_v48 }
 0x666   :  { %2427 = vmatpush1.bf16.msra.mxu0 %v3125_v54  ;;  %2459 = vmatpush1.bf16.msra.mxu1 %v3135_v58 }
 0x667   :  { %2429 = vmatprep.subr.bf16.mxu0 %v3145_v62  ;;  %2461 = vmatprep.subr.bf16.mxu1 %v3154_v4 }
 0x66a   :  { %2431 = vmatpush1.bf16.msra.mxu0 %v3166_v9  ;;  %2463 = vmatpush1.bf16.msra.mxu1 %v3176_v14 }
 0x66b   :  { %2433 = vmatprep.subr.bf16.mxu0 %v3186_v18  ;;  %2465 = vmatprep.subr.bf16.mxu1 %v3195_v22 }
 0x66e   :  { %2435 = vmatpush1.bf16.msra.mxu0 %v3201_v25  ;;  %2467 = vmatpush1.bf16.msra.mxu1 %v3205_v27 }
 0x724   :  { %v1570_v3 = vpop.f32.mrb[12].mxu0  ;;  %v1641_v47 = vpop.f32.mrb[12].mxu1 }
 0x725   :  { %v2480_v50 = vadd.f32 %v1570_v3, %v3255_v35  ;;  %v1572_v53 = vpop.f32.mrb[13].mxu0  ;;  %v1643_v56 = vpop.f32.mrb[13].mxu1  ;;  %v2496_v13 = vadd.f32 %v1641_v47, %v3264_v0 }
 0x726   :  { %v2481_v60 = vadd.f32 %v1572_v53, %v3257_v37  ;;  %v2497_v6 = vadd.f32 %v1643_v56, %v3261_v57 }
 0x727   :  { %v1886_v63 = vmul.f32 -1.442695, %v2480_v50 }
 0x728   :  { %v1887_v2 = vmul.f32 -1.442695, %v2481_v60  ;;  %v1888_v10 = vmul.f32 -1.442695, %v2497_v6 }
 0x729   :  { %2629 = vpow2.f32 %v1886_v63 }
 0x72a   :  { %2631 = vpow2.f32 %v1887_v2 }
 0x72b   :  { %2633 = vpow2.f32 %v1888_v10 }
 0x72c   :  { %2635 = vtanh.f32 %v2496_v13 }
 0x733   :  { %v2630_v16 = vpop.eup %2629 }
 0x734   :  { %v2632_v19 = vpop.eup %2631  ;;  %v1653_v23 = vadd.f32 1.0, %v2630_v16 }
 0x735   :  { %v1659_v26 = vadd.f32 1.0, %v2632_v19  ;;  %v2634_v29 = vpop.eup %2633 }
 0x736   :  { %2637 = vrcp.f32 %v1653_v23  ;;  %v2636_v32 = vpop.eup %2635  ;;  %v1666_v48 = vadd.f32 1.0, %v2634_v29 }
 0x737   :  { %2639 = vrcp.f32 %v1659_v26 }
 0x738   :  { %2641 = vrcp.f32 %v1666_v48 }
 0x740   :  { %v2638_v36 = vpop.eup %2637 }
 0x741   :  { %v2640_v40 = vpop.eup %2639  ;;  %v1670_v44 = vmul.f32 %v2638_v36, %v2636_v32 }
 0x742   :  { %v1669_v54 = vmul.f32 %v2640_v40, %v3477_v15  ;;  %v2642_v62 = vpop.eup %2641 }
 0x744   :  { %v1671_v58 = vadd.f32 %v1670_v44, %v1669_v54 }
 0x746   :  { %2643 = vtanh.f32 %v1671_v58 }
 0x750   :  { %v2644_v4 = vpop.eup %2643 }
 0x751   :  { %v1673_v9 = vmul.f32 %v2644_v4, %v2642_v62 }
 0x753   :  { %1746 = vmatmul.mubr.f32.vlgmr.msra.gmra.mrb[14].mxu0 %v1673_v9  ;;  %1817 = vmatmul.mubr.f32.vlgmr.msra.gmra.mrb[14].mxu1 %v1673_v9 }
 0x826   :  { %v1747_v14 = vpop.f32.mrb[14].mxu0  ;;  %v1818_v18 = vpop.f32.mrb[14].mxu1 }
 0x827   :  { %v2482_v22 = vadd.f32 %v1747_v14, %v3255_v35  ;;  %v1749_v25 = vpop.f32.mrb[15].mxu0  ;;  %v1820_v27 = vpop.f32.mrb[15].mxu1  ;;  %v2498_v30 = vadd.f32 %v1818_v18, %v3264_v0 }
 0x828   :  { %v2483_v21 = vadd.f32 %v1749_v25, %v3257_v37  ;;  %v2499_v24 = vadd.f32 %v1820_v27, %v3261_v57 }
 0x829   :  { %v1889_v34 = vmul.f32 -1.442695, %v2482_v22 }
 0x82a   :  { %v1890_v39 = vmul.f32 -1.442695, %v2483_v21  ;;  %v1891_v28 = vmul.f32 -1.442695, %v2499_v24 }
 0x82b   :  { %2645 = vpow2.f32 %v1889_v34 }
 0x82c   :  { %2647 = vpow2.f32 %v1890_v39 }
 0x82d   :  { %2649 = vpow2.f32 %v1891_v28 }
 0x82e   :  { %2651 = vtanh.f32 %v2498_v30 }
 0x835   :  { %v2646_v31 = vpop.eup %2645 }
 0x836   :  { %v2648_v42 = vpop.eup %2647  ;;  %v1830_v43 = vadd.f32 1.0, %v2646_v31 }
 0x837   :  { %v1836_v45 = vadd.f32 1.0, %v2648_v42  ;;  %v2650_v35 = vpop.eup %2649 }
 0x838   :  { %2653 = vrcp.f32 %v1830_v43  ;;  %v2652_v46 = vpop.eup %2651  ;;  %v1843_v52 = vadd.f32 1.0, %v2650_v35 }
 0x839   :  { %2655 = vrcp.f32 %v1836_v45 }
 0x83a   :  { %2657 = vrcp.f32 %v1843_v52 }
 0x842   :  { %v2654_v37 = vpop.eup %2653 }
 0x843   :  { %v2656_v49 = vpop.eup %2655  ;;  %v1847_v51 = vmul.f32 %v2654_v37, %v2652_v46 }
 0x844   :  { %v1846_v38 = vmul.f32 %v2656_v49, %v1671_v58  ;;  %v2658_v57 = vpop.eup %2657 }
 0x846   :  { %v1848_v55 = vadd.f32 %v1847_v51, %v1846_v38 }
 0x848   :  { %2659 = vtanh.f32 %v1848_v55  ;;  %1852 = vst [vmem:[%s3531_s5] sm:$0xff] %v1848_v55 }
 0x852   :  { %v2660_v0 = vpop.eup %2659 }
 0x853   :  { %v1850_v41 = vmul.f32 %v2660_v0, %v2658_v57 }
 0x855   :  { %1851 = vst [vmem:[%s3532_s4] sm:$0xff] %v1850_v41 }

// kernel: seq2seq_forward.3
= control target key start
LH: loop header
LB: loop body
LE: loop exit
PB: predicated region body
PF: predicated region fallthrough
CT: control target
= control target key end

     0   :  { %14 = vsyncpa [#allocation3], 0  ;;  %s8965_s0 = inlined_call_operand.vmem [shape: s32[8], index: 0, kind: input, shape index: {}]   ;;  %s8966_s1 = inlined_call_operand.vmem [shape: f32[8,128], index: 1, kind: input, shape index: {}]   ;;  %s8967_s2 = inlined_call_operand.vmem [shape: f32[8,128], index: 2, kind: input, shape index: {}]   ;;  %s8968_s3 = inlined_call_operand.vmem [shape: f32[8,8,128], index: 3, kind: input, shape index: {}]   ;;  %s8969_s4 = inlined_call_operand.vmem [shape: f32[128,128], index: 4, kind: input, shape index: {}]   ;;  %s8970_s5 = inlined_call_operand.vmem [shape: f32[256,512], index: 5, kind: input, shape index: {}]   ;;  %s8971_s6 = inlined_call_operand.vmem [shape: f32[1,512], index: 6, kind: input, shape index: {}]   ;;  %s8972_s7 = inlined_call_operand.vmem [shape: f32[128,128], index: 7, kind: input, shape index: {}]   ;;  %s8973_s8 = inlined_call_operand.vmem [shape: f32[1,128], index: 8, kind: input, shape index: {}]   ;;  %s8974_s9 = inlined_call_operand.vmem [shape: f32[8,8,128], index: 9, kind: output, shape index: {}]  }
   0x1   :  { %s21_s11 = sshll.u32 %s8965_s0, 4  ;;  %s22_s11 = int_to_ptr.vmem [resolvable:$true] %s21_s11 }
   0x2   :  { %s5698_s12 = scalar_lea.vmem %s22_s11, 16  ;;  %p5703_p1 = scmp.lt.s32.totalorder %s22_s11, %s22_s11 }
   0x3   :  { %p5699_p0 = scmp.ne.s32.totalorder %s22_s11, %s5698_s12  ;;  %p5704_p2 = scmp.lt.s32.totalorder %s5698_s12, %s5698_s12 }
   0x5   :  { %p5705_p3 = por %p5704_p2, %p5703_p1 }
   0x7   :  { %p5706_p4 = pnand %p5705_p3, %p5699_p0 }
   0x9   :  { %5709 = shalt.err (!%p5706_p4)
}
   0xa   :  { %s5712_s13 = smov [#allocation2]  }
   0xb   :  { %24 = dma.vmem_to_smem %s22_s11, 16, %s5712_s13, [#allocation3]  }
   0xc   :  { %5710 = dma.done.wait [#allocation3], 16  }
   0xd   :  { %5711 = vsyncadd [#allocation3], 4294967280 }
   0xe   :  { %44 = sfence }
   0xf   :  { %v52_v0 = vld [vmem:[%s8970_s5 + $0x8] sm:$0xff]  ;;  %v51_v2 = vld [vmem:[%s8970_s5] sm:$0xff]  ;;  %v54_v18 = vld [vmem:[%s8970_s5 + $0x18] sm:$0xff]  ;;  %vm5715_vm0 = vmmov 0   ;;  %s3642_s30 = sld [smem:[#allocation2 + $0x1]]  ;;  %s3660_s15 = sld [smem:[#allocation2 + $0x3]] }
  0x10   :  { %v56_v1 = vld [vmem:[%s8970_s5 + $0x28] sm:$0xff]  ;;  %v55_v4 = vld [vmem:[%s8970_s5 + $0x20] sm:$0xff]  ;;  %v58_v19 = vld [vmem:[%s8970_s5 + $0x38] sm:$0xff] }
  0x11   :  { %v5779_v3 = vpack.c.bf16 %v56_v1, %v52_v0  ;;  %v60_v5 = vld [vmem:[%s8970_s5 + $0x48] sm:$0xff]  ;;  %v5790_v7 = vpack.c.bf16 %v55_v4, %v51_v2  ;;  %v59_v9 = vld [vmem:[%s8970_s5 + $0x40] sm:$0xff]  ;;  %v5831_v21 = vpack.c.bf16 %v58_v19, %v54_v18  ;;  %v53_v22 = vld [vmem:[%s8970_s5 + $0x10] sm:$0xff] }
  0x12   :  { %v64_v6 = vld [vmem:[%s8970_s5 + $0x68] sm:$0xff]  ;;  %v63_v10 = vld [vmem:[%s8970_s5 + $0x60] sm:$0xff]  ;;  %v57_v23 = vld [vmem:[%s8970_s5 + $0x30] sm:$0xff] }
  0x13   :  { %v5792_v8 = vpack.c.bf16 %v64_v6, %v60_v5  ;;  %v68_v11 = vld [vmem:[%s8970_s5 + $0x88] sm:$0xff]  ;;  %4371 = vmatprep.subr.bf16.mxu0 %v5779_v3  ;;  %v5808_v13 = vpack.c.bf16 %v63_v10, %v59_v9  ;;  %v67_v14 = vld [vmem:[%s8970_s5 + $0x80] sm:$0xff]  ;;  %v5839_v24 = vpack.c.bf16 %v57_v23, %v53_v22  ;;  %4435 = vmatprep.subr.bf16.mxu1 %v5831_v21  ;;  %v62_v26 = vld [vmem:[%s8970_s5 + $0x58] sm:$0xff] }
  0x14   :  { %v72_v12 = vld [vmem:[%s8970_s5 + $0xa8] sm:$0xff]  ;;  %4373 = vmatpush1.bf16.msra.mxu0 %v5790_v7  ;;  %v71_v15 = vld [vmem:[%s8970_s5 + $0xa0] sm:$0xff]  ;;  %v66_v27 = vld [vmem:[%s8970_s5 + $0x78] sm:$0xff] }
  0x15   :  { %4375 = vmatprep.subr.bf16.mxu0 %v5792_v8  ;;  %v5817_v16 = vpack.c.bf16 %v72_v12, %v68_v11  ;;  %v76_v17 = vld [vmem:[%s8970_s5 + $0xc8] sm:$0xff]  ;;  %v5842_v25 = vpack.c.bf16 %v71_v15, %v67_v14  ;;  %v61_v28 = vld [vmem:[%s8970_s5 + $0x50] sm:$0xff]  ;;  %v75_v30 = vld [vmem:[%s8970_s5 + $0xc0] sm:$0xff]  ;;  %4437 = vmatpush1.bf16.msra.mxu1 %v5839_v24  ;;  %v5864_v32 = vpack.c.bf16 %v66_v27, %v62_v26  ;;  %s570_s10 = scvt.s32.f32 %s3642_s30  ;;  %s1626_s16 = scvt.s32.f32 %s3660_s15 }
  0x16   :  { %v80_v20 = vld [vmem:[%s8970_s5 + $0xe8] sm:$0xff]  ;;  %v79_v31 = vld [vmem:[%s8970_s5 + $0xe0] sm:$0xff]  ;;  %v65_v33 = vld [vmem:[%s8970_s5 + $0x70] sm:$0xff] }
  0x17   :  { %v5855_v29 = vpack.c.bf16 %v80_v20, %v76_v17  ;;  %v84_v34 = vld [vmem:[%s8970_s5 + $0x108] sm:$0xff]  ;;  %v5875_v36 = vpack.c.bf16 %v65_v33, %v61_v28  ;;  %v70_v37 = vld [vmem:[%s8970_s5 + $0x98] sm:$0xff]  ;;  %4439 = vmatprep.subr.bf16.mxu1 %v5864_v32  ;;  %v69_v39 = vld [vmem:[%s8970_s5 + $0x90] sm:$0xff]  ;;  %v5891_v41 = vpack.c.bf16 %v79_v31, %v75_v30  ;;  %s575_s11 = ssub.f32 1.0, %s570_s10 }
  0x18   :  { %4377 = vmatpush1.bf16.msra.mxu0 %v5808_v13  ;;  %v88_v35 = vld [vmem:[%s8970_s5 + $0x128] sm:$0xff]  ;;  %v74_v38 = vld [vmem:[%s8970_s5 + $0xb8] sm:$0xff]  ;;  %v73_v40 = vld [vmem:[%s8970_s5 + $0xb0] sm:$0xff] }
  0x19   :  { %4379 = vmatprep.subr.bf16.mxu0 %v5817_v16  ;;  %v83_v42 = vld [vmem:[%s8970_s5 + $0x100] sm:$0xff]  ;;  %v5899_v44 = vpack.c.bf16 %v74_v38, %v70_v37  ;;  %v5902_v45 = vpack.c.bf16 %v88_v35, %v84_v34  ;;  %4441 = vmatpush1.bf16.msra.mxu1 %v5875_v36  ;;  %v92_v46 = vld [vmem:[%s8970_s5 + $0x148] sm:$0xff]  ;;  %v5908_v47 = vpack.c.bf16 %v73_v40, %v69_v39  ;;  %v78_v48 = vld [vmem:[%s8970_s5 + $0xd8] sm:$0xff] }
  0x1a   :  { %v87_v43 = vld [vmem:[%s8970_s5 + $0x120] sm:$0xff]  ;;  %v82_v49 = vld [vmem:[%s8970_s5 + $0xf8] sm:$0xff]  ;;  %v96_v50 = vld [vmem:[%s8970_s5 + $0x168] sm:$0xff] }
  0x1b   :  { %4443 = vmatprep.subr.bf16.mxu1 %v5899_v44  ;;  %v5920_v51 = vpack.c.bf16 %v82_v49, %v78_v48  ;;  %v77_v52 = vld [vmem:[%s8970_s5 + $0xd0] sm:$0xff]  ;;  %v5929_v54 = vpack.c.bf16 %v87_v43, %v83_v42  ;;  %v86_v55 = vld [vmem:[%s8970_s5 + $0x118] sm:$0xff]  ;;  %v5938_v57 = vpack.c.bf16 %v96_v50, %v92_v46  ;;  %v91_v58 = vld [vmem:[%s8970_s5 + $0x140] sm:$0xff] }
  0x1c   :  { %4381 = vmatpush1.bf16.msra.mxu0 %v5842_v25  ;;  %v81_v53 = vld [vmem:[%s8970_s5 + $0xf0] sm:$0xff]  ;;  %v90_v56 = vld [vmem:[%s8970_s5 + $0x138] sm:$0xff]  ;;  %v95_v59 = vld [vmem:[%s8970_s5 + $0x160] sm:$0xff] }
  0x1d   :  { %4383 = vmatprep.subr.bf16.mxu0 %v5855_v29  ;;  %4445 = vmatpush1.bf16.msra.mxu1 %v5908_v47  ;;  %v100_v60 = vld [vmem:[%s8970_s5 + $0x188] sm:$0xff]  ;;  %v5950_v61 = vpack.c.bf16 %v81_v53, %v77_v52  ;;  %v5956_v63 = vpack.c.bf16 %v90_v56, %v86_v55  ;;  %v85_v0 = vld [vmem:[%s8970_s5 + $0x110] sm:$0xff]  ;;  %v94_v2 = vld [vmem:[%s8970_s5 + $0x158] sm:$0xff]  ;;  %v5971_v5 = vpack.c.bf16 %v95_v59, %v91_v58 }
  0x1e   :  { %v104_v62 = vld [vmem:[%s8970_s5 + $0x1a8] sm:$0xff]  ;;  %4447 = vmatprep.subr.bf16.mxu1 %v5920_v51  ;;  %v89_v1 = vld [vmem:[%s8970_s5 + $0x130] sm:$0xff]  ;;  %v98_v4 = vld [vmem:[%s8970_s5 + $0x178] sm:$0xff] }
  0x1f   :  { %v5974_v6 = vpack.c.bf16 %v104_v62, %v100_v60  ;;  %v99_v9 = vld [vmem:[%s8970_s5 + $0x180] sm:$0xff]  ;;  %v108_v11 = vld [vmem:[%s8970_s5 + $0x1c8] sm:$0xff]  ;;  %v5986_v12 = vpack.c.bf16 %v89_v1, %v85_v0  ;;  %v5992_v15 = vpack.c.bf16 %v98_v4, %v94_v2  ;;  %v93_v17 = vld [vmem:[%s8970_s5 + $0x150] sm:$0xff] }
  0x20   :  { %4385 = vmatpush1.bf16.msra.mxu0 %v5891_v41  ;;  %v103_v10 = vld [vmem:[%s8970_s5 + $0x1a0] sm:$0xff]  ;;  %v112_v14 = vld [vmem:[%s8970_s5 + $0x1e8] sm:$0xff]  ;;  %v97_v18 = vld [vmem:[%s8970_s5 + $0x170] sm:$0xff] }
  0x21   :  { %4387 = vmatprep.subr.bf16.mxu0 %v5902_v45  ;;  %4449 = vmatpush1.bf16.msra.mxu1 %v5950_v61  ;;  %v102_v19 = vld [vmem:[%s8970_s5 + $0x198] sm:$0xff]  ;;  %v6007_v22 = vpack.c.bf16 %v103_v10, %v99_v9  ;;  %v6010_v23 = vpack.c.bf16 %v112_v14, %v108_v11  ;;  %v107_v26 = vld [vmem:[%s8970_s5 + $0x1c0] sm:$0xff]  ;;  %v116_v28 = vld [vmem:[%s8970_s5 + $0x208] sm:$0xff]  ;;  %v6022_v30 = vpack.c.bf16 %v97_v18, %v93_v17 }
  0x22   :  { %4451 = vmatprep.subr.bf16.mxu1 %v5956_v63  ;;  %v106_v20 = vld [vmem:[%s8970_s5 + $0x1b8] sm:$0xff]  ;;  %v111_v27 = vld [vmem:[%s8970_s5 + $0x1e0] sm:$0xff]  ;;  %v120_v31 = vld [vmem:[%s8970_s5 + $0x228] sm:$0xff] }
  0x23   :  { %v6028_v33 = vpack.c.bf16 %v106_v20, %v102_v19  ;;  %v101_v34 = vld [vmem:[%s8970_s5 + $0x190] sm:$0xff]  ;;  %v110_v37 = vld [vmem:[%s8970_s5 + $0x1d8] sm:$0xff]  ;;  %v6043_v39 = vpack.c.bf16 %v111_v27, %v107_v26  ;;  %v6046_v40 = vpack.c.bf16 %v120_v31, %v116_v28  ;;  %v115_v42 = vld [vmem:[%s8970_s5 + $0x200] sm:$0xff] }
  0x24   :  { %4389 = vmatpush1.bf16.msra.mxu0 %v5929_v54  ;;  %v105_v35 = vld [vmem:[%s8970_s5 + $0x1b0] sm:$0xff]  ;;  %v114_v38 = vld [vmem:[%s8970_s5 + $0x1f8] sm:$0xff]  ;;  %v119_v43 = vld [vmem:[%s8970_s5 + $0x220] sm:$0xff] }
  0x25   :  { %4391 = vmatprep.subr.bf16.mxu0 %v5938_v57  ;;  %4453 = vmatpush1.bf16.msra.mxu1 %v5986_v12  ;;  %v124_v46 = vld [vmem:[%s8970_s5 + $0x248] sm:$0xff]  ;;  %v6058_v48 = vpack.c.bf16 %v105_v35, %v101_v34  ;;  %v6064_v50 = vpack.c.bf16 %v114_v38, %v110_v37  ;;  %v109_v52 = vld [vmem:[%s8970_s5 + $0x1d0] sm:$0xff]  ;;  %v118_v55 = vld [vmem:[%s8970_s5 + $0x218] sm:$0xff]  ;;  %v6079_v58 = vpack.c.bf16 %v119_v43, %v115_v42 }
  0x26   :  { %4455 = vmatprep.subr.bf16.mxu1 %v5992_v15  ;;  %v128_v49 = vld [vmem:[%s8970_s5 + $0x268] sm:$0xff]  ;;  %v113_v53 = vld [vmem:[%s8970_s5 + $0x1f0] sm:$0xff]  ;;  %v122_v56 = vld [vmem:[%s8970_s5 + $0x238] sm:$0xff] }
  0x27   :  { %9084 = vst [vmem:[#allocation5_spill] sm:$0xff] %v6058_v48  ;;  %9085 = vst [vmem:[#allocation6_spill] sm:$0xff] %v6064_v50  ;;  %v6082_v59 = vpack.c.bf16 %v128_v49, %v124_v46  ;;  %v123_v60 = vld [vmem:[%s8970_s5 + $0x240] sm:$0xff]  ;;  %v132_v0 = vld [vmem:[%s8970_s5 + $0x288] sm:$0xff]  ;;  %v6094_v1 = vpack.c.bf16 %v113_v53, %v109_v52  ;;  %v6100_v4 = vpack.c.bf16 %v122_v56, %v118_v55 }
  0x28   :  { %4393 = vmatpush1.bf16.msra.mxu0 %v5971_v5  ;;  %v127_v62 = vld [vmem:[%s8970_s5 + $0x260] sm:$0xff]  ;;  %v136_v2 = vld [vmem:[%s8970_s5 + $0x2a8] sm:$0xff]  ;;  %v117_v9 = vld [vmem:[%s8970_s5 + $0x210] sm:$0xff] }
  0x29   :  { %4395 = vmatprep.subr.bf16.mxu0 %v5974_v6  ;;  %4457 = vmatpush1.bf16.msra.mxu1 %v6022_v30  ;;  %9086 = vst [vmem:[#allocation7_spill] sm:$0xff] %v6094_v1  ;;  %9087 = vst [vmem:[#allocation8_spill] sm:$0xff] %v6100_v4  ;;  %v121_v10 = vld [vmem:[%s8970_s5 + $0x230] sm:$0xff]  ;;  %v126_v11 = vld [vmem:[%s8970_s5 + $0x258] sm:$0xff]  ;;  %v6115_v17 = vpack.c.bf16 %v127_v62, %v123_v60  ;;  %v6121_v19 = vpack.c.bf16 %v136_v2, %v132_v0 }
  0x2a   :  { %4459 = vmatprep.subr.bf16.mxu1 %v6028_v33  ;;  %v130_v14 = vld [vmem:[%s8970_s5 + $0x278] sm:$0xff]  ;;  %v131_v18 = vld [vmem:[%s8970_s5 + $0x280] sm:$0xff]  ;;  %v140_v26 = vld [vmem:[%s8970_s5 + $0x2c8] sm:$0xff]  ;;  %v6133_v28 = vpack.c.bf16 %v121_v10, %v117_v9 }
  0x2b   :  { %v135_v20 = vld [vmem:[%s8970_s5 + $0x2a0] sm:$0xff]  ;;  %v144_v27 = vld [vmem:[%s8970_s5 + $0x2e8] sm:$0xff]  ;;  %v6136_v31 = vpack.c.bf16 %v130_v14, %v126_v11  ;;  %v125_v34 = vld [vmem:[%s8970_s5 + $0x250] sm:$0xff] }
  0x2c   :  { %4397 = vmatpush1.bf16.msra.mxu0 %v6007_v22  ;;  %9088 = vst [vmem:[#allocation9_spill] sm:$0xff] %v6133_v28  ;;  %v129_v35 = vld [vmem:[%s8970_s5 + $0x270] sm:$0xff]  ;;  %v48_v37 = vld [vmem:[%s8966_s1] sm:$0xff]  ;;  %v134_v38 = vld [vmem:[%s8970_s5 + $0x298] sm:$0xff]  ;;  %v6154_v43 = vpack.c.bf16 %v135_v20, %v131_v18  ;;  %v6157_v46 = vpack.c.bf16 %v144_v27, %v140_v26  ;;  %s1631_s1 = ssub.f32 1.0, %s1626_s16 }
  0x2d   :  { %4399 = vmatprep.subr.bf16.mxu0 %v6010_v23  ;;  %4461 = vmatpush1.bf16.msra.mxu1 %v6058_v48  ;;  %9089 = vst [vmem:[#allocation10_spill] sm:$0xff] %v6136_v31  ;;  %v138_v42 = vld [vmem:[%s8970_s5 + $0x2b8] sm:$0xff]  ;;  %v139_v49 = vld [vmem:[%s8970_s5 + $0x2c0] sm:$0xff]  ;;  %v148_v53 = vld [vmem:[%s8970_s5 + $0x308] sm:$0xff]  ;;  %v6169_v55 = vpack.c.bf16 %v129_v35, %v125_v34 }
  0x2e   :  { %4463 = vmatprep.subr.bf16.mxu1 %v6064_v50  ;;  %265 = vmatprep.mubr.f32.mxu0 %v48_v37  ;;  %v143_v52 = vld [vmem:[%s8970_s5 + $0x2e0] sm:$0xff]  ;;  %v152_v56 = vld [vmem:[%s8970_s5 + $0x328] sm:$0xff]  ;;  %v6175_v60 = vpack.c.bf16 %v138_v42, %v134_v38  ;;  %v133_v62 = vld [vmem:[%s8970_s5 + $0x290] sm:$0xff] }
  0x2f   :  { %336 = vmatprep.mubr.f32.mxu1 %v48_v37  ;;  %9090 = vst [vmem:[#allocation11_spill] sm:$0xff] %v6169_v55  ;;  %v137_v0 = vld [vmem:[%s8970_s5 + $0x2b0] sm:$0xff]  ;;  %v142_v2 = vld [vmem:[%s8970_s5 + $0x2d8] sm:$0xff]  ;;  %v6190_v10 = vpack.c.bf16 %v143_v52, %v139_v49  ;;  %v6193_v11 = vpack.c.bf16 %v152_v56, %v148_v53  ;;  %v147_v14 = vld [vmem:[%s8970_s5 + $0x300] sm:$0xff] }
  0x30   :  { %4401 = vmatpush1.bf16.msra.mxu0 %v6043_v39  ;;  %9091 = vst [vmem:[#allocation12_spill] sm:$0xff] %v6175_v60  ;;  %v146_v9 = vld [vmem:[%s8970_s5 + $0x2f8] sm:$0xff]  ;;  %v151_v18 = vld [vmem:[%s8970_s5 + $0x320] sm:$0xff]  ;;  %v156_v20 = vld [vmem:[%s8970_s5 + $0x348] sm:$0xff]  ;;  %v6205_v26 = vpack.c.bf16 %v137_v0, %v133_v62 }
  0x31   :  { %4403 = vmatprep.subr.bf16.mxu0 %v6046_v40  ;;  %4465 = vmatpush1.bf16.msra.mxu1 %v6094_v1  ;;  %v160_v27 = vld [vmem:[%s8970_s5 + $0x368] sm:$0xff]  ;;  %v6211_v34 = vpack.c.bf16 %v146_v9, %v142_v2  ;;  %v141_v35 = vld [vmem:[%s8970_s5 + $0x2d0] sm:$0xff]  ;;  %v150_v38 = vld [vmem:[%s8970_s5 + $0x318] sm:$0xff]  ;;  %v6226_v49 = vpack.c.bf16 %v151_v18, %v147_v14 }
  0x32   :  { %4467 = vmatprep.subr.bf16.mxu1 %v6100_v4  ;;  %9092 = vst [vmem:[#allocation13_spill] sm:$0xff] %v6205_v26  ;;  %v145_v37 = vld [vmem:[%s8970_s5 + $0x2f0] sm:$0xff]  ;;  %v154_v42 = vld [vmem:[%s8970_s5 + $0x338] sm:$0xff]  ;;  %v6229_v52 = vpack.c.bf16 %v160_v27, %v156_v20  ;;  %v155_v53 = vld [vmem:[%s8970_s5 + $0x340] sm:$0xff] }
  0x33   :  { %9093 = vst [vmem:[#allocation14_spill] sm:$0xff] %v6211_v34  ;;  %v159_v56 = vld [vmem:[%s8970_s5 + $0x360] sm:$0xff]  ;;  %v164_v62 = vld [vmem:[%s8970_s5 + $0x388] sm:$0xff]  ;;  %v6241_v0 = vpack.c.bf16 %v145_v37, %v141_v35  ;;  %v6247_v9 = vpack.c.bf16 %v154_v42, %v150_v38  ;;  %v149_v14 = vld [vmem:[%s8970_s5 + $0x310] sm:$0xff] }
  0x34   :  { %4405 = vmatpush1.bf16.msra.mxu0 %v6079_v58  ;;  %v168_v2 = vld [vmem:[%s8970_s5 + $0x3a8] sm:$0xff]  ;;  %v153_v18 = vld [vmem:[%s8970_s5 + $0x330] sm:$0xff]  ;;  %v158_v20 = vld [vmem:[%s8970_s5 + $0x358] sm:$0xff]  ;;  %v6262_v35 = vpack.c.bf16 %v159_v56, %v155_v53 }
  0x35   :  { %4407 = vmatprep.subr.bf16.mxu0 %v6082_v59  ;;  %4469 = vmatpush1.bf16.msra.mxu1 %v6133_v28  ;;  %9094 = vst [vmem:[#allocation15_spill] sm:$0xff] %v6241_v0  ;;  %9095 = vst [vmem:[#allocation16_spill] sm:$0xff] %v6247_v9  ;;  %v162_v27 = vld [vmem:[%s8970_s5 + $0x378] sm:$0xff]  ;;  %v6265_v37 = vpack.c.bf16 %v168_v2, %v164_v62  ;;  %v163_v38 = vld [vmem:[%s8970_s5 + $0x380] sm:$0xff]  ;;  %v6277_v53 = vpack.c.bf16 %v153_v18, %v149_v14 }
  0x36   :  { %4471 = vmatprep.subr.bf16.mxu1 %v6136_v31  ;;  %v167_v42 = vld [vmem:[%s8970_s5 + $0x3a0] sm:$0xff]  ;;  %v176_v56 = vld [vmem:[%s8970_s5 + $0x3e8] sm:$0xff]  ;;  %v6283_v62 = vpack.c.bf16 %v162_v27, %v158_v20  ;;  %v157_v2 = vld [vmem:[%s8970_s5 + $0x350] sm:$0xff] }
  0x37   :  { %9096 = vst [vmem:[#allocation17_spill] sm:$0xff] %v6277_v53  ;;  %v166_v14 = vld [vmem:[%s8970_s5 + $0x398] sm:$0xff]  ;;  %v6298_v20 = vpack.c.bf16 %v167_v42, %v163_v38  ;;  %v169_v42 = vld [vmem:[%s8970_s5 + $0x3b0] sm:$0xff] }
  0x38   :  { %4409 = vmatpush1.bf16.msra.mxu0 %v6115_v17  ;;  %9097 = vst [vmem:[#allocation18_spill] sm:$0xff] %v6283_v62  ;;  %v170_v18 = vld [vmem:[%s8970_s5 + $0x3b8] sm:$0xff] }
  0x39   :  { %4411 = vmatprep.subr.bf16.mxu0 %v6121_v19  ;;  %4473 = vmatpush1.bf16.msra.mxu1 %v6169_v55  ;;  %v6313_v38 = vpack.c.bf16 %v170_v18, %v166_v14 }
  0x3a   :  { %4475 = vmatprep.subr.bf16.mxu1 %v6175_v60 }
  0x3b   :  { %9099 = vst [vmem:[#allocation20_spill] sm:$0xff] %v6313_v38 }
  0x3c   :  { %4413 = vmatpush1.bf16.msra.mxu0 %v6154_v43 }
  0x3d   :  { %4415 = vmatprep.subr.bf16.mxu0 %v6157_v46  ;;  %4477 = vmatpush1.bf16.msra.mxu1 %v6205_v26  ;;  %v175_v26 = vld [vmem:[%s8970_s5 + $0x3e0] sm:$0xff] }
  0x3e   :  { %4479 = vmatprep.subr.bf16.mxu1 %v6211_v34  ;;  %v172_v34 = vld [vmem:[%s8970_s5 + $0x3c8] sm:$0xff] }
  0x3f   :  { %v6301_v27 = vpack.c.bf16 %v176_v56, %v172_v34  ;;  %v165_v34 = vld [vmem:[%s8970_s5 + $0x390] sm:$0xff]  ;;  %v174_v56 = vld [vmem:[%s8970_s5 + $0x3d8] sm:$0xff] }
  0x40   :  { %4417 = vmatpush1.bf16.msra.mxu0 %v6190_v10  ;;  %v6332_v14 = vpack.c.bf16 %v169_v42, %v165_v34  ;;  %v367_v34 = vld [vmem:[%s8972_s7] sm:$0xff]  ;;  %v368_v42 = vld [vmem:[%s8972_s7 + $0x8] sm:$0xff] }
  0x41   :  { %4419 = vmatprep.subr.bf16.mxu0 %v6193_v11  ;;  %4481 = vmatpush1.bf16.msra.mxu1 %v6241_v0  ;;  %v161_v0 = vld [vmem:[%s8970_s5 + $0x370] sm:$0xff] }
  0x42   :  { %4483 = vmatprep.subr.bf16.mxu1 %v6247_v9  ;;  %v171_v9 = vld [vmem:[%s8970_s5 + $0x3c0] sm:$0xff]  ;;  %v6310_v60 = vpack.c.bf16 %v161_v0, %v157_v2  ;;  %v178_v0 = vld [vmem:[%s8970_s5 + $0x3f8] sm:$0xff]  ;;  %9100 = vst [vmem:[#allocation21_spill] sm:$0xff] %v6332_v14 }
  0x43   :  { %v6328_v2 = vpack.c.bf16 %v175_v26, %v171_v9  ;;  %v6335_v18 = vpack.c.bf16 %v178_v0, %v174_v56  ;;  %v50_v26 = vld [vmem:[%s8968_s3] sm:$0xff]  ;;  %v6358_v56 = vpack.c.bf16 %v368_v42, %v367_v34  ;;  %v8993_v0 = vmov 0.0|0.0   ;;  %v372_v42 = vld [vmem:[%s8972_s7 + $0x28] sm:$0xff] }
  0x44   :  { %4421 = vmatpush1.bf16.msra.mxu0 %v6226_v49  ;;  %9098 = vst [vmem:[#allocation19_spill] sm:$0xff] %v6310_v60  ;;  %v371_v34 = vld [vmem:[%s8972_s7 + $0x20] sm:$0xff] }
  0x45   :  { %4423 = vmatprep.subr.bf16.mxu0 %v6229_v52  ;;  %4485 = vmatpush1.bf16.msra.mxu1 %v6277_v53  ;;  %9101 = vst [vmem:[#allocation22_spill] sm:$0xff] %v6335_v18  ;;  %v177_v53 = vld [vmem:[%s8970_s5 + $0x3f0] sm:$0xff]  ;;  %9103 = vst [vmem:[#allocation24_spill] sm:$0xff] %v6358_v56 }
  0x46   :  { %4487 = vmatprep.subr.bf16.mxu1 %v6283_v62  ;;  %v173_v62 = vld [vmem:[%s8970_s5 + $0x3d0] sm:$0xff] }
  0x47   :  { %v6348_v9 = vpack.c.bf16 %v177_v53, %v173_v62  ;;  %v369_v53 = vld [vmem:[%s8972_s7 + $0x10] sm:$0xff]  ;;  %v370_v62 = vld [vmem:[%s8972_s7 + $0x18] sm:$0xff] }
  0x48   :  { %4425 = vmatpush1.bf16.msra.mxu0 %v6262_v35 }
  0x49   :  { %4427 = vmatprep.subr.bf16.mxu0 %v6265_v37  ;;  %4489 = vmatpush1.bf16.msra.mxu1 %v6310_v60  ;;  %9102 = vst [vmem:[#allocation23_spill] sm:$0xff] %v6348_v9 }
  0x4a   :  { %4491 = vmatprep.subr.bf16.mxu1 %v6313_v38 }
  0x4c   :  { %4429 = vmatpush1.bf16.msra.mxu0 %v6298_v20 }
  0x4d   :  { %4431 = vmatprep.subr.bf16.mxu0 %v6301_v27  ;;  %4493 = vmatpush1.bf16.msra.mxu1 %v6332_v14 }
  0x4e   :  { %4495 = vmatprep.subr.bf16.mxu1 %v6335_v18 }
  0x50   :  { %4433 = vmatpush1.bf16.msra.mxu0 %v6328_v2 }
  0x51   :  { %4497 = vmatpush1.bf16.msra.mxu1 %v6348_v9  ;;  %4498 = vmatprep.subr.bf16.mxu0 %v8993_v0  ;;  %v379_v9 = vld [vmem:[%s8972_s7 + $0x60] sm:$0xff] }
  0x52   :  { %4522 = vmatprep.subr.bf16.mxu1 %v8993_v0 }
  0x53   :  { %266 = vmatmul.mubr.f32.vlgmr.msra.gmra.mrb[0].mxu0 %v50_v26 }
  0x54   :  { %337 = vmatmul.mubr.f32.vlgmr.msra.gmra.mrb[0].mxu1 %v50_v26  ;;  %4500 = vmatpush3.bf16.msra.mxu0 %v6358_v56  ;;  %v6370_v26 = vpack.c.bf16 %v370_v62, %v369_v53  ;;  %v6380_v56 = vpack.c.bf16 %v372_v42, %v371_v34  ;;  %v373_v53 = vld [vmem:[%s8972_s7 + $0x30] sm:$0xff]  ;;  %v374_v62 = vld [vmem:[%s8972_s7 + $0x38] sm:$0xff]  ;;  %v375_v34 = vld [vmem:[%s8972_s7 + $0x40] sm:$0xff] }
  0x55   :  { %4501 = vmatprep.subr.bf16.mxu0 %v8993_v0  ;;  %v376_v42 = vld [vmem:[%s8972_s7 + $0x48] sm:$0xff] }
  0x56   :  { %9104 = vst [vmem:[#allocation25_spill] sm:$0xff] %v6370_v26  ;;  %9105 = vst [vmem:[#allocation26_spill] sm:$0xff] %v6380_v56 }
  0x58   :  { %4503 = vmatpush3.bf16.msra.mxu0 %v6370_v26  ;;  %v6390_v26 = vpack.c.bf16 %v374_v62, %v373_v53  ;;  %v377_v53 = vld [vmem:[%s8972_s7 + $0x50] sm:$0xff]  ;;  %v378_v62 = vld [vmem:[%s8972_s7 + $0x58] sm:$0xff] }
  0x59   :  { %4504 = vmatprep.subr.bf16.mxu0 %v8993_v0 }
  0x5a   :  { %9106 = vst [vmem:[#allocation27_spill] sm:$0xff] %v6390_v26 }
  0x5c   :  { %4506 = vmatpush3.bf16.msra.mxu0 %v6380_v56  ;;  %v6400_v56 = vpack.c.bf16 %v376_v42, %v375_v34  ;;  %v380_v34 = vld [vmem:[%s8972_s7 + $0x68] sm:$0xff]  ;;  %v8989_v42 = vmov 0.0  }
  0x5d   :  { %4507 = vmatprep.subr.bf16.mxu0 %v8993_v0  ;;  %47 = vst [vmem:[%s8974_s9] sm:$0xff] %v8989_v42  ;;  %3947 = vmatprep.mubr.msk.f32.mxu0 %vm5715_vm0, %v8989_v42 }
  0x5e   :  { %9107 = vst [vmem:[#allocation28_spill] sm:$0xff] %v6400_v56  ;;  %3982 = vmatprep.mubr.msk.f32.mxu1 %vm5715_vm0, %v8989_v42 }
  0x60   :  { %4509 = vmatpush3.bf16.msra.mxu0 %v6390_v26  ;;  %v6410_v26 = vpack.c.bf16 %v378_v62, %v377_v53  ;;  %v6427_v53 = vpack.c.bf16 %v380_v34, %v379_v9  ;;  %v381_v62 = vld [vmem:[%s8972_s7 + $0x70] sm:$0xff]  ;;  %v8999_v9 = vlaneseq }
  0x61   :  { %4510 = vmatprep.subr.bf16.mxu0 %v8993_v0 }
  0x62   :  { %9108 = vst [vmem:[#allocation29_spill] sm:$0xff] %v6410_v26  ;;  %9109 = vst [vmem:[#allocation30_spill] sm:$0xff] %v6427_v53  ;;  %v182_v34 = vshrl.u32 %v8999_v9, 7 }
  0x64   :  { %4512 = vmatpush3.bf16.msra.mxu0 %v6400_v56  ;;  %v382_v56 = vld [vmem:[%s8972_s7 + $0x78] sm:$0xff]  ;;  %v6443_v42 = vsub.s32 0, %v182_v34  ;;  %v6448_v14 = vsub.s32 1, %v182_v34  ;;  %v6455_v31 = vsub.s32 2, %v182_v34 }
  0x65   :  { %4513 = vmatprep.subr.bf16.mxu0 %v8993_v0  ;;  %v6437_v18 = vpack.c.bf16 %v382_v56, %v381_v62 }
  0x66   :  { %9111 = vst [vmem:[#allocation32_spill] sm:$0xff] %v6443_v42  ;;  %9112 = vst [vmem:[#allocation33_spill] sm:$0xff] %v6448_v14 }
  0x67   :  { %9110 = vst [vmem:[#allocation31_spill] sm:$0xff] %v6437_v18 }
  0x68   :  { %4515 = vmatpush3.bf16.msra.mxu0 %v6410_v26  ;;  %v179_v26 = vld [vmem:[%s8971_s6] sm:$0xf] }
  0x69   :  { %4516 = vmatprep.subr.bf16.mxu0 %v8993_v0  ;;  %v184_v56 = vrot.slane %v179_v26, %v6443_v42  ;;  %v188_v62 = vrot.slane %v179_v26, %v6448_v14  ;;  %v192_v42 = vrot.slane %v179_v26, %v6455_v31 }
  0x6c   :  { %4518 = vmatpush3.bf16.msra.mxu0 %v6427_v53 }
  0x6d   :  { %4519 = vmatprep.subr.bf16.mxu0 %v8993_v0  ;;  %v6452_v0 = vsub.s32 3, %v182_v34 }
  0x6f   :  { %v196_v9 = vrot.slane %v179_v26, %v6452_v0 }
  0x70   :  { %4521 = vmatpush3.bf16.msra.mxu0 %v6437_v18 }
  0x71   :  { %4547 = vmatprep.subr.bf16.mxu0 %v5779_v3 }
 0x126   :  { %v267_v18 = vpop.f32.mrb[0].mxu0 }
 0x127   :  { %v268_v53 = vadd.f32 %v267_v18, %v184_v56  ;;  %v269_v3 = vpop.f32.mrb[1].mxu0  ;;  %v338_v28 = vpop.f32.mrb[0].mxu1 }
 0x128   :  { %v270_v38 = vadd.f32 %v269_v3, %v188_v62  ;;  %v340_v4 = vpop.f32.mrb[1].mxu1  ;;  %v339_v50 = vadd.f32 %v338_v28, %v192_v42 }
 0x129   :  { %v3635_v60 = vmul.f32 -1.442695, %v268_v53  ;;  %v341_v1 = vadd.f32 %v340_v4, %v196_v9 }
 0x12a   :  { %v3636_v55 = vmul.f32 -1.442695, %v270_v38 }
 0x12b   :  { %5583 = vpow2.f32 %v3635_v60  ;;  %v3637_v14 = vmul.f32 -1.442695, %v341_v1 }
 0x12c   :  { %5585 = vpow2.f32 %v3636_v55  ;;  %v49_v55 = vld [vmem:[%s8967_s2] sm:$0xff] }
 0x12d   :  { %5587 = vpow2.f32 %v3637_v14 }
 0x12e   :  { %5589 = vtanh.f32 %v339_v50 }
 0x135   :  { %v5584_v48 = vpop.eup %5583 }
 0x136   :  { %v5586_v18 = vpop.eup %5585  ;;  %v346_v56 = vadd.f32 1.0, %v5584_v48 }
 0x137   :  { %v352_v53 = vadd.f32 1.0, %v5586_v18  ;;  %v5588_v38 = vpop.eup %5587 }
 0x138   :  { %5591 = vrcp.f32 %v346_v56  ;;  %v5590_v34 = vpop.eup %5589  ;;  %v359_v4 = vadd.f32 1.0, %v5588_v38  ;;  %v498_v38 = vld [vmem:[%s8969_s4 + $0x78] sm:$0xff] }
 0x139   :  { %5593 = vrcp.f32 %v352_v53  ;;  %v497_v53 = vld [vmem:[%s8969_s4 + $0x70] sm:$0xff] }
 0x13a   :  { %5595 = vrcp.f32 %v359_v4 }
 0x142   :  { %v5592_v60 = vpop.eup %5591 }
 0x143   :  { %v5594_v9 = vpop.eup %5593  ;;  %v363_v26 = vmul.f32 %v5592_v60, %v5590_v34  ;;  %v6589_v34 = vpack.c.bf16 %v498_v38, %v497_v53 }
 0x144   :  { %v362_v1 = vmul.f32 %v5594_v9, %v49_v55  ;;  %v5596_v48 = vpop.eup %5595 }
 0x146   :  { %v6461_v28 = vadd.f32 %v363_v26, %v362_v1  ;;  %v9011_v1 = vmov 1.0  }
 0x148   :  { %5597 = vtanh.f32 %v6461_v28 }
 0x152   :  { %v5598_v50 = vpop.eup %5597 }
 0x153   :  { %v6464_v14 = vmul.f32 %v5598_v50, %v5596_v48  ;;  %v9128_v48 = vld [vmem:[#allocation18_spill] sm:$0xff]  ;;  %v9129_v50 = vld [vmem:[#allocation19_spill] sm:$0xff] }
 0x155   :  { %3948 = vmatmul.mubr.f32.vlgmr.msra.gmra.mrb[2].mxu0 %v6464_v14 }
 0x156   :  { %793 = vmatprep.mubr.f32.mxu0 %v6464_v14  ;;  %4549 = vmatpush1.bf16.msra.mxu0 %v5790_v7  ;;  %v9113_v7 = vmov 0.0|0.0  }
 0x157   :  { %4551 = vmatprep.subr.bf16.mxu0 %v5792_v8  ;;  %v6503_v8 = vld [vmem:[%s8973_s8] ss:$0 sm:$0xff] }
 0x15a   :  { %4553 = vmatpush1.bf16.msra.mxu0 %v5808_v13 }
 0x15b   :  { %4555 = vmatprep.subr.bf16.mxu0 %v5817_v16 }
 0x15e   :  { %4557 = vmatpush1.bf16.msra.mxu0 %v5842_v25 }
 0x15f   :  { %4559 = vmatprep.subr.bf16.mxu0 %v5855_v29  ;;  %v9114_v29 = vlaneseq }
 0x162   :  { %4561 = vmatpush1.bf16.msra.mxu0 %v5891_v41  ;;  %v6510_v41 = vand.u32 127, %v9114_v29  ;;  %v3643_v29 = vld [vmem:[%s8968_s3 + $0x8] sm:$0xff] }
 0x163   :  { %4563 = vmatprep.subr.bf16.mxu0 %v5902_v45 }
 0x166   :  { %4565 = vmatpush1.bf16.msra.mxu0 %v5929_v54 }
 0x167   :  { %4567 = vmatprep.subr.bf16.mxu0 %v5938_v57 }
 0x16a   :  { %4569 = vmatpush1.bf16.msra.mxu0 %v5971_v5 }
 0x16b   :  { %4571 = vmatprep.subr.bf16.mxu0 %v5974_v6  ;;  %v483_v6 = vld [vmem:[%s8969_s4] sm:$0xff] }
 0x16e   :  { %4573 = vmatpush1.bf16.msra.mxu0 %v6007_v22  ;;  %v484_v22 = vld [vmem:[%s8969_s4 + $0x8] sm:$0xff] }
 0x16f   :  { %4575 = vmatprep.subr.bf16.mxu0 %v6010_v23  ;;  %v485_v23 = vld [vmem:[%s8969_s4 + $0x10] sm:$0xff] }
 0x172   :  { %4577 = vmatpush1.bf16.msra.mxu0 %v6043_v39  ;;  %v6522_v39 = vpack.c.bf16 %v484_v22, %v483_v6 }
 0x173   :  { %4579 = vmatprep.subr.bf16.mxu0 %v6046_v40  ;;  %v486_v40 = vld [vmem:[%s8969_s4 + $0x18] sm:$0xff] }
 0x174   :  { %4524 = vmatpush3.bf16.msra.mxu1 %v6522_v39 }
 0x175   :  { %4525 = vmatprep.subr.bf16.mxu1 %v9113_v7 }
 0x176   :  { %4581 = vmatpush1.bf16.msra.mxu0 %v6079_v58  ;;  %v6528_v58 = vpack.c.bf16 %v486_v40, %v485_v23  ;;  %v9134_v40 = vld [vmem:[#allocation24_spill] sm:$0xff] }
 0x177   :  { %4583 = vmatprep.subr.bf16.mxu0 %v6082_v59  ;;  %v487_v59 = vld [vmem:[%s8969_s4 + $0x20] sm:$0xff] }
 0x178   :  { %4527 = vmatpush3.bf16.msra.mxu1 %v6528_v58 }
 0x179   :  { %4528 = vmatprep.subr.bf16.mxu1 %v9113_v7 }
 0x17a   :  { %4585 = vmatpush1.bf16.msra.mxu0 %v6115_v17  ;;  %v488_v17 = vld [vmem:[%s8969_s4 + $0x28] sm:$0xff] }
 0x17b   :  { %4587 = vmatprep.subr.bf16.mxu0 %v6121_v19  ;;  %v6538_v19 = vpack.c.bf16 %v488_v17, %v487_v59  ;;  %v9135_v59 = vmov 0.0   ;;  %v9136_v17 = vld [vmem:[#allocation25_spill] sm:$0xff] }
 0x17d   :  { %4530 = vmatpush3.bf16.msra.mxu1 %v6538_v19 }
 0x17e   :  { %4589 = vmatpush1.bf16.msra.mxu0 %v6154_v43  ;;  %v489_v43 = vld [vmem:[%s8969_s4 + $0x30] sm:$0xff]  ;;  %4531 = vmatprep.subr.bf16.mxu1 %v9113_v7 }
 0x17f   :  { %4591 = vmatprep.subr.bf16.mxu0 %v6157_v46  ;;  %v490_v46 = vld [vmem:[%s8969_s4 + $0x38] sm:$0xff] }
 0x182   :  { %4593 = vmatpush1.bf16.msra.mxu0 %v6190_v10  ;;  %v6548_v10 = vpack.c.bf16 %v490_v46, %v489_v43  ;;  %v9137_v43 = vld [vmem:[#allocation26_spill] sm:$0xff]  ;;  %v9139_v46 = vld [vmem:[#allocation28_spill] sm:$0xff] }
 0x183   :  { %4595 = vmatprep.subr.bf16.mxu0 %v6193_v11  ;;  %v491_v11 = vld [vmem:[%s8969_s4 + $0x40] sm:$0xff] }
 0x184   :  { %4533 = vmatpush3.bf16.msra.mxu1 %v6548_v10 }
 0x185   :  { %4534 = vmatprep.subr.bf16.mxu1 %v9113_v7 }
 0x186   :  { %4597 = vmatpush1.bf16.msra.mxu0 %v6226_v49  ;;  %v492_v49 = vld [vmem:[%s8969_s4 + $0x48] sm:$0xff] }
 0x187   :  { %4599 = vmatprep.subr.bf16.mxu0 %v6229_v52  ;;  %v6558_v52 = vpack.c.bf16 %v492_v49, %v491_v11  ;;  %v707_v11 = vld [vmem:[%s8971_s6] sm:$0xf]  ;;  %v9143_v49 = vld [vmem:[#allocation32_spill] sm:$0xff] }
 0x188   :  { %v724_v53 = vrot.slane %v707_v11, %v6452_v0 }
 0x189   :  { %4536 = vmatpush3.bf16.msra.mxu1 %v6558_v52 }
 0x18a   :  { %4601 = vmatpush1.bf16.msra.mxu0 %v6262_v35  ;;  %v493_v35 = vld [vmem:[%s8969_s4 + $0x50] sm:$0xff]  ;;  %4537 = vmatprep.subr.bf16.mxu1 %v9113_v7 }
 0x18b   :  { %4603 = vmatprep.subr.bf16.mxu0 %v6265_v37  ;;  %v494_v37 = vld [vmem:[%s8969_s4 + $0x58] sm:$0xff] }
 0x18e   :  { %4605 = vmatpush1.bf16.msra.mxu0 %v6298_v20  ;;  %v6568_v20 = vpack.c.bf16 %v494_v37, %v493_v35  ;;  %v9144_v35 = vld [vmem:[#allocation33_spill] sm:$0xff] }
 0x18f   :  { %4607 = vmatprep.subr.bf16.mxu0 %v6301_v27  ;;  %v495_v27 = vld [vmem:[%s8969_s4 + $0x60] sm:$0xff]  ;;  %v716_v37 = vrot.slane %v707_v11, %v9144_v35 }
 0x190   :  { %4539 = vmatpush3.bf16.msra.mxu1 %v6568_v20 }
 0x191   :  { %4540 = vmatprep.subr.bf16.mxu1 %v9113_v7 }
 0x192   :  { %4609 = vmatpush1.bf16.msra.mxu0 %v6328_v2  ;;  %v496_v2 = vld [vmem:[%s8969_s4 + $0x68] sm:$0xff] }
 0x193   :  { %4674 = vmatprep.subr.bf16.mxu0 %v9113_v7  ;;  %v6578_v42 = vpack.c.bf16 %v496_v2, %v495_v27 }
 0x195   :  { %4542 = vmatpush3.bf16.msra.mxu1 %v6578_v42 }
 0x196   :  { %4543 = vmatprep.subr.bf16.mxu1 %v9113_v7 }
 0x199   :  { %4545 = vmatpush3.bf16.msra.mxu1 %v6589_v34 }
 0x19a   :  { %4611 = vmatprep.subr.bf16.mxu1 %v5831_v21  ;;  %v9115_v21 = vld [vmem:[#allocation5_spill] sm:$0xff] }
 0x228   :  { %v456_v13 = vpop.f32.mrb[2].mxu0 }
 0x229   :  { %v457_v16 = vadd.f32 %v6503_v8, %v456_v13  ;;  %v3949_v25 = vpop.f32.mrb[3].mxu0  ;;  %v9131_v13 = vld [vmem:[#allocation21_spill] sm:$0xff] }
 0x22a   :  { %v9133_v25 = vld [vmem:[#allocation23_spill] sm:$0xff] }
 0x22b   :  { %3639 = vst [vmem:[%s8974_s9 + $0x8] sm:$0xff] %v457_v16  ;;  %462 = vmax.xlane.f32.xlu0 %v457_v16 }
 0x2b8   :  { %v463_v45 = vpop.xlane.xlu0 %462 }
 0x2b9   :  { %vm464_vm1 = vcmp.eq.f32.partialorder %v457_v16, %v463_v45  ;;  %v9132_v16 = vld [vmem:[#allocation22_spill] sm:$0xff]  ;;  %v573_v45 = vstv %s570_s10  ;;  %s3651_s10 = sld [smem:[#allocation2 + $0x2]] }
 0x2ba   :  { %v465_v54 = vsel %vm464_vm1, %v6510_v41, 128 }
 0x2bb   :  { %v467_v57 = vshra.s32 %v465_v54, 16  ;;  %v466_v62 = vand.u32 65535, %v465_v54  ;;  %v576_v54 = vstv %s575_s11 }
 0x2bd   :  { %v469_v5 = vcvt.s32.f32 %v467_v57  ;;  %v468_v18 = vcvt.s32.f32 %v466_v62  ;;  %v574_v57 = vmul.f32 %v3643_v29, %v573_v45 }
 0x2bf   :  { %470 = vmin.xlane.f32.xlu0 %v469_v5  ;;  %s1098_s11 = scvt.s32.f32 %s3651_s10 }
 0x2c1   :  { %s1103_s12 = ssub.f32 1.0, %s1098_s11 }
 0x34c   :  { %v471_v3 = vpop.xlane.xlu0 %470 }
 0x34d   :  { %vm472_vm2 = vcmp.eq.f32.partialorder %v469_v5, %v471_v3  ;;  %v477_v55 = vcvt.f32.s32 %v471_v3 }
 0x34e   :  { %v473_v56 = vsel %vm472_vm2, %v468_v18, inf }
 0x34f   :  { %474 = vmin.xlane.f32.xlu1 %v473_v56  ;;  %v478_v4 = vshll.u32 %v477_v55, 16 }
 0x3dc   :  { %v475_v60 = vpop.xlane.xlu1 %474 }
 0x3dd   :  { %v476_v9 = vcvt.f32.s32 %v475_v60 }
 0x3df   :  { %v479_v26 = vadd.s32 %v478_v4, %v476_v9 }
 0x3e1   :  { %vm480_vm3 = vcmp.eq.s32.totalorder %v6510_v41, %v479_v26 }
 0x3e2   :  { %3983 = vmatmul.mubr.msk.f32.vlgmr.msra.gmra.mrb[2].mxu1 %vm480_vm3, %v9011_v1 }
 0x3e3   :  { %864 = vmatprep.mubr.f32.mxu1 %v6464_v14  ;;  %4613 = vmatpush1.bf16.msra.mxu1 %v5839_v24  ;;  %v9116_v24 = vld [vmem:[#allocation6_spill] sm:$0xff]  ;;  %v9130_v14 = vld [vmem:[#allocation20_spill] sm:$0xff] }
 0x3e4   :  { %4615 = vmatprep.subr.bf16.mxu1 %v5864_v32  ;;  %v9117_v32 = vld [vmem:[#allocation7_spill] sm:$0xff] }
 0x3e7   :  { %4617 = vmatpush1.bf16.msra.mxu1 %v5875_v36  ;;  %v9118_v36 = vld [vmem:[#allocation8_spill] sm:$0xff] }
 0x3e8   :  { %4619 = vmatprep.subr.bf16.mxu1 %v5899_v44  ;;  %v9119_v44 = vld [vmem:[#allocation9_spill] sm:$0xff] }
 0x3eb   :  { %4621 = vmatpush1.bf16.msra.mxu1 %v5908_v47  ;;  %v9120_v47 = vld [vmem:[#allocation10_spill] sm:$0xff] }
 0x3ec   :  { %4623 = vmatprep.subr.bf16.mxu1 %v5920_v51  ;;  %v9121_v51 = vld [vmem:[#allocation11_spill] sm:$0xff] }
 0x3ef   :  { %4625 = vmatpush1.bf16.msra.mxu1 %v5950_v61  ;;  %v9122_v61 = vld [vmem:[#allocation12_spill] sm:$0xff] }
 0x3f0   :  { %4627 = vmatprep.subr.bf16.mxu1 %v5956_v63  ;;  %v9123_v63 = vld [vmem:[#allocation13_spill] sm:$0xff] }
 0x3f3   :  { %4629 = vmatpush1.bf16.msra.mxu1 %v5986_v12  ;;  %v9124_v12 = vld [vmem:[#allocation14_spill] sm:$0xff] }
 0x3f4   :  { %4631 = vmatprep.subr.bf16.mxu1 %v5992_v15  ;;  %v9125_v15 = vld [vmem:[#allocation15_spill] sm:$0xff] }
 0x3f7   :  { %4633 = vmatpush1.bf16.msra.mxu1 %v6022_v30  ;;  %v9126_v30 = vld [vmem:[#allocation16_spill] sm:$0xff] }
 0x3f8   :  { %4635 = vmatprep.subr.bf16.mxu1 %v6028_v33  ;;  %v9127_v33 = vld [vmem:[#allocation17_spill] sm:$0xff] }
 0x3fb   :  { %4637 = vmatpush1.bf16.msra.mxu1 %v9115_v21 }
 0x3fc   :  { %4639 = vmatprep.subr.bf16.mxu1 %v9116_v24 }
 0x3ff   :  { %4641 = vmatpush1.bf16.msra.mxu1 %v9117_v32 }
 0x400   :  { %4643 = vmatprep.subr.bf16.mxu1 %v9118_v36 }
 0x403   :  { %4645 = vmatpush1.bf16.msra.mxu1 %v9119_v44 }
 0x404   :  { %4647 = vmatprep.subr.bf16.mxu1 %v9120_v47 }
 0x407   :  { %4649 = vmatpush1.bf16.msra.mxu1 %v9121_v51 }
 0x408   :  { %4651 = vmatprep.subr.bf16.mxu1 %v9122_v61 }
 0x40b   :  { %4653 = vmatpush1.bf16.msra.mxu1 %v9123_v63 }
 0x40c   :  { %4655 = vmatprep.subr.bf16.mxu1 %v9124_v12 }
 0x40f   :  { %4657 = vmatpush1.bf16.msra.mxu1 %v9125_v15 }
 0x410   :  { %4659 = vmatprep.subr.bf16.mxu1 %v9126_v30 }
 0x413   :  { %4661 = vmatpush1.bf16.msra.mxu1 %v9127_v33 }
 0x414   :  { %4663 = vmatprep.subr.bf16.mxu1 %v9128_v48 }
 0x417   :  { %4665 = vmatpush1.bf16.msra.mxu1 %v9129_v50 }
 0x418   :  { %4667 = vmatprep.subr.bf16.mxu1 %v9130_v14 }
 0x41b   :  { %4669 = vmatpush1.bf16.msra.mxu1 %v9131_v13 }
 0x41c   :  { %4671 = vmatprep.subr.bf16.mxu1 %v9132_v16 }
 0x41f   :  { %4673 = vmatpush1.bf16.msra.mxu1 %v9133_v25 }
 0x420   :  { %4698 = vmatprep.subr.bf16.mxu1 %v9113_v7 }
 0x4b5   :  { %v565_v5 = vpop.f32.mrb[2].mxu1 }
 0x4b6   :  { %v577_v6 = vmul.f32 %v576_v54, %v565_v5  ;;  %v3984_v22 = vpop.f32.mrb[3].mxu1  ;;  %v1108_v54 = vld [vmem:[%s8970_s5 + $0x8] sm:$0xff]  ;;  %v1110_v5 = vld [vmem:[%s8970_s5 + $0x18] sm:$0xff] }
 0x4b7   :  { %v1114_v22 = vld [vmem:[%s8970_s5 + $0x38] sm:$0xff] }
 0x4b8   :  { %v578_v23 = vadd.f32 %v577_v6, %v574_v57  ;;  %v1112_v57 = vld [vmem:[%s8970_s5 + $0x28] sm:$0xff] }
 0x4b9   :  { %v6697_v6 = vpack.c.bf16 %v1112_v57, %v1108_v54  ;;  %v1171_v54 = vld [vmem:[%s8970_s5 + $0x200] sm:$0xff] }
 0x4ba   :  { %794 = vmatmul.mubr.f32.vlgmr.msra.gmra.mrb[4].mxu0 %v578_v23  ;;  %865 = vmatmul.mubr.f32.vlgmr.msra.gmra.mrb[4].mxu1 %v578_v23  ;;  %v1107_v23 = vld [vmem:[%s8970_s5] sm:$0xff] }
 0x4bb   :  { %4676 = vmatpush3.bf16.msra.mxu0 %v9134_v40  ;;  %4017 = vmatprep.mubr.msk.f32.mxu0 %vm5715_vm0, %v9135_v59  ;;  %v1111_v40 = vld [vmem:[%s8970_s5 + $0x20] sm:$0xff] }
 0x4bc   :  { %4677 = vmatprep.subr.bf16.mxu0 %v9113_v7  ;;  %4700 = vmatpush3.bf16.msra.mxu1 %v6522_v39  ;;  %v9138_v39 = vld [vmem:[#allocation27_spill] sm:$0xff]  ;;  %v1175_v57 = vld [vmem:[%s8970_s5 + $0x220] sm:$0xff] }
 0x4bd   :  { %4701 = vmatprep.subr.bf16.mxu1 %v9113_v7  ;;  %4052 = vmatprep.mubr.msk.f32.mxu1 %vm5715_vm0, %v9135_v59  ;;  %v6708_v59 = vpack.c.bf16 %v1114_v22, %v1110_v5  ;;  %v6855_v5 = vpack.c.bf16 %v1175_v57, %v1171_v54  ;;  %v1180_v22 = vld [vmem:[%s8970_s5 + $0x248] sm:$0xff]  ;;  %v1219_v54 = vld [vmem:[%s8970_s5 + $0x380] sm:$0xff] }
 0x4be   :  { %v1223_v57 = vld [vmem:[%s8970_s5 + $0x3a0] sm:$0xff] }
 0x4bf   :  { %4679 = vmatpush3.bf16.msra.mxu0 %v9136_v17  ;;  %v6710_v17 = vpack.c.bf16 %v1111_v40, %v1107_v23  ;;  %v1184_v23 = vld [vmem:[%s8970_s5 + $0x268] sm:$0xff] }
 0x4c0   :  { %4680 = vmatprep.subr.bf16.mxu0 %v9113_v7  ;;  %4703 = vmatpush3.bf16.msra.mxu1 %v6528_v58  ;;  %v9140_v58 = vld [vmem:[#allocation29_spill] sm:$0xff]  ;;  %v6864_v40 = vpack.c.bf16 %v1184_v23, %v1180_v22  ;;  %v6963_v22 = vpack.c.bf16 %v1223_v57, %v1219_v54  ;;  %v1133_v54 = vld [vmem:[%s8970_s5 + $0xd0] sm:$0xff] }
 0x4c1   :  { %4704 = vmatprep.subr.bf16.mxu1 %v9113_v7  ;;  %v1137_v57 = vld [vmem:[%s8970_s5 + $0xf0] sm:$0xff] }
 0x4c3   :  { %4682 = vmatpush3.bf16.msra.mxu0 %v9137_v43  ;;  %v1116_v43 = vld [vmem:[%s8970_s5 + $0x48] sm:$0xff] }
 0x4c4   :  { %4683 = vmatprep.subr.bf16.mxu0 %v9113_v7  ;;  %4706 = vmatpush3.bf16.msra.mxu1 %v6538_v19  ;;  %v9141_v19 = vld [vmem:[#allocation30_spill] sm:$0xff] }
 0x4c5   :  { %4707 = vmatprep.subr.bf16.mxu1 %v9113_v7 }
 0x4c7   :  { %4685 = vmatpush3.bf16.msra.mxu0 %v9138_v39  ;;  %v1120_v39 = vld [vmem:[%s8970_s5 + $0x68] sm:$0xff] }
 0x4c8   :  { %4686 = vmatprep.subr.bf16.mxu0 %v9113_v7  ;;  %4709 = vmatpush3.bf16.msra.mxu1 %v6548_v10  ;;  %v9142_v10 = vld [vmem:[#allocation31_spill] sm:$0xff] }
 0x4c9   :  { %4710 = vmatprep.subr.bf16.mxu1 %v9113_v7 }
 0x4cb   :  { %4688 = vmatpush3.bf16.msra.mxu0 %v9139_v46  ;;  %v6721_v46 = vpack.c.bf16 %v1120_v39, %v1116_v43  ;;  %v1179_v43 = vld [vmem:[%s8970_s5 + $0x240] sm:$0xff] }
 0x4cc   :  { %4689 = vmatprep.subr.bf16.mxu0 %v9113_v7  ;;  %4712 = vmatpush3.bf16.msra.mxu1 %v6558_v52  ;;  %v712_v52 = vrot.slane %v707_v11, %v9143_v49  ;;  %v1183_v39 = vld [vmem:[%s8970_s5 + $0x260] sm:$0xff] }
 0x4cd   :  { %4713 = vmatprep.subr.bf16.mxu1 %v9113_v7 }
 0x4cf   :  { %4691 = vmatpush3.bf16.msra.mxu0 %v9140_v58  ;;  %v1115_v58 = vld [vmem:[%s8970_s5 + $0x40] sm:$0xff] }
 0x4d0   :  { %4692 = vmatprep.subr.bf16.mxu0 %v9113_v7  ;;  %4715 = vmatpush3.bf16.msra.mxu1 %v6568_v20 }
 0x4d1   :  { %4716 = vmatprep.subr.bf16.mxu1 %v9113_v7 }
 0x4d3   :  { %4694 = vmatpush3.bf16.msra.mxu0 %v9141_v19  ;;  %v1119_v19 = vld [vmem:[%s8970_s5 + $0x60] sm:$0xff] }
 0x4d4   :  { %4695 = vmatprep.subr.bf16.mxu0 %v9113_v7  ;;  %4718 = vmatpush3.bf16.msra.mxu1 %v6578_v42 }
 0x4d5   :  { %4719 = vmatprep.subr.bf16.mxu1 %v9113_v7 }
 0x4d7   :  { %4697 = vmatpush3.bf16.msra.mxu0 %v9142_v10  ;;  %v6729_v10 = vpack.c.bf16 %v1119_v19, %v1115_v58  ;;  %v6873_v58 = vpack.c.bf16 %v1183_v39, %v1179_v43  ;;  %v1188_v19 = vld [vmem:[%s8970_s5 + $0x288] sm:$0xff]  ;;  %v1109_v39 = vld [vmem:[%s8970_s5 + $0x10] sm:$0xff] }
 0x4d8   :  { %4721 = vmatpush3.bf16.msra.mxu1 %v6589_v34  ;;  %v720_v34 = vrot.slane %v707_v11, %v6455_v31  ;;  %4723 = vmatprep.subr.bf16.mxu0 %v6697_v6  ;;  %v1124_v11 = vld [vmem:[%s8970_s5 + $0x88] sm:$0xff] }
 0x4d9   :  { %4787 = vmatprep.subr.bf16.mxu1 %v6708_v59 }
 0x58d   :  { %v795_v20 = vpop.f32.mrb[4].mxu0  ;;  %v866_v27 = vpop.f32.mrb[4].mxu1 }
 0x58e   :  { %v796_v2 = vadd.f32 %v795_v20, %v712_v52  ;;  %v797_v62 = vpop.f32.mrb[5].mxu0  ;;  %v868_v3 = vpop.f32.mrb[5].mxu1  ;;  %v867_v60 = vadd.f32 %v866_v27, %v720_v34  ;;  %v1128_v52 = vld [vmem:[%s8970_s5 + $0xa8] sm:$0xff]  ;;  %v1123_v20 = vld [vmem:[%s8970_s5 + $0x80] sm:$0xff] }
 0x58f   :  { %v798_v42 = vadd.f32 %v797_v62, %v716_v37  ;;  %v869_v38 = vadd.f32 %v868_v3, %v724_v53  ;;  %v6738_v37 = vpack.c.bf16 %v1128_v52, %v1124_v11  ;;  %v1127_v27 = vld [vmem:[%s8970_s5 + $0xa0] sm:$0xff]  ;;  %v1132_v62 = vld [vmem:[%s8970_s5 + $0xc8] sm:$0xff] }
 0x590   :  { %v3644_v18 = vmul.f32 -1.442695, %v796_v2  ;;  %v6747_v2 = vpack.c.bf16 %v1127_v27, %v1123_v20  ;;  %v1136_v3 = vld [vmem:[%s8970_s5 + $0xe8] sm:$0xff]  ;;  %v1187_v20 = vld [vmem:[%s8970_s5 + $0x280] sm:$0xff] }
 0x591   :  { %v3645_v56 = vmul.f32 -1.442695, %v798_v42  ;;  %v3646_v55 = vmul.f32 -1.442695, %v869_v38  ;;  %v6756_v42 = vpack.c.bf16 %v1136_v3, %v1132_v62  ;;  %v1140_v38 = vld [vmem:[%s8970_s5 + $0x108] sm:$0xff]  ;;  %v1191_v27 = vld [vmem:[%s8970_s5 + $0x2a0] sm:$0xff] }
 0x592   :  { %5599 = vpow2.f32 %v3644_v18  ;;  %v1131_v18 = vld [vmem:[%s8970_s5 + $0xc0] sm:$0xff]  ;;  %v1144_v34 = vld [vmem:[%s8970_s5 + $0x128] sm:$0xff]  ;;  %v6891_v62 = vpack.c.bf16 %v1191_v27, %v1187_v20  ;;  %v1118_v27 = vld [vmem:[%s8970_s5 + $0x58] sm:$0xff] }
 0x593   :  { %5601 = vpow2.f32 %v3645_v56  ;;  %v1135_v56 = vld [vmem:[%s8970_s5 + $0xe0] sm:$0xff]  ;;  %v1192_v11 = vld [vmem:[%s8970_s5 + $0x2a8] sm:$0xff] }
 0x594   :  { %5603 = vpow2.f32 %v3646_v55  ;;  %v6765_v53 = vpack.c.bf16 %v1135_v56, %v1131_v18  ;;  %v6774_v55 = vpack.c.bf16 %v1144_v34, %v1140_v38  ;;  %v6882_v52 = vpack.c.bf16 %v1192_v11, %v1188_v19  ;;  %v1196_v3 = vld [vmem:[%s8970_s5 + $0x2c8] sm:$0xff]  ;;  %v1195_v38 = vld [vmem:[%s8970_s5 + $0x2c0] sm:$0xff]  ;;  %v1113_v19 = vld [vmem:[%s8970_s5 + $0x30] sm:$0xff] }
 0x595   :  { %5605 = vtanh.f32 %v867_v60  ;;  %v1139_v60 = vld [vmem:[%s8970_s5 + $0x100] sm:$0xff]  ;;  %v1200_v18 = vld [vmem:[%s8970_s5 + $0x2e8] sm:$0xff] }
 0x596   :  { %v6900_v56 = vpack.c.bf16 %v1200_v18, %v1196_v3  ;;  %v1199_v34 = vld [vmem:[%s8970_s5 + $0x2e0] sm:$0xff]  ;;  %v1122_v3 = vld [vmem:[%s8970_s5 + $0x78] sm:$0xff]  ;;  %v6980_v18 = vpack.c.bf16 %v1113_v19, %v1109_v39  ;;  %v7036_v39 = vpack.c.bf16 %v1137_v57, %v1133_v54  ;;  %v1161_v54 = vld [vmem:[%s8970_s5 + $0x1b0] sm:$0xff] }
 0x597   :  { %v1166_v57 = vld [vmem:[%s8970_s5 + $0x1d8] sm:$0xff] }
 0x59c   :  { %v5600_v4 = vpop.eup %5599 }
 0x59d   :  { %v5602_v9 = vpop.eup %5601  ;;  %v874_v26 = vadd.f32 1.0, %v5600_v4  ;;  %v1143_v4 = vld [vmem:[%s8970_s5 + $0x120] sm:$0xff] }
 0x59e   :  { %v880_v21 = vadd.f32 1.0, %v5602_v9  ;;  %v5604_v24 = vpop.eup %5603  ;;  %v6783_v9 = vpack.c.bf16 %v1143_v4, %v1139_v60  ;;  %v6909_v60 = vpack.c.bf16 %v1199_v34, %v1195_v38  ;;  %v1204_v4 = vld [vmem:[%s8970_s5 + $0x308] sm:$0xff]  ;;  %v6982_v38 = vpack.c.bf16 %v1122_v3, %v1118_v27  ;;  %v1117_v34 = vld [vmem:[%s8970_s5 + $0x50] sm:$0xff]  ;;  %v1150_v27 = vld [vmem:[%s8970_s5 + $0x158] sm:$0xff] }
 0x59f   :  { %5607 = vrcp.f32 %v874_v26  ;;  %v5606_v32 = vpop.eup %5605  ;;  %v887_v51 = vadd.f32 1.0, %v5604_v24  ;;  %v1148_v26 = vld [vmem:[%s8970_s5 + $0x148] sm:$0xff]  ;;  %v1154_v3 = vld [vmem:[%s8970_s5 + $0x178] sm:$0xff] }
 0x5a0   :  { %5609 = vrcp.f32 %v880_v21  ;;  %v1152_v21 = vld [vmem:[%s8970_s5 + $0x168] sm:$0xff] }
 0x5a1   :  { %5611 = vrcp.f32 %v887_v51  ;;  %v6792_v24 = vpack.c.bf16 %v1152_v21, %v1148_v26  ;;  %v1160_v51 = vld [vmem:[%s8970_s5 + $0x1a8] sm:$0xff] }
 0x5a2   :  { %v1208_v26 = vld [vmem:[%s8970_s5 + $0x328] sm:$0xff] }
 0x5a3   :  { %v6918_v21 = vpack.c.bf16 %v1208_v26, %v1204_v4  ;;  %v1121_v4 = vld [vmem:[%s8970_s5 + $0x70] sm:$0xff]  ;;  %v1126_v26 = vld [vmem:[%s8970_s5 + $0x98] sm:$0xff] }
 0x5a9   :  { %v5608_v36 = vpop.eup %5607 }
 0x5aa   :  { %v5610_v44 = vpop.eup %5609  ;;  %v891_v47 = vmul.f32 %v5608_v36, %v5606_v32  ;;  %v1147_v32 = vld [vmem:[%s8970_s5 + $0x140] sm:$0xff] }
 0x5ab   :  { %v890_v61 = vmul.f32 %v5610_v44, %v6461_v28  ;;  %v5612_v12 = vpop.eup %5611  ;;  %v1151_v36 = vld [vmem:[%s8970_s5 + $0x160] sm:$0xff] }
 0x5ac   :  { %v6801_v44 = vpack.c.bf16 %v1151_v36, %v1147_v32  ;;  %v1203_v32 = vld [vmem:[%s8970_s5 + $0x300] sm:$0xff] }
 0x5ad   :  { %v6673_v63 = vadd.f32 %v891_v47, %v890_v61  ;;  %v1156_v47 = vld [vmem:[%s8970_s5 + $0x188] sm:$0xff]  ;;  %v1207_v36 = vld [vmem:[%s8970_s5 + $0x320] sm:$0xff] }
 0x5ae   :  { %v6810_v61 = vpack.c.bf16 %v1160_v51, %v1156_v47  ;;  %v6927_v47 = vpack.c.bf16 %v1207_v36, %v1203_v32  ;;  %v1212_v51 = vld [vmem:[%s8970_s5 + $0x348] sm:$0xff]  ;;  %v1130_v32 = vld [vmem:[%s8970_s5 + $0xb8] sm:$0xff]  ;;  %v7000_v36 = vpack.c.bf16 %v1121_v4, %v1117_v34  ;;  %v7057_v34 = vpack.c.bf16 %v1154_v3, %v1150_v27  ;;  %v1149_v4 = vld [vmem:[%s8970_s5 + $0x150] sm:$0xff] }
 0x5af   :  { %5613 = vtanh.f32 %v6673_v63  ;;  %v1169_v27 = vld [vmem:[%s8970_s5 + $0x1f0] sm:$0xff]  ;;  %v1174_v3 = vld [vmem:[%s8970_s5 + $0x218] sm:$0xff] }
 0x5b0   :  { %9146 = vst [vmem:[#allocation6_spill] sm:$0xff] %v7057_v34 }
 0x5b9   :  { %v5614_v15 = vpop.eup %5613 }
 0x5ba   :  { %v6676_v30 = vmul.f32 %v5614_v15, %v5612_v12  ;;  %v1155_v12 = vld [vmem:[%s8970_s5 + $0x180] sm:$0xff] }
 0x5bb   :  { %v1159_v15 = vld [vmem:[%s8970_s5 + $0x1a0] sm:$0xff] }
 0x5bc   :  { %4018 = vmatmul.mubr.f32.vlgmr.msra.gmra.mrb[6].mxu0 %v6676_v30 }
 0x5bd   :  { %1321 = vmatprep.mubr.f32.mxu0 %v6676_v30  ;;  %4725 = vmatpush1.bf16.msra.mxu0 %v6710_v17 }
 0x5be   :  { %4727 = vmatprep.subr.bf16.mxu0 %v6721_v46 }
 0x5c1   :  { %4729 = vmatpush1.bf16.msra.mxu0 %v6729_v10 }
 0x5c2   :  { %4731 = vmatprep.subr.bf16.mxu0 %v6738_v37 }
 0x5c5   :  { %4733 = vmatpush1.bf16.msra.mxu0 %v6747_v2 }
 0x5c6   :  { %4735 = vmatprep.subr.bf16.mxu0 %v6756_v42 }
 0x5c9   :  { %4737 = vmatpush1.bf16.msra.mxu0 %v6765_v53 }
 0x5ca   :  { %4739 = vmatprep.subr.bf16.mxu0 %v6774_v55 }
 0x5cd   :  { %4741 = vmatpush1.bf16.msra.mxu0 %v6783_v9 }
 0x5ce   :  { %4743 = vmatprep.subr.bf16.mxu0 %v6792_v24 }
 0x5d1   :  { %4745 = vmatpush1.bf16.msra.mxu0 %v6801_v44 }
 0x5d2   :  { %4747 = vmatprep.subr.bf16.mxu0 %v6810_v61 }
 0x68f   :  { %v984_v33 = vpop.f32.mrb[6].mxu0 }
 0x690   :  { %v985_v48 = vadd.f32 %v6503_v8, %v984_v33  ;;  %v4019_v50 = vpop.f32.mrb[7].mxu0  ;;  %v6819_v33 = vpack.c.bf16 %v1159_v15, %v1155_v12  ;;  %v1216_v12 = vld [vmem:[%s8970_s5 + $0x368] sm:$0xff] }
 0x691   :  { %v1168_v50 = vld [vmem:[%s8970_s5 + $0x1e8] sm:$0xff]  ;;  %v6936_v15 = vpack.c.bf16 %v1216_v12, %v1212_v51  ;;  %v7003_v51 = vpack.c.bf16 %v1130_v32, %v1126_v26  ;;  %v1125_v12 = vld [vmem:[%s8970_s5 + $0x90] sm:$0xff]  ;;  %v1158_v32 = vld [vmem:[%s8970_s5 + $0x198] sm:$0xff] }
 0x692   :  { %3648 = vst [vmem:[%s8974_s9 + $0x10] sm:$0xff] %v985_v48  ;;  %990 = vmax.xlane.f32.xlu1 %v985_v48  ;;  %4749 = vmatpush1.bf16.msra.mxu0 %v6819_v33  ;;  %v1153_v26 = vld [vmem:[%s8970_s5 + $0x170] sm:$0xff] }
 0x71f   :  { %v991_v28 = vpop.xlane.xlu1 %990 }
 0x720   :  { %vm992_vm4 = vcmp.eq.f32.partialorder %v985_v48, %v991_v28  ;;  %v1164_v48 = vld [vmem:[%s8970_s5 + $0x1c8] sm:$0xff] }
 0x721   :  { %v993_v14 = vsel %vm992_vm4, %v6510_v41, 128  ;;  %v6828_v28 = vpack.c.bf16 %v1168_v50, %v1164_v48  ;;  %v1211_v48 = vld [vmem:[%s8970_s5 + $0x340] sm:$0xff] }
 0x722   :  { %v995_v13 = vshra.s32 %v993_v14, 16  ;;  %v994_v25 = vand.u32 65535, %v993_v14  ;;  %v1163_v14 = vld [vmem:[%s8970_s5 + $0x1c0] sm:$0xff] }
 0x723   :  { %4751 = vmatprep.subr.bf16.mxu0 %v6828_v28  ;;  %v1215_v50 = vld [vmem:[%s8970_s5 + $0x360] sm:$0xff] }
 0x724   :  { %v997_v16 = vcvt.s32.f32 %v995_v13  ;;  %v996_v45 = vcvt.s32.f32 %v994_v25  ;;  %v1167_v13 = vld [vmem:[%s8970_s5 + $0x1e0] sm:$0xff]  ;;  %v1172_v25 = vld [vmem:[%s8970_s5 + $0x208] sm:$0xff] }
 0x726   :  { %998 = vmin.xlane.f32.xlu0 %v997_v16 }
 0x7b3   :  { %v6685_v29 = vpop.xlane.xlu0 %998 }
 0x7b4   :  { %vm1000_vm5 = vcmp.eq.f32.partialorder %v997_v16, %v6685_v29  ;;  %v6837_v16 = vpack.c.bf16 %v1167_v13, %v1163_v14  ;;  %v6945_v14 = vpack.c.bf16 %v1215_v50, %v1211_v48  ;;  %v1220_v13 = vld [vmem:[%s8970_s5 + $0x388] sm:$0xff]  ;;  %v1005_v23 = vcvt.f32.s32 %v6685_v29  ;;  %v1129_v48 = vld [vmem:[%s8970_s5 + $0xb0] sm:$0xff]  ;;  %v1138_v50 = vld [vmem:[%s8970_s5 + $0xf8] sm:$0xff] }
 0x7b5   :  { %v1001_v8 = vsel %vm1000_vm5, %v996_v45, inf  ;;  %v1176_v45 = vld [vmem:[%s8970_s5 + $0x228] sm:$0xff] }
 0x7b6   :  { %1002 = vmin.xlane.f32.xlu1 %v1001_v8  ;;  %v6846_v8 = vpack.c.bf16 %v1176_v45, %v1172_v25  ;;  %4753 = vmatpush1.bf16.msra.mxu0 %v6837_v16  ;;  %v1224_v25 = vld [vmem:[%s8970_s5 + $0x3a8] sm:$0xff]  ;;  %v1006_v11 = vshll.u32 %v1005_v23, 16  ;;  %v1142_v23 = vld [vmem:[%s8970_s5 + $0x118] sm:$0xff] }
 0x7b7   :  { %v6954_v45 = vpack.c.bf16 %v1224_v25, %v1220_v13  ;;  %v7018_v13 = vpack.c.bf16 %v1129_v48, %v1125_v12  ;;  %v1162_v12 = vld [vmem:[%s8970_s5 + $0x1b8] sm:$0xff]  ;;  %v7072_v48 = vpack.c.bf16 %v1153_v26, %v1149_v4 }
 0x7b8   :  { %4755 = vmatprep.subr.bf16.mxu0 %v6846_v8  ;;  %v1178_v4 = vld [vmem:[%s8970_s5 + $0x238] sm:$0xff] }
 0x7b9   :  { %9147 = vst [vmem:[#allocation7_spill] sm:$0xff] %v7072_v48 }
 0x7ba   :  { %4757 = vmatpush1.bf16.msra.mxu0 %v6855_v5 }
 0x7bb   :  { %4759 = vmatprep.subr.bf16.mxu0 %v6864_v40 }
 0x7be   :  { %4761 = vmatpush1.bf16.msra.mxu0 %v6873_v58 }
 0x7bf   :  { %4763 = vmatprep.subr.bf16.mxu0 %v6882_v52 }
 0x7c2   :  { %4765 = vmatpush1.bf16.msra.mxu0 %v6891_v62 }
 0x7c3   :  { %4767 = vmatprep.subr.bf16.mxu0 %v6900_v56 }
 0x7c6   :  { %4769 = vmatpush1.bf16.msra.mxu0 %v6909_v60 }
 0x7c7   :  { %4771 = vmatprep.subr.bf16.mxu0 %v6918_v21 }
 0x7ca   :  { %4773 = vmatpush1.bf16.msra.mxu0 %v6927_v47 }
 0x7cb   :  { %4775 = vmatprep.subr.bf16.mxu0 %v6936_v15 }
 0x7ce   :  { %4777 = vmatpush1.bf16.msra.mxu0 %v6945_v14 }
 0x7cf   :  { %4779 = vmatprep.subr.bf16.mxu0 %v6954_v45 }
 0x7d2   :  { %4781 = vmatpush1.bf16.msra.mxu0 %v6963_v22 }
 0x843   :  { %v1003_v43 = vpop.xlane.xlu1 %1002 }
 0x844   :  { %v1004_v20 = vcvt.f32.s32 %v1003_v43  ;;  %v1146_v43 = vld [vmem:[%s8970_s5 + $0x138] sm:$0xff] }
 0x845   :  { %v7039_v19 = vpack.c.bf16 %v1146_v43, %v1142_v23  ;;  %v1170_v23 = vld [vmem:[%s8970_s5 + $0x1f8] sm:$0xff] }
 0x846   :  { %v1007_v29 = vadd.s32 %v1006_v11, %v1004_v20  ;;  %v1141_v11 = vld [vmem:[%s8970_s5 + $0x110] sm:$0xff] }
 0x847   :  { %v1145_v20 = vld [vmem:[%s8970_s5 + $0x130] sm:$0xff] }
 0x848   :  { %vm1008_vm6 = vcmp.eq.s32.totalorder %v6510_v41, %v1007_v29  ;;  %v7054_v29 = vpack.c.bf16 %v1145_v20, %v1141_v11  ;;  %v7093_v11 = vpack.c.bf16 %v1170_v23, %v1166_v57  ;;  %v1165_v20 = vld [vmem:[%s8970_s5 + $0x1d0] sm:$0xff]  ;;  %v1186_v57 = vld [vmem:[%s8970_s5 + $0x278] sm:$0xff] }
 0x849   :  { %4053 = vmatmul.mubr.msk.f32.vlgmr.msra.gmra.mrb[6].mxu1 %vm1008_vm6, %v9011_v1  ;;  %v7108_v26 = vpack.c.bf16 %v1169_v27, %v1165_v20  ;;  %v1181_v27 = vld [vmem:[%s8970_s5 + $0x250] sm:$0xff] }
 0x84a   :  { %1392 = vmatprep.mubr.f32.mxu1 %v6676_v30  ;;  %4789 = vmatpush1.bf16.msra.mxu1 %v6980_v18  ;;  %v1134_v30 = vld [vmem:[%s8970_s5 + $0xd8] sm:$0xff]  ;;  %9145 = vst [vmem:[#allocation5_spill] sm:$0xff] %v7054_v29  ;;  %9150 = vst [vmem:[#allocation10_spill] sm:$0xff] %v7093_v11  ;;  %v1193_v1 = vld [vmem:[%s8970_s5 + $0x2b0] sm:$0xff] }
 0x84b   :  { %4791 = vmatprep.subr.bf16.mxu1 %v6982_v38  ;;  %v7021_v25 = vpack.c.bf16 %v1138_v50, %v1134_v30  ;;  %v7075_v30 = vpack.c.bf16 %v1162_v12, %v1158_v32  ;;  %v1157_v50 = vld [vmem:[%s8970_s5 + $0x190] sm:$0xff]  ;;  %9151 = vst [vmem:[#allocation11_spill] sm:$0xff] %v7108_v26  ;;  %v7111_v32 = vpack.c.bf16 %v1178_v4, %v1174_v3  ;;  %v1190_v4 = vld [vmem:[%s8970_s5 + $0x298] sm:$0xff] }
 0x84c   :  { %v7090_v43 = vpack.c.bf16 %v1161_v54, %v1157_v50  ;;  %v1173_v12 = vld [vmem:[%s8970_s5 + $0x210] sm:$0xff]  ;;  %v1182_v54 = vld [vmem:[%s8970_s5 + $0x258] sm:$0xff] }
 0x84d   :  { %9148 = vst [vmem:[#allocation8_spill] sm:$0xff] %v7075_v30  ;;  %9152 = vst [vmem:[#allocation12_spill] sm:$0xff] %v7111_v32  ;;  %v1177_v50 = vld [vmem:[%s8970_s5 + $0x230] sm:$0xff]  ;;  %v7129_v20 = vpack.c.bf16 %v1186_v57, %v1182_v54 }
 0x84e   :  { %4793 = vmatpush1.bf16.msra.mxu1 %v7000_v36  ;;  %9149 = vst [vmem:[#allocation9_spill] sm:$0xff] %v7090_v43  ;;  %v7126_v23 = vpack.c.bf16 %v1177_v50, %v1173_v12  ;;  %v1185_v3 = vld [vmem:[%s8970_s5 + $0x270] sm:$0xff]  ;;  %v1194_v12 = vld [vmem:[%s8970_s5 + $0x2b8] sm:$0xff] }
 0x84f   :  { %4795 = vmatprep.subr.bf16.mxu1 %v7003_v51  ;;  %9154 = vst [vmem:[#allocation14_spill] sm:$0xff] %v7129_v20  ;;  %v7144_v50 = vpack.c.bf16 %v1185_v3, %v1181_v27  ;;  %v7147_v54 = vpack.c.bf16 %v1194_v12, %v1190_v4  ;;  %v1189_v57 = vld [vmem:[%s8970_s5 + $0x290] sm:$0xff]  ;;  %v1202_v27 = vld [vmem:[%s8970_s5 + $0x2f8] sm:$0xff] }
 0x850   :  { %9153 = vst [vmem:[#allocation13_spill] sm:$0xff] %v7126_v23  ;;  %v7162_v3 = vpack.c.bf16 %v1193_v1, %v1189_v57  ;;  %v1197_v12 = vld [vmem:[%s8970_s5 + $0x2d0] sm:$0xff]  ;;  %v1210_v1 = vld [vmem:[%s8970_s5 + $0x338] sm:$0xff] }
 0x851   :  { %9155 = vst [vmem:[#allocation15_spill] sm:$0xff] %v7144_v50  ;;  %9156 = vst [vmem:[#allocation16_spill] sm:$0xff] %v7147_v54 }
 0x852   :  { %4797 = vmatpush1.bf16.msra.mxu1 %v7018_v13  ;;  %9157 = vst [vmem:[#allocation17_spill] sm:$0xff] %v7162_v3 }
 0x853   :  { %4799 = vmatprep.subr.bf16.mxu1 %v7021_v25 }
 0x856   :  { %4801 = vmatpush1.bf16.msra.mxu1 %v7036_v39 }
 0x857   :  { %4803 = vmatprep.subr.bf16.mxu1 %v7039_v19 }
 0x85a   :  { %4805 = vmatpush1.bf16.msra.mxu1 %v7054_v29 }
 0x85b   :  { %4807 = vmatprep.subr.bf16.mxu1 %v7057_v34 }
 0x85e   :  { %4809 = vmatpush1.bf16.msra.mxu1 %v7072_v48 }
 0x85f   :  { %4811 = vmatprep.subr.bf16.mxu1 %v7075_v30 }
 0x862   :  { %4813 = vmatpush1.bf16.msra.mxu1 %v7090_v43 }
 0x863   :  { %4815 = vmatprep.subr.bf16.mxu1 %v7093_v11 }
 0x866   :  { %4817 = vmatpush1.bf16.msra.mxu1 %v7108_v26 }
 0x867   :  { %4819 = vmatprep.subr.bf16.mxu1 %v7111_v32  ;;  %v1198_v32 = vld [vmem:[%s8970_s5 + $0x2d8] sm:$0xff] }
 0x868   :  { %v7165_v4 = vpack.c.bf16 %v1202_v27, %v1198_v32  ;;  %v1205_v27 = vld [vmem:[%s8970_s5 + $0x310] sm:$0xff] }
 0x86a   :  { %4821 = vmatpush1.bf16.msra.mxu1 %v7126_v23  ;;  %9158 = vst [vmem:[#allocation18_spill] sm:$0xff] %v7165_v4  ;;  %v1206_v23 = vld [vmem:[%s8970_s5 + $0x318] sm:$0xff] }
 0x86b   :  { %4823 = vmatprep.subr.bf16.mxu1 %v7129_v20  ;;  %v1201_v20 = vld [vmem:[%s8970_s5 + $0x2f0] sm:$0xff]  ;;  %v7183_v57 = vpack.c.bf16 %v1210_v1, %v1206_v23 }
 0x86c   :  { %v7180_v32 = vpack.c.bf16 %v1201_v20, %v1197_v12  ;;  %v1218_v20 = vld [vmem:[%s8970_s5 + $0x378] sm:$0xff]  ;;  %v1213_v1 = vld [vmem:[%s8970_s5 + $0x350] sm:$0xff] }
 0x86d   :  { %9160 = vst [vmem:[#allocation20_spill] sm:$0xff] %v7183_v57 }
 0x86e   :  { %4825 = vmatpush1.bf16.msra.mxu1 %v7144_v50  ;;  %9159 = vst [vmem:[#allocation19_spill] sm:$0xff] %v7180_v32  ;;  %v1214_v50 = vld [vmem:[%s8970_s5 + $0x358] sm:$0xff] }
 0x86f   :  { %4827 = vmatprep.subr.bf16.mxu1 %v7147_v54  ;;  %v1209_v54 = vld [vmem:[%s8970_s5 + $0x330] sm:$0xff]  ;;  %v7201_v12 = vpack.c.bf16 %v1218_v20, %v1214_v50 }
 0x870   :  { %v7198_v23 = vpack.c.bf16 %v1209_v54, %v1205_v27  ;;  %v1226_v54 = vld [vmem:[%s8970_s5 + $0x3b8] sm:$0xff]  ;;  %v1221_v20 = vld [vmem:[%s8970_s5 + $0x390] sm:$0xff] }
 0x871   :  { %9162 = vst [vmem:[#allocation22_spill] sm:$0xff] %v7201_v12 }
 0x872   :  { %4829 = vmatpush1.bf16.msra.mxu1 %v7162_v3  ;;  %9161 = vst [vmem:[#allocation21_spill] sm:$0xff] %v7198_v23  ;;  %v1222_v3 = vld [vmem:[%s8970_s5 + $0x398] sm:$0xff] }
 0x873   :  { %4831 = vmatprep.subr.bf16.mxu1 %v7165_v4  ;;  %v1217_v4 = vld [vmem:[%s8970_s5 + $0x370] sm:$0xff]  ;;  %v7219_v27 = vpack.c.bf16 %v1226_v54, %v1222_v3  ;;  %v1228_v3 = vld [vmem:[%s8970_s5 + $0x3c8] sm:$0xff] }
 0x874   :  { %v7216_v50 = vpack.c.bf16 %v1217_v4, %v1213_v1  ;;  %v1232_v4 = vld [vmem:[%s8970_s5 + $0x3e8] sm:$0xff]  ;;  %v1230_v1 = vld [vmem:[%s8970_s5 + $0x3d8] sm:$0xff] }
 0x875   :  { %9164 = vst [vmem:[#allocation24_spill] sm:$0xff] %v7219_v27  ;;  %v7241_v54 = vpack.c.bf16 %v1232_v4, %v1228_v3  ;;  %v1233_v3 = vld [vmem:[%s8970_s5 + $0x3f0] sm:$0xff] }
 0x876   :  { %4833 = vmatpush1.bf16.msra.mxu1 %v7180_v32  ;;  %9163 = vst [vmem:[#allocation23_spill] sm:$0xff] %v7216_v50 }
 0x877   :  { %4835 = vmatprep.subr.bf16.mxu1 %v7183_v57  ;;  %v1225_v57 = vld [vmem:[%s8970_s5 + $0x3b0] sm:$0xff]  ;;  %4783 = vmatprep.subr.bf16.mxu0 %v7241_v54 }
 0x878   :  { %v7228_v32 = vpack.c.bf16 %v1225_v57, %v1221_v20  ;;  %v1234_v57 = vld [vmem:[%s8970_s5 + $0x3f8] sm:$0xff]  ;;  %v1227_v20 = vld [vmem:[%s8970_s5 + $0x3c0] sm:$0xff] }
 0x87a   :  { %4837 = vmatpush1.bf16.msra.mxu1 %v7198_v23  ;;  %9165 = vst [vmem:[#allocation25_spill] sm:$0xff] %v7228_v32 }
 0x87b   :  { %4839 = vmatprep.subr.bf16.mxu1 %v7201_v12 }
 0x87e   :  { %4841 = vmatpush1.bf16.msra.mxu1 %v7216_v50  ;;  %v1229_v50 = vld [vmem:[%s8970_s5 + $0x3d0] sm:$0xff] }
 0x87f   :  { %4843 = vmatprep.subr.bf16.mxu1 %v7219_v27  ;;  %v1231_v27 = vld [vmem:[%s8970_s5 + $0x3e0] sm:$0xff]  ;;  %v7263_v12 = vpack.c.bf16 %v1233_v3, %v1229_v50  ;;  %v1104_v50 = vstv %s1103_s12 }
 0x880   :  { %v7261_v4 = vpack.c.bf16 %v1231_v27, %v1227_v20  ;;  %v3652_v27 = vld [vmem:[%s8968_s3 + $0x10] sm:$0xff] }
 0x881   :  { %9167 = vst [vmem:[#allocation27_spill] sm:$0xff] %v7263_v12 }
 0x882   :  { %4845 = vmatpush1.bf16.msra.mxu1 %v7228_v32  ;;  %v7249_v32 = vpack.c.bf16 %v1234_v57, %v1230_v1  ;;  %4785 = vmatpush1.bf16.msra.mxu0 %v7261_v4  ;;  %v1101_v1 = vstv %s1098_s11  ;;  %s3687_s11 = sld [smem:[#allocation2 + $0x6]] }
 0x883   :  { %4850 = vmatprep.subr.bf16.mxu0 %v9113_v7  ;;  %v1102_v57 = vmul.f32 %v3652_v27, %v1101_v1  ;;  %v1423_v27 = vld [vmem:[%s8972_s7] sm:$0xff]  ;;  %v1425_v1 = vld [vmem:[%s8972_s7 + $0x10] sm:$0xff] }
 0x884   :  { %9166 = vst [vmem:[#allocation26_spill] sm:$0xff] %v7249_v32  ;;  %4847 = vmatprep.subr.bf16.mxu1 %v7249_v32 }
 0x886   :  { %4849 = vmatpush1.bf16.msra.mxu1 %v7263_v12  ;;  %v7276_v12 = vld [vmem:[%s8974_s9] sm:$0xff] }
 0x887   :  { %4874 = vmatprep.subr.bf16.mxu1 %v9113_v7  ;;  %9168 = vst [vmem:[#allocation28_spill] sm:$0xff] %v7276_v12 }
 0x888   :  { %s3210_s12 = scvt.s32.f32 %s3687_s11 }
 0x88a   :  { %s3215_s13 = ssub.f32 1.0, %s3210_s12 }
 0x91c   :  { %v1093_v20 = vpop.f32.mrb[6].mxu1 }
 0x91d   :  { %v1105_v3 = vmul.f32 %v1104_v50, %v1093_v20  ;;  %v4054_v32 = vpop.f32.mrb[7].mxu1  ;;  %v1426_v50 = vld [vmem:[%s8972_s7 + $0x18] sm:$0xff]  ;;  %v1427_v20 = vld [vmem:[%s8972_s7 + $0x20] sm:$0xff] }
 0x91e   :  { %v1424_v32 = vld [vmem:[%s8972_s7 + $0x8] sm:$0xff] }
 0x91f   :  { %v1106_v23 = vadd.f32 %v1105_v3, %v1102_v57  ;;  %v7298_v57 = vpack.c.bf16 %v1426_v50, %v1425_v1  ;;  %v1428_v3 = vld [vmem:[%s8972_s7 + $0x28] sm:$0xff]  ;;  %v1430_v1 = vld [vmem:[%s8972_s7 + $0x38] sm:$0xff] }
 0x921   :  { %1322 = vmatmul.mubr.f32.vlgmr.msra.gmra.mrb[8].mxu0 %v1106_v23  ;;  %1393 = vmatmul.mubr.f32.vlgmr.msra.gmra.mrb[8].mxu1 %v1106_v23  ;;  %v7288_v23 = vpack.c.bf16 %v1424_v32, %v1423_v27  ;;  %9170 = vst [vmem:[#allocation30_spill] sm:$0xff] %v7298_v57  ;;  %v7308_v27 = vpack.c.bf16 %v1428_v3, %v1427_v20  ;;  %v1429_v32 = vld [vmem:[%s8972_s7 + $0x30] sm:$0xff]  ;;  %v1431_v20 = vld [vmem:[%s8972_s7 + $0x40] sm:$0xff]  ;;  %v1432_v3 = vld [vmem:[%s8972_s7 + $0x48] sm:$0xff] }
 0x922   :  { %4087 = vmatprep.mubr.msk.f32.mxu0 %vm5715_vm0, %v7276_v12  ;;  %4122 = vmatprep.mubr.msk.f32.mxu1 %vm5715_vm0, %v7276_v12  ;;  %v7318_v50 = vpack.c.bf16 %v1430_v1, %v1429_v32  ;;  %v1434_v32 = vld [vmem:[%s8972_s7 + $0x58] sm:$0xff] }
 0x923   :  { %9169 = vst [vmem:[#allocation29_spill] sm:$0xff] %v7288_v23  ;;  %4852 = vmatpush3.bf16.msra.mxu0 %v7288_v23  ;;  %9171 = vst [vmem:[#allocation31_spill] sm:$0xff] %v7308_v27 }
 0x924   :  { %4853 = vmatprep.subr.bf16.mxu0 %v9113_v7  ;;  %9172 = vst [vmem:[#allocation34_spill] sm:$0xff] %v7318_v50 }
 0x927   :  { %4855 = vmatpush3.bf16.msra.mxu0 %v7298_v57  ;;  %v1433_v57 = vld [vmem:[%s8972_s7 + $0x50] sm:$0xff] }
 0x928   :  { %4856 = vmatprep.subr.bf16.mxu0 %v9113_v7  ;;  %v7337_v1 = vpack.c.bf16 %v1434_v32, %v1433_v57  ;;  %v1437_v57 = vld [vmem:[%s8972_s7 + $0x70] sm:$0xff]  ;;  %v1438_v32 = vld [vmem:[%s8972_s7 + $0x78] sm:$0xff] }
 0x92a   :  { %9174 = vst [vmem:[#allocation36_spill] sm:$0xff] %v7337_v1 }
 0x92b   :  { %4858 = vmatpush3.bf16.msra.mxu0 %v7308_v27  ;;  %v7328_v27 = vpack.c.bf16 %v1432_v3, %v1431_v20  ;;  %v1436_v20 = vld [vmem:[%s8972_s7 + $0x68] sm:$0xff] }
 0x92c   :  { %4859 = vmatprep.subr.bf16.mxu0 %v9113_v7 }
 0x92d   :  { %9173 = vst [vmem:[#allocation35_spill] sm:$0xff] %v7328_v27 }
 0x92f   :  { %4861 = vmatpush3.bf16.msra.mxu0 %v7318_v50  ;;  %v1435_v50 = vld [vmem:[%s8972_s7 + $0x60] sm:$0xff] }
 0x930   :  { %4862 = vmatprep.subr.bf16.mxu0 %v9113_v7  ;;  %v7347_v3 = vpack.c.bf16 %v1436_v20, %v1435_v50  ;;  %v1235_v50 = vld [vmem:[%s8971_s6] sm:$0xf] }
 0x931   :  { %v1240_v20 = vrot.slane %v1235_v50, %v9143_v49  ;;  %v1248_v30 = vrot.slane %v1235_v50, %v6455_v31 }
 0x932   :  { %9175 = vst [vmem:[#allocation37_spill] sm:$0xff] %v7347_v3 }
 0x933   :  { %4864 = vmatpush3.bf16.msra.mxu0 %v7328_v27  ;;  %v7357_v27 = vpack.c.bf16 %v1438_v32, %v1437_v57 }
 0x934   :  { %4865 = vmatprep.subr.bf16.mxu0 %v9113_v7 }
 0x935   :  { %9176 = vst [vmem:[#allocation38_spill] sm:$0xff] %v7357_v27 }
 0x937   :  { %4867 = vmatpush3.bf16.msra.mxu0 %v7337_v1  ;;  %v1244_v1 = vrot.slane %v1235_v50, %v9144_v35 }
 0x938   :  { %4868 = vmatprep.subr.bf16.mxu0 %v9113_v7 }
 0x93b   :  { %4870 = vmatpush3.bf16.msra.mxu0 %v7347_v3 }
 0x93c   :  { %4871 = vmatprep.subr.bf16.mxu0 %v9113_v7 }
 0x93f   :  { %4873 = vmatpush3.bf16.msra.mxu0 %v7357_v27  ;;  %v1252_v27 = vrot.slane %v1235_v50, %v6452_v0 }
 0x940   :  { %4899 = vmatprep.subr.bf16.mxu0 %v6697_v6 }
 0x9f4   :  { %v1323_v12 = vpop.f32.mrb[8].mxu0  ;;  %v1394_v23 = vpop.f32.mrb[8].mxu1 }
 0x9f5   :  { %v1324_v26 = vadd.f32 %v1323_v12, %v1240_v20  ;;  %v1325_v3 = vpop.f32.mrb[9].mxu0  ;;  %v1396_v57 = vpop.f32.mrb[9].mxu1  ;;  %v1395_v34 = vadd.f32 %v1394_v23, %v1248_v30 }
 0x9f6   :  { %v1326_v32 = vadd.f32 %v1325_v3, %v1244_v1  ;;  %v1397_v6 = vadd.f32 %v1396_v57, %v1252_v27 }
 0x9f7   :  { %v3653_v11 = vmul.f32 -1.442695, %v1324_v26 }
 0x9f8   :  { %v3654_v43 = vmul.f32 -1.442695, %v1326_v32  ;;  %v3655_v48 = vmul.f32 -1.442695, %v1397_v6 }
 0x9f9   :  { %5615 = vpow2.f32 %v3653_v11 }
 0x9fa   :  { %5617 = vpow2.f32 %v3654_v43 }
 0x9fb   :  { %5619 = vpow2.f32 %v3655_v48 }
 0x9fc   :  { %5621 = vtanh.f32 %v1395_v34 }
 0xa03   :  { %v5616_v49 = vpop.eup %5615 }
 0xa04   :  { %v5618_v29 = vpop.eup %5617  ;;  %v1402_v35 = vadd.f32 1.0, %v5616_v49 }
 0xa05   :  { %v1408_v12 = vadd.f32 1.0, %v5618_v29  ;;  %v5620_v1 = vpop.eup %5619 }
 0xa06   :  { %5623 = vrcp.f32 %v1402_v35  ;;  %v5622_v26 = vpop.eup %5621  ;;  %v1415_v11 = vadd.f32 1.0, %v5620_v1  ;;  %v7412_v35 = vld [vmem:[%s8973_s8] ss:$0 sm:$0xff] }
 0xa07   :  { %5625 = vrcp.f32 %v1408_v12 }
 0xa08   :  { %5627 = vrcp.f32 %v1415_v11  ;;  %v9190_v11 = vld [vmem:[#allocation17_spill] sm:$0xff] }
 0xa10   :  { %v5624_v3 = vpop.eup %5623 }
 0xa11   :  { %v5626_v20 = vpop.eup %5625  ;;  %v1419_v32 = vmul.f32 %v5624_v3, %v5622_v26  ;;  %v9177_v26 = vmov 1.0   ;;  %v9179_v3 = vld [vmem:[#allocation6_spill] sm:$0xff] }
 0xa12   :  { %v1418_v43 = vmul.f32 %v5626_v20, %v6673_v63  ;;  %v5628_v30 = vpop.eup %5627  ;;  %v9180_v20 = vld [vmem:[#allocation7_spill] sm:$0xff] }
 0xa14   :  { %v7370_v27 = vadd.f32 %v1419_v32, %v1418_v43  ;;  %v9189_v32 = vld [vmem:[#allocation16_spill] sm:$0xff]  ;;  %v9191_v43 = vld [vmem:[#allocation18_spill] sm:$0xff] }
 0xa16   :  { %5629 = vtanh.f32 %v7370_v27 }
 0xa20   :  { %v5630_v49 = vpop.eup %5629 }
 0xa21   :  { %v7373_v48 = vmul.f32 %v5630_v49, %v5628_v30  ;;  %v9192_v30 = vld [vmem:[#allocation19_spill] sm:$0xff]  ;;  %v9193_v49 = vld [vmem:[#allocation20_spill] sm:$0xff] }
 0xa23   :  { %4088 = vmatmul.mubr.f32.vlgmr.msra.gmra.mrb[10].mxu0 %v7373_v48 }
 0xa24   :  { %1849 = vmatprep.mubr.f32.mxu0 %v7373_v48  ;;  %4901 = vmatpush1.bf16.msra.mxu0 %v6710_v17 }
 0xa25   :  { %4903 = vmatprep.subr.bf16.mxu0 %v6721_v46 }
 0xa28   :  { %4905 = vmatpush1.bf16.msra.mxu0 %v6729_v10 }
 0xa29   :  { %4907 = vmatprep.subr.bf16.mxu0 %v6738_v37 }
 0xa2c   :  { %4909 = vmatpush1.bf16.msra.mxu0 %v6747_v2 }
 0xa2d   :  { %4911 = vmatprep.subr.bf16.mxu0 %v6756_v42 }
 0xa30   :  { %4913 = vmatpush1.bf16.msra.mxu0 %v6765_v53  ;;  %v1539_v53 = vld [vmem:[%s8969_s4] sm:$0xff] }
 0xa31   :  { %4915 = vmatprep.subr.bf16.mxu0 %v6774_v55  ;;  %v1540_v55 = vld [vmem:[%s8969_s4 + $0x8] sm:$0xff] }
 0xa34   :  { %4917 = vmatpush1.bf16.msra.mxu0 %v6783_v9  ;;  %v1541_v9 = vld [vmem:[%s8969_s4 + $0x10] sm:$0xff] }
 0xa35   :  { %4919 = vmatprep.subr.bf16.mxu0 %v6792_v24  ;;  %v7428_v24 = vpack.c.bf16 %v1540_v55, %v1539_v53  ;;  %v1629_v53 = vstv %s1626_s16  ;;  %v1632_v55 = vstv %s1631_s1  ;;  %s3669_s16 = sld [smem:[#allocation2 + $0x4]] }
 0xa37   :  { %4876 = vmatpush3.bf16.msra.mxu1 %v7428_v24 }
 0xa38   :  { %4921 = vmatpush1.bf16.msra.mxu0 %v6801_v44  ;;  %v1542_v44 = vld [vmem:[%s8969_s4 + $0x18] sm:$0xff]  ;;  %4877 = vmatprep.subr.bf16.mxu1 %v9113_v7 }
 0xa39   :  { %4923 = vmatprep.subr.bf16.mxu0 %v6810_v61  ;;  %v7434_v61 = vpack.c.bf16 %v1542_v44, %v1541_v9 }
 0xa3b   :  { %4879 = vmatpush3.bf16.msra.mxu1 %v7434_v61  ;;  %s2154_s1 = scvt.s32.f32 %s3669_s16 }
 0xa3c   :  { %4925 = vmatpush1.bf16.msra.mxu0 %v6819_v33  ;;  %v1543_v33 = vld [vmem:[%s8969_s4 + $0x20] sm:$0xff]  ;;  %4880 = vmatprep.subr.bf16.mxu1 %v9113_v7 }
 0xa3d   :  { %4927 = vmatprep.subr.bf16.mxu0 %v6828_v28  ;;  %v1544_v28 = vld [vmem:[%s8969_s4 + $0x28] sm:$0xff]  ;;  %s2159_s17 = ssub.f32 1.0, %s2154_s1 }
 0xa40   :  { %4929 = vmatpush1.bf16.msra.mxu0 %v6837_v16  ;;  %v7444_v16 = vpack.c.bf16 %v1544_v28, %v1543_v33 }
 0xa41   :  { %4931 = vmatprep.subr.bf16.mxu0 %v6846_v8  ;;  %v1545_v8 = vld [vmem:[%s8969_s4 + $0x30] sm:$0xff] }
 0xa42   :  { %4882 = vmatpush3.bf16.msra.mxu1 %v7444_v16 }
 0xa43   :  { %4883 = vmatprep.subr.bf16.mxu1 %v9113_v7 }
 0xa44   :  { %4933 = vmatpush1.bf16.msra.mxu0 %v6855_v5  ;;  %v1546_v5 = vld [vmem:[%s8969_s4 + $0x38] sm:$0xff] }
 0xa45   :  { %4935 = vmatprep.subr.bf16.mxu0 %v6864_v40  ;;  %v7454_v40 = vpack.c.bf16 %v1546_v5, %v1545_v8  ;;  %v9201_v5 = vld [vmem:[#allocation29_spill] sm:$0xff] }
 0xa47   :  { %4885 = vmatpush3.bf16.msra.mxu1 %v7454_v40 }
 0xa48   :  { %4937 = vmatpush1.bf16.msra.mxu0 %v6873_v58  ;;  %v1547_v58 = vld [vmem:[%s8969_s4 + $0x40] sm:$0xff]  ;;  %4886 = vmatprep.subr.bf16.mxu1 %v9113_v7 }
 0xa49   :  { %4939 = vmatprep.subr.bf16.mxu0 %v6882_v52  ;;  %v1548_v52 = vld [vmem:[%s8969_s4 + $0x48] sm:$0xff] }
 0xa4c   :  { %4941 = vmatpush1.bf16.msra.mxu0 %v6891_v62  ;;  %v7464_v62 = vpack.c.bf16 %v1548_v52, %v1547_v58  ;;  %v9202_v58 = vld [vmem:[#allocation28_spill] sm:$0xff]  ;;  %v9203_v52 = vld [vmem:[#allocation30_spill] sm:$0xff] }
 0xa4d   :  { %4943 = vmatprep.subr.bf16.mxu0 %v6900_v56  ;;  %v1549_v56 = vld [vmem:[%s8969_s4 + $0x50] sm:$0xff] }
 0xa4e   :  { %4888 = vmatpush3.bf16.msra.mxu1 %v7464_v62 }
 0xa4f   :  { %4889 = vmatprep.subr.bf16.mxu1 %v9113_v7 }
 0xa50   :  { %4945 = vmatpush1.bf16.msra.mxu0 %v6909_v60  ;;  %v1550_v60 = vld [vmem:[%s8969_s4 + $0x58] sm:$0xff] }
 0xa51   :  { %4947 = vmatprep.subr.bf16.mxu0 %v6918_v21  ;;  %v7474_v21 = vpack.c.bf16 %v1550_v60, %v1549_v56  ;;  %v9204_v56 = vld [vmem:[#allocation31_spill] sm:$0xff] }
 0xa52   :  { %v9206_v60 = vld [vmem:[#allocation35_spill] sm:$0xff] }
 0xa53   :  { %4891 = vmatpush3.bf16.msra.mxu1 %v7474_v21 }
 0xa54   :  { %4949 = vmatpush1.bf16.msra.mxu0 %v6927_v47  ;;  %v1551_v47 = vld [vmem:[%s8969_s4 + $0x60] sm:$0xff]  ;;  %4892 = vmatprep.subr.bf16.mxu1 %v9113_v7 }
 0xa55   :  { %4951 = vmatprep.subr.bf16.mxu0 %v6936_v15  ;;  %v1552_v15 = vld [vmem:[%s8969_s4 + $0x68] sm:$0xff] }
 0xa58   :  { %4953 = vmatpush1.bf16.msra.mxu0 %v6945_v14  ;;  %v7484_v14 = vpack.c.bf16 %v1552_v15, %v1551_v47  ;;  %v9210_v47 = vld [vmem:[#allocation32_spill] sm:$0xff]  ;;  %v9211_v15 = vld [vmem:[#allocation33_spill] sm:$0xff] }
 0xa59   :  { %4955 = vmatprep.subr.bf16.mxu0 %v6954_v45 }
 0xa5a   :  { %4894 = vmatpush3.bf16.msra.mxu1 %v7484_v14 }
 0xa5b   :  { %4895 = vmatprep.subr.bf16.mxu1 %v9113_v7 }
 0xa5c   :  { %4957 = vmatpush1.bf16.msra.mxu0 %v6963_v22 }
 0xa5d   :  { %4959 = vmatprep.subr.bf16.mxu0 %v7241_v54  ;;  %v1553_v54 = vld [vmem:[%s8969_s4 + $0x70] sm:$0xff] }
 0xa60   :  { %4961 = vmatpush1.bf16.msra.mxu0 %v7261_v4  ;;  %v1554_v4 = vld [vmem:[%s8969_s4 + $0x78] sm:$0xff] }
 0xa61   :  { %5026 = vmatprep.subr.bf16.mxu0 %v9113_v7  ;;  %v7495_v23 = vpack.c.bf16 %v1554_v4, %v1553_v54 }
 0xa63   :  { %4897 = vmatpush3.bf16.msra.mxu1 %v7495_v23 }
 0xa64   :  { %4963 = vmatprep.subr.bf16.mxu1 %v6708_v59  ;;  %v9178_v59 = vld [vmem:[#allocation5_spill] sm:$0xff] }
 0xaf6   :  { %v1512_v63 = vpop.f32.mrb[10].mxu0 }
 0xaf7   :  { %v1513_v17 = vadd.f32 %v7412_v35, %v1512_v63  ;;  %v4089_v46 = vpop.f32.mrb[11].mxu0  ;;  %v9195_v63 = vld [vmem:[#allocation22_spill] sm:$0xff] }
 0xaf8   :  { %v9197_v46 = vld [vmem:[#allocation24_spill] sm:$0xff] }
 0xaf9   :  { %3657 = vst [vmem:[%s8974_s9 + $0x18] sm:$0xff] %v1513_v17  ;;  %1518 = vmax.xlane.f32.xlu0 %v1513_v17 }
 0xb86   :  { %v1519_v10 = vpop.xlane.xlu0 %1518 }
 0xb87   :  { %vm1520_vm7 = vcmp.eq.f32.partialorder %v1513_v17, %v1519_v10  ;;  %v9196_v17 = vld [vmem:[#allocation23_spill] sm:$0xff]  ;;  %v9198_v10 = vld [vmem:[#allocation25_spill] sm:$0xff] }
 0xb88   :  { %v1521_v37 = vsel %vm1520_vm7, %v6510_v41, 128 }
 0xb89   :  { %v1523_v2 = vshra.s32 %v1521_v37, 16  ;;  %v1522_v45 = vand.u32 65535, %v1521_v37  ;;  %v9199_v37 = vld [vmem:[#allocation26_spill] sm:$0xff] }
 0xb8b   :  { %v1525_v42 = vcvt.s32.f32 %v1523_v2  ;;  %v1524_v29 = vcvt.s32.f32 %v1522_v45  ;;  %v9200_v2 = vld [vmem:[#allocation27_spill] sm:$0xff] }
 0xb8d   :  { %1526 = vmin.xlane.f32.xlu1 %v1525_v42 }
 0xc1a   :  { %v1527_v22 = vpop.xlane.xlu1 %1526 }
 0xc1b   :  { %vm1528_vm8 = vcmp.eq.f32.partialorder %v1525_v42, %v1527_v22  ;;  %v1533_v50 = vcvt.f32.s32 %v1527_v22  ;;  %v3661_v42 = vld [vmem:[%s8968_s3 + $0x18] sm:$0xff] }
 0xc1c   :  { %v1529_v34 = vsel %vm1528_vm8, %v1524_v29, inf  ;;  %v1630_v9 = vmul.f32 %v3661_v42, %v1629_v53 }
 0xc1d   :  { %1530 = vmin.xlane.f32.xlu0 %v1529_v34  ;;  %v1534_v6 = vshll.u32 %v1533_v50, 16 }
 0xcaa   :  { %v1531_v57 = vpop.xlane.xlu0 %1530 }
 0xcab   :  { %v1532_v12 = vcvt.f32.s32 %v1531_v57 }
 0xcad   :  { %v1535_v1 = vadd.s32 %v1534_v6, %v1532_v12 }
 0xcaf   :  { %vm1536_vm9 = vcmp.eq.s32.totalorder %v6510_v41, %v1535_v1 }
 0xcb0   :  { %4123 = vmatmul.mubr.msk.f32.vlgmr.msra.gmra.mrb[10].mxu1 %vm1536_vm9, %v9177_v26 }
 0xcb1   :  { %1920 = vmatprep.mubr.f32.mxu1 %v7373_v48  ;;  %4965 = vmatpush1.bf16.msra.mxu1 %v6980_v18  ;;  %v9181_v18 = vld [vmem:[#allocation8_spill] sm:$0xff]  ;;  %v9194_v48 = vld [vmem:[#allocation21_spill] sm:$0xff] }
 0xcb2   :  { %4967 = vmatprep.subr.bf16.mxu1 %v6982_v38  ;;  %v9182_v38 = vld [vmem:[#allocation9_spill] sm:$0xff] }
 0xcb5   :  { %4969 = vmatpush1.bf16.msra.mxu1 %v7000_v36  ;;  %v9183_v36 = vld [vmem:[#allocation10_spill] sm:$0xff] }
 0xcb6   :  { %4971 = vmatprep.subr.bf16.mxu1 %v7003_v51  ;;  %v9184_v51 = vld [vmem:[#allocation11_spill] sm:$0xff] }
 0xcb9   :  { %4973 = vmatpush1.bf16.msra.mxu1 %v7018_v13  ;;  %v9185_v13 = vld [vmem:[#allocation12_spill] sm:$0xff] }
 0xcba   :  { %4975 = vmatprep.subr.bf16.mxu1 %v7021_v25  ;;  %v9186_v25 = vld [vmem:[#allocation13_spill] sm:$0xff] }
 0xcbd   :  { %4977 = vmatpush1.bf16.msra.mxu1 %v7036_v39  ;;  %v9187_v39 = vld [vmem:[#allocation14_spill] sm:$0xff] }
 0xcbe   :  { %4979 = vmatprep.subr.bf16.mxu1 %v7039_v19  ;;  %v9188_v19 = vld [vmem:[#allocation15_spill] sm:$0xff] }
 0xcc1   :  { %4981 = vmatpush1.bf16.msra.mxu1 %v9178_v59 }
 0xcc2   :  { %4983 = vmatprep.subr.bf16.mxu1 %v9179_v3 }
 0xcc5   :  { %4985 = vmatpush1.bf16.msra.mxu1 %v9180_v20 }
 0xcc6   :  { %4987 = vmatprep.subr.bf16.mxu1 %v9181_v18 }
 0xcc9   :  { %4989 = vmatpush1.bf16.msra.mxu1 %v9182_v38 }
 0xcca   :  { %4991 = vmatprep.subr.bf16.mxu1 %v9183_v36 }
 0xccd   :  { %4993 = vmatpush1.bf16.msra.mxu1 %v9184_v51 }
 0xcce   :  { %4995 = vmatprep.subr.bf16.mxu1 %v9185_v13 }
 0xcd1   :  { %4997 = vmatpush1.bf16.msra.mxu1 %v9186_v25 }
 0xcd2   :  { %4999 = vmatprep.subr.bf16.mxu1 %v9187_v39 }
 0xcd5   :  { %5001 = vmatpush1.bf16.msra.mxu1 %v9188_v19 }
 0xcd6   :  { %5003 = vmatprep.subr.bf16.mxu1 %v9189_v32 }
 0xcd9   :  { %5005 = vmatpush1.bf16.msra.mxu1 %v9190_v11 }
 0xcda   :  { %5007 = vmatprep.subr.bf16.mxu1 %v9191_v43 }
 0xcdd   :  { %5009 = vmatpush1.bf16.msra.mxu1 %v9192_v30 }
 0xcde   :  { %5011 = vmatprep.subr.bf16.mxu1 %v9193_v49 }
 0xce1   :  { %5013 = vmatpush1.bf16.msra.mxu1 %v9194_v48 }
 0xce2   :  { %5015 = vmatprep.subr.bf16.mxu1 %v9195_v63 }
 0xce5   :  { %5017 = vmatpush1.bf16.msra.mxu1 %v9196_v17 }
 0xce6   :  { %5019 = vmatprep.subr.bf16.mxu1 %v9197_v46 }
 0xce9   :  { %5021 = vmatpush1.bf16.msra.mxu1 %v9198_v10 }
 0xcea   :  { %5023 = vmatprep.subr.bf16.mxu1 %v9199_v37 }
 0xced   :  { %5025 = vmatpush1.bf16.msra.mxu1 %v9200_v2 }
 0xcee   :  { %5050 = vmatprep.subr.bf16.mxu1 %v9113_v7 }
 0xd83   :  { %v1621_v44 = vpop.f32.mrb[10].mxu1 }
 0xd84   :  { %v1633_v33 = vmul.f32 %v1632_v55, %v1621_v44  ;;  %v4124_v28 = vpop.f32.mrb[11].mxu1  ;;  %v2164_v55 = vld [vmem:[%s8970_s5 + $0x8] sm:$0xff]  ;;  %v2166_v44 = vld [vmem:[%s8970_s5 + $0x18] sm:$0xff] }
 0xd85   :  { %v2170_v28 = vld [vmem:[%s8970_s5 + $0x38] sm:$0xff] }
 0xd86   :  { %v1634_v8 = vadd.f32 %v1633_v33, %v1630_v9  ;;  %v2168_v9 = vld [vmem:[%s8970_s5 + $0x28] sm:$0xff] }
 0xd87   :  { %v7603_v33 = vpack.c.bf16 %v2168_v9, %v2164_v55  ;;  %v2227_v55 = vld [vmem:[%s8970_s5 + $0x200] sm:$0xff] }
 0xd88   :  { %1850 = vmatmul.mubr.f32.vlgmr.msra.gmra.mrb[12].mxu0 %v1634_v8  ;;  %1921 = vmatmul.mubr.f32.vlgmr.msra.gmra.mrb[12].mxu1 %v1634_v8  ;;  %v2163_v8 = vld [vmem:[%s8970_s5] sm:$0xff] }
 0xd89   :  { %5028 = vmatpush3.bf16.msra.mxu0 %v9201_v5  ;;  %4157 = vmatprep.mubr.msk.f32.mxu0 %vm5715_vm0, %v9202_v58  ;;  %v2167_v5 = vld [vmem:[%s8970_s5 + $0x20] sm:$0xff] }
 0xd8a   :  { %5029 = vmatprep.subr.bf16.mxu0 %v9113_v7  ;;  %5052 = vmatpush3.bf16.msra.mxu1 %v7428_v24  ;;  %v9205_v24 = vld [vmem:[#allocation34_spill] sm:$0xff]  ;;  %v2231_v9 = vld [vmem:[%s8970_s5 + $0x220] sm:$0xff] }
 0xd8b   :  { %5053 = vmatprep.subr.bf16.mxu1 %v9113_v7  ;;  %4192 = vmatprep.mubr.msk.f32.mxu1 %vm5715_vm0, %v9202_v58  ;;  %v7614_v58 = vpack.c.bf16 %v2170_v28, %v2166_v44  ;;  %v7761_v44 = vpack.c.bf16 %v2231_v9, %v2227_v55  ;;  %v2236_v28 = vld [vmem:[%s8970_s5 + $0x248] sm:$0xff]  ;;  %v2275_v55 = vld [vmem:[%s8970_s5 + $0x380] sm:$0xff] }
 0xd8c   :  { %v2279_v9 = vld [vmem:[%s8970_s5 + $0x3a0] sm:$0xff] }
 0xd8d   :  { %5031 = vmatpush3.bf16.msra.mxu0 %v9203_v52  ;;  %v7616_v52 = vpack.c.bf16 %v2167_v5, %v2163_v8  ;;  %v2240_v8 = vld [vmem:[%s8970_s5 + $0x268] sm:$0xff] }
 0xd8e   :  { %5032 = vmatprep.subr.bf16.mxu0 %v9113_v7  ;;  %5055 = vmatpush3.bf16.msra.mxu1 %v7434_v61  ;;  %v9207_v61 = vld [vmem:[#allocation36_spill] sm:$0xff]  ;;  %v7770_v5 = vpack.c.bf16 %v2240_v8, %v2236_v28  ;;  %v7869_v28 = vpack.c.bf16 %v2279_v9, %v2275_v55  ;;  %v2189_v55 = vld [vmem:[%s8970_s5 + $0xd0] sm:$0xff] }
 0xd8f   :  { %5056 = vmatprep.subr.bf16.mxu1 %v9113_v7  ;;  %v2193_v9 = vld [vmem:[%s8970_s5 + $0xf0] sm:$0xff] }
 0xd91   :  { %5034 = vmatpush3.bf16.msra.mxu0 %v9204_v56  ;;  %v2172_v56 = vld [vmem:[%s8970_s5 + $0x48] sm:$0xff] }
 0xd92   :  { %5035 = vmatprep.subr.bf16.mxu0 %v9113_v7  ;;  %5058 = vmatpush3.bf16.msra.mxu1 %v7444_v16  ;;  %v9208_v16 = vld [vmem:[#allocation37_spill] sm:$0xff] }
 0xd93   :  { %5059 = vmatprep.subr.bf16.mxu1 %v9113_v7 }
 0xd95   :  { %5037 = vmatpush3.bf16.msra.mxu0 %v9205_v24  ;;  %v2176_v24 = vld [vmem:[%s8970_s5 + $0x68] sm:$0xff] }
 0xd96   :  { %5038 = vmatprep.subr.bf16.mxu0 %v9113_v7  ;;  %5061 = vmatpush3.bf16.msra.mxu1 %v7454_v40  ;;  %v9209_v40 = vld [vmem:[#allocation38_spill] sm:$0xff] }
 0xd97   :  { %5062 = vmatprep.subr.bf16.mxu1 %v9113_v7 }
 0xd99   :  { %5040 = vmatpush3.bf16.msra.mxu0 %v9206_v60  ;;  %v7627_v60 = vpack.c.bf16 %v2176_v24, %v2172_v56  ;;  %v2235_v56 = vld [vmem:[%s8970_s5 + $0x240] sm:$0xff] }
 0xd9a   :  { %5041 = vmatprep.subr.bf16.mxu0 %v9113_v7  ;;  %5064 = vmatpush3.bf16.msra.mxu1 %v7464_v62  ;;  %v1763_v62 = vld [vmem:[%s8971_s6] sm:$0xf] }
 0xd9b   :  { %5065 = vmatprep.subr.bf16.mxu1 %v9113_v7  ;;  %v1772_v45 = vrot.slane %v1763_v62, %v9211_v15  ;;  %v1780_v6 = vrot.slane %v1763_v62, %v6452_v0  ;;  %v1776_v12 = vrot.slane %v1763_v62, %v6455_v31  ;;  %v2239_v24 = vld [vmem:[%s8970_s5 + $0x260] sm:$0xff] }
 0xd9d   :  { %5043 = vmatpush3.bf16.msra.mxu0 %v9207_v61  ;;  %v2171_v61 = vld [vmem:[%s8970_s5 + $0x40] sm:$0xff] }
 0xd9e   :  { %5044 = vmatprep.subr.bf16.mxu0 %v9113_v7  ;;  %5067 = vmatpush3.bf16.msra.mxu1 %v7474_v21  ;;  %v1768_v21 = vrot.slane %v1763_v62, %v9210_v47  ;;  %v2180_v62 = vld [vmem:[%s8970_s5 + $0x88] sm:$0xff] }
 0xd9f   :  { %5068 = vmatprep.subr.bf16.mxu1 %v9113_v7 }
 0xda1   :  { %5046 = vmatpush3.bf16.msra.mxu0 %v9208_v16  ;;  %v2175_v16 = vld [vmem:[%s8970_s5 + $0x60] sm:$0xff] }
 0xda2   :  { %5047 = vmatprep.subr.bf16.mxu0 %v9113_v7  ;;  %5070 = vmatpush3.bf16.msra.mxu1 %v7484_v14 }
 0xda3   :  { %5071 = vmatprep.subr.bf16.mxu1 %v9113_v7 }
 0xda5   :  { %5049 = vmatpush3.bf16.msra.mxu0 %v9209_v40  ;;  %v7635_v40 = vpack.c.bf16 %v2175_v16, %v2171_v61  ;;  %v7779_v61 = vpack.c.bf16 %v2239_v24, %v2235_v56  ;;  %v2244_v16 = vld [vmem:[%s8970_s5 + $0x288] sm:$0xff]  ;;  %v2165_v24 = vld [vmem:[%s8970_s5 + $0x10] sm:$0xff] }
 0xda6   :  { %5073 = vmatpush3.bf16.msra.mxu1 %v7495_v23  ;;  %5075 = vmatprep.subr.bf16.mxu0 %v7603_v33 }
 0xda7   :  { %5139 = vmatprep.subr.bf16.mxu1 %v7614_v58 }
 0xe5b   :  { %v1851_v22 = vpop.f32.mrb[12].mxu0  ;;  %v1922_v29 = vpop.f32.mrb[12].mxu1 }
 0xe5c   :  { %v1852_v34 = vadd.f32 %v1851_v22, %v1768_v21  ;;  %v1853_v54 = vpop.f32.mrb[13].mxu0  ;;  %v1924_v4 = vpop.f32.mrb[13].mxu1  ;;  %v1923_v59 = vadd.f32 %v1922_v29, %v1776_v12  ;;  %v2184_v21 = vld [vmem:[%s8970_s5 + $0xa8] sm:$0xff]  ;;  %v2179_v22 = vld [vmem:[%s8970_s5 + $0x80] sm:$0xff] }
 0xe5d   :  { %v1854_v14 = vadd.f32 %v1853_v54, %v1772_v45  ;;  %v1925_v23 = vadd.f32 %v1924_v4, %v1780_v6  ;;  %v7644_v45 = vpack.c.bf16 %v2184_v21, %v2180_v62  ;;  %v2183_v29 = vld [vmem:[%s8970_s5 + $0xa0] sm:$0xff]  ;;  %v2188_v54 = vld [vmem:[%s8970_s5 + $0xc8] sm:$0xff] }
 0xe5e   :  { %v3662_v50 = vmul.f32 -1.442695, %v1852_v34  ;;  %v7653_v34 = vpack.c.bf16 %v2183_v29, %v2179_v22  ;;  %v2192_v4 = vld [vmem:[%s8970_s5 + $0xe8] sm:$0xff]  ;;  %v2243_v22 = vld [vmem:[%s8970_s5 + $0x280] sm:$0xff] }
 0xe5f   :  { %v3663_v57 = vmul.f32 -1.442695, %v1854_v14  ;;  %v3664_v1 = vmul.f32 -1.442695, %v1925_v23  ;;  %v7662_v14 = vpack.c.bf16 %v2192_v4, %v2188_v54  ;;  %v2196_v23 = vld [vmem:[%s8970_s5 + $0x108] sm:$0xff]  ;;  %v2247_v29 = vld [vmem:[%s8970_s5 + $0x2a0] sm:$0xff] }
 0xe60   :  { %5631 = vpow2.f32 %v3662_v50  ;;  %v2187_v50 = vld [vmem:[%s8970_s5 + $0xc0] sm:$0xff]  ;;  %v2200_v12 = vld [vmem:[%s8970_s5 + $0x128] sm:$0xff]  ;;  %v7797_v54 = vpack.c.bf16 %v2247_v29, %v2243_v22  ;;  %v2174_v29 = vld [vmem:[%s8970_s5 + $0x58] sm:$0xff] }
 0xe61   :  { %5633 = vpow2.f32 %v3663_v57  ;;  %v2191_v57 = vld [vmem:[%s8970_s5 + $0xe0] sm:$0xff]  ;;  %v2248_v62 = vld [vmem:[%s8970_s5 + $0x2a8] sm:$0xff] }
 0xe62   :  { %5635 = vpow2.f32 %v3664_v1  ;;  %v7671_v6 = vpack.c.bf16 %v2191_v57, %v2187_v50  ;;  %v7680_v1 = vpack.c.bf16 %v2200_v12, %v2196_v23  ;;  %v7788_v21 = vpack.c.bf16 %v2248_v62, %v2244_v16  ;;  %v2252_v4 = vld [vmem:[%s8970_s5 + $0x2c8] sm:$0xff]  ;;  %v2251_v23 = vld [vmem:[%s8970_s5 + $0x2c0] sm:$0xff]  ;;  %v2169_v16 = vld [vmem:[%s8970_s5 + $0x30] sm:$0xff] }
 0xe63   :  { %5637 = vtanh.f32 %v1923_v59  ;;  %v2195_v59 = vld [vmem:[%s8970_s5 + $0x100] sm:$0xff]  ;;  %v2256_v50 = vld [vmem:[%s8970_s5 + $0x2e8] sm:$0xff] }
 0xe64   :  { %v7806_v57 = vpack.c.bf16 %v2256_v50, %v2252_v4  ;;  %v2255_v12 = vld [vmem:[%s8970_s5 + $0x2e0] sm:$0xff]  ;;  %v2178_v4 = vld [vmem:[%s8970_s5 + $0x78] sm:$0xff]  ;;  %v7886_v50 = vpack.c.bf16 %v2169_v16, %v2165_v24  ;;  %v7942_v24 = vpack.c.bf16 %v2193_v9, %v2189_v55  ;;  %v2217_v55 = vld [vmem:[%s8970_s5 + $0x1b0] sm:$0xff] }
 0xe65   :  { %v2222_v9 = vld [vmem:[%s8970_s5 + $0x1d8] sm:$0xff] }
 0xe6a   :  { %v5632_v3 = vpop.eup %5631 }
 0xe6b   :  { %v5634_v20 = vpop.eup %5633  ;;  %v1930_v18 = vadd.f32 1.0, %v5632_v3  ;;  %v2199_v3 = vld [vmem:[%s8970_s5 + $0x120] sm:$0xff] }
 0xe6c   :  { %v1936_v38 = vadd.f32 1.0, %v5634_v20  ;;  %v5636_v36 = vpop.eup %5635  ;;  %v7689_v20 = vpack.c.bf16 %v2199_v3, %v2195_v59  ;;  %v7815_v59 = vpack.c.bf16 %v2255_v12, %v2251_v23  ;;  %v2260_v3 = vld [vmem:[%s8970_s5 + $0x308] sm:$0xff]  ;;  %v7888_v23 = vpack.c.bf16 %v2178_v4, %v2174_v29  ;;  %v2173_v12 = vld [vmem:[%s8970_s5 + $0x50] sm:$0xff]  ;;  %v2206_v29 = vld [vmem:[%s8970_s5 + $0x158] sm:$0xff] }
 0xe6d   :  { %5639 = vrcp.f32 %v1930_v18  ;;  %v5638_v51 = vpop.eup %5637  ;;  %v1943_v19 = vadd.f32 1.0, %v5636_v36  ;;  %v2204_v18 = vld [vmem:[%s8970_s5 + $0x148] sm:$0xff]  ;;  %v2210_v4 = vld [vmem:[%s8970_s5 + $0x178] sm:$0xff] }
 0xe6e   :  { %5641 = vrcp.f32 %v1936_v38  ;;  %v2208_v38 = vld [vmem:[%s8970_s5 + $0x168] sm:$0xff] }
 0xe6f   :  { %5643 = vrcp.f32 %v1943_v19  ;;  %v7698_v36 = vpack.c.bf16 %v2208_v38, %v2204_v18  ;;  %v2216_v19 = vld [vmem:[%s8970_s5 + $0x1a8] sm:$0xff] }
 0xe70   :  { %v2264_v18 = vld [vmem:[%s8970_s5 + $0x328] sm:$0xff] }
 0xe71   :  { %v7824_v38 = vpack.c.bf16 %v2264_v18, %v2260_v3  ;;  %v2177_v3 = vld [vmem:[%s8970_s5 + $0x70] sm:$0xff]  ;;  %v2182_v18 = vld [vmem:[%s8970_s5 + $0x98] sm:$0xff] }
 0xe77   :  { %v5640_v13 = vpop.eup %5639 }
 0xe78   :  { %v5642_v25 = vpop.eup %5641  ;;  %v1947_v39 = vmul.f32 %v5640_v13, %v5638_v51  ;;  %v2203_v51 = vld [vmem:[%s8970_s5 + $0x140] sm:$0xff] }
 0xe79   :  { %v1946_v32 = vmul.f32 %v5642_v25, %v7370_v27  ;;  %v5644_v43 = vpop.eup %5643  ;;  %v2207_v13 = vld [vmem:[%s8970_s5 + $0x160] sm:$0xff] }
 0xe7a   :  { %v7707_v25 = vpack.c.bf16 %v2207_v13, %v2203_v51  ;;  %v2259_v51 = vld [vmem:[%s8970_s5 + $0x300] sm:$0xff] }
 0xe7b   :  { %v7579_v11 = vadd.f32 %v1947_v39, %v1946_v32  ;;  %v2212_v39 = vld [vmem:[%s8970_s5 + $0x188] sm:$0xff]  ;;  %v2263_v13 = vld [vmem:[%s8970_s5 + $0x320] sm:$0xff] }
 0xe7c   :  { %v7716_v32 = vpack.c.bf16 %v2216_v19, %v2212_v39  ;;  %v7833_v39 = vpack.c.bf16 %v2263_v13, %v2259_v51  ;;  %v2268_v19 = vld [vmem:[%s8970_s5 + $0x348] sm:$0xff]  ;;  %v2186_v51 = vld [vmem:[%s8970_s5 + $0xb8] sm:$0xff]  ;;  %v7906_v13 = vpack.c.bf16 %v2177_v3, %v2173_v12  ;;  %v7963_v12 = vpack.c.bf16 %v2210_v4, %v2206_v29  ;;  %v2205_v3 = vld [vmem:[%s8970_s5 + $0x150] sm:$0xff] }
 0xe7d   :  { %5645 = vtanh.f32 %v7579_v11  ;;  %v2225_v29 = vld [vmem:[%s8970_s5 + $0x1f0] sm:$0xff]  ;;  %v2230_v4 = vld [vmem:[%s8970_s5 + $0x218] sm:$0xff] }
 0xe7e   :  { %9214 = vst [vmem:[#allocation7_spill] sm:$0xff] %v7963_v12 }
 0xe87   :  { %v5646_v30 = vpop.eup %5645 }
 0xe88   :  { %v7582_v49 = vmul.f32 %v5646_v30, %v5644_v43  ;;  %v2211_v43 = vld [vmem:[%s8970_s5 + $0x180] sm:$0xff] }
 0xe89   :  { %v2215_v30 = vld [vmem:[%s8970_s5 + $0x1a0] sm:$0xff] }
 0xe8a   :  { %4158 = vmatmul.mubr.f32.vlgmr.msra.gmra.mrb[14].mxu0 %v7582_v49 }
 0xe8b   :  { %2377 = vmatprep.mubr.f32.mxu0 %v7582_v49  ;;  %5077 = vmatpush1.bf16.msra.mxu0 %v7616_v52 }
 0xe8c   :  { %5079 = vmatprep.subr.bf16.mxu0 %v7627_v60 }
 0xe8f   :  { %5081 = vmatpush1.bf16.msra.mxu0 %v7635_v40 }
 0xe90   :  { %5083 = vmatprep.subr.bf16.mxu0 %v7644_v45 }
 0xe93   :  { %5085 = vmatpush1.bf16.msra.mxu0 %v7653_v34 }
 0xe94   :  { %5087 = vmatprep.subr.bf16.mxu0 %v7662_v14 }
 0xe97   :  { %5089 = vmatpush1.bf16.msra.mxu0 %v7671_v6 }
 0xe98   :  { %5091 = vmatprep.subr.bf16.mxu0 %v7680_v1 }
 0xe9b   :  { %5093 = vmatpush1.bf16.msra.mxu0 %v7689_v20 }
 0xe9c   :  { %5095 = vmatprep.subr.bf16.mxu0 %v7698_v36 }
 0xe9f   :  { %5097 = vmatpush1.bf16.msra.mxu0 %v7707_v25 }
 0xea0   :  { %5099 = vmatprep.subr.bf16.mxu0 %v7716_v32 }
 0xf5d   :  { %v2040_v48 = vpop.f32.mrb[14].mxu0 }
 0xf5e   :  { %v2041_v63 = vadd.f32 %v7412_v35, %v2040_v48  ;;  %v4159_v17 = vpop.f32.mrb[15].mxu0  ;;  %v7725_v48 = vpack.c.bf16 %v2215_v30, %v2211_v43  ;;  %v2272_v43 = vld [vmem:[%s8970_s5 + $0x368] sm:$0xff] }
 0xf5f   :  { %v2224_v17 = vld [vmem:[%s8970_s5 + $0x1e8] sm:$0xff]  ;;  %v7842_v30 = vpack.c.bf16 %v2272_v43, %v2268_v19  ;;  %v7909_v19 = vpack.c.bf16 %v2186_v51, %v2182_v18  ;;  %v2181_v43 = vld [vmem:[%s8970_s5 + $0x90] sm:$0xff]  ;;  %v2214_v51 = vld [vmem:[%s8970_s5 + $0x198] sm:$0xff] }
 0xf60   :  { %3666 = vst [vmem:[%s8974_s9 + $0x20] sm:$0xff] %v2041_v63  ;;  %2046 = vmax.xlane.f32.xlu1 %v2041_v63  ;;  %5101 = vmatpush1.bf16.msra.mxu0 %v7725_v48  ;;  %v2209_v18 = vld [vmem:[%s8970_s5 + $0x170] sm:$0xff] }
 0xfed   :  { %v2047_v27 = vpop.xlane.xlu1 %2046 }
 0xfee   :  { %vm2048_vm10 = vcmp.eq.f32.partialorder %v2041_v63, %v2047_v27  ;;  %v2220_v63 = vld [vmem:[%s8970_s5 + $0x1c8] sm:$0xff] }
 0xfef   :  { %v2049_v46 = vsel %vm2048_vm10, %v6510_v41, 128  ;;  %v7734_v27 = vpack.c.bf16 %v2224_v17, %v2220_v63  ;;  %v2267_v63 = vld [vmem:[%s8970_s5 + $0x340] sm:$0xff] }
 0xff0   :  { %v2051_v10 = vshra.s32 %v2049_v46, 16  ;;  %v2050_v2 = vand.u32 65535, %v2049_v46  ;;  %v2219_v46 = vld [vmem:[%s8970_s5 + $0x1c0] sm:$0xff] }
 0xff1   :  { %5103 = vmatprep.subr.bf16.mxu0 %v7734_v27  ;;  %v2271_v17 = vld [vmem:[%s8970_s5 + $0x360] sm:$0xff] }
 0xff2   :  { %v2053_v37 = vcvt.s32.f32 %v2051_v10  ;;  %v2052_v53 = vcvt.s32.f32 %v2050_v2  ;;  %v2223_v10 = vld [vmem:[%s8970_s5 + $0x1e0] sm:$0xff]  ;;  %v2228_v2 = vld [vmem:[%s8970_s5 + $0x208] sm:$0xff] }
 0xff4   :  { %2054 = vmin.xlane.f32.xlu0 %v2053_v37 }
0x1081   :  { %v7591_v42 = vpop.xlane.xlu0 %2054 }
0x1082   :  { %vm2056_vm11 = vcmp.eq.f32.partialorder %v2053_v37, %v7591_v42  ;;  %v7743_v37 = vpack.c.bf16 %v2223_v10, %v2219_v46  ;;  %v7851_v46 = vpack.c.bf16 %v2271_v17, %v2267_v63  ;;  %v2276_v10 = vld [vmem:[%s8970_s5 + $0x388] sm:$0xff]  ;;  %v2061_v8 = vcvt.f32.s32 %v7591_v42  ;;  %v2185_v63 = vld [vmem:[%s8970_s5 + $0xb0] sm:$0xff]  ;;  %v2194_v17 = vld [vmem:[%s8970_s5 + $0xf8] sm:$0xff] }
0x1083   :  { %v2057_v35 = vsel %vm2056_vm11, %v2052_v53, inf  ;;  %v2232_v53 = vld [vmem:[%s8970_s5 + $0x228] sm:$0xff] }
0x1084   :  { %2058 = vmin.xlane.f32.xlu1 %v2057_v35  ;;  %v7752_v35 = vpack.c.bf16 %v2232_v53, %v2228_v2  ;;  %5105 = vmatpush1.bf16.msra.mxu0 %v7743_v37  ;;  %v2280_v2 = vld [vmem:[%s8970_s5 + $0x3a8] sm:$0xff]  ;;  %v2062_v62 = vshll.u32 %v2061_v8, 16  ;;  %v2198_v8 = vld [vmem:[%s8970_s5 + $0x118] sm:$0xff] }
0x1085   :  { %v7860_v53 = vpack.c.bf16 %v2280_v2, %v2276_v10  ;;  %v7924_v10 = vpack.c.bf16 %v2185_v63, %v2181_v43  ;;  %v2218_v43 = vld [vmem:[%s8970_s5 + $0x1b8] sm:$0xff]  ;;  %v7978_v63 = vpack.c.bf16 %v2209_v18, %v2205_v3 }
0x1086   :  { %5107 = vmatprep.subr.bf16.mxu0 %v7752_v35  ;;  %v2234_v3 = vld [vmem:[%s8970_s5 + $0x238] sm:$0xff] }
0x1087   :  { %9215 = vst [vmem:[#allocation8_spill] sm:$0xff] %v7978_v63 }
0x1088   :  { %5109 = vmatpush1.bf16.msra.mxu0 %v7761_v44 }
0x1089   :  { %5111 = vmatprep.subr.bf16.mxu0 %v7770_v5 }
0x108c   :  { %5113 = vmatpush1.bf16.msra.mxu0 %v7779_v61 }
0x108d   :  { %5115 = vmatprep.subr.bf16.mxu0 %v7788_v21 }
0x1090   :  { %5117 = vmatpush1.bf16.msra.mxu0 %v7797_v54 }
0x1091   :  { %5119 = vmatprep.subr.bf16.mxu0 %v7806_v57 }
0x1094   :  { %5121 = vmatpush1.bf16.msra.mxu0 %v7815_v59 }
0x1095   :  { %5123 = vmatprep.subr.bf16.mxu0 %v7824_v38 }
0x1098   :  { %5125 = vmatpush1.bf16.msra.mxu0 %v7833_v39 }
0x1099   :  { %5127 = vmatprep.subr.bf16.mxu0 %v7842_v30 }
0x109c   :  { %5129 = vmatpush1.bf16.msra.mxu0 %v7851_v46 }
0x109d   :  { %5131 = vmatprep.subr.bf16.mxu0 %v7860_v53 }
0x10a0   :  { %5133 = vmatpush1.bf16.msra.mxu0 %v7869_v28 }
0x1111   :  { %v2059_v56 = vpop.xlane.xlu1 %2058 }
0x1112   :  { %v2060_v22 = vcvt.f32.s32 %v2059_v56  ;;  %v2202_v56 = vld [vmem:[%s8970_s5 + $0x138] sm:$0xff] }
0x1113   :  { %v7945_v16 = vpack.c.bf16 %v2202_v56, %v2198_v8  ;;  %v2226_v8 = vld [vmem:[%s8970_s5 + $0x1f8] sm:$0xff] }
0x1114   :  { %v2063_v42 = vadd.s32 %v2062_v62, %v2060_v22  ;;  %v2197_v62 = vld [vmem:[%s8970_s5 + $0x110] sm:$0xff] }
0x1115   :  { %9212 = vst [vmem:[#allocation5_spill] sm:$0xff] %v7945_v16  ;;  %v2201_v22 = vld [vmem:[%s8970_s5 + $0x130] sm:$0xff] }
0x1116   :  { %vm2064_vm12 = vcmp.eq.s32.totalorder %v6510_v41, %v2063_v42  ;;  %v7960_v42 = vpack.c.bf16 %v2201_v22, %v2197_v62  ;;  %v7999_v62 = vpack.c.bf16 %v2226_v8, %v2222_v9  ;;  %v2221_v22 = vld [vmem:[%s8970_s5 + $0x1d0] sm:$0xff]  ;;  %v2242_v9 = vld [vmem:[%s8970_s5 + $0x278] sm:$0xff] }
0x1117   :  { %4193 = vmatmul.mubr.msk.f32.vlgmr.msra.gmra.mrb[14].mxu1 %vm2064_vm12, %v9177_v26  ;;  %v8014_v18 = vpack.c.bf16 %v2225_v29, %v2221_v22  ;;  %v2237_v29 = vld [vmem:[%s8970_s5 + $0x250] sm:$0xff] }
0x1118   :  { %2448 = vmatprep.mubr.f32.mxu1 %v7582_v49  ;;  %5141 = vmatpush1.bf16.msra.mxu1 %v7886_v50  ;;  %v2190_v49 = vld [vmem:[%s8970_s5 + $0xd8] sm:$0xff]  ;;  %9213 = vst [vmem:[#allocation6_spill] sm:$0xff] %v7960_v42  ;;  %9218 = vst [vmem:[#allocation11_spill] sm:$0xff] %v7999_v62 }
0x1119   :  { %5143 = vmatprep.subr.bf16.mxu1 %v7888_v23  ;;  %v7927_v2 = vpack.c.bf16 %v2194_v17, %v2190_v49  ;;  %v7981_v49 = vpack.c.bf16 %v2218_v43, %v2214_v51  ;;  %v2213_v17 = vld [vmem:[%s8970_s5 + $0x190] sm:$0xff]  ;;  %9219 = vst [vmem:[#allocation12_spill] sm:$0xff] %v8014_v18  ;;  %v8017_v51 = vpack.c.bf16 %v2234_v3, %v2230_v4  ;;  %v2246_v3 = vld [vmem:[%s8970_s5 + $0x298] sm:$0xff] }
0x111a   :  { %v7996_v56 = vpack.c.bf16 %v2217_v55, %v2213_v17  ;;  %v2229_v43 = vld [vmem:[%s8970_s5 + $0x210] sm:$0xff]  ;;  %v2238_v55 = vld [vmem:[%s8970_s5 + $0x258] sm:$0xff] }
0x111b   :  { %9216 = vst [vmem:[#allocation9_spill] sm:$0xff] %v7981_v49  ;;  %9220 = vst [vmem:[#allocation13_spill] sm:$0xff] %v8017_v51  ;;  %v2233_v17 = vld [vmem:[%s8970_s5 + $0x230] sm:$0xff]  ;;  %v8035_v22 = vpack.c.bf16 %v2242_v9, %v2238_v55 }
0x111c   :  { %5145 = vmatpush1.bf16.msra.mxu1 %v7906_v13  ;;  %9217 = vst [vmem:[#allocation10_spill] sm:$0xff] %v7996_v56  ;;  %v8032_v8 = vpack.c.bf16 %v2233_v17, %v2229_v43  ;;  %v2241_v4 = vld [vmem:[%s8970_s5 + $0x270] sm:$0xff]  ;;  %v2250_v43 = vld [vmem:[%s8970_s5 + $0x2b8] sm:$0xff] }
0x111d   :  { %5147 = vmatprep.subr.bf16.mxu1 %v7909_v19  ;;  %9222 = vst [vmem:[#allocation15_spill] sm:$0xff] %v8035_v22  ;;  %v8050_v17 = vpack.c.bf16 %v2241_v4, %v2237_v29  ;;  %v8053_v55 = vpack.c.bf16 %v2250_v43, %v2246_v3  ;;  %v2245_v9 = vld [vmem:[%s8970_s5 + $0x290] sm:$0xff]  ;;  %v2258_v29 = vld [vmem:[%s8970_s5 + $0x2f8] sm:$0xff] }
0x111e   :  { %9221 = vst [vmem:[#allocation14_spill] sm:$0xff] %v8032_v8  ;;  %v2253_v43 = vld [vmem:[%s8970_s5 + $0x2d0] sm:$0xff] }
0x111f   :  { %9223 = vst [vmem:[#allocation16_spill] sm:$0xff] %v8050_v17  ;;  %9224 = vst [vmem:[#allocation17_spill] sm:$0xff] %v8053_v55 }
0x1120   :  { %5149 = vmatpush1.bf16.msra.mxu1 %v7924_v10 }
0x1121   :  { %5151 = vmatprep.subr.bf16.mxu1 %v7927_v2 }
0x1124   :  { %5153 = vmatpush1.bf16.msra.mxu1 %v7942_v24 }
0x1125   :  { %5155 = vmatprep.subr.bf16.mxu1 %v7945_v16 }
0x1128   :  { %5157 = vmatpush1.bf16.msra.mxu1 %v7960_v42 }
0x1129   :  { %5159 = vmatprep.subr.bf16.mxu1 %v7963_v12 }
0x112c   :  { %5161 = vmatpush1.bf16.msra.mxu1 %v7978_v63 }
0x112d   :  { %5163 = vmatprep.subr.bf16.mxu1 %v7981_v49 }
0x1130   :  { %5165 = vmatpush1.bf16.msra.mxu1 %v7996_v56 }
0x1131   :  { %5167 = vmatprep.subr.bf16.mxu1 %v7999_v62 }
0x1134   :  { %5169 = vmatpush1.bf16.msra.mxu1 %v8014_v18  ;;  %v2254_v18 = vld [vmem:[%s8970_s5 + $0x2d8] sm:$0xff] }
0x1135   :  { %5171 = vmatprep.subr.bf16.mxu1 %v8017_v51  ;;  %v2249_v51 = vld [vmem:[%s8970_s5 + $0x2b0] sm:$0xff]  ;;  %v8071_v3 = vpack.c.bf16 %v2258_v29, %v2254_v18 }
0x1136   :  { %v8068_v4 = vpack.c.bf16 %v2249_v51, %v2245_v9  ;;  %v2266_v51 = vld [vmem:[%s8970_s5 + $0x338] sm:$0xff]  ;;  %v2261_v29 = vld [vmem:[%s8970_s5 + $0x310] sm:$0xff] }
0x1137   :  { %9226 = vst [vmem:[#allocation19_spill] sm:$0xff] %v8071_v3 }
0x1138   :  { %5173 = vmatpush1.bf16.msra.mxu1 %v8032_v8  ;;  %9225 = vst [vmem:[#allocation18_spill] sm:$0xff] %v8068_v4  ;;  %v2262_v8 = vld [vmem:[%s8970_s5 + $0x318] sm:$0xff] }
0x1139   :  { %5175 = vmatprep.subr.bf16.mxu1 %v8035_v22  ;;  %v2257_v22 = vld [vmem:[%s8970_s5 + $0x2f0] sm:$0xff]  ;;  %v8089_v9 = vpack.c.bf16 %v2266_v51, %v2262_v8 }
0x113a   :  { %v8086_v18 = vpack.c.bf16 %v2257_v22, %v2253_v43  ;;  %v2274_v22 = vld [vmem:[%s8970_s5 + $0x378] sm:$0xff]  ;;  %v2269_v51 = vld [vmem:[%s8970_s5 + $0x350] sm:$0xff] }
0x113b   :  { %9228 = vst [vmem:[#allocation21_spill] sm:$0xff] %v8089_v9 }
0x113c   :  { %5177 = vmatpush1.bf16.msra.mxu1 %v8050_v17  ;;  %9227 = vst [vmem:[#allocation20_spill] sm:$0xff] %v8086_v18  ;;  %v2270_v17 = vld [vmem:[%s8970_s5 + $0x358] sm:$0xff] }
0x113d   :  { %5179 = vmatprep.subr.bf16.mxu1 %v8053_v55  ;;  %v2265_v55 = vld [vmem:[%s8970_s5 + $0x330] sm:$0xff]  ;;  %v8107_v43 = vpack.c.bf16 %v2274_v22, %v2270_v17 }
0x113e   :  { %v8104_v8 = vpack.c.bf16 %v2265_v55, %v2261_v29  ;;  %v2282_v55 = vld [vmem:[%s8970_s5 + $0x3b8] sm:$0xff]  ;;  %v2277_v22 = vld [vmem:[%s8970_s5 + $0x390] sm:$0xff] }
0x113f   :  { %9230 = vst [vmem:[#allocation23_spill] sm:$0xff] %v8107_v43 }
0x1140   :  { %5181 = vmatpush1.bf16.msra.mxu1 %v8068_v4  ;;  %9229 = vst [vmem:[#allocation22_spill] sm:$0xff] %v8104_v8  ;;  %v2278_v4 = vld [vmem:[%s8970_s5 + $0x398] sm:$0xff] }
0x1141   :  { %5183 = vmatprep.subr.bf16.mxu1 %v8071_v3  ;;  %v2273_v3 = vld [vmem:[%s8970_s5 + $0x370] sm:$0xff]  ;;  %v8125_v29 = vpack.c.bf16 %v2282_v55, %v2278_v4  ;;  %v2284_v4 = vld [vmem:[%s8970_s5 + $0x3c8] sm:$0xff] }
0x1142   :  { %v8122_v17 = vpack.c.bf16 %v2273_v3, %v2269_v51  ;;  %v2288_v3 = vld [vmem:[%s8970_s5 + $0x3e8] sm:$0xff]  ;;  %v2286_v51 = vld [vmem:[%s8970_s5 + $0x3d8] sm:$0xff] }
0x1143   :  { %9232 = vst [vmem:[#allocation25_spill] sm:$0xff] %v8125_v29  ;;  %v8147_v55 = vpack.c.bf16 %v2288_v3, %v2284_v4  ;;  %v2289_v4 = vld [vmem:[%s8970_s5 + $0x3f0] sm:$0xff] }
0x1144   :  { %5185 = vmatpush1.bf16.msra.mxu1 %v8086_v18  ;;  %9231 = vst [vmem:[#allocation24_spill] sm:$0xff] %v8122_v17 }
0x1145   :  { %5187 = vmatprep.subr.bf16.mxu1 %v8089_v9  ;;  %v2281_v9 = vld [vmem:[%s8970_s5 + $0x3b0] sm:$0xff]  ;;  %5135 = vmatprep.subr.bf16.mxu0 %v8147_v55 }
0x1146   :  { %v8134_v18 = vpack.c.bf16 %v2281_v9, %v2277_v22  ;;  %v2290_v9 = vld [vmem:[%s8970_s5 + $0x3f8] sm:$0xff]  ;;  %v2283_v22 = vld [vmem:[%s8970_s5 + $0x3c0] sm:$0xff] }
0x1148   :  { %5189 = vmatpush1.bf16.msra.mxu1 %v8104_v8  ;;  %9233 = vst [vmem:[#allocation26_spill] sm:$0xff] %v8134_v18 }
0x1149   :  { %5191 = vmatprep.subr.bf16.mxu1 %v8107_v43 }
0x114c   :  { %5193 = vmatpush1.bf16.msra.mxu1 %v8122_v17  ;;  %v2285_v17 = vld [vmem:[%s8970_s5 + $0x3d0] sm:$0xff] }
0x114d   :  { %5195 = vmatprep.subr.bf16.mxu1 %v8125_v29  ;;  %v2287_v29 = vld [vmem:[%s8970_s5 + $0x3e0] sm:$0xff]  ;;  %v8169_v43 = vpack.c.bf16 %v2289_v4, %v2285_v17  ;;  %v2160_v17 = vstv %s2159_s17 }
0x114e   :  { %v8167_v3 = vpack.c.bf16 %v2287_v29, %v2283_v22  ;;  %v3670_v29 = vld [vmem:[%s8968_s3 + $0x20] sm:$0xff] }
0x114f   :  { %9235 = vst [vmem:[#allocation29_spill] sm:$0xff] %v8169_v43 }
0x1150   :  { %5197 = vmatpush1.bf16.msra.mxu1 %v8134_v18  ;;  %v8155_v18 = vpack.c.bf16 %v2290_v9, %v2286_v51  ;;  %5137 = vmatpush1.bf16.msra.mxu0 %v8167_v3  ;;  %v2157_v51 = vstv %s2154_s1 }
0x1151   :  { %5202 = vmatprep.subr.bf16.mxu0 %v9113_v7  ;;  %v2158_v9 = vmul.f32 %v3670_v29, %v2157_v51  ;;  %v2479_v29 = vld [vmem:[%s8972_s7] sm:$0xff]  ;;  %v2481_v51 = vld [vmem:[%s8972_s7 + $0x10] sm:$0xff] }
0x1152   :  { %9234 = vst [vmem:[#allocation27_spill] sm:$0xff] %v8155_v18  ;;  %5199 = vmatprep.subr.bf16.mxu1 %v8155_v18 }
0x1154   :  { %5201 = vmatpush1.bf16.msra.mxu1 %v8169_v43  ;;  %v8182_v43 = vld [vmem:[%s8974_s9] sm:$0xff] }
0x1155   :  { %5226 = vmatprep.subr.bf16.mxu1 %v9113_v7  ;;  %9236 = vst [vmem:[#allocation28_spill] sm:$0xff] %v8182_v43 }
0x11ea   :  { %v2149_v22 = vpop.f32.mrb[14].mxu1 }
0x11eb   :  { %v2161_v4 = vmul.f32 %v2160_v17, %v2149_v22  ;;  %v4194_v18 = vpop.f32.mrb[15].mxu1  ;;  %v2482_v17 = vld [vmem:[%s8972_s7 + $0x18] sm:$0xff]  ;;  %v2483_v22 = vld [vmem:[%s8972_s7 + $0x20] sm:$0xff] }
0x11ec   :  { %v2480_v18 = vld [vmem:[%s8972_s7 + $0x8] sm:$0xff] }
0x11ed   :  { %v2162_v8 = vadd.f32 %v2161_v4, %v2158_v9  ;;  %v8204_v9 = vpack.c.bf16 %v2482_v17, %v2481_v51  ;;  %v2484_v4 = vld [vmem:[%s8972_s7 + $0x28] sm:$0xff]  ;;  %v2486_v51 = vld [vmem:[%s8972_s7 + $0x38] sm:$0xff] }
0x11ef   :  { %2378 = vmatmul.mubr.f32.vlgmr.msra.gmra.mrb[16].mxu0 %v2162_v8  ;;  %2449 = vmatmul.mubr.f32.vlgmr.msra.gmra.mrb[16].mxu1 %v2162_v8  ;;  %v8194_v8 = vpack.c.bf16 %v2480_v18, %v2479_v29  ;;  %9238 = vst [vmem:[#allocation31_spill] sm:$0xff] %v8204_v9  ;;  %v8214_v29 = vpack.c.bf16 %v2484_v4, %v2483_v22  ;;  %v2485_v18 = vld [vmem:[%s8972_s7 + $0x30] sm:$0xff]  ;;  %v2487_v22 = vld [vmem:[%s8972_s7 + $0x40] sm:$0xff]  ;;  %v2488_v4 = vld [vmem:[%s8972_s7 + $0x48] sm:$0xff] }
0x11f0   :  { %4227 = vmatprep.mubr.msk.f32.mxu0 %vm5715_vm0, %v8182_v43  ;;  %4262 = vmatprep.mubr.msk.f32.mxu1 %vm5715_vm0, %v8182_v43  ;;  %v8224_v17 = vpack.c.bf16 %v2486_v51, %v2485_v18  ;;  %v2490_v18 = vld [vmem:[%s8972_s7 + $0x58] sm:$0xff] }
0x11f1   :  { %9237 = vst [vmem:[#allocation30_spill] sm:$0xff] %v8194_v8  ;;  %5204 = vmatpush3.bf16.msra.mxu0 %v8194_v8  ;;  %9239 = vst [vmem:[#allocation34_spill] sm:$0xff] %v8214_v29 }
0x11f2   :  { %5205 = vmatprep.subr.bf16.mxu0 %v9113_v7  ;;  %9240 = vst [vmem:[#allocation35_spill] sm:$0xff] %v8224_v17 }
0x11f5   :  { %5207 = vmatpush3.bf16.msra.mxu0 %v8204_v9  ;;  %v2489_v9 = vld [vmem:[%s8972_s7 + $0x50] sm:$0xff] }
0x11f6   :  { %5208 = vmatprep.subr.bf16.mxu0 %v9113_v7  ;;  %v8243_v51 = vpack.c.bf16 %v2490_v18, %v2489_v9  ;;  %v2493_v9 = vld [vmem:[%s8972_s7 + $0x70] sm:$0xff]  ;;  %v2494_v18 = vld [vmem:[%s8972_s7 + $0x78] sm:$0xff] }
0x11f8   :  { %9242 = vst [vmem:[#allocation37_spill] sm:$0xff] %v8243_v51 }
0x11f9   :  { %5210 = vmatpush3.bf16.msra.mxu0 %v8214_v29  ;;  %v8234_v29 = vpack.c.bf16 %v2488_v4, %v2487_v22  ;;  %v2492_v22 = vld [vmem:[%s8972_s7 + $0x68] sm:$0xff] }
0x11fa   :  { %5211 = vmatprep.subr.bf16.mxu0 %v9113_v7 }
0x11fb   :  { %9241 = vst [vmem:[#allocation36_spill] sm:$0xff] %v8234_v29 }
0x11fd   :  { %5213 = vmatpush3.bf16.msra.mxu0 %v8224_v17  ;;  %v2491_v17 = vld [vmem:[%s8972_s7 + $0x60] sm:$0xff] }
0x11fe   :  { %5214 = vmatprep.subr.bf16.mxu0 %v9113_v7  ;;  %v8253_v4 = vpack.c.bf16 %v2492_v22, %v2491_v17  ;;  %v2291_v17 = vld [vmem:[%s8971_s6] sm:$0xf] }
0x11ff   :  { %v2296_v22 = vrot.slane %v2291_v17, %v9210_v47  ;;  %v2304_v63 = vrot.slane %v2291_v17, %v6455_v31 }
0x1200   :  { %9243 = vst [vmem:[#allocation38_spill] sm:$0xff] %v8253_v4 }
0x1201   :  { %5216 = vmatpush3.bf16.msra.mxu0 %v8234_v29  ;;  %v8263_v29 = vpack.c.bf16 %v2494_v18, %v2493_v9 }
0x1202   :  { %5217 = vmatprep.subr.bf16.mxu0 %v9113_v7 }
0x1203   :  { %9244 = vst [vmem:[#allocation39_spill] sm:$0xff] %v8263_v29 }
0x1205   :  { %5219 = vmatpush3.bf16.msra.mxu0 %v8243_v51  ;;  %v2300_v51 = vrot.slane %v2291_v17, %v9211_v15 }
0x1206   :  { %5220 = vmatprep.subr.bf16.mxu0 %v9113_v7 }
0x1209   :  { %5222 = vmatpush3.bf16.msra.mxu0 %v8253_v4 }
0x120a   :  { %5223 = vmatprep.subr.bf16.mxu0 %v9113_v7 }
0x120d   :  { %5225 = vmatpush3.bf16.msra.mxu0 %v8263_v29  ;;  %v2308_v29 = vrot.slane %v2291_v17, %v6452_v0 }
0x120e   :  { %5251 = vmatprep.subr.bf16.mxu0 %v7603_v33 }
0x12c2   :  { %v2379_v43 = vpop.f32.mrb[16].mxu0  ;;  %v2450_v8 = vpop.f32.mrb[16].mxu1 }
0x12c3   :  { %v2380_v62 = vadd.f32 %v2379_v43, %v2296_v22  ;;  %v2381_v4 = vpop.f32.mrb[17].mxu0  ;;  %v2452_v9 = vpop.f32.mrb[17].mxu1  ;;  %v2451_v42 = vadd.f32 %v2450_v8, %v2304_v63 }
0x12c4   :  { %v2382_v18 = vadd.f32 %v2381_v4, %v2300_v51  ;;  %v2453_v33 = vadd.f32 %v2452_v9, %v2308_v29 }
0x12c5   :  { %v3671_v56 = vmul.f32 -1.442695, %v2380_v62 }
0x12c6   :  { %v3672_v49 = vmul.f32 -1.442695, %v2382_v18  ;;  %v3673_v12 = vmul.f32 -1.442695, %v2453_v33 }
0x12c7   :  { %5647 = vpow2.f32 %v3671_v56 }
0x12c8   :  { %5649 = vpow2.f32 %v3672_v49 }
0x12c9   :  { %5651 = vpow2.f32 %v3673_v12 }
0x12ca   :  { %5653 = vtanh.f32 %v2451_v42 }
0x12d1   :  { %v5648_v47 = vpop.eup %5647 }
0x12d2   :  { %v5650_v16 = vpop.eup %5649  ;;  %v2458_v15 = vadd.f32 1.0, %v5648_v47 }
0x12d3   :  { %v2464_v43 = vadd.f32 1.0, %v5650_v16  ;;  %v5652_v51 = vpop.eup %5651 }
0x12d4   :  { %5655 = vrcp.f32 %v2458_v15  ;;  %v5654_v62 = vpop.eup %5653  ;;  %v2471_v56 = vadd.f32 1.0, %v5652_v51  ;;  %v8318_v15 = vld [vmem:[%s8973_s8] ss:$0 sm:$0xff] }
0x12d5   :  { %5657 = vrcp.f32 %v2464_v43 }
0x12d6   :  { %5659 = vrcp.f32 %v2471_v56  ;;  %v9257_v56 = vld [vmem:[#allocation17_spill] sm:$0xff] }
0x12de   :  { %v5656_v4 = vpop.eup %5655 }
0x12df   :  { %v5658_v22 = vpop.eup %5657  ;;  %v2475_v18 = vmul.f32 %v5656_v4, %v5654_v62  ;;  %v9246_v62 = vld [vmem:[#allocation6_spill] sm:$0xff]  ;;  %v9247_v4 = vld [vmem:[#allocation7_spill] sm:$0xff] }
0x12e0   :  { %v2474_v49 = vmul.f32 %v5658_v22, %v7579_v11  ;;  %v5660_v63 = vpop.eup %5659  ;;  %v9248_v22 = vld [vmem:[#allocation8_spill] sm:$0xff] }
0x12e2   :  { %v8276_v29 = vadd.f32 %v2475_v18, %v2474_v49  ;;  %v9256_v18 = vld [vmem:[#allocation16_spill] sm:$0xff]  ;;  %v9258_v49 = vld [vmem:[#allocation18_spill] sm:$0xff] }
0x12e4   :  { %5661 = vtanh.f32 %v8276_v29 }
0x12ee   :  { %v5662_v47 = vpop.eup %5661 }
0x12ef   :  { %v8279_v12 = vmul.f32 %v5662_v47, %v5660_v63  ;;  %v9259_v63 = vld [vmem:[#allocation19_spill] sm:$0xff]  ;;  %v9260_v47 = vld [vmem:[#allocation20_spill] sm:$0xff] }
0x12f1   :  { %4228 = vmatmul.mubr.f32.vlgmr.msra.gmra.mrb[18].mxu0 %v8279_v12 }
0x12f2   :  { %2905 = vmatprep.mubr.f32.mxu0 %v8279_v12  ;;  %5253 = vmatpush1.bf16.msra.mxu0 %v7616_v52 }
0x12f3   :  { %5255 = vmatprep.subr.bf16.mxu0 %v7627_v60 }
0x12f6   :  { %5257 = vmatpush1.bf16.msra.mxu0 %v7635_v40 }
0x12f7   :  { %5259 = vmatprep.subr.bf16.mxu0 %v7644_v45 }
0x12fa   :  { %5261 = vmatpush1.bf16.msra.mxu0 %v7653_v34 }
0x12fb   :  { %5263 = vmatprep.subr.bf16.mxu0 %v7662_v14 }
0x12fe   :  { %5265 = vmatpush1.bf16.msra.mxu0 %v7671_v6  ;;  %v2595_v6 = vld [vmem:[%s8969_s4] sm:$0xff] }
0x12ff   :  { %5267 = vmatprep.subr.bf16.mxu0 %v7680_v1  ;;  %v2596_v1 = vld [vmem:[%s8969_s4 + $0x8] sm:$0xff] }
0x1302   :  { %5269 = vmatpush1.bf16.msra.mxu0 %v7689_v20  ;;  %v2597_v20 = vld [vmem:[%s8969_s4 + $0x10] sm:$0xff] }
0x1303   :  { %5271 = vmatprep.subr.bf16.mxu0 %v7698_v36  ;;  %v8334_v36 = vpack.c.bf16 %v2596_v1, %v2595_v6  ;;  %v3679_v6 = vld [vmem:[%s8968_s3 + $0x28] sm:$0xff] }
0x1305   :  { %5228 = vmatpush3.bf16.msra.mxu1 %v8334_v36 }
0x1306   :  { %5273 = vmatpush1.bf16.msra.mxu0 %v7707_v25  ;;  %v2598_v25 = vld [vmem:[%s8969_s4 + $0x18] sm:$0xff]  ;;  %5229 = vmatprep.subr.bf16.mxu1 %v9113_v7 }
0x1307   :  { %5275 = vmatprep.subr.bf16.mxu0 %v7716_v32  ;;  %v8340_v32 = vpack.c.bf16 %v2598_v25, %v2597_v20 }
0x1309   :  { %5231 = vmatpush3.bf16.msra.mxu1 %v8340_v32 }
0x130a   :  { %5277 = vmatpush1.bf16.msra.mxu0 %v7725_v48  ;;  %v2599_v48 = vld [vmem:[%s8969_s4 + $0x20] sm:$0xff]  ;;  %5232 = vmatprep.subr.bf16.mxu1 %v9113_v7 }
0x130b   :  { %5279 = vmatprep.subr.bf16.mxu0 %v7734_v27  ;;  %v2600_v27 = vld [vmem:[%s8969_s4 + $0x28] sm:$0xff] }
0x130e   :  { %5281 = vmatpush1.bf16.msra.mxu0 %v7743_v37  ;;  %v8350_v37 = vpack.c.bf16 %v2600_v27, %v2599_v48 }
0x130f   :  { %5283 = vmatprep.subr.bf16.mxu0 %v7752_v35  ;;  %v2601_v35 = vld [vmem:[%s8969_s4 + $0x30] sm:$0xff] }
0x1310   :  { %5234 = vmatpush3.bf16.msra.mxu1 %v8350_v37 }
0x1311   :  { %5235 = vmatprep.subr.bf16.mxu1 %v9113_v7 }
0x1312   :  { %5285 = vmatpush1.bf16.msra.mxu0 %v7761_v44  ;;  %v2602_v44 = vld [vmem:[%s8969_s4 + $0x38] sm:$0xff] }
0x1313   :  { %5287 = vmatprep.subr.bf16.mxu0 %v7770_v5  ;;  %v8360_v5 = vpack.c.bf16 %v2602_v44, %v2601_v35 }
0x1315   :  { %5237 = vmatpush3.bf16.msra.mxu1 %v8360_v5 }
0x1316   :  { %5289 = vmatpush1.bf16.msra.mxu0 %v7779_v61  ;;  %v2603_v61 = vld [vmem:[%s8969_s4 + $0x40] sm:$0xff]  ;;  %5238 = vmatprep.subr.bf16.mxu1 %v9113_v7 }
0x1317   :  { %5291 = vmatprep.subr.bf16.mxu0 %v7788_v21  ;;  %v2604_v21 = vld [vmem:[%s8969_s4 + $0x48] sm:$0xff] }
0x131a   :  { %5293 = vmatpush1.bf16.msra.mxu0 %v7797_v54  ;;  %v8370_v54 = vpack.c.bf16 %v2604_v21, %v2603_v61  ;;  %v9269_v61 = vld [vmem:[#allocation30_spill] sm:$0xff]  ;;  %v9270_v21 = vld [vmem:[#allocation28_spill] sm:$0xff] }
0x131b   :  { %5295 = vmatprep.subr.bf16.mxu0 %v7806_v57  ;;  %v2605_v57 = vld [vmem:[%s8969_s4 + $0x50] sm:$0xff] }
0x131c   :  { %5240 = vmatpush3.bf16.msra.mxu1 %v8370_v54 }
0x131d   :  { %5241 = vmatprep.subr.bf16.mxu1 %v9113_v7 }
0x131e   :  { %5297 = vmatpush1.bf16.msra.mxu0 %v7815_v59  ;;  %v2606_v59 = vld [vmem:[%s8969_s4 + $0x58] sm:$0xff] }
0x131f   :  { %5299 = vmatprep.subr.bf16.mxu0 %v7824_v38  ;;  %v8380_v38 = vpack.c.bf16 %v2606_v59, %v2605_v57  ;;  %v9271_v57 = vld [vmem:[#allocation31_spill] sm:$0xff]  ;;  %v9272_v59 = vld [vmem:[#allocation34_spill] sm:$0xff] }
0x1321   :  { %5243 = vmatpush3.bf16.msra.mxu1 %v8380_v38 }
0x1322   :  { %5301 = vmatpush1.bf16.msra.mxu0 %v7833_v39  ;;  %v2607_v39 = vld [vmem:[%s8969_s4 + $0x60] sm:$0xff]  ;;  %5244 = vmatprep.subr.bf16.mxu1 %v9113_v7 }
0x1323   :  { %5303 = vmatprep.subr.bf16.mxu0 %v7842_v30  ;;  %v2608_v30 = vld [vmem:[%s8969_s4 + $0x68] sm:$0xff] }
0x1326   :  { %5305 = vmatpush1.bf16.msra.mxu0 %v7851_v46  ;;  %v8390_v46 = vpack.c.bf16 %v2608_v30, %v2607_v39  ;;  %v9274_v39 = vld [vmem:[#allocation36_spill] sm:$0xff] }
0x1327   :  { %5307 = vmatprep.subr.bf16.mxu0 %v7860_v53  ;;  %v9278_v30 = vld [vmem:[#allocation32_spill] sm:$0xff] }
0x1328   :  { %5246 = vmatpush3.bf16.msra.mxu1 %v8390_v46 }
0x1329   :  { %5247 = vmatprep.subr.bf16.mxu1 %v9113_v7 }
0x132a   :  { %5309 = vmatpush1.bf16.msra.mxu0 %v7869_v28 }
0x132b   :  { %5311 = vmatprep.subr.bf16.mxu0 %v8147_v55  ;;  %v2609_v55 = vld [vmem:[%s8969_s4 + $0x70] sm:$0xff] }
0x132e   :  { %5313 = vmatpush1.bf16.msra.mxu0 %v8167_v3  ;;  %v2610_v3 = vld [vmem:[%s8969_s4 + $0x78] sm:$0xff]  ;;  %s3678_s4 = sld [smem:[#allocation2 + $0x5]] }
0x132f   :  { %5378 = vmatprep.subr.bf16.mxu0 %v9113_v7  ;;  %v8401_v8 = vpack.c.bf16 %v2610_v3, %v2609_v55 }
0x1331   :  { %5249 = vmatpush3.bf16.msra.mxu1 %v8401_v8 }
0x1332   :  { %5315 = vmatprep.subr.bf16.mxu1 %v7614_v58  ;;  %v9245_v58 = vld [vmem:[#allocation5_spill] sm:$0xff] }
0x1334   :  { %s2682_s2 = scvt.s32.f32 %s3678_s4 }
0x1336   :  { %s2687_s19 = ssub.f32 1.0, %s2682_s2  ;;  %v2685_v1 = vstv %s2682_s2 }
0x1337   :  { %v2686_v25 = vmul.f32 %v3679_v6, %v2685_v1 }
0x1338   :  { %v2688_v20 = vstv %s2687_s19 }
0x13c4   :  { %v2568_v11 = vpop.f32.mrb[18].mxu0 }
0x13c5   :  { %v2569_v52 = vadd.f32 %v8318_v15, %v2568_v11  ;;  %v4229_v60 = vpop.f32.mrb[19].mxu0  ;;  %v9262_v11 = vld [vmem:[#allocation22_spill] sm:$0xff] }
0x13c6   :  { %v9264_v60 = vld [vmem:[#allocation24_spill] sm:$0xff] }
0x13c7   :  { %3675 = vst [vmem:[%s8974_s9 + $0x28] sm:$0xff] %v2569_v52  ;;  %2574 = vmax.xlane.f32.xlu0 %v2569_v52 }
0x1454   :  { %v2575_v40 = vpop.xlane.xlu0 %2574 }
0x1455   :  { %vm2576_vm13 = vcmp.eq.f32.partialorder %v2569_v52, %v2575_v40  ;;  %v9263_v52 = vld [vmem:[#allocation23_spill] sm:$0xff]  ;;  %v9265_v40 = vld [vmem:[#allocation25_spill] sm:$0xff] }
0x1456   :  { %v2577_v45 = vsel %vm2576_vm13, %v6510_v41, 128 }
0x1457   :  { %v2579_v34 = vshra.s32 %v2577_v45, 16  ;;  %v2578_v53 = vand.u32 65535, %v2577_v45  ;;  %v9266_v45 = vld [vmem:[#allocation26_spill] sm:$0xff] }
0x1459   :  { %v2581_v14 = vcvt.s32.f32 %v2579_v34  ;;  %v2580_v16 = vcvt.s32.f32 %v2578_v53  ;;  %v9267_v34 = vld [vmem:[#allocation27_spill] sm:$0xff]  ;;  %v9279_v53 = vld [vmem:[#allocation33_spill] sm:$0xff] }
0x145b   :  { %2582 = vmin.xlane.f32.xlu1 %v2581_v14 }
0x14e8   :  { %v2583_v28 = vpop.xlane.xlu1 %2582 }
0x14e9   :  { %vm2584_vm14 = vcmp.eq.f32.partialorder %v2581_v14, %v2583_v28  ;;  %v2589_v17 = vcvt.f32.s32 %v2583_v28  ;;  %v9268_v14 = vld [vmem:[#allocation29_spill] sm:$0xff] }
0x14ea   :  { %v2585_v42 = vsel %vm2584_vm14, %v2580_v16, inf }
0x14eb   :  { %2586 = vmin.xlane.f32.xlu0 %v2585_v42  ;;  %v2590_v33 = vshll.u32 %v2589_v17, 16 }
0x1578   :  { %v2587_v9 = vpop.xlane.xlu0 %2586 }
0x1579   :  { %v2588_v43 = vcvt.f32.s32 %v2587_v9 }
0x157b   :  { %v2591_v51 = vadd.s32 %v2590_v33, %v2588_v43 }
0x157d   :  { %vm2592_vm15 = vcmp.eq.s32.totalorder %v6510_v41, %v2591_v51 }
0x157e   :  { %4263 = vmatmul.mubr.msk.f32.vlgmr.msra.gmra.mrb[18].mxu1 %vm2592_vm15, %v9177_v26 }
0x157f   :  { %2976 = vmatprep.mubr.f32.mxu1 %v8279_v12  ;;  %5317 = vmatpush1.bf16.msra.mxu1 %v7886_v50  ;;  %v9249_v50 = vld [vmem:[#allocation9_spill] sm:$0xff] }
0x1580   :  { %5319 = vmatprep.subr.bf16.mxu1 %v7888_v23  ;;  %v9250_v23 = vld [vmem:[#allocation10_spill] sm:$0xff]  ;;  %v9261_v12 = vld [vmem:[#allocation21_spill] sm:$0xff] }
0x1583   :  { %5321 = vmatpush1.bf16.msra.mxu1 %v7906_v13  ;;  %v9251_v13 = vld [vmem:[#allocation11_spill] sm:$0xff] }
0x1584   :  { %5323 = vmatprep.subr.bf16.mxu1 %v7909_v19  ;;  %v9252_v19 = vld [vmem:[#allocation12_spill] sm:$0xff] }
0x1587   :  { %5325 = vmatpush1.bf16.msra.mxu1 %v7924_v10  ;;  %v9253_v10 = vld [vmem:[#allocation13_spill] sm:$0xff] }
0x1588   :  { %5327 = vmatprep.subr.bf16.mxu1 %v7927_v2  ;;  %v9254_v2 = vld [vmem:[#allocation14_spill] sm:$0xff] }
0x158b   :  { %5329 = vmatpush1.bf16.msra.mxu1 %v7942_v24  ;;  %v9255_v24 = vld [vmem:[#allocation15_spill] sm:$0xff] }
0x158c   :  { %5331 = vmatprep.subr.bf16.mxu1 %v9245_v58 }
0x158f   :  { %5333 = vmatpush1.bf16.msra.mxu1 %v9246_v62 }
0x1590   :  { %5335 = vmatprep.subr.bf16.mxu1 %v9247_v4 }
0x1593   :  { %5337 = vmatpush1.bf16.msra.mxu1 %v9248_v22 }
0x1594   :  { %5339 = vmatprep.subr.bf16.mxu1 %v9249_v50 }
0x1597   :  { %5341 = vmatpush1.bf16.msra.mxu1 %v9250_v23 }
0x1598   :  { %5343 = vmatprep.subr.bf16.mxu1 %v9251_v13 }
0x159b   :  { %5345 = vmatpush1.bf16.msra.mxu1 %v9252_v19 }
0x159c   :  { %5347 = vmatprep.subr.bf16.mxu1 %v9253_v10 }
0x159f   :  { %5349 = vmatpush1.bf16.msra.mxu1 %v9254_v2 }
0x15a0   :  { %5351 = vmatprep.subr.bf16.mxu1 %v9255_v24 }
0x15a3   :  { %5353 = vmatpush1.bf16.msra.mxu1 %v9256_v18 }
0x15a4   :  { %5355 = vmatprep.subr.bf16.mxu1 %v9257_v56 }
0x15a7   :  { %5357 = vmatpush1.bf16.msra.mxu1 %v9258_v49 }
0x15a8   :  { %5359 = vmatprep.subr.bf16.mxu1 %v9259_v63 }
0x15ab   :  { %5361 = vmatpush1.bf16.msra.mxu1 %v9260_v47 }
0x15ac   :  { %5363 = vmatprep.subr.bf16.mxu1 %v9261_v12 }
0x15af   :  { %5365 = vmatpush1.bf16.msra.mxu1 %v9262_v11 }
0x15b0   :  { %5367 = vmatprep.subr.bf16.mxu1 %v9263_v52 }
0x15b3   :  { %5369 = vmatpush1.bf16.msra.mxu1 %v9264_v60 }
0x15b4   :  { %5371 = vmatprep.subr.bf16.mxu1 %v9265_v40 }
0x15b7   :  { %5373 = vmatpush1.bf16.msra.mxu1 %v9266_v45 }
0x15b8   :  { %5375 = vmatprep.subr.bf16.mxu1 %v9267_v34 }
0x15bb   :  { %5377 = vmatpush1.bf16.msra.mxu1 %v9268_v14 }
0x15bc   :  { %5402 = vmatprep.subr.bf16.mxu1 %v9113_v7 }
0x1651   :  { %v2677_v48 = vpop.f32.mrb[18].mxu1 }
0x1652   :  { %v2689_v27 = vmul.f32 %v2688_v20, %v2677_v48  ;;  %v4264_v35 = vpop.f32.mrb[19].mxu1  ;;  %v3220_v20 = vld [vmem:[%s8970_s5 + $0x8] sm:$0xff]  ;;  %v3222_v48 = vld [vmem:[%s8970_s5 + $0x18] sm:$0xff] }
0x1653   :  { %v3226_v35 = vld [vmem:[%s8970_s5 + $0x38] sm:$0xff] }
0x1654   :  { %v2690_v44 = vadd.f32 %v2689_v27, %v2686_v25  ;;  %v3224_v25 = vld [vmem:[%s8970_s5 + $0x28] sm:$0xff] }
0x1655   :  { %v5426_v27 = vpack.c.bf16 %v3224_v25, %v3220_v20  ;;  %v3283_v20 = vld [vmem:[%s8970_s5 + $0x200] sm:$0xff] }
0x1656   :  { %2906 = vmatmul.mubr.f32.vlgmr.msra.gmra.mrb[20].mxu0 %v2690_v44  ;;  %2977 = vmatmul.mubr.f32.vlgmr.msra.gmra.mrb[20].mxu1 %v2690_v44  ;;  %v3219_v44 = vld [vmem:[%s8970_s5] sm:$0xff] }
0x1657   :  { %5380 = vmatpush3.bf16.msra.mxu0 %v9269_v61  ;;  %4297 = vmatprep.mubr.msk.f32.mxu0 %vm5715_vm0, %v9270_v21  ;;  %v3223_v61 = vld [vmem:[%s8970_s5 + $0x20] sm:$0xff] }
0x1658   :  { %5381 = vmatprep.subr.bf16.mxu0 %v9113_v7  ;;  %5404 = vmatpush3.bf16.msra.mxu1 %v8334_v36  ;;  %v9273_v36 = vld [vmem:[#allocation35_spill] sm:$0xff]  ;;  %v3287_v25 = vld [vmem:[%s8970_s5 + $0x220] sm:$0xff] }
0x1659   :  { %5405 = vmatprep.subr.bf16.mxu1 %v9113_v7  ;;  %4332 = vmatprep.mubr.msk.f32.mxu1 %vm5715_vm0, %v9270_v21  ;;  %v5490_v21 = vpack.c.bf16 %v3226_v35, %v3222_v48  ;;  %v5460_v48 = vpack.c.bf16 %v3287_v25, %v3283_v20  ;;  %v3296_v35 = vld [vmem:[%s8970_s5 + $0x268] sm:$0xff]  ;;  %v3241_v25 = vld [vmem:[%s8970_s5 + $0xb0] sm:$0xff] }
0x165b   :  { %5383 = vmatpush3.bf16.msra.mxu0 %v9271_v57  ;;  %v5428_v57 = vpack.c.bf16 %v3223_v61, %v3219_v44  ;;  %v3291_v61 = vld [vmem:[%s8970_s5 + $0x240] sm:$0xff] }
0x165c   :  { %5384 = vmatprep.subr.bf16.mxu0 %v9113_v7  ;;  %5407 = vmatpush3.bf16.msra.mxu1 %v8340_v32  ;;  %v9275_v32 = vld [vmem:[#allocation37_spill] sm:$0xff] }
0x165d   :  { %5408 = vmatprep.subr.bf16.mxu1 %v9113_v7 }
0x165f   :  { %5386 = vmatpush3.bf16.msra.mxu0 %v9272_v59  ;;  %v3228_v59 = vld [vmem:[%s8970_s5 + $0x48] sm:$0xff] }
0x1660   :  { %5387 = vmatprep.subr.bf16.mxu0 %v9113_v7  ;;  %5410 = vmatpush3.bf16.msra.mxu1 %v8350_v37  ;;  %v9276_v37 = vld [vmem:[#allocation38_spill] sm:$0xff] }
0x1661   :  { %5411 = vmatprep.subr.bf16.mxu1 %v9113_v7 }
0x1663   :  { %5389 = vmatpush3.bf16.msra.mxu0 %v9273_v36  ;;  %v3232_v36 = vld [vmem:[%s8970_s5 + $0x68] sm:$0xff] }
0x1664   :  { %5390 = vmatprep.subr.bf16.mxu0 %v9113_v7  ;;  %5413 = vmatpush3.bf16.msra.mxu1 %v8360_v5  ;;  %v9277_v5 = vld [vmem:[#allocation39_spill] sm:$0xff] }
0x1665   :  { %5414 = vmatprep.subr.bf16.mxu1 %v9113_v7 }
0x1667   :  { %5392 = vmatpush3.bf16.msra.mxu0 %v9274_v39  ;;  %v5430_v39 = vpack.c.bf16 %v3232_v36, %v3228_v59  ;;  %v3300_v59 = vld [vmem:[%s8970_s5 + $0x288] sm:$0xff] }
0x1668   :  { %5393 = vmatprep.subr.bf16.mxu0 %v9113_v7  ;;  %5416 = vmatpush3.bf16.msra.mxu1 %v8370_v54  ;;  %v2819_v54 = vld [vmem:[%s8971_s6] sm:$0xf]  ;;  %v3304_v36 = vld [vmem:[%s8970_s5 + $0x2a8] sm:$0xff] }
0x1669   :  { %5417 = vmatprep.subr.bf16.mxu1 %v9113_v7  ;;  %v2828_v28 = vrot.slane %v2819_v54, %v9279_v53  ;;  %v2836_v43 = vrot.slane %v2819_v54, %v6452_v0  ;;  %v2832_v51 = vrot.slane %v2819_v54, %v6455_v31 }
0x166b   :  { %5395 = vmatpush3.bf16.msra.mxu0 %v9275_v32  ;;  %v3227_v32 = vld [vmem:[%s8970_s5 + $0x40] sm:$0xff] }
0x166c   :  { %5396 = vmatprep.subr.bf16.mxu0 %v9113_v7  ;;  %5419 = vmatpush3.bf16.msra.mxu1 %v8380_v38  ;;  %v2824_v38 = vrot.slane %v2819_v54, %v9278_v30  ;;  %v3236_v54 = vld [vmem:[%s8970_s5 + $0x88] sm:$0xff] }
0x166d   :  { %5420 = vmatprep.subr.bf16.mxu1 %v9113_v7 }
0x166f   :  { %5398 = vmatpush3.bf16.msra.mxu0 %v9276_v37  ;;  %v3231_v37 = vld [vmem:[%s8970_s5 + $0x60] sm:$0xff] }
0x1670   :  { %5399 = vmatprep.subr.bf16.mxu0 %v9113_v7  ;;  %5422 = vmatpush3.bf16.msra.mxu1 %v8390_v46 }
0x1671   :  { %5423 = vmatprep.subr.bf16.mxu1 %v9113_v7 }
0x1673   :  { %5401 = vmatpush3.bf16.msra.mxu0 %v9277_v5  ;;  %v5432_v5 = vpack.c.bf16 %v3231_v37, %v3227_v32  ;;  %v3299_v32 = vld [vmem:[%s8970_s5 + $0x280] sm:$0xff] }
0x1674   :  { %5425 = vmatpush3.bf16.msra.mxu1 %v8401_v8  ;;  %5427 = vmatprep.subr.bf16.mxu0 %v5426_v27  ;;  %v3292_v27 = vld [vmem:[%s8970_s5 + $0x248] sm:$0xff]  ;;  %v3303_v37 = vld [vmem:[%s8970_s5 + $0x2a0] sm:$0xff] }
0x1675   :  { %5491 = vmatprep.subr.bf16.mxu1 %v5490_v21  ;;  %v5462_v44 = vpack.c.bf16 %v3296_v35, %v3292_v27  ;;  %v3295_v21 = vld [vmem:[%s8970_s5 + $0x260] sm:$0xff]  ;;  %v3245_v35 = vld [vmem:[%s8970_s5 + $0xd0] sm:$0xff] }
0x1729   :  { %v2907_v16 = vpop.f32.mrb[20].mxu0  ;;  %v2978_v42 = vpop.f32.mrb[20].mxu1 }
0x172a   :  { %v2908_v55 = vadd.f32 %v2907_v16, %v2824_v38  ;;  %v2909_v3 = vpop.f32.mrb[21].mxu0  ;;  %v2980_v17 = vpop.f32.mrb[21].mxu1  ;;  %v2979_v62 = vadd.f32 %v2978_v42, %v2832_v51  ;;  %v3240_v38 = vld [vmem:[%s8970_s5 + $0xa8] sm:$0xff]  ;;  %v3235_v16 = vld [vmem:[%s8970_s5 + $0x80] sm:$0xff] }
0x172b   :  { %v2910_v46 = vadd.f32 %v2909_v3, %v2828_v28  ;;  %v2981_v8 = vadd.f32 %v2980_v17, %v2836_v43  ;;  %v5434_v28 = vpack.c.bf16 %v3240_v38, %v3236_v54  ;;  %v3239_v42 = vld [vmem:[%s8970_s5 + $0xa0] sm:$0xff]  ;;  %v3244_v3 = vld [vmem:[%s8970_s5 + $0xc8] sm:$0xff] }
0x172c   :  { %v3680_v9 = vmul.f32 -1.442695, %v2908_v55  ;;  %v5436_v55 = vpack.c.bf16 %v3239_v42, %v3235_v16  ;;  %v3248_v17 = vld [vmem:[%s8970_s5 + $0xe8] sm:$0xff]  ;;  %v3307_v16 = vld [vmem:[%s8970_s5 + $0x2c0] sm:$0xff] }
0x172d   :  { %v3681_v33 = vmul.f32 -1.442695, %v2910_v46  ;;  %v3682_v58 = vmul.f32 -1.442695, %v2981_v8  ;;  %v5438_v46 = vpack.c.bf16 %v3248_v17, %v3244_v3  ;;  %v3252_v8 = vld [vmem:[%s8970_s5 + $0x108] sm:$0xff]  ;;  %v3311_v42 = vld [vmem:[%s8970_s5 + $0x2e0] sm:$0xff] }
0x172e   :  { %5663 = vpow2.f32 %v3680_v9  ;;  %v3243_v9 = vld [vmem:[%s8970_s5 + $0xc0] sm:$0xff]  ;;  %v3256_v51 = vld [vmem:[%s8970_s5 + $0x128] sm:$0xff] }
0x172f   :  { %5665 = vpow2.f32 %v3681_v33  ;;  %v3247_v33 = vld [vmem:[%s8970_s5 + $0xe0] sm:$0xff]  ;;  %v3308_v54 = vld [vmem:[%s8970_s5 + $0x2c8] sm:$0xff] }
0x1730   :  { %5667 = vpow2.f32 %v3682_v58  ;;  %v5440_v43 = vpack.c.bf16 %v3247_v33, %v3243_v9  ;;  %v5442_v58 = vpack.c.bf16 %v3256_v51, %v3252_v8  ;;  %v3312_v38 = vld [vmem:[%s8970_s5 + $0x2e8] sm:$0xff]  ;;  %v3315_v9 = vld [vmem:[%s8970_s5 + $0x300] sm:$0xff] }
0x1731   :  { %5669 = vtanh.f32 %v2979_v62  ;;  %v3251_v62 = vld [vmem:[%s8970_s5 + $0x100] sm:$0xff]  ;;  %v3316_v3 = vld [vmem:[%s8970_s5 + $0x308] sm:$0xff] }
0x1732   :  { %v3320_v17 = vld [vmem:[%s8970_s5 + $0x328] sm:$0xff]  ;;  %v3319_v33 = vld [vmem:[%s8970_s5 + $0x320] sm:$0xff] }
0x1733   :  { %v3324_v8 = vld [vmem:[%s8970_s5 + $0x348] sm:$0xff] }
0x1734   :  { %v3328_v51 = vld [vmem:[%s8970_s5 + $0x368] sm:$0xff] }
0x1738   :  { %v5664_v4 = vpop.eup %5663 }
0x1739   :  { %v5666_v22 = vpop.eup %5665  ;;  %v2986_v50 = vadd.f32 1.0, %v5664_v4  ;;  %v3255_v4 = vld [vmem:[%s8970_s5 + $0x120] sm:$0xff] }
0x173a   :  { %v2992_v23 = vadd.f32 1.0, %v5666_v22  ;;  %v5668_v13 = vpop.eup %5667  ;;  %v5444_v22 = vpack.c.bf16 %v3255_v4, %v3251_v62  ;;  %v3323_v62 = vld [vmem:[%s8970_s5 + $0x340] sm:$0xff] }
0x173b   :  { %5671 = vrcp.f32 %v2986_v50  ;;  %v5670_v19 = vpop.eup %5669  ;;  %v2999_v18 = vadd.f32 1.0, %v5668_v13  ;;  %v3260_v50 = vld [vmem:[%s8970_s5 + $0x148] sm:$0xff]  ;;  %v3327_v4 = vld [vmem:[%s8970_s5 + $0x360] sm:$0xff] }
0x173c   :  { %5673 = vrcp.f32 %v2992_v23  ;;  %v3264_v23 = vld [vmem:[%s8970_s5 + $0x168] sm:$0xff] }
0x173d   :  { %5675 = vrcp.f32 %v2999_v18  ;;  %v5446_v13 = vpack.c.bf16 %v3264_v23, %v3260_v50  ;;  %v3272_v18 = vld [vmem:[%s8970_s5 + $0x1a8] sm:$0xff] }
0x173e   :  { %v3332_v50 = vld [vmem:[%s8970_s5 + $0x388] sm:$0xff] }
0x173f   :  { %v3336_v23 = vld [vmem:[%s8970_s5 + $0x3a8] sm:$0xff] }
0x1745   :  { %v5672_v10 = vpop.eup %5671 }
0x1746   :  { %v5674_v2 = vpop.eup %5673  ;;  %v3003_v24 = vmul.f32 %v5672_v10, %v5670_v19  ;;  %v3259_v19 = vld [vmem:[%s8970_s5 + $0x140] sm:$0xff] }
0x1747   :  { %v3002_v56 = vmul.f32 %v5674_v2, %v8276_v29  ;;  %v5676_v63 = vpop.eup %5675  ;;  %v3263_v10 = vld [vmem:[%s8970_s5 + $0x160] sm:$0xff] }
0x1748   :  { %v5448_v2 = vpack.c.bf16 %v3263_v10, %v3259_v19  ;;  %v3331_v19 = vld [vmem:[%s8970_s5 + $0x380] sm:$0xff] }
0x1749   :  { %v8485_v49 = vadd.f32 %v3003_v24, %v3002_v56  ;;  %v3268_v24 = vld [vmem:[%s8970_s5 + $0x188] sm:$0xff]  ;;  %v3335_v10 = vld [vmem:[%s8970_s5 + $0x3a0] sm:$0xff] }
0x174a   :  { %v5450_v56 = vpack.c.bf16 %v3272_v18, %v3268_v24 }
0x174b   :  { %5677 = vtanh.f32 %v8485_v49 }
0x1755   :  { %v5678_v47 = vpop.eup %5677 }
0x1756   :  { %v8488_v12 = vmul.f32 %v5678_v47, %v5676_v63  ;;  %v3267_v63 = vld [vmem:[%s8970_s5 + $0x180] sm:$0xff] }
0x1757   :  { %v3271_v47 = vld [vmem:[%s8970_s5 + $0x1a0] sm:$0xff] }
0x1758   :  { %4298 = vmatmul.mubr.f32.vlgmr.msra.gmra.mrb[22].mxu0 %v8488_v12 }
0x1759   :  { %3433 = vmatprep.mubr.f32.mxu0 %v8488_v12  ;;  %5429 = vmatpush1.bf16.msra.mxu0 %v5428_v57  ;;  %v5464_v57 = vpack.c.bf16 %v3295_v21, %v3291_v61  ;;  %v3254_v61 = vld [vmem:[%s8970_s5 + $0x118] sm:$0xff] }
0x175a   :  { %5431 = vmatprep.subr.bf16.mxu0 %v5430_v39  ;;  %v5466_v39 = vpack.c.bf16 %v3304_v36, %v3300_v59  ;;  %v3258_v21 = vld [vmem:[%s8970_s5 + $0x138] sm:$0xff]  ;;  %v3253_v36 = vld [vmem:[%s8970_s5 + $0x110] sm:$0xff] }
0x175b   :  { %v5506_v59 = vpack.c.bf16 %v3258_v21, %v3254_v61  ;;  %v3325_v61 = vld [vmem:[%s8970_s5 + $0x350] sm:$0xff] }
0x175c   :  { %v3329_v21 = vld [vmem:[%s8970_s5 + $0x370] sm:$0xff] }
0x175d   :  { %5433 = vmatpush1.bf16.msra.mxu0 %v5432_v5  ;;  %v5468_v5 = vpack.c.bf16 %v3303_v37, %v3299_v32  ;;  %v3262_v32 = vld [vmem:[%s8970_s5 + $0x158] sm:$0xff] }
0x175e   :  { %5435 = vmatprep.subr.bf16.mxu0 %v5434_v28  ;;  %v5470_v28 = vpack.c.bf16 %v3312_v38, %v3308_v54  ;;  %v3266_v37 = vld [vmem:[%s8970_s5 + $0x178] sm:$0xff]  ;;  %v3261_v38 = vld [vmem:[%s8970_s5 + $0x150] sm:$0xff] }
0x175f   :  { %v5510_v54 = vpack.c.bf16 %v3266_v37, %v3262_v32  ;;  %v3333_v32 = vld [vmem:[%s8970_s5 + $0x390] sm:$0xff] }
0x1760   :  { %v3337_v37 = vld [vmem:[%s8970_s5 + $0x3b0] sm:$0xff] }
0x1761   :  { %5437 = vmatpush1.bf16.msra.mxu0 %v5436_v55  ;;  %v5472_v55 = vpack.c.bf16 %v3311_v42, %v3307_v16  ;;  %v3270_v16 = vld [vmem:[%s8970_s5 + $0x198] sm:$0xff] }
0x1762   :  { %5439 = vmatprep.subr.bf16.mxu0 %v5438_v46  ;;  %v5474_v46 = vpack.c.bf16 %v3320_v17, %v3316_v3  ;;  %v3274_v42 = vld [vmem:[%s8970_s5 + $0x1b8] sm:$0xff]  ;;  %v3269_v17 = vld [vmem:[%s8970_s5 + $0x190] sm:$0xff] }
0x1763   :  { %v5514_v3 = vpack.c.bf16 %v3274_v42, %v3270_v16  ;;  %v3346_v42 = vld [vmem:[%s8970_s5 + $0x3f8] sm:$0xff] }
0x1765   :  { %5441 = vmatpush1.bf16.msra.mxu0 %v5440_v43  ;;  %v5476_v43 = vpack.c.bf16 %v3319_v33, %v3315_v9  ;;  %v3278_v9 = vld [vmem:[%s8970_s5 + $0x1d8] sm:$0xff] }
0x1766   :  { %5443 = vmatprep.subr.bf16.mxu0 %v5442_v58  ;;  %v5478_v58 = vpack.c.bf16 %v3328_v51, %v3324_v8  ;;  %v3282_v33 = vld [vmem:[%s8970_s5 + $0x1f8] sm:$0xff]  ;;  %v3277_v51 = vld [vmem:[%s8970_s5 + $0x1d0] sm:$0xff] }
0x1767   :  { %v5518_v8 = vpack.c.bf16 %v3282_v33, %v3278_v9  ;;  %v3345_v9 = vld [vmem:[%s8970_s5 + $0x3f0] sm:$0xff] }
0x1769   :  { %5445 = vmatpush1.bf16.msra.mxu0 %v5444_v22  ;;  %v5480_v22 = vpack.c.bf16 %v3327_v4, %v3323_v62  ;;  %v3286_v62 = vld [vmem:[%s8970_s5 + $0x218] sm:$0xff] }
0x176a   :  { %5447 = vmatprep.subr.bf16.mxu0 %v5446_v13  ;;  %v5482_v13 = vpack.c.bf16 %v3336_v23, %v3332_v50  ;;  %v3290_v4 = vld [vmem:[%s8970_s5 + $0x238] sm:$0xff]  ;;  %v3285_v23 = vld [vmem:[%s8970_s5 + $0x210] sm:$0xff] }
0x176b   :  { %v5522_v50 = vpack.c.bf16 %v3290_v4, %v3286_v62 }
0x176d   :  { %5449 = vmatpush1.bf16.msra.mxu0 %v5448_v2  ;;  %v5484_v2 = vpack.c.bf16 %v3335_v10, %v3331_v19  ;;  %v3294_v19 = vld [vmem:[%s8970_s5 + $0x258] sm:$0xff] }
0x176e   :  { %5451 = vmatprep.subr.bf16.mxu0 %v5450_v56  ;;  %v3221_v56 = vld [vmem:[%s8970_s5 + $0x10] sm:$0xff]  ;;  %v3298_v10 = vld [vmem:[%s8970_s5 + $0x278] sm:$0xff] }
0x182b   :  { %v3096_v11 = vpop.f32.mrb[22].mxu0 }
0x182c   :  { %v3097_v52 = vadd.f32 %v8318_v15, %v3096_v11  ;;  %v4299_v60 = vpop.f32.mrb[23].mxu0  ;;  %v5452_v11 = vpack.c.bf16 %v3271_v47, %v3267_v63  ;;  %v3225_v63 = vld [vmem:[%s8970_s5 + $0x30] sm:$0xff] }
0x182d   :  { %v3280_v60 = vld [vmem:[%s8970_s5 + $0x1e8] sm:$0xff] }
0x182e   :  { %3684 = vst [vmem:[%s8974_s9 + $0x30] sm:$0xff] %v3097_v52  ;;  %3102 = vmax.xlane.f32.xlu1 %v3097_v52  ;;  %5453 = vmatpush1.bf16.msra.mxu0 %v5452_v11 }
0x18bb   :  { %v3103_v29 = vpop.xlane.xlu1 %3102 }
0x18bc   :  { %vm3104_vm1 = vcmp.eq.f32.partialorder %v3097_v52, %v3103_v29  ;;  %v3276_v52 = vld [vmem:[%s8970_s5 + $0x1c8] sm:$0xff] }
0x18bd   :  { %v3105_v40 = vsel %vm3104_vm1, %v6510_v41, 128  ;;  %v5454_v29 = vpack.c.bf16 %v3280_v60, %v3276_v52  ;;  %v3230_v52 = vld [vmem:[%s8970_s5 + $0x58] sm:$0xff] }
0x18be   :  { %v3107_v45 = vshra.s32 %v3105_v40, 16  ;;  %v3106_v14 = vand.u32 65535, %v3105_v40  ;;  %v3275_v40 = vld [vmem:[%s8970_s5 + $0x1c0] sm:$0xff]  ;;  %v3234_v60 = vld [vmem:[%s8970_s5 + $0x78] sm:$0xff] }
0x18bf   :  { %5455 = vmatprep.subr.bf16.mxu0 %v5454_v29  ;;  %v5492_v29 = vpack.c.bf16 %v3225_v63, %v3221_v56  ;;  %v3297_v56 = vld [vmem:[%s8970_s5 + $0x270] sm:$0xff]  ;;  %v3302_v63 = vld [vmem:[%s8970_s5 + $0x298] sm:$0xff] }
0x18c0   :  { %v3109_v34 = vcvt.s32.f32 %v3107_v45  ;;  %v3108_v1 = vcvt.s32.f32 %v3106_v14  ;;  %v3279_v45 = vld [vmem:[%s8970_s5 + $0x1e0] sm:$0xff]  ;;  %v3284_v14 = vld [vmem:[%s8970_s5 + $0x208] sm:$0xff] }
0x18c2   :  { %3110 = vmin.xlane.f32.xlu0 %v3109_v34 }
0x194f   :  { %v8497_v6 = vpop.xlane.xlu0 %3110 }
0x1950   :  { %vm3112_vm2 = vcmp.eq.f32.partialorder %v3109_v34, %v8497_v6  ;;  %v5456_v34 = vpack.c.bf16 %v3279_v45, %v3275_v40  ;;  %v3117_v24 = vcvt.f32.s32 %v8497_v6  ;;  %v5494_v40 = vpack.c.bf16 %v3234_v60, %v3230_v52  ;;  %v3229_v45 = vld [vmem:[%s8970_s5 + $0x50] sm:$0xff] }
0x1951   :  { %v3113_v15 = vsel %vm3112_vm2, %v3108_v1, inf  ;;  %v3288_v1 = vld [vmem:[%s8970_s5 + $0x228] sm:$0xff]  ;;  %v3301_v60 = vld [vmem:[%s8970_s5 + $0x290] sm:$0xff] }
0x1952   :  { %3114 = vmin.xlane.f32.xlu1 %v3113_v15  ;;  %v5458_v15 = vpack.c.bf16 %v3288_v1, %v3284_v14  ;;  %5457 = vmatpush1.bf16.msra.mxu0 %v5456_v34  ;;  %v3118_v47 = vshll.u32 %v3117_v24, 16  ;;  %v3233_v34 = vld [vmem:[%s8970_s5 + $0x70] sm:$0xff]  ;;  %v3238_v14 = vld [vmem:[%s8970_s5 + $0x98] sm:$0xff]  ;;  %v5526_v24 = vpack.c.bf16 %v3298_v10, %v3294_v19  ;;  %v3535_v19 = vld [vmem:[%s8972_s7] sm:$0xff] }
0x1953   :  { %v3242_v1 = vld [vmem:[%s8970_s5 + $0xb8] sm:$0xff]  ;;  %v3536_v10 = vld [vmem:[%s8972_s7 + $0x8] sm:$0xff] }
0x1954   :  { %5459 = vmatprep.subr.bf16.mxu0 %v5458_v15  ;;  %v5496_v15 = vpack.c.bf16 %v3233_v34, %v3229_v45  ;;  %v5498_v20 = vpack.c.bf16 %v3242_v1, %v3238_v14  ;;  %v3309_v14 = vld [vmem:[%s8970_s5 + $0x2d0] sm:$0xff] }
0x1955   :  { %v3313_v1 = vld [vmem:[%s8970_s5 + $0x2f0] sm:$0xff] }
0x1956   :  { %5461 = vmatpush1.bf16.msra.mxu0 %v5460_v48  ;;  %v3246_v48 = vld [vmem:[%s8970_s5 + $0xd8] sm:$0xff] }
0x1957   :  { %5463 = vmatprep.subr.bf16.mxu0 %v5462_v44  ;;  %v3249_v44 = vld [vmem:[%s8970_s5 + $0xf0] sm:$0xff] }
0x195a   :  { %5465 = vmatpush1.bf16.msra.mxu0 %v5464_v57  ;;  %v5504_v57 = vpack.c.bf16 %v3249_v44, %v3245_v35 }
0x195b   :  { %5467 = vmatprep.subr.bf16.mxu0 %v5466_v39  ;;  %v3257_v39 = vld [vmem:[%s8970_s5 + $0x130] sm:$0xff] }
0x195e   :  { %5469 = vmatpush1.bf16.msra.mxu0 %v5468_v5  ;;  %v5508_v5 = vpack.c.bf16 %v3257_v39, %v3253_v36  ;;  %v5544_v36 = vpack.c.bf16 %v3329_v21, %v3325_v61 }
0x195f   :  { %5471 = vmatprep.subr.bf16.mxu0 %v5470_v28  ;;  %v3265_v28 = vld [vmem:[%s8970_s5 + $0x170] sm:$0xff] }
0x1962   :  { %5473 = vmatpush1.bf16.msra.mxu0 %v5472_v55  ;;  %v5512_v55 = vpack.c.bf16 %v3265_v28, %v3261_v38  ;;  %v3344_v38 = vld [vmem:[%s8970_s5 + $0x3e8] sm:$0xff]  ;;  %v3342_v28 = vld [vmem:[%s8970_s5 + $0x3d8] sm:$0xff] }
0x1963   :  { %5475 = vmatprep.subr.bf16.mxu0 %v5474_v46  ;;  %v3273_v46 = vld [vmem:[%s8970_s5 + $0x1b0] sm:$0xff] }
0x1966   :  { %5477 = vmatpush1.bf16.msra.mxu0 %v5476_v43  ;;  %v5516_v43 = vpack.c.bf16 %v3273_v46, %v3269_v17  ;;  %v3343_v17 = vld [vmem:[%s8970_s5 + $0x3e0] sm:$0xff]  ;;  %v3341_v46 = vld [vmem:[%s8970_s5 + $0x3d0] sm:$0xff] }
0x1967   :  { %5479 = vmatprep.subr.bf16.mxu0 %v5478_v58  ;;  %v3281_v58 = vld [vmem:[%s8970_s5 + $0x1f0] sm:$0xff] }
0x196a   :  { %5481 = vmatpush1.bf16.msra.mxu0 %v5480_v22  ;;  %v5520_v22 = vpack.c.bf16 %v3281_v58, %v3277_v51  ;;  %v3213_v51 = vstv %s3210_s12  ;;  %v3216_v58 = vstv %s3215_s13 }
0x196b   :  { %5483 = vmatprep.subr.bf16.mxu0 %v5482_v13  ;;  %v3289_v13 = vld [vmem:[%s8970_s5 + $0x230] sm:$0xff] }
0x196e   :  { %5485 = vmatpush1.bf16.msra.mxu0 %v5484_v2  ;;  %v5524_v2 = vpack.c.bf16 %v3289_v13, %v3285_v23  ;;  %v5697_v13 = vld [vmem:[%s8974_s9] sm:$0xff] }
0x19df   :  { %v3115_v18 = vpop.xlane.xlu1 %3114 }
0x19e0   :  { %v3116_v11 = vcvt.f32.s32 %v3115_v18  ;;  %v3293_v18 = vld [vmem:[%s8970_s5 + $0x250] sm:$0xff] }
0x19e2   :  { %v3119_v6 = vadd.s32 %v3118_v47, %v3116_v11  ;;  %v3306_v47 = vld [vmem:[%s8970_s5 + $0x2b8] sm:$0xff]  ;;  %v5528_v11 = vpack.c.bf16 %v3297_v56, %v3293_v18 }
0x19e3   :  { %v5530_v52 = vpack.c.bf16 %v3306_v47, %v3302_v63  ;;  %v3538_v18 = vld [vmem:[%s8972_s7 + $0x18] sm:$0xff]  ;;  %v3539_v63 = vld [vmem:[%s8972_s7 + $0x20] sm:$0xff]  ;;  %v3540_v47 = vld [vmem:[%s8972_s7 + $0x28] sm:$0xff] }
0x19e4   :  { %vm3120_vm3 = vcmp.eq.s32.totalorder %v6510_v41, %v3119_v6  ;;  %v3237_v41 = vld [vmem:[%s8970_s5 + $0x90] sm:$0xff] }
0x19e5   :  { %4333 = vmatmul.mubr.msk.f32.vlgmr.msra.gmra.mrb[22].mxu1 %vm3120_vm3, %v9177_v26  ;;  %v3250_v26 = vld [vmem:[%s8970_s5 + $0xf8] sm:$0xff]  ;;  %v3305_v6 = vld [vmem:[%s8970_s5 + $0x2b0] sm:$0xff] }
0x19e6   :  { %3504 = vmatprep.mubr.f32.mxu1 %v8488_v12  ;;  %5493 = vmatpush1.bf16.msra.mxu1 %v5492_v29  ;;  %v5500_v12 = vpack.c.bf16 %v3241_v25, %v3237_v41  ;;  %v5502_v27 = vpack.c.bf16 %v3250_v26, %v3246_v48  ;;  %v3310_v29 = vld [vmem:[%s8970_s5 + $0x2d8] sm:$0xff]  ;;  %v5532_v45 = vpack.c.bf16 %v3305_v6, %v3301_v60  ;;  %v3317_v48 = vld [vmem:[%s8970_s5 + $0x310] sm:$0xff] }
0x19e7   :  { %5495 = vmatprep.subr.bf16.mxu1 %v5494_v40  ;;  %v3314_v40 = vld [vmem:[%s8970_s5 + $0x2f8] sm:$0xff]  ;;  %v5536_v41 = vpack.c.bf16 %v3313_v1, %v3309_v14  ;;  %v3321_v26 = vld [vmem:[%s8970_s5 + $0x330] sm:$0xff]  ;;  %v3547_v1 = vld [vmem:[%s8972_s7 + $0x60] sm:$0xff] }
0x19e8   :  { %v5534_v34 = vpack.c.bf16 %v3314_v40, %v3310_v29  ;;  %v5540_v35 = vpack.c.bf16 %v3321_v26, %v3317_v48  ;;  %v3542_v60 = vld [vmem:[%s8972_s7 + $0x38] sm:$0xff]  ;;  %v3543_v29 = vld [vmem:[%s8972_s7 + $0x40] sm:$0xff]  ;;  %v3544_v40 = vld [vmem:[%s8972_s7 + $0x48] sm:$0xff] }
0x19e9   :  { %v3546_v14 = vld [vmem:[%s8972_s7 + $0x58] sm:$0xff] }
0x19ea   :  { %5497 = vmatpush1.bf16.msra.mxu1 %v5496_v15  ;;  %v3318_v15 = vld [vmem:[%s8970_s5 + $0x318] sm:$0xff] }
0x19eb   :  { %5499 = vmatprep.subr.bf16.mxu1 %v5498_v20  ;;  %v3322_v20 = vld [vmem:[%s8970_s5 + $0x338] sm:$0xff] }
0x19ec   :  { %v5538_v25 = vpack.c.bf16 %v3322_v20, %v3318_v15  ;;  %v3548_v20 = vld [vmem:[%s8972_s7 + $0x68] sm:$0xff]  ;;  %v3550_v48 = vld [vmem:[%s8972_s7 + $0x78] sm:$0xff] }
0x19ee   :  { %5501 = vmatpush1.bf16.msra.mxu1 %v5500_v12  ;;  %v3326_v12 = vld [vmem:[%s8970_s5 + $0x358] sm:$0xff] }
0x19ef   :  { %5503 = vmatprep.subr.bf16.mxu1 %v5502_v27  ;;  %v3330_v27 = vld [vmem:[%s8970_s5 + $0x378] sm:$0xff] }
0x19f0   :  { %v5542_v44 = vpack.c.bf16 %v3330_v27, %v3326_v12  ;;  %v3347_v12 = vld [vmem:[%s8971_s6] sm:$0xf] }
0x19f1   :  { %v3352_v27 = vrot.slane %v3347_v12, %v9278_v30 }
0x19f2   :  { %5505 = vmatpush1.bf16.msra.mxu1 %v5504_v57  ;;  %v3334_v57 = vld [vmem:[%s8970_s5 + $0x398] sm:$0xff] }
0x19f3   :  { %5507 = vmatprep.subr.bf16.mxu1 %v5506_v59  ;;  %v3338_v59 = vld [vmem:[%s8970_s5 + $0x3b8] sm:$0xff] }
0x19f4   :  { %v5546_v39 = vpack.c.bf16 %v3338_v59, %v3334_v57 }
0x19f6   :  { %5509 = vmatpush1.bf16.msra.mxu1 %v5508_v5  ;;  %v5548_v5 = vpack.c.bf16 %v3337_v37, %v3333_v32  ;;  %v3364_v37 = vrot.slane %v3347_v12, %v6452_v0 }
0x19f7   :  { %5511 = vmatprep.subr.bf16.mxu1 %v5510_v54  ;;  %v3340_v54 = vld [vmem:[%s8970_s5 + $0x3c8] sm:$0xff] }
0x19f8   :  { %v5486_v16 = vpack.c.bf16 %v3344_v38, %v3340_v54 }
0x19fa   :  { %5513 = vmatpush1.bf16.msra.mxu1 %v5512_v55  ;;  %v3339_v55 = vld [vmem:[%s8970_s5 + $0x3c0] sm:$0xff]  ;;  %5487 = vmatprep.subr.bf16.mxu0 %v5486_v16 }
0x19fb   :  { %5515 = vmatprep.subr.bf16.mxu1 %v5514_v3  ;;  %v5550_v3 = vpack.c.bf16 %v3346_v42, %v3342_v28  ;;  %v5488_v33 = vpack.c.bf16 %v3343_v17, %v3339_v55 }
0x19fd   :  { %5489 = vmatpush1.bf16.msra.mxu0 %v5488_v33 }
0x19fe   :  { %5517 = vmatpush1.bf16.msra.mxu1 %v5516_v43  ;;  %v5552_v43 = vpack.c.bf16 %v3345_v9, %v3341_v46  ;;  %5554 = vmatprep.subr.bf16.mxu0 %v9113_v7 }
0x19ff   :  { %5519 = vmatprep.subr.bf16.mxu1 %v5518_v8  ;;  %v3688_v8 = vld [vmem:[%s8968_s3 + $0x30] sm:$0xff] }
0x1a00   :  { %v3214_v62 = vmul.f32 %v3688_v8, %v3213_v51  ;;  %v3692_v51 = vld [vmem:[%s8973_s8] ss:$0 sm:$0xff] }
0x1a02   :  { %5521 = vmatpush1.bf16.msra.mxu1 %v5520_v22 }
0x1a03   :  { %5523 = vmatprep.subr.bf16.mxu1 %v5522_v50 }
0x1a06   :  { %5525 = vmatpush1.bf16.msra.mxu1 %v5524_v2  ;;  %v5555_v2 = vpack.c.bf16 %v3536_v10, %v3535_v19 }
0x1a07   :  { %5527 = vmatprep.subr.bf16.mxu1 %v5526_v24  ;;  %v3537_v24 = vld [vmem:[%s8972_s7 + $0x10] sm:$0xff] }
0x1a08   :  { %v5558_v56 = vpack.c.bf16 %v3538_v18, %v3537_v24 }
0x1a0a   :  { %5529 = vmatpush1.bf16.msra.mxu1 %v5528_v11  ;;  %v5561_v11 = vpack.c.bf16 %v3540_v47, %v3539_v63 }
0x1a0b   :  { %5531 = vmatprep.subr.bf16.mxu1 %v5530_v52  ;;  %v3541_v52 = vld [vmem:[%s8972_s7 + $0x30] sm:$0xff] }
0x1a0c   :  { %v5564_v6 = vpack.c.bf16 %v3542_v60, %v3541_v52 }
0x1a0e   :  { %5533 = vmatpush1.bf16.msra.mxu1 %v5532_v45  ;;  %v5567_v45 = vpack.c.bf16 %v3544_v40, %v3543_v29 }
0x1a0f   :  { %5535 = vmatprep.subr.bf16.mxu1 %v5534_v34  ;;  %v3545_v34 = vld [vmem:[%s8972_s7 + $0x50] sm:$0xff] }
0x1a10   :  { %v5570_v15 = vpack.c.bf16 %v3546_v14, %v3545_v34 }
0x1a12   :  { %5537 = vmatpush1.bf16.msra.mxu1 %v5536_v41  ;;  %v5573_v41 = vpack.c.bf16 %v3548_v20, %v3547_v1 }
0x1a13   :  { %5539 = vmatprep.subr.bf16.mxu1 %v5538_v25  ;;  %v3549_v25 = vld [vmem:[%s8972_s7 + $0x70] sm:$0xff] }
0x1a14   :  { %v5576_v26 = vpack.c.bf16 %v3550_v48, %v3549_v25 }
0x1a16   :  { %5541 = vmatpush1.bf16.msra.mxu1 %v5540_v35  ;;  %v3356_v35 = vrot.slane %v3347_v12, %v9279_v53 }
0x1a17   :  { %5543 = vmatprep.subr.bf16.mxu1 %v5542_v44 }
0x1a1a   :  { %5545 = vmatpush1.bf16.msra.mxu1 %v5544_v36 }
0x1a1b   :  { %5547 = vmatprep.subr.bf16.mxu1 %v5546_v39 }
0x1a1e   :  { %5549 = vmatpush1.bf16.msra.mxu1 %v5548_v5  ;;  %v3360_v5 = vrot.slane %v3347_v12, %v6455_v31 }
0x1a1f   :  { %5551 = vmatprep.subr.bf16.mxu1 %v5550_v3 }
0x1a22   :  { %5553 = vmatpush1.bf16.msra.mxu1 %v5552_v43 }
0x1ab8   :  { %v3205_v4 = vpop.f32.mrb[22].mxu1 }
0x1ab9   :  { %v3217_v22 = vmul.f32 %v3216_v58, %v3205_v4  ;;  %v4334_v50 = vpop.f32.mrb[23].mxu1 }
0x1abb   :  { %v3218_v23 = vadd.f32 %v3217_v22, %v3214_v62 }
0x1abd   :  { %3434 = vmatmul.mubr.f32.vlgmr.msra.gmra.mrb[24].mxu0 %v3218_v23  ;;  %3505 = vmatmul.mubr.f32.vlgmr.msra.gmra.mrb[24].mxu1 %v3218_v23 }
0x1abe   :  { %4367 = vmatprep.mubr.msk.f32.mxu0 %vm5715_vm0, %v5697_v13  ;;  %5556 = vmatpush3.bf16.msra.mxu0 %v5555_v2 }
0x1abf   :  { %5557 = vmatprep.subr.bf16.mxu0 %v9113_v7 }
0x1ac2   :  { %5559 = vmatpush3.bf16.msra.mxu0 %v5558_v56 }
0x1ac3   :  { %5560 = vmatprep.subr.bf16.mxu0 %v9113_v7 }
0x1ac6   :  { %5562 = vmatpush3.bf16.msra.mxu0 %v5561_v11 }
0x1ac7   :  { %5563 = vmatprep.subr.bf16.mxu0 %v9113_v7 }
0x1aca   :  { %5565 = vmatpush3.bf16.msra.mxu0 %v5564_v6 }
0x1acb   :  { %5566 = vmatprep.subr.bf16.mxu0 %v9113_v7 }
0x1ace   :  { %5568 = vmatpush3.bf16.msra.mxu0 %v5567_v45 }
0x1acf   :  { %5569 = vmatprep.subr.bf16.mxu0 %v9113_v7 }
0x1ad2   :  { %5571 = vmatpush3.bf16.msra.mxu0 %v5570_v15 }
0x1ad3   :  { %5572 = vmatprep.subr.bf16.mxu0 %v9113_v7 }
0x1ad6   :  { %5574 = vmatpush3.bf16.msra.mxu0 %v5573_v41 }
0x1ad7   :  { %5575 = vmatprep.subr.bf16.mxu0 %v9113_v7 }
0x1ada   :  { %5577 = vmatpush3.bf16.msra.mxu0 %v5576_v26 }
0x1b90   :  { %v3435_v44 = vpop.f32.mrb[24].mxu0  ;;  %v3506_v61 = vpop.f32.mrb[24].mxu1 }
0x1b91   :  { %v3436_v21 = vadd.f32 %v3435_v44, %v3352_v27  ;;  %v3437_v57 = vpop.f32.mrb[25].mxu0  ;;  %v3508_v59 = vpop.f32.mrb[25].mxu1  ;;  %v3507_v38 = vadd.f32 %v3506_v61, %v3360_v5 }
0x1b92   :  { %v3438_v36 = vadd.f32 %v3437_v57, %v3356_v35  ;;  %v3509_v7 = vadd.f32 %v3508_v59, %v3364_v37 }
0x1b93   :  { %v3689_v39 = vmul.f32 -1.442695, %v3436_v21 }
0x1b94   :  { %v3690_v32 = vmul.f32 -1.442695, %v3438_v36  ;;  %v3691_v54 = vmul.f32 -1.442695, %v3509_v7 }
0x1b95   :  { %5679 = vpow2.f32 %v3689_v39 }
0x1b96   :  { %5681 = vpow2.f32 %v3690_v32 }
0x1b97   :  { %5683 = vpow2.f32 %v3691_v54 }
0x1b98   :  { %5685 = vtanh.f32 %v3507_v38 }
0x1b9f   :  { %v5680_v30 = vpop.eup %5679 }
0x1ba0   :  { %v5682_v28 = vpop.eup %5681  ;;  %v3514_v53 = vadd.f32 1.0, %v5680_v30 }
0x1ba1   :  { %v3520_v16 = vadd.f32 1.0, %v5682_v28  ;;  %v5684_v42 = vpop.eup %5683 }
0x1ba2   :  { %5687 = vrcp.f32 %v3514_v53  ;;  %v5686_v55 = vpop.eup %5685  ;;  %v3527_v46 = vadd.f32 1.0, %v5684_v42 }
0x1ba3   :  { %5689 = vrcp.f32 %v3520_v16 }
0x1ba4   :  { %5691 = vrcp.f32 %v3527_v46 }
0x1bac   :  { %v5688_v3 = vpop.eup %5687 }
0x1bad   :  { %v5690_v17 = vpop.eup %5689  ;;  %v3531_v0 = vmul.f32 %v5688_v3, %v5686_v55 }
0x1bae   :  { %v3530_v9 = vmul.f32 %v5690_v17, %v8485_v49  ;;  %v5692_v31 = vpop.eup %5691 }
0x1bb0   :  { %v3532_v33 = vadd.f32 %v3531_v0, %v3530_v9 }
0x1bb2   :  { %5693 = vtanh.f32 %v3532_v33 }
0x1bbc   :  { %v5694_v43 = vpop.eup %5693 }
0x1bbd   :  { %v3534_v8 = vmul.f32 %v5694_v43, %v5692_v31 }
0x1bbf   :  { %4368 = vmatmul.mubr.f32.vlgmr.msra.gmra.mrb[26].mxu0 %v3534_v8 }
0x1c92   :  { %v3624_v58 = vpop.f32.mrb[26].mxu0 }
0x1c93   :  { %v3625_v62 = vadd.f32 %v3692_v51, %v3624_v58  ;;  %v4369_v4 = vpop.f32.mrb[27].mxu0 }
0x1c95   :  { %3693 = vst [vmem:[%s8974_s9 + $0x38] sm:$0xff] %v3625_v62 }
0x1c96   :  { %3634 = vsyncpa [#allocation3], 1 }

</bundles_post_ra>
